<compile_context>
chip_gen: v5e
topology: v5e:2x2
jax: 0.10.0
libtpu: 0.0.40
codegen_flags: <defaults>
</compile_context>

<pallas_src>
import numpy as np
import jax
import jax.numpy as jnp
from jax.experimental import pallas as pl
from jax.experimental.pallas import tpu as pltpu  # noqa: F401  (kept for parity)

nc = 1
ndf = 4
Path_length = 8
B = 2            # batch size (static)
IMG = 64         # input spatial size

# index 0 is conv6's kernel, index 5 is conv1's kernel (as in the PyTorch code)
kernels = [2, 4, 4, 4, 4, 4]
strides = [1, 2, 2, 2, 2, 2]
pads = [0, 1, 1, 1, 1, 1]

LRELU_SLOPE = 0.2
BN_EPS = 1e-5

CHANNELS = [nc, ndf, ndf * 2, ndf * 4, ndf * 8, ndf * 16, Path_length]


def _geometry():
    geos = []
    h = IMG
    for i in range(6):
        k, s, p = kernels[5 - i], strides[5 - i], pads[5 - i]
        hout = (h + 2 * p - k) // s + 1
        geos.append(dict(cin=CHANNELS[i], cout=CHANNELS[i + 1],
                         hin=h, k=k, s=s, p=p, hout=hout))
        h = hout
    return tuple(geos)


GEOM = _geometry()                       # conv1 .. conv6
HAS_BN = tuple(1 <= i <= 4 for i in range(6))   # conv2..conv5 have BatchNorm2d


# --------------------------- host-side constants -----------------------------

def _make_swj(g, j):
    """Width-tap selector (B*Win, B*Wout): column (b,w2) picks row (b, s*w2+j-p).
       Out-of-range taps leave the column all-zero -> implements zero padding."""
    s, p = g["s"], g["p"]
    win, wout = g["hin"], g["hout"]          # spatial is square
    m = np.zeros((B * win, B * wout), np.float32)
    for b in range(B):
        for w2 in range(wout):
            w = s * w2 + j - p
            if 0 <= w < win:
                m[b * win + w, b * wout + w2] = 1.0
    return m


def _make_vj(g, w_np, j):
    """Height-expanded weights for width tap j:
       V_j[(h2,co), (h,c)] = W[co, c, h - s*h2 + p, j]  (0 outside the kernel
       window -> implements height zero padding)."""
    k, s, p = g["k"], g["s"], g["p"]
    hin, hout = g["hin"], g["hout"]
    cin, cout = g["cin"], g["cout"]
    v = np.zeros((hout, cout, hin, cin), np.float32)
    for h2 in range(hout):
        for i in range(k):
            h = s * h2 + i - p
            if 0 <= h < hin:
                v[h2, :, h, :] = w_np[:, :, i, j]
    return v.reshape(hout * cout, hin * cin)


def _make_cs(g):
    """0/1 channel selectors for BatchNorm:
       CS  (Cout, Hout*Cout): sums a channel across its h2 row-groups.
       CSE (Hout*Cout, Cout): broadcasts per-channel scalars back to rows."""
    hout, cout = g["hout"], g["cout"]
    cs = np.zeros((cout, hout * cout), np.float32)
    idx = np.arange(cout)
    for h2 in range(hout):
        cs[idx, h2 * cout + idx] = 1.0
    return cs, np.ascontiguousarray(cs.T)


# ----------------------------- in-kernel helpers -----------------------------

def _lrelu(y):
    return jnp.where(y >= 0.0, y, LRELU_SLOPE * y)


def _conv_layer(a, v_ref, sw_ref, g):
    """One conv layer as pure MXU work.  `a` is (Hin*Cin, B*Win) with rows
       ordered (h, c) and lanes ordered (b, w)."""
    k = g["k"]
    # width taps (+ width padding): k small 0/1-selector matmuls
    t = jnp.concatenate(
        [jnp.dot(a, sw_ref[j], preferred_element_type=jnp.float32)
         for j in range(k)],
        axis=0)                                            # (k*Hin*Cin, B*Wout)
    # height taps (+ height padding) folded into the pre-expanded weights
    return jnp.dot(v_ref[...], t,
                   preferred_element_type=jnp.float32)     # (Hout*Cout, B*Wout)


def _bn_lrelu(y, g_ref, b_ref, cs_ref, cse_ref, g):
    """Training-mode BatchNorm2d (biased batch stats) + LeakyReLU(0.2).
       y is (Hout*Cout, B*Wout); channel reductions / broadcasts go through
       constant 0/1 selector matmuls so everything stays on MXU + lane sums."""
    n = float(g["hout"] * g["hout"] * B)      # elems per channel = Hout*Wout*B
    cs = cs_ref[...]
    s1 = jnp.sum(jnp.dot(cs, y, preferred_element_type=jnp.float32),
                 axis=1, keepdims=True)                       # (Cout, 1)
    s2 = jnp.sum(jnp.dot(cs, y * y, preferred_element_type=jnp.float32),
                 axis=1, keepdims=True)                       # (Cout, 1)
    mean = s1 * (1.0 / n)
    var = s2 * (1.0 / n) - mean * mean                        # biased (train mode)
    inv = jax.lax.rsqrt(var + BN_EPS)
    scale = g_ref[...] * inv                                  # (Cout, 1)
    shift = b_ref[...] - mean * scale                         # (Cout, 1)
    rs = jnp.dot(cse_ref[...], scale, preferred_element_type=jnp.float32)
    rh = jnp.dot(cse_ref[...], shift, preferred_element_type=jnp.float32)
    return _lrelu(y * rs + rh)


# ------------------------------- fused kernel --------------------------------

def _netd_kernel(*refs):
    # refs = [x, (v, sw[, gamma, beta, cs, cse]) x 6 layers, out]
    pos = 0
    a = refs[pos][...]          # (IMG, B*IMG): rows = h, lanes = (b, w)
    pos += 1
    for idx, g in enumerate(GEOM):
        v_ref, sw_ref = refs[pos], refs[pos + 1]
        pos += 2
        y = _conv_layer(a, v_ref, sw_ref, g)
        if HAS_BN[idx]:                              # conv2..conv5: BN + LeakyReLU
            g_ref, b_ref, cs_ref, cse_ref = refs[pos:pos + 4]
            pos += 4
            a = _bn_lrelu(y, g_ref, b_ref, cs_ref, cse_ref, g)
        elif idx == 0:                               # conv1: LeakyReLU only
            a = _lrelu(y)
        else:                                        # conv6: Sigmoid -> output
            refs[-1][...] = jax.nn.sigmoid(y)        # (Path_length, B)


# ------------------------------- host wrappers --------------------------------

def _full_spec(shape):
    nd = len(shape)
    return pl.BlockSpec(shape, lambda nd=nd: (0,) * nd)


def init_params(key):
    """DCGAN-style init: conv ~ N(0, 0.02); BN gamma=1, beta=0."""
    params = []
    for idx, g in enumerate(GEOM):
        key, sub = jax.random.split(key)
        layer = {"w": 0.02 * jax.random.normal(
            sub, (g["cout"], g["cin"], g["k"], g["k"]), jnp.float32)}
        if HAS_BN[idx]:
            layer["gamma"] = jnp.ones((g["cout"], 1), jnp.float32)
            layer["beta"] = jnp.zeros((g["cout"], 1), jnp.float32)
        params.append(layer)
    return params


def prepare_operands(params):
    """One-time host prep: expanded conv weights + constant 0/1 selectors."""
    ops = []
    for idx, g in enumerate(GEOM):
        w_np = np.asarray(params[idx]["w"])
        vcat = np.concatenate([_make_vj(g, w_np, j) for j in range(g["k"])],
                              axis=1)                       # (Hout*Cout, k*Hin*Cin)
        sw = np.stack([_make_swj(g, j) for j in range(g["k"])], axis=0)
        ops += [jnp.asarray(vcat), jnp.asarray(sw)]
        if HAS_BN[idx]:
            cs, cse = _make_cs(g)
            ops += [params[idx]["gamma"], params[idx]["beta"],
                    jnp.asarray(cs), jnp.asarray(cse)]
    return ops


@jax.jit
def netD_forward(operands, x):
    # NCHW (B, 1, IMG, IMG) -> (h, b*w) layout used by the fused kernel.
    a1 = jnp.transpose(x[:, 0], (1, 0, 2)).reshape(IMG, B * IMG)
    args = [a1] + list(operands)
    out = pl.pallas_call(
        _netd_kernel,
        out_shape=jax.ShapeDtypeStruct((Path_length, B), jnp.float32),
        in_specs=[_full_spec(a.shape) for a in args],
        out_specs=_full_spec((Path_length, B)),
    )(*args)
    # (Path_length, B) -> NCHW (B, Path_length, 1, 1)
    return out.T.reshape(B, Path_length, 1, 1)


# Pure-JAX reference of the PyTorch forward (for a sanity check only).
def _reference_forward(params, x):
    a = x
    for idx, g in enumerate(GEOM):
        a = jax.lax.conv_general_dilated(
            a, params[idx]["w"], window_strides=(g["s"], g["s"]),
            padding=[(g["p"], g["p"]), (g["p"], g["p"])],
            dimension_numbers=("NCHW", "OIHW", "NCHW"))
        if HAS_BN[idx]:
            mean = jnp.mean(a, axis=(0, 2, 3), keepdims=True)
            var = jnp.mean(a * a, axis=(0, 2, 3), keepdims=True) - mean * mean
            gamma = params[idx]["gamma"].reshape(1, -1, 1, 1)
            beta = params[idx]["beta"].reshape(1, -1, 1, 1)
            a = (a - mean) * jax.lax.rsqrt(var + BN_EPS) * gamma + beta
            a = jnp.where(a >= 0.0, a, LRELU_SLOPE * a)
        elif idx == 0:
            a = jnp.where(a >= 0.0, a, LRELU_SLOPE * a)
        else:
            a = jax.nn.sigmoid(a)
    return a


if __name__ == "__main__":
    key = jax.random.PRNGKey(0)
    kp, kx = jax.random.split(key)
    params = init_params(kp)
    operands = prepare_operands(params)
    x = jax.random.normal(kx, (B, nc, IMG, IMG), jnp.float32)   # NCHW

    out = jax.block_until_ready(netD_forward(operands, x))

    assert out.shape == (B, Path_length, 1, 1), out.shape
    assert bool(jnp.all(jnp.isfinite(out)))
    assert bool(jnp.all((out >= 0.0) & (out <= 1.0)))           # sigmoid range
    # Loose-tolerance sanity check vs. a plain-JAX reference (loose because the
    # TPU default matmul/conv precision differs between the two paths).
    ref = jax.block_until_ready(_reference_forward(params, x))
    assert bool(jnp.allclose(out, ref, atol=1e-2, rtol=1e-2))
    print("KERNEL_OK")
</pallas_src>

<mosaic_0001>
module attributes {stable_mosaic.version = 11 : i64} {
  func.func @_netd_kernel(%arg0: memref<64x128xf32, #tpu.memory_space<vmem>>, %arg1: memref<128x256xf32, #tpu.memory_space<vmem>>, %arg2: memref<4x128x64xf32, #tpu.memory_space<vmem>>, %arg3: memref<128x512xf32, #tpu.memory_space<vmem>>, %arg4: memref<4x64x32xf32, #tpu.memory_space<vmem>>, %arg5: memref<8x1xf32, #tpu.memory_space<vmem>>, %arg6: memref<8x1xf32, #tpu.memory_space<vmem>>, %arg7: memref<8x128xf32, #tpu.memory_space<vmem>>, %arg8: memref<128x8xf32, #tpu.memory_space<vmem>>, %arg9: memref<128x512xf32, #tpu.memory_space<vmem>>, %arg10: memref<4x32x16xf32, #tpu.memory_space<vmem>>, %arg11: memref<16x1xf32, #tpu.memory_space<vmem>>, %arg12: memref<16x1xf32, #tpu.memory_space<vmem>>, %arg13: memref<16x128xf32, #tpu.memory_space<vmem>>, %arg14: memref<128x16xf32, #tpu.memory_space<vmem>>, %arg15: memref<128x512xf32, #tpu.memory_space<vmem>>, %arg16: memref<4x16x8xf32, #tpu.memory_space<vmem>>, %arg17: memref<32x1xf32, #tpu.memory_space<vmem>>, %arg18: memref<32x1xf32, #tpu.memory_space<vmem>>, %arg19: memref<32x128xf32, #tpu.memory_space<vmem>>, %arg20: memref<128x32xf32, #tpu.memory_space<vmem>>, %arg21: memref<128x512xf32, #tpu.memory_space<vmem>>, %arg22: memref<4x8x4xf32, #tpu.memory_space<vmem>>, %arg23: memref<64x1xf32, #tpu.memory_space<vmem>>, %arg24: memref<64x1xf32, #tpu.memory_space<vmem>>, %arg25: memref<64x128xf32, #tpu.memory_space<vmem>>, %arg26: memref<128x64xf32, #tpu.memory_space<vmem>>, %arg27: memref<8x256xf32, #tpu.memory_space<vmem>>, %arg28: memref<2x4x2xf32, #tpu.memory_space<vmem>>, %arg29: memref<8x2xf32, #tpu.memory_space<vmem>>) attributes {dimension_semantics = [], scalar_prefetch = 0 : i64, scratch_operands = 0 : i64, tpu.core_type = #tpu.core_type<tc>} {
    %c0 = arith.constant 0 : index
    %c0_0 = arith.constant 0 : index
    %0 = vector.load %arg0[%c0, %c0_0] : memref<64x128xf32, #tpu.memory_space<vmem>>, vector<64x128xf32>
    %c0_1 = arith.constant 0 : index
    %c0_2 = arith.constant 0 : index
    %c0_3 = arith.constant 0 : index
    %1 = vector.load %arg2[%c0_1, %c0_2, %c0_3] : memref<4x128x64xf32, #tpu.memory_space<vmem>>, vector<1x128x64xf32>
    %2 = vector.shape_cast %1 : vector<1x128x64xf32> to vector<128x64xf32>
    %cst = arith.constant dense<0.000000e+00> : vector<64x64xf32>
    %3 = tpu.matmul %0, %2, %cst {dimension_numbers = #tpu.dot_dimension_numbers<[1], [0], [0], [1], [0, 0, 1, 1], [], []>} : vector<64x128xf32>, vector<128x64xf32>, vector<64x64xf32> -> vector<64x64xf32>
    %c1 = arith.constant 1 : index
    %c0_4 = arith.constant 0 : index
    %c0_5 = arith.constant 0 : index
    %4 = vector.load %arg2[%c1, %c0_4, %c0_5] : memref<4x128x64xf32, #tpu.memory_space<vmem>>, vector<1x128x64xf32>
    %5 = vector.shape_cast %4 : vector<1x128x64xf32> to vector<128x64xf32>
    %cst_6 = arith.constant dense<0.000000e+00> : vector<64x64xf32>
    %6 = tpu.matmul %0, %5, %cst_6 {dimension_numbers = #tpu.dot_dimension_numbers<[1], [0], [0], [1], [0, 0, 1, 1], [], []>} : vector<64x128xf32>, vector<128x64xf32>, vector<64x64xf32> -> vector<64x64xf32>
    %c2 = arith.constant 2 : index
    %c0_7 = arith.constant 0 : index
    %c0_8 = arith.constant 0 : index
    %7 = vector.load %arg2[%c2, %c0_7, %c0_8] : memref<4x128x64xf32, #tpu.memory_space<vmem>>, vector<1x128x64xf32>
    %8 = vector.shape_cast %7 : vector<1x128x64xf32> to vector<128x64xf32>
    %cst_9 = arith.constant dense<0.000000e+00> : vector<64x64xf32>
    %9 = tpu.matmul %0, %8, %cst_9 {dimension_numbers = #tpu.dot_dimension_numbers<[1], [0], [0], [1], [0, 0, 1, 1], [], []>} : vector<64x128xf32>, vector<128x64xf32>, vector<64x64xf32> -> vector<64x64xf32>
    %c3 = arith.constant 3 : index
    %c0_10 = arith.constant 0 : index
    %c0_11 = arith.constant 0 : index
    %10 = vector.load %arg2[%c3, %c0_10, %c0_11] : memref<4x128x64xf32, #tpu.memory_space<vmem>>, vector<1x128x64xf32>
    %11 = vector.shape_cast %10 : vector<1x128x64xf32> to vector<128x64xf32>
    %cst_12 = arith.constant dense<0.000000e+00> : vector<64x64xf32>
    %12 = tpu.matmul %0, %11, %cst_12 {dimension_numbers = #tpu.dot_dimension_numbers<[1], [0], [0], [1], [0, 0, 1, 1], [], []>} : vector<64x128xf32>, vector<128x64xf32>, vector<64x64xf32> -> vector<64x64xf32>
    %13 = tpu.concatenate %3, %6, %9, %12 in 0 : vector<64x64xf32>, vector<64x64xf32>, vector<64x64xf32>, vector<64x64xf32> -> vector<256x64xf32>
    %c0_13 = arith.constant 0 : index
    %c0_14 = arith.constant 0 : index
    %14 = vector.load %arg1[%c0_13, %c0_14] : memref<128x256xf32, #tpu.memory_space<vmem>>, vector<128x256xf32>
    %cst_15 = arith.constant dense<0.000000e+00> : vector<128x64xf32>
    %15 = tpu.matmul %14, %13, %cst_15 {dimension_numbers = #tpu.dot_dimension_numbers<[1], [0], [0], [1], [0, 0, 1, 1], [], []>} : vector<128x256xf32>, vector<256x64xf32>, vector<128x64xf32> -> vector<128x64xf32>
    %cst_16 = arith.constant 0.000000e+00 : f32
    %16 = vector.broadcast %cst_16 : f32 to vector<128x64xf32>
    %17 = arith.cmpf oge, %15, %16 : vector<128x64xf32>
    %cst_17 = arith.constant 2.000000e-01 : f32
    %18 = vector.broadcast %cst_17 : f32 to vector<128x64xf32>
    %19 = arith.mulf %18, %15 : vector<128x64xf32>
    %20 = arith.select %17, %15, %19 : vector<128x64xi1>, vector<128x64xf32>
    %c0_18 = arith.constant 0 : index
    %c0_19 = arith.constant 0 : index
    %c0_20 = arith.constant 0 : index
    %21 = vector.load %arg4[%c0_18, %c0_19, %c0_20] : memref<4x64x32xf32, #tpu.memory_space<vmem>>, vector<1x64x32xf32>
    %22 = vector.shape_cast %21 : vector<1x64x32xf32> to vector<64x32xf32>
    %cst_21 = arith.constant dense<0.000000e+00> : vector<128x32xf32>
    %23 = tpu.matmul %20, %22, %cst_21 {dimension_numbers = #tpu.dot_dimension_numbers<[1], [0], [0], [1], [0, 0, 1, 1], [], []>} : vector<128x64xf32>, vector<64x32xf32>, vector<128x32xf32> -> vector<128x32xf32>
    %c1_22 = arith.constant 1 : index
    %c0_23 = arith.constant 0 : index
    %c0_24 = arith.constant 0 : index
    %24 = vector.load %arg4[%c1_22, %c0_23, %c0_24] : memref<4x64x32xf32, #tpu.memory_space<vmem>>, vector<1x64x32xf32>
    %25 = vector.shape_cast %24 : vector<1x64x32xf32> to vector<64x32xf32>
    %cst_25 = arith.constant dense<0.000000e+00> : vector<128x32xf32>
    %26 = tpu.matmul %20, %25, %cst_25 {dimension_numbers = #tpu.dot_dimension_numbers<[1], [0], [0], [1], [0, 0, 1, 1], [], []>} : vector<128x64xf32>, vector<64x32xf32>, vector<128x32xf32> -> vector<128x32xf32>
    %c2_26 = arith.constant 2 : index
    %c0_27 = arith.constant 0 : index
    %c0_28 = arith.constant 0 : index
    %27 = vector.load %arg4[%c2_26, %c0_27, %c0_28] : memref<4x64x32xf32, #tpu.memory_space<vmem>>, vector<1x64x32xf32>
    %28 = vector.shape_cast %27 : vector<1x64x32xf32> to vector<64x32xf32>
    %cst_29 = arith.constant dense<0.000000e+00> : vector<128x32xf32>
    %29 = tpu.matmul %20, %28, %cst_29 {dimension_numbers = #tpu.dot_dimension_numbers<[1], [0], [0], [1], [0, 0, 1, 1], [], []>} : vector<128x64xf32>, vector<64x32xf32>, vector<128x32xf32> -> vector<128x32xf32>
    %c3_30 = arith.constant 3 : index
    %c0_31 = arith.constant 0 : index
    %c0_32 = arith.constant 0 : index
    %30 = vector.load %arg4[%c3_30, %c0_31, %c0_32] : memref<4x64x32xf32, #tpu.memory_space<vmem>>, vector<1x64x32xf32>
    %31 = vector.shape_cast %30 : vector<1x64x32xf32> to vector<64x32xf32>
    %cst_33 = arith.constant dense<0.000000e+00> : vector<128x32xf32>
    %32 = tpu.matmul %20, %31, %cst_33 {dimension_numbers = #tpu.dot_dimension_numbers<[1], [0], [0], [1], [0, 0, 1, 1], [], []>} : vector<128x64xf32>, vector<64x32xf32>, vector<128x32xf32> -> vector<128x32xf32>
    %33 = tpu.concatenate %23, %26, %29, %32 in 0 : vector<128x32xf32>, vector<128x32xf32>, vector<128x32xf32>, vector<128x32xf32> -> vector<512x32xf32>
    %c0_34 = arith.constant 0 : index
    %c0_35 = arith.constant 0 : index
    %34 = vector.load %arg3[%c0_34, %c0_35] : memref<128x512xf32, #tpu.memory_space<vmem>>, vector<128x512xf32>
    %cst_36 = arith.constant dense<0.000000e+00> : vector<128x32xf32>
    %35 = tpu.matmul %34, %33, %cst_36 {dimension_numbers = #tpu.dot_dimension_numbers<[1], [0], [0], [1], [0, 0, 1, 1], [], []>} : vector<128x512xf32>, vector<512x32xf32>, vector<128x32xf32> -> vector<128x32xf32>
    %c0_37 = arith.constant 0 : index
    %c0_38 = arith.constant 0 : index
    %36 = vector.load %arg7[%c0_37, %c0_38] : memref<8x128xf32, #tpu.memory_space<vmem>>, vector<8x128xf32>
    %cst_39 = arith.constant dense<0.000000e+00> : vector<8x32xf32>
    %37 = tpu.matmul %36, %35, %cst_39 {dimension_numbers = #tpu.dot_dimension_numbers<[1], [0], [0], [1], [0, 0, 1, 1], [], []>} : vector<8x128xf32>, vector<128x32xf32>, vector<8x32xf32> -> vector<8x32xf32>
    %cst_40 = arith.constant dense<0.000000e+00> : vector<8xf32>
    %38 = vector.multi_reduction <add>, %37, %cst_40 [1] : vector<8x32xf32> to vector<8xf32>
    %39 = vector.shape_cast %38 : vector<8xf32> to vector<8x1xf32>
    %40 = arith.mulf %35, %35 : vector<128x32xf32>
    %cst_41 = arith.constant dense<0.000000e+00> : vector<8x32xf32>
    %41 = tpu.matmul %36, %40, %cst_41 {dimension_numbers = #tpu.dot_dimension_numbers<[1], [0], [0], [1], [0, 0, 1, 1], [], []>} : vector<8x128xf32>, vector<128x32xf32>, vector<8x32xf32> -> vector<8x32xf32>
    %cst_42 = arith.constant dense<0.000000e+00> : vector<8xf32>
    %42 = vector.multi_reduction <add>, %41, %cst_42 [1] : vector<8x32xf32> to vector<8xf32>
    %43 = vector.shape_cast %42 : vector<8xf32> to vector<8x1xf32>
    %cst_43 = arith.constant 0.001953125 : f32
    %44 = vector.broadcast %cst_43 : f32 to vector<8x1xf32>
    %45 = arith.mulf %39, %44 : vector<8x1xf32>
    %cst_44 = arith.constant 0.001953125 : f32
    %46 = vector.broadcast %cst_44 : f32 to vector<8x1xf32>
    %47 = arith.mulf %43, %46 : vector<8x1xf32>
    %48 = arith.mulf %45, %45 : vector<8x1xf32>
    %49 = arith.subf %47, %48 : vector<8x1xf32>
    %cst_45 = arith.constant 9.99999974E-6 : f32
    %50 = vector.broadcast %cst_45 : f32 to vector<8x1xf32>
    %51 = arith.addf %49, %50 : vector<8x1xf32>
    %52 = math.rsqrt %51 : vector<8x1xf32>
    %c0_46 = arith.constant 0 : index
    %c0_47 = arith.constant 0 : index
    %53 = vector.load %arg5[%c0_46, %c0_47] : memref<8x1xf32, #tpu.memory_space<vmem>>, vector<8x1xf32>
    %54 = arith.mulf %53, %52 : vector<8x1xf32>
    %c0_48 = arith.constant 0 : index
    %c0_49 = arith.constant 0 : index
    %55 = vector.load %arg6[%c0_48, %c0_49] : memref<8x1xf32, #tpu.memory_space<vmem>>, vector<8x1xf32>
    %56 = arith.mulf %45, %54 : vector<8x1xf32>
    %57 = arith.subf %55, %56 : vector<8x1xf32>
    %c0_50 = arith.constant 0 : index
    %c0_51 = arith.constant 0 : index
    %58 = vector.load %arg8[%c0_50, %c0_51] : memref<128x8xf32, #tpu.memory_space<vmem>>, vector<128x8xf32>
    %cst_52 = arith.constant dense<0.000000e+00> : vector<128x1xf32>
    %59 = tpu.matmul %58, %54, %cst_52 {dimension_numbers = #tpu.dot_dimension_numbers<[1], [0], [0], [1], [0, 0, 1, 1], [], []>} : vector<128x8xf32>, vector<8x1xf32>, vector<128x1xf32> -> vector<128x1xf32>
    %c0_53 = arith.constant 0 : index
    %c0_54 = arith.constant 0 : index
    %60 = vector.load %arg8[%c0_53, %c0_54] : memref<128x8xf32, #tpu.memory_space<vmem>>, vector<128x8xf32>
    %cst_55 = arith.constant dense<0.000000e+00> : vector<128x1xf32>
    %61 = tpu.matmul %60, %57, %cst_55 {dimension_numbers = #tpu.dot_dimension_numbers<[1], [0], [0], [1], [0, 0, 1, 1], [], []>} : vector<128x8xf32>, vector<8x1xf32>, vector<128x1xf32> -> vector<128x1xf32>
    %62 = vector.broadcast %59 : vector<128x1xf32> to vector<128x32xf32>
    %63 = arith.mulf %35, %62 : vector<128x32xf32>
    %64 = vector.broadcast %61 : vector<128x1xf32> to vector<128x32xf32>
    %65 = arith.addf %63, %64 : vector<128x32xf32>
    %cst_56 = arith.constant 0.000000e+00 : f32
    %66 = vector.broadcast %cst_56 : f32 to vector<128x32xf32>
    %67 = arith.cmpf oge, %65, %66 : vector<128x32xf32>
    %cst_57 = arith.constant 2.000000e-01 : f32
    %68 = vector.broadcast %cst_57 : f32 to vector<128x32xf32>
    %69 = arith.mulf %68, %65 : vector<128x32xf32>
    %70 = arith.select %67, %65, %69 : vector<128x32xi1>, vector<128x32xf32>
    %c0_58 = arith.constant 0 : index
    %c0_59 = arith.constant 0 : index
    %c0_60 = arith.constant 0 : index
    %71 = vector.load %arg10[%c0_58, %c0_59, %c0_60] : memref<4x32x16xf32, #tpu.memory_space<vmem>>, vector<1x32x16xf32>
    %72 = vector.shape_cast %71 : vector<1x32x16xf32> to vector<32x16xf32>
    %cst_61 = arith.constant dense<0.000000e+00> : vector<128x16xf32>
    %73 = tpu.matmul %70, %72, %cst_61 {dimension_numbers = #tpu.dot_dimension_numbers<[1], [0], [0], [1], [0, 0, 1, 1], [], []>} : vector<128x32xf32>, vector<32x16xf32>, vector<128x16xf32> -> vector<128x16xf32>
    %c1_62 = arith.constant 1 : index
    %c0_63 = arith.constant 0 : index
    %c0_64 = arith.constant 0 : index
    %74 = vector.load %arg10[%c1_62, %c0_63, %c0_64] : memref<4x32x16xf32, #tpu.memory_space<vmem>>, vector<1x32x16xf32>
    %75 = vector.shape_cast %74 : vector<1x32x16xf32> to vector<32x16xf32>
    %cst_65 = arith.constant dense<0.000000e+00> : vector<128x16xf32>
    %76 = tpu.matmul %70, %75, %cst_65 {dimension_numbers = #tpu.dot_dimension_numbers<[1], [0], [0], [1], [0, 0, 1, 1], [], []>} : vector<128x32xf32>, vector<32x16xf32>, vector<128x16xf32> -> vector<128x16xf32>
    %c2_66 = arith.constant 2 : index
    %c0_67 = arith.constant 0 : index
    %c0_68 = arith.constant 0 : index
    %77 = vector.load %arg10[%c2_66, %c0_67, %c0_68] : memref<4x32x16xf32, #tpu.memory_space<vmem>>, vector<1x32x16xf32>
    %78 = vector.shape_cast %77 : vector<1x32x16xf32> to vector<32x16xf32>
    %cst_69 = arith.constant dense<0.000000e+00> : vector<128x16xf32>
    %79 = tpu.matmul %70, %78, %cst_69 {dimension_numbers = #tpu.dot_dimension_numbers<[1], [0], [0], [1], [0, 0, 1, 1], [], []>} : vector<128x32xf32>, vector<32x16xf32>, vector<128x16xf32> -> vector<128x16xf32>
    %c3_70 = arith.constant 3 : index
    %c0_71 = arith.constant 0 : index
    %c0_72 = arith.constant 0 : index
    %80 = vector.load %arg10[%c3_70, %c0_71, %c0_72] : memref<4x32x16xf32, #tpu.memory_space<vmem>>, vector<1x32x16xf32>
    %81 = vector.shape_cast %80 : vector<1x32x16xf32> to vector<32x16xf32>
    %cst_73 = arith.constant dense<0.000000e+00> : vector<128x16xf32>
    %82 = tpu.matmul %70, %81, %cst_73 {dimension_numbers = #tpu.dot_dimension_numbers<[1], [0], [0], [1], [0, 0, 1, 1], [], []>} : vector<128x32xf32>, vector<32x16xf32>, vector<128x16xf32> -> vector<128x16xf32>
    %83 = tpu.concatenate %73, %76, %79, %82 in 0 : vector<128x16xf32>, vector<128x16xf32>, vector<128x16xf32>, vector<128x16xf32> -> vector<512x16xf32>
    %c0_74 = arith.constant 0 : index
    %c0_75 = arith.constant 0 : index
    %84 = vector.load %arg9[%c0_74, %c0_75] : memref<128x512xf32, #tpu.memory_space<vmem>>, vector<128x512xf32>
    %cst_76 = arith.constant dense<0.000000e+00> : vector<128x16xf32>
    %85 = tpu.matmul %84, %83, %cst_76 {dimension_numbers = #tpu.dot_dimension_numbers<[1], [0], [0], [1], [0, 0, 1, 1], [], []>} : vector<128x512xf32>, vector<512x16xf32>, vector<128x16xf32> -> vector<128x16xf32>
    %c0_77 = arith.constant 0 : index
    %c0_78 = arith.constant 0 : index
    %86 = vector.load %arg13[%c0_77, %c0_78] : memref<16x128xf32, #tpu.memory_space<vmem>>, vector<16x128xf32>
    %cst_79 = arith.constant dense<0.000000e+00> : vector<16x16xf32>
    %87 = tpu.matmul %86, %85, %cst_79 {dimension_numbers = #tpu.dot_dimension_numbers<[1], [0], [0], [1], [0, 0, 1, 1], [], []>} : vector<16x128xf32>, vector<128x16xf32>, vector<16x16xf32> -> vector<16x16xf32>
    %cst_80 = arith.constant dense<0.000000e+00> : vector<16xf32>
    %88 = vector.multi_reduction <add>, %87, %cst_80 [1] : vector<16x16xf32> to vector<16xf32>
    %89 = vector.shape_cast %88 : vector<16xf32> to vector<16x1xf32>
    %90 = arith.mulf %85, %85 : vector<128x16xf32>
    %cst_81 = arith.constant dense<0.000000e+00> : vector<16x16xf32>
    %91 = tpu.matmul %86, %90, %cst_81 {dimension_numbers = #tpu.dot_dimension_numbers<[1], [0], [0], [1], [0, 0, 1, 1], [], []>} : vector<16x128xf32>, vector<128x16xf32>, vector<16x16xf32> -> vector<16x16xf32>
    %cst_82 = arith.constant dense<0.000000e+00> : vector<16xf32>
    %92 = vector.multi_reduction <add>, %91, %cst_82 [1] : vector<16x16xf32> to vector<16xf32>
    %93 = vector.shape_cast %92 : vector<16xf32> to vector<16x1xf32>
    %cst_83 = arith.constant 7.812500e-03 : f32
    %94 = vector.broadcast %cst_83 : f32 to vector<16x1xf32>
    %95 = arith.mulf %89, %94 : vector<16x1xf32>
    %cst_84 = arith.constant 7.812500e-03 : f32
    %96 = vector.broadcast %cst_84 : f32 to vector<16x1xf32>
    %97 = arith.mulf %93, %96 : vector<16x1xf32>
    %98 = arith.mulf %95, %95 : vector<16x1xf32>
    %99 = arith.subf %97, %98 : vector<16x1xf32>
    %cst_85 = arith.constant 9.99999974E-6 : f32
    %100 = vector.broadcast %cst_85 : f32 to vector<16x1xf32>
    %101 = arith.addf %99, %100 : vector<16x1xf32>
    %102 = math.rsqrt %101 : vector<16x1xf32>
    %c0_86 = arith.constant 0 : index
    %c0_87 = arith.constant 0 : index
    %103 = vector.load %arg11[%c0_86, %c0_87] : memref<16x1xf32, #tpu.memory_space<vmem>>, vector<16x1xf32>
    %104 = arith.mulf %103, %102 : vector<16x1xf32>
    %c0_88 = arith.constant 0 : index
    %c0_89 = arith.constant 0 : index
    %105 = vector.load %arg12[%c0_88, %c0_89] : memref<16x1xf32, #tpu.memory_space<vmem>>, vector<16x1xf32>
    %106 = arith.mulf %95, %104 : vector<16x1xf32>
    %107 = arith.subf %105, %106 : vector<16x1xf32>
    %c0_90 = arith.constant 0 : index
    %c0_91 = arith.constant 0 : index
    %108 = vector.load %arg14[%c0_90, %c0_91] : memref<128x16xf32, #tpu.memory_space<vmem>>, vector<128x16xf32>
    %cst_92 = arith.constant dense<0.000000e+00> : vector<128x1xf32>
    %109 = tpu.matmul %108, %104, %cst_92 {dimension_numbers = #tpu.dot_dimension_numbers<[1], [0], [0], [1], [0, 0, 1, 1], [], []>} : vector<128x16xf32>, vector<16x1xf32>, vector<128x1xf32> -> vector<128x1xf32>
    %c0_93 = arith.constant 0 : index
    %c0_94 = arith.constant 0 : index
    %110 = vector.load %arg14[%c0_93, %c0_94] : memref<128x16xf32, #tpu.memory_space<vmem>>, vector<128x16xf32>
    %cst_95 = arith.constant dense<0.000000e+00> : vector<128x1xf32>
    %111 = tpu.matmul %110, %107, %cst_95 {dimension_numbers = #tpu.dot_dimension_numbers<[1], [0], [0], [1], [0, 0, 1, 1], [], []>} : vector<128x16xf32>, vector<16x1xf32>, vector<128x1xf32> -> vector<128x1xf32>
    %112 = vector.broadcast %109 : vector<128x1xf32> to vector<128x16xf32>
    %113 = arith.mulf %85, %112 : vector<128x16xf32>
    %114 = vector.broadcast %111 : vector<128x1xf32> to vector<128x16xf32>
    %115 = arith.addf %113, %114 : vector<128x16xf32>
    %cst_96 = arith.constant 0.000000e+00 : f32
    %116 = vector.broadcast %cst_96 : f32 to vector<128x16xf32>
    %117 = arith.cmpf oge, %115, %116 : vector<128x16xf32>
    %cst_97 = arith.constant 2.000000e-01 : f32
    %118 = vector.broadcast %cst_97 : f32 to vector<128x16xf32>
    %119 = arith.mulf %118, %115 : vector<128x16xf32>
    %120 = arith.select %117, %115, %119 : vector<128x16xi1>, vector<128x16xf32>
    %c0_98 = arith.constant 0 : index
    %c0_99 = arith.constant 0 : index
    %c0_100 = arith.constant 0 : index
    %121 = vector.load %arg16[%c0_98, %c0_99, %c0_100] : memref<4x16x8xf32, #tpu.memory_space<vmem>>, vector<1x16x8xf32>
    %122 = vector.shape_cast %121 : vector<1x16x8xf32> to vector<16x8xf32>
    %cst_101 = arith.constant dense<0.000000e+00> : vector<128x8xf32>
    %123 = tpu.matmul %120, %122, %cst_101 {dimension_numbers = #tpu.dot_dimension_numbers<[1], [0], [0], [1], [0, 0, 1, 1], [], []>} : vector<128x16xf32>, vector<16x8xf32>, vector<128x8xf32> -> vector<128x8xf32>
    %c1_102 = arith.constant 1 : index
    %c0_103 = arith.constant 0 : index
    %c0_104 = arith.constant 0 : index
    %124 = vector.load %arg16[%c1_102, %c0_103, %c0_104] : memref<4x16x8xf32, #tpu.memory_space<vmem>>, vector<1x16x8xf32>
    %125 = vector.shape_cast %124 : vector<1x16x8xf32> to vector<16x8xf32>
    %cst_105 = arith.constant dense<0.000000e+00> : vector<128x8xf32>
    %126 = tpu.matmul %120, %125, %cst_105 {dimension_numbers = #tpu.dot_dimension_numbers<[1], [0], [0], [1], [0, 0, 1, 1], [], []>} : vector<128x16xf32>, vector<16x8xf32>, vector<128x8xf32> -> vector<128x8xf32>
    %c2_106 = arith.constant 2 : index
    %c0_107 = arith.constant 0 : index
    %c0_108 = arith.constant 0 : index
    %127 = vector.load %arg16[%c2_106, %c0_107, %c0_108] : memref<4x16x8xf32, #tpu.memory_space<vmem>>, vector<1x16x8xf32>
    %128 = vector.shape_cast %127 : vector<1x16x8xf32> to vector<16x8xf32>
    %cst_109 = arith.constant dense<0.000000e+00> : vector<128x8xf32>
    %129 = tpu.matmul %120, %128, %cst_109 {dimension_numbers = #tpu.dot_dimension_numbers<[1], [0], [0], [1], [0, 0, 1, 1], [], []>} : vector<128x16xf32>, vector<16x8xf32>, vector<128x8xf32> -> vector<128x8xf32>
    %c3_110 = arith.constant 3 : index
    %c0_111 = arith.constant 0 : index
    %c0_112 = arith.constant 0 : index
    %130 = vector.load %arg16[%c3_110, %c0_111, %c0_112] : memref<4x16x8xf32, #tpu.memory_space<vmem>>, vector<1x16x8xf32>
    %131 = vector.shape_cast %130 : vector<1x16x8xf32> to vector<16x8xf32>
    %cst_113 = arith.constant dense<0.000000e+00> : vector<128x8xf32>
    %132 = tpu.matmul %120, %131, %cst_113 {dimension_numbers = #tpu.dot_dimension_numbers<[1], [0], [0], [1], [0, 0, 1, 1], [], []>} : vector<128x16xf32>, vector<16x8xf32>, vector<128x8xf32> -> vector<128x8xf32>
    %133 = tpu.concatenate %123, %126, %129, %132 in 0 : vector<128x8xf32>, vector<128x8xf32>, vector<128x8xf32>, vector<128x8xf32> -> vector<512x8xf32>
    %c0_114 = arith.constant 0 : index
    %c0_115 = arith.constant 0 : index
    %134 = vector.load %arg15[%c0_114, %c0_115] : memref<128x512xf32, #tpu.memory_space<vmem>>, vector<128x512xf32>
    %cst_116 = arith.constant dense<0.000000e+00> : vector<128x8xf32>
    %135 = tpu.matmul %134, %133, %cst_116 {dimension_numbers = #tpu.dot_dimension_numbers<[1], [0], [0], [1], [0, 0, 1, 1], [], []>} : vector<128x512xf32>, vector<512x8xf32>, vector<128x8xf32> -> vector<128x8xf32>
    %c0_117 = arith.constant 0 : index
    %c0_118 = arith.constant 0 : index
    %136 = vector.load %arg19[%c0_117, %c0_118] : memref<32x128xf32, #tpu.memory_space<vmem>>, vector<32x128xf32>
    %cst_119 = arith.constant dense<0.000000e+00> : vector<32x8xf32>
    %137 = tpu.matmul %136, %135, %cst_119 {dimension_numbers = #tpu.dot_dimension_numbers<[1], [0], [0], [1], [0, 0, 1, 1], [], []>} : vector<32x128xf32>, vector<128x8xf32>, vector<32x8xf32> -> vector<32x8xf32>
    %cst_120 = arith.constant dense<0.000000e+00> : vector<32xf32>
    %138 = vector.multi_reduction <add>, %137, %cst_120 [1] : vector<32x8xf32> to vector<32xf32>
    %139 = vector.shape_cast %138 : vector<32xf32> to vector<32x1xf32>
    %140 = arith.mulf %135, %135 : vector<128x8xf32>
    %cst_121 = arith.constant dense<0.000000e+00> : vector<32x8xf32>
    %141 = tpu.matmul %136, %140, %cst_121 {dimension_numbers = #tpu.dot_dimension_numbers<[1], [0], [0], [1], [0, 0, 1, 1], [], []>} : vector<32x128xf32>, vector<128x8xf32>, vector<32x8xf32> -> vector<32x8xf32>
    %cst_122 = arith.constant dense<0.000000e+00> : vector<32xf32>
    %142 = vector.multi_reduction <add>, %141, %cst_122 [1] : vector<32x8xf32> to vector<32xf32>
    %143 = vector.shape_cast %142 : vector<32xf32> to vector<32x1xf32>
    %cst_123 = arith.constant 3.125000e-02 : f32
    %144 = vector.broadcast %cst_123 : f32 to vector<32x1xf32>
    %145 = arith.mulf %139, %144 : vector<32x1xf32>
    %cst_124 = arith.constant 3.125000e-02 : f32
    %146 = vector.broadcast %cst_124 : f32 to vector<32x1xf32>
    %147 = arith.mulf %143, %146 : vector<32x1xf32>
    %148 = arith.mulf %145, %145 : vector<32x1xf32>
    %149 = arith.subf %147, %148 : vector<32x1xf32>
    %cst_125 = arith.constant 9.99999974E-6 : f32
    %150 = vector.broadcast %cst_125 : f32 to vector<32x1xf32>
    %151 = arith.addf %149, %150 : vector<32x1xf32>
    %152 = math.rsqrt %151 : vector<32x1xf32>
    %c0_126 = arith.constant 0 : index
    %c0_127 = arith.constant 0 : index
    %153 = vector.load %arg17[%c0_126, %c0_127] : memref<32x1xf32, #tpu.memory_space<vmem>>, vector<32x1xf32>
    %154 = arith.mulf %153, %152 : vector<32x1xf32>
    %c0_128 = arith.constant 0 : index
    %c0_129 = arith.constant 0 : index
    %155 = vector.load %arg18[%c0_128, %c0_129] : memref<32x1xf32, #tpu.memory_space<vmem>>, vector<32x1xf32>
    %156 = arith.mulf %145, %154 : vector<32x1xf32>
    %157 = arith.subf %155, %156 : vector<32x1xf32>
    %c0_130 = arith.constant 0 : index
    %c0_131 = arith.constant 0 : index
    %158 = vector.load %arg20[%c0_130, %c0_131] : memref<128x32xf32, #tpu.memory_space<vmem>>, vector<128x32xf32>
    %cst_132 = arith.constant dense<0.000000e+00> : vector<128x1xf32>
    %159 = tpu.matmul %158, %154, %cst_132 {dimension_numbers = #tpu.dot_dimension_numbers<[1], [0], [0], [1], [0, 0, 1, 1], [], []>} : vector<128x32xf32>, vector<32x1xf32>, vector<128x1xf32> -> vector<128x1xf32>
    %c0_133 = arith.constant 0 : index
    %c0_134 = arith.constant 0 : index
    %160 = vector.load %arg20[%c0_133, %c0_134] : memref<128x32xf32, #tpu.memory_space<vmem>>, vector<128x32xf32>
    %cst_135 = arith.constant dense<0.000000e+00> : vector<128x1xf32>
    %161 = tpu.matmul %160, %157, %cst_135 {dimension_numbers = #tpu.dot_dimension_numbers<[1], [0], [0], [1], [0, 0, 1, 1], [], []>} : vector<128x32xf32>, vector<32x1xf32>, vector<128x1xf32> -> vector<128x1xf32>
    %162 = vector.broadcast %159 : vector<128x1xf32> to vector<128x8xf32>
    %163 = arith.mulf %135, %162 : vector<128x8xf32>
    %164 = vector.broadcast %161 : vector<128x1xf32> to vector<128x8xf32>
    %165 = arith.addf %163, %164 : vector<128x8xf32>
    %cst_136 = arith.constant 0.000000e+00 : f32
    %166 = vector.broadcast %cst_136 : f32 to vector<128x8xf32>
    %167 = arith.cmpf oge, %165, %166 : vector<128x8xf32>
    %cst_137 = arith.constant 2.000000e-01 : f32
    %168 = vector.broadcast %cst_137 : f32 to vector<128x8xf32>
    %169 = arith.mulf %168, %165 : vector<128x8xf32>
    %170 = arith.select %167, %165, %169 : vector<128x8xi1>, vector<128x8xf32>
    %c0_138 = arith.constant 0 : index
    %c0_139 = arith.constant 0 : index
    %c0_140 = arith.constant 0 : index
    %171 = vector.load %arg22[%c0_138, %c0_139, %c0_140] : memref<4x8x4xf32, #tpu.memory_space<vmem>>, vector<1x8x4xf32>
    %172 = vector.shape_cast %171 : vector<1x8x4xf32> to vector<8x4xf32>
    %cst_141 = arith.constant dense<0.000000e+00> : vector<128x4xf32>
    %173 = tpu.matmul %170, %172, %cst_141 {dimension_numbers = #tpu.dot_dimension_numbers<[1], [0], [0], [1], [0, 0, 1, 1], [], []>} : vector<128x8xf32>, vector<8x4xf32>, vector<128x4xf32> -> vector<128x4xf32>
    %c1_142 = arith.constant 1 : index
    %c0_143 = arith.constant 0 : index
    %c0_144 = arith.constant 0 : index
    %174 = vector.load %arg22[%c1_142, %c0_143, %c0_144] : memref<4x8x4xf32, #tpu.memory_space<vmem>>, vector<1x8x4xf32>
    %175 = vector.shape_cast %174 : vector<1x8x4xf32> to vector<8x4xf32>
    %cst_145 = arith.constant dense<0.000000e+00> : vector<128x4xf32>
    %176 = tpu.matmul %170, %175, %cst_145 {dimension_numbers = #tpu.dot_dimension_numbers<[1], [0], [0], [1], [0, 0, 1, 1], [], []>} : vector<128x8xf32>, vector<8x4xf32>, vector<128x4xf32> -> vector<128x4xf32>
    %c2_146 = arith.constant 2 : index
    %c0_147 = arith.constant 0 : index
    %c0_148 = arith.constant 0 : index
    %177 = vector.load %arg22[%c2_146, %c0_147, %c0_148] : memref<4x8x4xf32, #tpu.memory_space<vmem>>, vector<1x8x4xf32>
    %178 = vector.shape_cast %177 : vector<1x8x4xf32> to vector<8x4xf32>
    %cst_149 = arith.constant dense<0.000000e+00> : vector<128x4xf32>
    %179 = tpu.matmul %170, %178, %cst_149 {dimension_numbers = #tpu.dot_dimension_numbers<[1], [0], [0], [1], [0, 0, 1, 1], [], []>} : vector<128x8xf32>, vector<8x4xf32>, vector<128x4xf32> -> vector<128x4xf32>
    %c3_150 = arith.constant 3 : index
    %c0_151 = arith.constant 0 : index
    %c0_152 = arith.constant 0 : index
    %180 = vector.load %arg22[%c3_150, %c0_151, %c0_152] : memref<4x8x4xf32, #tpu.memory_space<vmem>>, vector<1x8x4xf32>
    %181 = vector.shape_cast %180 : vector<1x8x4xf32> to vector<8x4xf32>
    %cst_153 = arith.constant dense<0.000000e+00> : vector<128x4xf32>
    %182 = tpu.matmul %170, %181, %cst_153 {dimension_numbers = #tpu.dot_dimension_numbers<[1], [0], [0], [1], [0, 0, 1, 1], [], []>} : vector<128x8xf32>, vector<8x4xf32>, vector<128x4xf32> -> vector<128x4xf32>
    %183 = tpu.concatenate %173, %176, %179, %182 in 0 : vector<128x4xf32>, vector<128x4xf32>, vector<128x4xf32>, vector<128x4xf32> -> vector<512x4xf32>
    %c0_154 = arith.constant 0 : index
    %c0_155 = arith.constant 0 : index
    %184 = vector.load %arg21[%c0_154, %c0_155] : memref<128x512xf32, #tpu.memory_space<vmem>>, vector<128x512xf32>
    %cst_156 = arith.constant dense<0.000000e+00> : vector<128x4xf32>
    %185 = tpu.matmul %184, %183, %cst_156 {dimension_numbers = #tpu.dot_dimension_numbers<[1], [0], [0], [1], [0, 0, 1, 1], [], []>} : vector<128x512xf32>, vector<512x4xf32>, vector<128x4xf32> -> vector<128x4xf32>
    %c0_157 = arith.constant 0 : index
    %c0_158 = arith.constant 0 : index
    %186 = vector.load %arg25[%c0_157, %c0_158] : memref<64x128xf32, #tpu.memory_space<vmem>>, vector<64x128xf32>
    %cst_159 = arith.constant dense<0.000000e+00> : vector<64x4xf32>
    %187 = tpu.matmul %186, %185, %cst_159 {dimension_numbers = #tpu.dot_dimension_numbers<[1], [0], [0], [1], [0, 0, 1, 1], [], []>} : vector<64x128xf32>, vector<128x4xf32>, vector<64x4xf32> -> vector<64x4xf32>
    %cst_160 = arith.constant dense<0.000000e+00> : vector<64xf32>
    %188 = vector.multi_reduction <add>, %187, %cst_160 [1] : vector<64x4xf32> to vector<64xf32>
    %189 = vector.shape_cast %188 : vector<64xf32> to vector<64x1xf32>
    %190 = arith.mulf %185, %185 : vector<128x4xf32>
    %cst_161 = arith.constant dense<0.000000e+00> : vector<64x4xf32>
    %191 = tpu.matmul %186, %190, %cst_161 {dimension_numbers = #tpu.dot_dimension_numbers<[1], [0], [0], [1], [0, 0, 1, 1], [], []>} : vector<64x128xf32>, vector<128x4xf32>, vector<64x4xf32> -> vector<64x4xf32>
    %cst_162 = arith.constant dense<0.000000e+00> : vector<64xf32>
    %192 = vector.multi_reduction <add>, %191, %cst_162 [1] : vector<64x4xf32> to vector<64xf32>
    %193 = vector.shape_cast %192 : vector<64xf32> to vector<64x1xf32>
    %cst_163 = arith.constant 1.250000e-01 : f32
    %194 = vector.broadcast %cst_163 : f32 to vector<64x1xf32>
    %195 = arith.mulf %189, %194 : vector<64x1xf32>
    %cst_164 = arith.constant 1.250000e-01 : f32
    %196 = vector.broadcast %cst_164 : f32 to vector<64x1xf32>
    %197 = arith.mulf %193, %196 : vector<64x1xf32>
    %198 = arith.mulf %195, %195 : vector<64x1xf32>
    %199 = arith.subf %197, %198 : vector<64x1xf32>
    %cst_165 = arith.constant 9.99999974E-6 : f32
    %200 = vector.broadcast %cst_165 : f32 to vector<64x1xf32>
    %201 = arith.addf %199, %200 : vector<64x1xf32>
    %202 = math.rsqrt %201 : vector<64x1xf32>
    %c0_166 = arith.constant 0 : index
    %c0_167 = arith.constant 0 : index
    %203 = vector.load %arg23[%c0_166, %c0_167] : memref<64x1xf32, #tpu.memory_space<vmem>>, vector<64x1xf32>
    %204 = arith.mulf %203, %202 : vector<64x1xf32>
    %c0_168 = arith.constant 0 : index
    %c0_169 = arith.constant 0 : index
    %205 = vector.load %arg24[%c0_168, %c0_169] : memref<64x1xf32, #tpu.memory_space<vmem>>, vector<64x1xf32>
    %206 = arith.mulf %195, %204 : vector<64x1xf32>
    %207 = arith.subf %205, %206 : vector<64x1xf32>
    %c0_170 = arith.constant 0 : index
    %c0_171 = arith.constant 0 : index
    %208 = vector.load %arg26[%c0_170, %c0_171] : memref<128x64xf32, #tpu.memory_space<vmem>>, vector<128x64xf32>
    %cst_172 = arith.constant dense<0.000000e+00> : vector<128x1xf32>
    %209 = tpu.matmul %208, %204, %cst_172 {dimension_numbers = #tpu.dot_dimension_numbers<[1], [0], [0], [1], [0, 0, 1, 1], [], []>} : vector<128x64xf32>, vector<64x1xf32>, vector<128x1xf32> -> vector<128x1xf32>
    %c0_173 = arith.constant 0 : index
    %c0_174 = arith.constant 0 : index
    %210 = vector.load %arg26[%c0_173, %c0_174] : memref<128x64xf32, #tpu.memory_space<vmem>>, vector<128x64xf32>
    %cst_175 = arith.constant dense<0.000000e+00> : vector<128x1xf32>
    %211 = tpu.matmul %210, %207, %cst_175 {dimension_numbers = #tpu.dot_dimension_numbers<[1], [0], [0], [1], [0, 0, 1, 1], [], []>} : vector<128x64xf32>, vector<64x1xf32>, vector<128x1xf32> -> vector<128x1xf32>
    %212 = vector.broadcast %209 : vector<128x1xf32> to vector<128x4xf32>
    %213 = arith.mulf %185, %212 : vector<128x4xf32>
    %214 = vector.broadcast %211 : vector<128x1xf32> to vector<128x4xf32>
    %215 = arith.addf %213, %214 : vector<128x4xf32>
    %cst_176 = arith.constant 0.000000e+00 : f32
    %216 = vector.broadcast %cst_176 : f32 to vector<128x4xf32>
    %217 = arith.cmpf oge, %215, %216 : vector<128x4xf32>
    %cst_177 = arith.constant 2.000000e-01 : f32
    %218 = vector.broadcast %cst_177 : f32 to vector<128x4xf32>
    %219 = arith.mulf %218, %215 : vector<128x4xf32>
    %220 = arith.select %217, %215, %219 : vector<128x4xi1>, vector<128x4xf32>
    %c0_178 = arith.constant 0 : index
    %c0_179 = arith.constant 0 : index
    %c0_180 = arith.constant 0 : index
    %221 = vector.load %arg28[%c0_178, %c0_179, %c0_180] : memref<2x4x2xf32, #tpu.memory_space<vmem>>, vector<1x4x2xf32>
    %222 = vector.shape_cast %221 : vector<1x4x2xf32> to vector<4x2xf32>
    %cst_181 = arith.constant dense<0.000000e+00> : vector<128x2xf32>
    %223 = tpu.matmul %220, %222, %cst_181 {dimension_numbers = #tpu.dot_dimension_numbers<[1], [0], [0], [1], [0, 0, 1, 1], [], []>} : vector<128x4xf32>, vector<4x2xf32>, vector<128x2xf32> -> vector<128x2xf32>
    %c1_182 = arith.constant 1 : index
    %c0_183 = arith.constant 0 : index
    %c0_184 = arith.constant 0 : index
    %224 = vector.load %arg28[%c1_182, %c0_183, %c0_184] : memref<2x4x2xf32, #tpu.memory_space<vmem>>, vector<1x4x2xf32>
    %225 = vector.shape_cast %224 : vector<1x4x2xf32> to vector<4x2xf32>
    %cst_185 = arith.constant dense<0.000000e+00> : vector<128x2xf32>
    %226 = tpu.matmul %220, %225, %cst_185 {dimension_numbers = #tpu.dot_dimension_numbers<[1], [0], [0], [1], [0, 0, 1, 1], [], []>} : vector<128x4xf32>, vector<4x2xf32>, vector<128x2xf32> -> vector<128x2xf32>
    %227 = tpu.concatenate %223, %226 in 0 : vector<128x2xf32>, vector<128x2xf32> -> vector<256x2xf32>
    %c0_186 = arith.constant 0 : index
    %c0_187 = arith.constant 0 : index
    %228 = vector.load %arg27[%c0_186, %c0_187] : memref<8x256xf32, #tpu.memory_space<vmem>>, vector<8x256xf32>
    %cst_188 = arith.constant dense<0.000000e+00> : vector<8x2xf32>
    %229 = tpu.matmul %228, %227, %cst_188 {dimension_numbers = #tpu.dot_dimension_numbers<[1], [0], [0], [1], [0, 0, 1, 1], [], []>} : vector<8x256xf32>, vector<256x2xf32>, vector<8x2xf32> -> vector<8x2xf32>
    %230 = arith.negf %229 : vector<8x2xf32>
    %231 = math.exp %230 : vector<8x2xf32>
    %cst_189 = arith.constant 1.000000e+00 : f32
    %232 = vector.broadcast %cst_189 : f32 to vector<8x2xf32>
    %233 = arith.addf %232, %231 : vector<8x2xf32>
    %234 = arith.divf %232, %233 : vector<8x2xf32>
    %c0_190 = arith.constant 0 : index
    %c0_191 = arith.constant 0 : index
    %235 = vector.load %arg29[%c0_190, %c0_191] : memref<8x2xf32, #tpu.memory_space<vmem>>, vector<8x2xf32>
    tpu.vector_store %arg29[%c0_190, %c0_191], %234 {strides = array<i32>} : memref<8x2xf32, #tpu.memory_space<vmem>>, vector<8x2xf32>,
    return
  }
}

</mosaic_0001>

<bundles_post_ra>
// kernel: netD_forward.1
= control target key start
LH: loop header
LB: loop body
LE: loop exit
PB: predicated region body
PF: predicated region fallthrough
CT: control target
= control target key end

     0   :  { %s6561_s6 = smov 1   ;;  %s6562_s10 = smov 2   ;;  %s8933_s0 = inlined_call_operand.smem [shape: u32[30], index: -1, kind: input, shape index: {}] }
   0x1   :  { %s6603_s5 = sld [smem:[%s8933_s0]]   ;;  %s6563_s14 = smov 3  }
   0x2   :  { %s6608_s9 = sld [smem:[%s8933_s0 + %s6561_s6]]   ;;  %s6564_s18 = smov 4  }
   0x3   :  { %s6613_s13 = sld [smem:[%s8933_s0 + %s6562_s10]]   ;;  %s6565_s22 = smov 5  }
   0x4   :  { %s6618_s17 = sld [smem:[%s8933_s0 + %s6563_s14]]   ;;  %s6566_s26 = smov 6  }
   0x5   :  { %s6623_s21 = sld [smem:[%s8933_s0 + %s6564_s18]]   ;;  %s6567_s30 = smov 7  }
   0x6   :  { %s6628_s25 = sld [smem:[%s8933_s0 + %s6565_s22]]   ;;  %s6568_s4 = smov 8  }
   0x7   :  { %s6633_s29 = sld [smem:[%s8933_s0 + %s6566_s26]]   ;;  %s6569_s10 = smov 9  }
   0x8   :  { %s6638_s3 = sld [smem:[%s8933_s0 + %s6567_s30]]   ;;  %s6570_s15 = smov 10  }
   0x9   :  { %s6643_s8 = sld [smem:[%s8933_s0 + %s6568_s4]]   ;;  %s6571_s20 = smov 11  }
   0xa   :  { %s6648_s14 = sld [smem:[%s8933_s0 + %s6569_s10]]   ;;  %s6572_s26 = smov 12  }
   0xb   :  { %s6653_s19 = sld [smem:[%s8933_s0 + %s6570_s15]]   ;;  %s6573_s1 = smov 13  }
   0xc   :  { %s6658_s24 = sld [smem:[%s8933_s0 + %s6571_s20]]   ;;  %s6574_s7 = smov 14  }
   0xd   :  { %s6663_s30 = sld [smem:[%s8933_s0 + %s6572_s26]]   ;;  %s6575_s15 = smov 15  }
   0xe   :  { %s6668_s6 = sld [smem:[%s8933_s0 + %s6573_s1]]   ;;  %s6576_s22 = smov 16  }
   0xf   :  { %s6673_s12 = sld [smem:[%s8933_s0 + %s6574_s7]]   ;;  %s6577_s28 = smov 17  }
  0x10   :  { %s6678_s20 = sld [smem:[%s8933_s0 + %s6575_s15]]   ;;  %s6578_s7 = smov 18  }
  0x11   :  { %s6683_s27 = sld [smem:[%s8933_s0 + %s6576_s22]]   ;;  %s6579_s15 = smov 19  }
  0x12   :  { %8946 = sst [smem:[#allocation8_spill]] %s6658_s24  ;;  %s6580_s22 = smov 20  }
  0x13   :  { %8947 = sst [smem:[#allocation9_spill]] %s6663_s30 }
  0x14   :  { %s6688_s4 = sld [smem:[%s8933_s0 + %s6577_s28]]   ;;  %s6581_s28 = smov 21  }
  0x15   :  { %8948 = sst [smem:[#allocation10_spill]] %s6673_s12 }
  0x16   :  { %s6693_s12 = sld [smem:[%s8933_s0 + %s6578_s7]]   ;;  %s6582_s7 = smov 22  }
  0x17   :  { %8949 = sst [smem:[#allocation11_spill]] %s6683_s27 }
  0x18   :  { %s6698_s30 = sld [smem:[%s8933_s0 + %s6579_s15]]   ;;  %s6583_s15 = smov 23  }
  0x19   :  { %s6703_s27 = sld [smem:[%s8933_s0 + %s6580_s22]]   ;;  %s6584_s22 = smov 24  }
  0x1a   :  { %8950 = sst [smem:[#allocation12_spill]] %s6688_s4 }
  0x1b   :  { %s6708_s4 = sld [smem:[%s8933_s0 + %s6581_s28]]   ;;  %s6585_s28 = smov 25  }
  0x1c   :  { %8951 = sst [smem:[#allocation13_spill]] %s6693_s12 }
  0x1d   :  { %s6713_s12 = sld [smem:[%s8933_s0 + %s6582_s7]]   ;;  %s6586_s7 = smov 26  }
  0x1e   :  { %8952 = sst [smem:[#allocation14_spill]] %s6698_s30 }
  0x1f   :  { %8953 = sst [smem:[#allocation15_spill]] %s6703_s27 }
  0x20   :  { %s6718_s30 = sld [smem:[%s8933_s0 + %s6583_s15]]   ;;  %s6587_s15 = smov 27  }
  0x21   :  { %s6723_s27 = sld [smem:[%s8933_s0 + %s6584_s22]]   ;;  %s6588_s22 = smov 28  }
  0x22   :  { %s6728_s24 = sld [smem:[%s8933_s0 + %s6585_s28]]   ;;  %s6589_s28 = smov 29  }
  0x23   :  { %8954 = sst [smem:[#allocation16_spill]] %s6713_s12 }
  0x24   :  { %s6733_s12 = sld [smem:[%s8933_s0 + %s6586_s7]]  }
  0x26   :  { %8955 = sst [smem:[#allocation17_spill]] %s6718_s30 }
  0x27   :  { %8956 = sst [smem:[#allocation18_spill]] %s6723_s27 }
  0x28   :  { %8957 = sst [smem:[#allocation19_spill]] %s6728_s24 }
  0x29   :  { %s6738_s30 = sld [smem:[%s8933_s0 + %s6587_s15]]  }
  0x2a   :  { %s6743_s27 = sld [smem:[%s8933_s0 + %s6588_s22]]  }
  0x2b   :  { %s6748_s24 = sld [smem:[%s8933_s0 + %s6589_s28]]  }
  0x2c   :  { %64 = vsyncpa [#allocation3], 0  ;;  %s100_s7 = sshll.u32 %s6678_s20, 4  ;;  %s101_s7 = int_to_ptr.hbm [resolvable:$true] %s100_s7 }
  0x2d   :  { %65 = vsyncpa [#allocation5], 0  ;;  %s6590_s10 = smov [#allocation2]   ;;  %s123_s15 = sshll.u32 %s6708_s4, 4  ;;  %s124_s15 = int_to_ptr.hbm [resolvable:$true] %s123_s15 }
  0x2e   :  { %s102_s11 = sshll.u32 %s6590_s10, 4  ;;  %s6509_s16 = sshra.s32 %s101_s7, 4  ;;  %s103_s11 = int_to_ptr.vmem [resolvable:$true] %s102_s11  ;;  %s6510_s16 = int_to_ptr.hbm [resolvable:$true] %s6509_s16 }
  0x2f   :  { %s6511_s18 = scalar_lea.hbm %s6510_s16, 512  ;;  %s6513_s22 = scalar_lea.hbm %s6678_s20, 512 }
  0x30   :  { %p6512_p0 = scmp.ne.s32.totalorder %s6510_s16, %s6511_s18  ;;  %p6514_p1 = scmp.lt.s32.totalorder %s6510_s16, %s6678_s20 }
  0x31   :  { %p6515_p2 = scmp.lt.s32.totalorder %s6513_s22, %s6511_s18 }
  0x33   :  { %p6516_p3 = por %p6515_p2, %p6514_p1 }
  0x35   :  { %p6517_p4 = pnand %p6516_p3, %p6512_p0 }
  0x37   :  { %6520 = shalt.err (!%p6517_p4)
}
  0x38   :  { %s6591_s0 = smov 512   ;;  %s6592_s23 = smov 32  }
  0x39   :  { %108 = dma.hbm_to_vmem [thread:$0]  %s101_s7, 8192, %s103_s11, [#allocation3], %s6591_s0, %s6591_s0, %s6592_s23  }
  0x3a   :  { %s6593_s26 = smov [#allocation4]   ;;  %s6533_s1 = sshra.s32 %s124_s15, 4  ;;  %s6534_s1 = int_to_ptr.hbm [resolvable:$true] %s6533_s1 }
  0x3b   :  { %s125_s28 = sshll.u32 %s6593_s26, 4  ;;  %s6535_s2 = scalar_lea.hbm %s6534_s1, 512  ;;  %s126_s28 = int_to_ptr.vmem [resolvable:$true] %s125_s28 }
  0x3c   :  { %p6536_p5 = scmp.ne.s32.totalorder %s6534_s1, %s6535_s2  ;;  %s6537_s10 = scalar_lea.hbm %s6708_s4, 512 }
  0x3d   :  { %p6538_p6 = scmp.lt.s32.totalorder %s6534_s1, %s6708_s4  ;;  %p6539_p7 = scmp.lt.s32.totalorder %s6537_s10, %s6535_s2 }
  0x3f   :  { %p6540_p8 = por %p6539_p7, %p6538_p6 }
  0x41   :  { %p6541_p9 = pnand %p6540_p8, %p6536_p5 }
  0x43   :  { %6544 = shalt.err (!%p6541_p9)
}
  0x44   :  { %131 = dma.hbm_to_vmem [thread:$0]  %s124_s15, 8192, %s126_s28, [#allocation5], %s6591_s0, %s6591_s0, %s6592_s23  }
  0x45   :  { %6557 = dma.done.wait [#allocation3], 8192  }
  0x46   :  { %6558 = vsyncadd [#allocation3], 4294959104 }
  0x47   :  { %6559 = dma.done.wait [#allocation5], 8192  }
  0x48   :  { %6560 = vsyncadd [#allocation5], 4294959104  ;;  %v5940_v0 = vld [vmem:[%s6613_s13 + $0xf8] sm:$0xff]  ;;  %v5939_v2 = vld [vmem:[%s6613_s13 + $0xf0] sm:$0xff]  ;;  %vm611_vm1 = vcmask 523264  }
  0x49   :  { %v5972_v1 = vld [vmem:[%s6613_s13 + $0x1f8] sm:$0xff]  ;;  %236 = vmatpush.msra.mxu1 %v5940_v0  ;;  %v5971_v3 = vld [vmem:[%s6613_s13 + $0x1f0] sm:$0xff]  ;;  %v5938_v4 = vld [vmem:[%s6613_s13 + $0xe8] sm:$0xff] }
  0x4a   :  { %352 = vmatpush.msra.mxu3 %v5972_v1  ;;  %v5970_v5 = vld [vmem:[%s6613_s13 + $0x1e8] sm:$0xff]  ;;  %v5937_v6 = vld [vmem:[%s6613_s13 + $0xe0] sm:$0xff]  ;;  %v5936_v8 = vld [vmem:[%s6613_s13 + $0xd8] sm:$0xff] }
  0x4b   :  { %237 = vmatpush.msra.mxu1 %v5939_v2  ;;  %v5969_v7 = vld [vmem:[%s6613_s13 + $0x1e0] sm:$0xff]  ;;  %v177_v9 = vld [vmem:[%s6613_s13 + $0x78] sm:$0xff]  ;;  %v176_v12 = vld [vmem:[%s6613_s13 + $0x70] sm:$0xff] }
  0x4c   :  { %353 = vmatpush.msra.mxu3 %v5971_v3  ;;  %v5968_v10 = vld [vmem:[%s6613_s13 + $0x1d8] sm:$0xff]  ;;  %178 = vmatpush.msra.mxu0 %v177_v9  ;;  %v5955_v13 = vld [vmem:[%s6613_s13 + $0x170] sm:$0xff]  ;;  %v175_v16 = vld [vmem:[%s6613_s13 + $0x68] sm:$0xff] }
  0x4d   :  { %238 = vmatpush.msra.mxu1 %v5938_v4  ;;  %v5956_v11 = vld [vmem:[%s6613_s13 + $0x178] sm:$0xff]  ;;  %v5935_v14 = vld [vmem:[%s6613_s13 + $0xd0] sm:$0xff]  ;;  %v5954_v17 = vld [vmem:[%s6613_s13 + $0x168] sm:$0xff] }
  0x4e   :  { %354 = vmatpush.msra.mxu3 %v5970_v5  ;;  %v5967_v15 = vld [vmem:[%s6613_s13 + $0x1d0] sm:$0xff]  ;;  %294 = vmatpush.msra.mxu2 %v5956_v11  ;;  %v174_v18 = vld [vmem:[%s6613_s13 + $0x60] sm:$0xff]  ;;  %v5934_v19 = vld [vmem:[%s6613_s13 + $0xc8] sm:$0xff] }
  0x4f   :  { %239 = vmatpush.msra.mxu1 %v5937_v6  ;;  %179 = vmatpush.msra.mxu0 %v176_v12  ;;  %v5966_v20 = vld [vmem:[%s6613_s13 + $0x1c8] sm:$0xff]  ;;  %v5953_v21 = vld [vmem:[%s6613_s13 + $0x160] sm:$0xff]  ;;  %v173_v22 = vld [vmem:[%s6613_s13 + $0x58] sm:$0xff] }
  0x50   :  { %355 = vmatpush.msra.mxu3 %v5969_v7  ;;  %295 = vmatpush.msra.mxu2 %v5955_v13  ;;  %v5933_v23 = vld [vmem:[%s6613_s13 + $0xc0] sm:$0xff]  ;;  %v5952_v25 = vld [vmem:[%s6613_s13 + $0x158] sm:$0xff]  ;;  %v172_v26 = vld [vmem:[%s6613_s13 + $0x50] sm:$0xff] }
  0x51   :  { %240 = vmatpush.msra.mxu1 %v5936_v8  ;;  %180 = vmatpush.msra.mxu0 %v175_v16  ;;  %v5965_v24 = vld [vmem:[%s6613_s13 + $0x1c0] sm:$0xff]  ;;  %v5932_v27 = vld [vmem:[%s6613_s13 + $0xb8] sm:$0xff]  ;;  %v5951_v29 = vld [vmem:[%s6613_s13 + $0x150] sm:$0xff] }
  0x52   :  { %356 = vmatpush.msra.mxu3 %v5968_v10  ;;  %296 = vmatpush.msra.mxu2 %v5954_v17  ;;  %v5964_v28 = vld [vmem:[%s6613_s13 + $0x1b8] sm:$0xff]  ;;  %v171_v30 = vld [vmem:[%s6613_s13 + $0x48] sm:$0xff]  ;;  %v5931_v31 = vld [vmem:[%s6613_s13 + $0xb0] sm:$0xff] }
  0x53   :  { %241 = vmatpush.msra.mxu1 %v5935_v14  ;;  %181 = vmatpush.msra.mxu0 %v174_v18  ;;  %v5963_v32 = vld [vmem:[%s6613_s13 + $0x1b0] sm:$0xff]  ;;  %v5950_v33 = vld [vmem:[%s6613_s13 + $0x148] sm:$0xff]  ;;  %v170_v34 = vld [vmem:[%s6613_s13 + $0x40] sm:$0xff] }
  0x54   :  { %357 = vmatpush.msra.mxu3 %v5967_v15  ;;  %297 = vmatpush.msra.mxu2 %v5953_v21  ;;  %v5930_v35 = vld [vmem:[%s6613_s13 + $0xa8] sm:$0xff]  ;;  %v5949_v37 = vld [vmem:[%s6613_s13 + $0x140] sm:$0xff]  ;;  %v169_v38 = vld [vmem:[%s6613_s13 + $0x38] sm:$0xff] }
  0x55   :  { %242 = vmatpush.msra.mxu1 %v5934_v19  ;;  %182 = vmatpush.msra.mxu0 %v173_v22  ;;  %v5962_v36 = vld [vmem:[%s6613_s13 + $0x1a8] sm:$0xff]  ;;  %v5929_v39 = vld [vmem:[%s6613_s13 + $0xa0] sm:$0xff]  ;;  %v5948_v41 = vld [vmem:[%s6613_s13 + $0x138] sm:$0xff] }
  0x56   :  { %358 = vmatpush.msra.mxu3 %v5966_v20  ;;  %298 = vmatpush.msra.mxu2 %v5952_v25  ;;  %v5961_v40 = vld [vmem:[%s6613_s13 + $0x1a0] sm:$0xff]  ;;  %v168_v42 = vld [vmem:[%s6613_s13 + $0x30] sm:$0xff]  ;;  %v5928_v43 = vld [vmem:[%s6613_s13 + $0x98] sm:$0xff] }
  0x57   :  { %243 = vmatpush.msra.mxu1 %v5933_v23  ;;  %183 = vmatpush.msra.mxu0 %v172_v26  ;;  %v5960_v44 = vld [vmem:[%s6613_s13 + $0x198] sm:$0xff]  ;;  %v5947_v45 = vld [vmem:[%s6613_s13 + $0x130] sm:$0xff]  ;;  %v167_v46 = vld [vmem:[%s6613_s13 + $0x28] sm:$0xff] }
  0x58   :  { %359 = vmatpush.msra.mxu3 %v5965_v24  ;;  %299 = vmatpush.msra.mxu2 %v5951_v29  ;;  %v5927_v47 = vld [vmem:[%s6613_s13 + $0x90] sm:$0xff]  ;;  %v5946_v49 = vld [vmem:[%s6613_s13 + $0x128] sm:$0xff]  ;;  %v166_v50 = vld [vmem:[%s6613_s13 + $0x20] sm:$0xff] }
  0x59   :  { %244 = vmatpush.msra.mxu1 %v5932_v27  ;;  %184 = vmatpush.msra.mxu0 %v171_v30  ;;  %v5959_v48 = vld [vmem:[%s6613_s13 + $0x190] sm:$0xff]  ;;  %v5926_v51 = vld [vmem:[%s6613_s13 + $0x88] sm:$0xff]  ;;  %v5945_v53 = vld [vmem:[%s6613_s13 + $0x120] sm:$0xff] }
  0x5a   :  { %360 = vmatpush.msra.mxu3 %v5964_v28  ;;  %300 = vmatpush.msra.mxu2 %v5950_v33  ;;  %v5958_v52 = vld [vmem:[%s6613_s13 + $0x188] sm:$0xff]  ;;  %v165_v54 = vld [vmem:[%s6613_s13 + $0x18] sm:$0xff]  ;;  %v5925_v55 = vld [vmem:[%s6613_s13 + $0x80] sm:$0xff] }
  0x5b   :  { %245 = vmatpush.msra.mxu1 %v5931_v31  ;;  %185 = vmatpush.msra.mxu0 %v170_v34  ;;  %v5957_v56 = vld [vmem:[%s6613_s13 + $0x180] sm:$0xff]  ;;  %v5944_v58 = vld [vmem:[%s6613_s13 + $0x118] sm:$0xff]  ;;  %v164_v59 = vld [vmem:[%s6613_s13 + $0x10] sm:$0xff] }
  0x5c   :  { %361 = vmatpush.msra.mxu3 %v5963_v32  ;;  %301 = vmatpush.msra.mxu2 %v5949_v37  ;;  %v154_v57 = vld [vmem:[%s6603_s5] sm:$0xff]  ;;  %v5943_v60 = vld [vmem:[%s6613_s13 + $0x110] sm:$0xff]  ;;  %v163_v61 = vld [vmem:[%s6613_s13 + $0x8] sm:$0xff] }
  0x5d   :  { %246 = vmatpush.msra.mxu1 %v5930_v35  ;;  %186 = vmatpush.msra.mxu0 %v169_v38  ;;  %v5942_v62 = vld [vmem:[%s6613_s13 + $0x108] sm:$0xff]  ;;  %v162_v63 = vld [vmem:[%s6613_s13] sm:$0xff]  ;;  %v156_v2 = vld [vmem:[%s6603_s5 + $0x10] sm:$0xff] }
  0x5e   :  { %362 = vmatpush.msra.mxu3 %v5962_v36  ;;  %302 = vmatpush.msra.mxu2 %v5948_v41  ;;  %v5941_v0 = vld [vmem:[%s6613_s13 + $0x100] sm:$0xff]  ;;  %v155_v1 = vld [vmem:[%s6603_s5 + $0x8] sm:$0xff]  ;;  %v157_v3 = vld [vmem:[%s6603_s5 + $0x18] sm:$0xff]  ;;  %s9018_s13 = sld [smem:[#allocation10_spill]] }
  0x5f   :  { %247 = vmatpush.msra.mxu1 %v5929_v39  ;;  %187 = vmatpush.msra.mxu0 %v168_v42  ;;  %v158_v4 = vld [vmem:[%s6603_s5 + $0x20] sm:$0xff]  ;;  %v159_v5 = vld [vmem:[%s6603_s5 + $0x28] sm:$0xff]  ;;  %v160_v6 = vld [vmem:[%s6603_s5 + $0x30] sm:$0xff] }
  0x60   :  { %363 = vmatpush.msra.mxu3 %v5961_v40  ;;  %303 = vmatpush.msra.mxu2 %v5947_v45  ;;  %v161_v7 = vld [vmem:[%s6603_s5 + $0x38] sm:$0xff]  ;;  %v393_v40 = vld [vmem:[%s6608_s9] sm:$0xff]  ;;  %v394_v41 = vld [vmem:[%s6608_s9 + $0x8] sm:$0xff]  ;;  %s9016_s5 = sld [smem:[#allocation8_spill]] }
  0x61   :  { %248 = vmatpush.msra.mxu1 %v5928_v43  ;;  %188 = vmatpush.msra.mxu0 %v167_v46  ;;  %v395_v42 = vld [vmem:[%s6608_s9 + $0x10] sm:$0xff]  ;;  %v396_v43 = vld [vmem:[%s6608_s9 + $0x18] sm:$0xff]  ;;  %v398_v45 = vld [vmem:[%s6608_s9 + $0x28] sm:$0xff] }
  0x62   :  { %364 = vmatpush.msra.mxu3 %v5960_v44  ;;  %304 = vmatpush.msra.mxu2 %v5946_v49  ;;  %v397_v44 = vld [vmem:[%s6608_s9 + $0x20] sm:$0xff]  ;;  %v399_v46 = vld [vmem:[%s6608_s9 + $0x30] sm:$0xff]  ;;  %v402_v49 = vld [vmem:[%s6608_s9 + $0x48] sm:$0xff] }
  0x63   :  { %249 = vmatpush.msra.mxu1 %v5927_v47  ;;  %189 = vmatpush.msra.mxu0 %v166_v50  ;;  %v400_v47 = vld [vmem:[%s6608_s9 + $0x38] sm:$0xff]  ;;  %v403_v50 = vld [vmem:[%s6608_s9 + $0x50] sm:$0xff] }
  0x64   :  { %365 = vmatpush.msra.mxu3 %v5959_v48  ;;  %305 = vmatpush.msra.mxu2 %v5945_v53  ;;  %v401_v48 = vld [vmem:[%s6608_s9 + $0x40] sm:$0xff]  ;;  %v406_v53 = vld [vmem:[%s6608_s9 + $0x68] sm:$0xff] }
  0x65   :  { %250 = vmatpush.msra.mxu1 %v5926_v51  ;;  %190 = vmatpush.msra.mxu0 %v165_v54  ;;  %v404_v51 = vld [vmem:[%s6608_s9 + $0x58] sm:$0xff]  ;;  %v407_v54 = vld [vmem:[%s6608_s9 + $0x70] sm:$0xff] }
  0x66   :  { %366 = vmatpush.msra.mxu3 %v5958_v52  ;;  %306 = vmatpush.msra.mxu2 %v5944_v58  ;;  %v405_v52 = vld [vmem:[%s6608_s9 + $0x60] sm:$0xff]  ;;  %v411_v58 = vld [vmem:[%s6608_s9 + $0x90] sm:$0xff] }
  0x67   :  { %251 = vmatpush.msra.mxu1 %v5925_v55  ;;  %191 = vmatpush.msra.mxu0 %v164_v59  ;;  %v408_v55 = vld [vmem:[%s6608_s9 + $0x78] sm:$0xff] }
  0x68   :  { %367 = vmatpush.msra.mxu3 %v5957_v56  ;;  %252 = vmatmul.f32.vlgmr.msra.gmra.mxu1 %v154_v57  ;;  %v409_v56 = vld [vmem:[%s6608_s9 + $0x80] sm:$0xff]  ;;  %v412_v59 = vld [vmem:[%s6608_s9 + $0x98] sm:$0xff] }
  0x69   :  { %368 = vmatmul.f32.vlgmr.msra.gmra.mxu3 %v154_v57  ;;  %307 = vmatpush.msra.mxu2 %v5943_v60  ;;  %v413_v60 = vld [vmem:[%s6608_s9 + $0xa0] sm:$0xff] }
  0x6a   :  { %192 = vmatpush.msra.mxu0 %v163_v61  ;;  %v414_v61 = vld [vmem:[%s6608_s9 + $0xa8] sm:$0xff] }
  0x6b   :  { %308 = vmatpush.msra.mxu2 %v5942_v62  ;;  %v415_v62 = vld [vmem:[%s6608_s9 + $0xb0] sm:$0xff] }
  0x6c   :  { %193 = vmatpush.msra.mxu0 %v162_v63  ;;  %v610_v63 = vld [vmem:[%s6623_s21 + $0x38] sm:$0xff] }
  0x6d   :  { %194 = vmatmul.f32.vlgmr.msra.gmra.mxu0 %v154_v57  ;;  %309 = vmatpush.msra.mxu2 %v5941_v0  ;;  %v5996_v0 = vld [vmem:[%s6623_s21 + $0x78] sm:$0xff] }
  0x6e   :  { %310 = vmatmul.f32.vlgmr.msra.gmra.mxu2 %v154_v57  ;;  %v410_v57 = vld [vmem:[%s6608_s9 + $0x88] sm:$0xff]  ;;  %742 = vmatpush.msrb.mxu3 %v5996_v0 }
  0x6f   :  { %668 = vmatpush.msrb.mxu2 %v610_v63 }
  0x70   :  { %255 = vmatmul.f32.gmra.mxu1 %v155_v1 }
  0x71   :  { %371 = vmatmul.f32.gmra.mxu3 %v155_v1 }
  0x75   :  { %197 = vmatmul.f32.gmra.mxu0 %v155_v1 }
  0x76   :  { %313 = vmatmul.f32.gmra.mxu2 %v155_v1  ;;  %v6020_v1 = vld [vmem:[%s6623_s21 + $0xb8] sm:$0xff] }
  0x78   :  { %258 = vmatmul.f32.gmra.mxu1 %v156_v2 }
  0x79   :  { %374 = vmatmul.f32.gmra.mxu3 %v156_v2 }
  0x7d   :  { %200 = vmatmul.f32.gmra.mxu0 %v156_v2 }
  0x7e   :  { %316 = vmatmul.f32.gmra.mxu2 %v156_v2  ;;  %v6044_v2 = vld [vmem:[%s6623_s21 + $0xf8] sm:$0xff] }
  0x80   :  { %261 = vmatmul.f32.gmra.mxu1 %v157_v3 }
  0x81   :  { %377 = vmatmul.f32.gmra.mxu3 %v157_v3 }
  0x85   :  { %203 = vmatmul.f32.gmra.mxu0 %v157_v3 }
  0x86   :  { %319 = vmatmul.f32.gmra.mxu2 %v157_v3  ;;  %v609_v3 = vld [vmem:[%s6623_s21 + $0x30] sm:$0xff] }
  0x87   :  { %669 = vmatpush.msrb.mxu2 %v609_v3 }
  0x88   :  { %264 = vmatmul.f32.gmra.mxu1 %v158_v4 }
  0x89   :  { %380 = vmatmul.f32.gmra.mxu3 %v158_v4 }
  0x8d   :  { %206 = vmatmul.f32.gmra.mxu0 %v158_v4 }
  0x8e   :  { %322 = vmatmul.f32.gmra.mxu2 %v158_v4  ;;  %v5995_v4 = vld [vmem:[%s6623_s21 + $0x70] sm:$0xff] }
  0x8f   :  { %743 = vmatpush.msrb.mxu3 %v5995_v4 }
  0x90   :  { %267 = vmatmul.f32.gmra.mxu1 %v159_v5 }
  0x91   :  { %383 = vmatmul.f32.gmra.mxu3 %v159_v5 }
  0x95   :  { %209 = vmatmul.f32.gmra.mxu0 %v159_v5 }
  0x96   :  { %325 = vmatmul.f32.gmra.mxu2 %v159_v5  ;;  %v6019_v5 = vld [vmem:[%s6623_s21 + $0xb0] sm:$0xff] }
  0x98   :  { %270 = vmatmul.f32.gmra.mxu1 %v160_v6 }
  0x99   :  { %386 = vmatmul.f32.gmra.mxu3 %v160_v6 }
  0x9d   :  { %212 = vmatmul.f32.gmra.mxu0 %v160_v6 }
  0x9e   :  { %328 = vmatmul.f32.gmra.mxu2 %v160_v6  ;;  %v6043_v6 = vld [vmem:[%s6623_s21 + $0xf0] sm:$0xff] }
  0xa0   :  { %273 = vmatmul.f32.gmra.mxu1 %v161_v7 }
  0xa1   :  { %389 = vmatmul.f32.gmra.mxu3 %v161_v7 }
  0xa5   :  { %215 = vmatmul.f32.gmra.mxu0 %v161_v7 }
  0xa6   :  { %331 = vmatmul.f32.gmra.mxu2 %v161_v7  ;;  %v416_v7 = vld [vmem:[%s6608_s9 + $0xb8] sm:$0xff] }
  0xe5   :  { %v253_v8 = vpop.f32.mrf.mxu1 }
  0xea   :  { %v195_v10 = vpop.f32.mrf.mxu0 }
  0xec   :  { %v369_v9 = vpop.f32.mrf.mxu3 }
  0xed   :  { %v256_v11 = vpop.f32.mrf.mxu1 }
  0xf1   :  { %v311_v14 = vpop.f32.mrf.mxu2 }
  0xf2   :  { %v198_v13 = vpop.f32.mrf.mxu0 }
  0xf4   :  { %v372_v12 = vpop.f32.mrf.mxu3 }
  0xf5   :  { %v259_v15 = vpop.f32.mrf.mxu1 }
  0xf9   :  { %v314_v18 = vpop.f32.mrf.mxu2 }
  0xfa   :  { %v201_v17 = vpop.f32.mrf.mxu0 }
  0xfc   :  { %v375_v16 = vpop.f32.mrf.mxu3 }
  0xfd   :  { %v262_v19 = vpop.f32.mrf.mxu1 }
 0x101   :  { %v317_v22 = vpop.f32.mrf.mxu2 }
 0x102   :  { %v204_v21 = vpop.f32.mrf.mxu0 }
 0x104   :  { %v378_v20 = vpop.f32.mrf.mxu3 }
 0x105   :  { %v265_v23 = vpop.f32.mrf.mxu1 }
 0x109   :  { %v320_v25 = vpop.f32.mrf.mxu2 }
 0x10a   :  { %v207_v27 = vpop.f32.mrf.mxu0 }
 0x10c   :  { %v381_v24 = vpop.f32.mrf.mxu3 }
 0x10d   :  { %v268_v26 = vpop.f32.mrf.mxu1 }
 0x111   :  { %v323_v29 = vpop.f32.mrf.mxu2 }
 0x112   :  { %v210_v31 = vpop.f32.mrf.mxu0 }
 0x114   :  { %v384_v28 = vpop.f32.mrf.mxu3 }
 0x115   :  { %v271_v30 = vpop.f32.mrf.mxu1 }
 0x119   :  { %v326_v34 = vpop.f32.mrf.mxu2 }
 0x11a   :  { %v213_v35 = vpop.f32.mrf.mxu0 }
 0x11c   :  { %v387_v32 = vpop.f32.mrf.mxu3 }
 0x11d   :  { %v274_v33 = vpop.f32.mrf.mxu1 }
 0x11e   :  { %425 = vmatpush.msrb.mxu0 %v274_v33  ;;  %v6013_v33 = vld [vmem:[%s6623_s21 + $0x80] sm:$0xff] }
 0x120   :  { %426 = vmatpush.msrb.mxu0 %v271_v30  ;;  %v6038_v30 = vld [vmem:[%s6623_s21 + $0xc8] sm:$0xff] }
 0x121   :  { %v329_v37 = vpop.f32.mrf.mxu2 }
 0x122   :  { %427 = vmatpush.msrb.mxu0 %v268_v26  ;;  %v216_v38 = vpop.f32.mrf.mxu0  ;;  %v419_v26 = vld [vmem:[%s6608_s9 + $0xd0] sm:$0xff] }
 0x124   :  { %v390_v36 = vpop.f32.mrf.mxu3  ;;  %428 = vmatpush.msrb.mxu0 %v265_v23  ;;  %v5991_v23 = vld [vmem:[%s6623_s21 + $0x50] sm:$0xff] }
 0x125   :  { %490 = vmatpush.msrb.mxu1 %v390_v36  ;;  %v421_v36 = vld [vmem:[%s6608_s9 + $0xe0] sm:$0xff] }
 0x126   :  { %429 = vmatpush.msrb.mxu0 %v262_v19  ;;  %v6016_v19 = vld [vmem:[%s6623_s21 + $0x98] sm:$0xff] }
 0x127   :  { %491 = vmatpush.msrb.mxu1 %v387_v32  ;;  %v5989_v32 = vld [vmem:[%s6623_s21 + $0x40] sm:$0xff] }
 0x128   :  { %430 = vmatpush.msrb.mxu0 %v259_v15  ;;  %v6017_v15 = vld [vmem:[%s6623_s21 + $0xa0] sm:$0xff] }
 0x129   :  { %492 = vmatpush.msrb.mxu1 %v384_v28  ;;  %v332_v39 = vpop.f32.mrf.mxu2  ;;  %v5990_v28 = vld [vmem:[%s6623_s21 + $0x48] sm:$0xff] }
 0x12a   :  { %431 = vmatpush.msrb.mxu0 %v256_v11  ;;  %v6018_v11 = vld [vmem:[%s6623_s21 + $0xa8] sm:$0xff] }
 0x12b   :  { %493 = vmatpush.msrb.mxu1 %v381_v24  ;;  %v6015_v24 = vld [vmem:[%s6623_s21 + $0x90] sm:$0xff] }
 0x12c   :  { %432 = vmatpush.msrb.mxu0 %v253_v8  ;;  %v417_v8 = vld [vmem:[%s6608_s9 + $0xc0] sm:$0xff] }
 0x12d   :  { %494 = vmatpush.msrb.mxu1 %v378_v20  ;;  %v6040_v20 = vld [vmem:[%s6623_s21 + $0xd8] sm:$0xff] }
 0x12e   :  { %433 = vmatpush.msrb.mxu0 %v216_v38  ;;  %v423_v38 = vld [vmem:[%s6608_s9 + $0xf0] sm:$0xff] }
 0x12f   :  { %495 = vmatpush.msrb.mxu1 %v375_v16  ;;  %v6041_v16 = vld [vmem:[%s6623_s21 + $0xe0] sm:$0xff] }
 0x130   :  { %434 = vmatpush.msrb.mxu0 %v213_v35  ;;  %v420_v35 = vld [vmem:[%s6608_s9 + $0xd8] sm:$0xff] }
 0x131   :  { %496 = vmatpush.msrb.mxu1 %v372_v12  ;;  %v6042_v12 = vld [vmem:[%s6623_s21 + $0xe8] sm:$0xff] }
 0x132   :  { %435 = vmatpush.msrb.mxu0 %v210_v31  ;;  %v603_v31 = vld [vmem:[%s6623_s21] sm:$0xff] }
 0x133   :  { %497 = vmatpush.msrb.mxu1 %v369_v9  ;;  %v608_v9 = vld [vmem:[%s6623_s21 + $0x28] sm:$0xff] }
 0x134   :  { %436 = vmatpush.msrb.mxu0 %v207_v27  ;;  %670 = vmatpush.msrb.mxu2 %v608_v9  ;;  %v604_v27 = vld [vmem:[%s6623_s21 + $0x8] sm:$0xff] }
 0x135   :  { %498 = vmatpush.msrb.mxu1 %v332_v39  ;;  %v424_v39 = vld [vmem:[%s6608_s9 + $0xf8] sm:$0xff] }
 0x136   :  { %437 = vmatpush.msrb.mxu0 %v204_v21  ;;  %v418_v21 = vld [vmem:[%s6608_s9 + $0xc8] sm:$0xff] }
 0x137   :  { %499 = vmatpush.msrb.mxu1 %v329_v37  ;;  %v422_v37 = vld [vmem:[%s6608_s9 + $0xe8] sm:$0xff]  ;;  %s9017_s9 = sld [smem:[#allocation9_spill]] }
 0x138   :  { %438 = vmatpush.msrb.mxu0 %v201_v17  ;;  %v606_v17 = vld [vmem:[%s6623_s21 + $0x18] sm:$0xff] }
 0x139   :  { %500 = vmatpush.msrb.mxu1 %v326_v34  ;;  %v6037_v34 = vld [vmem:[%s6623_s21 + $0xc0] sm:$0xff] }
 0x13a   :  { %439 = vmatpush.msrb.mxu0 %v198_v13  ;;  %v607_v13 = vld [vmem:[%s6623_s21 + $0x20] sm:$0xff] }
 0x13b   :  { %501 = vmatpush.msrb.mxu1 %v323_v29  ;;  %671 = vmatpush.msrb.mxu2 %v607_v13  ;;  %v6014_v29 = vld [vmem:[%s6623_s21 + $0x88] sm:$0xff] }
 0x13c   :  { %440 = vmatpush.msrb.mxu0 %v195_v10  ;;  %v5994_v10 = vld [vmem:[%s6623_s21 + $0x68] sm:$0xff] }
 0x13d   :  { %502 = vmatpush.msrb.mxu1 %v320_v25  ;;  %441 = vmatmul.f32.vlgmr.msrb.gmra.mxu0 %v393_v40  ;;  %v6039_v25 = vld [vmem:[%s6623_s21 + $0xd0] sm:$0xff] }
 0x13e   :  { %816 = vmatpush.msra.mxu0 %v6020_v1  ;;  %744 = vmatpush.msrb.mxu3 %v5994_v10 }
 0x13f   :  { %503 = vmatpush.msrb.mxu1 %v317_v22  ;;  %672 = vmatpush.msrb.mxu2 %v606_v17  ;;  %v605_v22 = vld [vmem:[%s6623_s21 + $0x10] sm:$0xff] }
 0x140   :  { %817 = vmatpush.msra.mxu0 %v6019_v5 }
 0x141   :  { %504 = vmatpush.msrb.mxu1 %v314_v18  ;;  %v5992_v18 = vld [vmem:[%s6623_s21 + $0x58] sm:$0xff]  ;;  %673 = vmatpush.msrb.mxu2 %v605_v22 }
 0x142   :  { %818 = vmatpush.msra.mxu0 %v6018_v11 }
 0x143   :  { %505 = vmatpush.msrb.mxu1 %v311_v14  ;;  %v5993_v14 = vld [vmem:[%s6623_s21 + $0x60] sm:$0xff]  ;;  %674 = vmatpush.msrb.mxu2 %v604_v27  ;;  %s9048_s21 = sld [smem:[#allocation14_spill]] }
 0x144   :  { %506 = vmatmul.f32.vlgmr.msrb.gmra.mxu1 %v394_v41  ;;  %745 = vmatpush.msrb.mxu3 %v5993_v14 }
 0x145   :  { %444 = vmatmul.f32.gmra.mxu0 %v395_v42  ;;  %890 = vmatpush.msra.mxu1 %v6044_v2 }
 0x146   :  { %819 = vmatpush.msra.mxu0 %v6017_v15  ;;  %746 = vmatpush.msrb.mxu3 %v5992_v18 }
 0x147   :  { %891 = vmatpush.msra.mxu1 %v6043_v6  ;;  %675 = vmatpush.msrb.mxu2 %v603_v31 }
 0x148   :  { %820 = vmatpush.msra.mxu0 %v6016_v19  ;;  %747 = vmatpush.msrb.mxu3 %v5991_v23 }
 0x149   :  { %892 = vmatpush.msra.mxu1 %v6042_v12 }
 0x14a   :  { %821 = vmatpush.msra.mxu0 %v6015_v24  ;;  %748 = vmatpush.msrb.mxu3 %v5990_v28 }
 0x14b   :  { %893 = vmatpush.msra.mxu1 %v6041_v16 }
 0x14c   :  { %509 = vmatmul.f32.gmra.mxu1 %v396_v43  ;;  %822 = vmatpush.msra.mxu0 %v6014_v29 }
 0x14d   :  { %447 = vmatmul.f32.gmra.mxu0 %v397_v44  ;;  %894 = vmatpush.msra.mxu1 %v6040_v20 }
 0x14e   :  { %749 = vmatpush.msrb.mxu3 %v5989_v32  ;;  %823 = vmatpush.msra.mxu0 %v6013_v33 }
 0x14f   :  { %895 = vmatpush.msra.mxu1 %v6039_v25 }
 0x151   :  { %896 = vmatpush.msra.mxu1 %v6038_v30 }
 0x153   :  { %897 = vmatpush.msra.mxu1 %v6037_v34 }
 0x154   :  { %512 = vmatmul.f32.gmra.mxu1 %v398_v45 }
 0x155   :  { %450 = vmatmul.f32.gmra.mxu0 %v399_v46 }
 0x15c   :  { %515 = vmatmul.f32.gmra.mxu1 %v400_v47 }
 0x15d   :  { %453 = vmatmul.f32.gmra.mxu0 %v401_v48 }
 0x164   :  { %518 = vmatmul.f32.gmra.mxu1 %v402_v49 }
 0x165   :  { %456 = vmatmul.f32.gmra.mxu0 %v403_v50 }
 0x16c   :  { %521 = vmatmul.f32.gmra.mxu1 %v404_v51 }
 0x16d   :  { %459 = vmatmul.f32.gmra.mxu0 %v405_v52 }
 0x174   :  { %524 = vmatmul.f32.gmra.mxu1 %v406_v53 }
 0x175   :  { %462 = vmatmul.f32.gmra.mxu0 %v407_v54 }
 0x17c   :  { %527 = vmatmul.f32.gmra.mxu1 %v408_v55 }
 0x17d   :  { %465 = vmatmul.f32.gmra.mxu0 %v409_v56 }
 0x184   :  { %530 = vmatmul.f32.gmra.mxu1 %v410_v57 }
 0x185   :  { %468 = vmatmul.f32.gmra.mxu0 %v411_v58 }
 0x18c   :  { %533 = vmatmul.f32.gmra.mxu1 %v412_v59 }
 0x18d   :  { %471 = vmatmul.f32.gmra.mxu0 %v413_v60 }
 0x194   :  { %536 = vmatmul.f32.gmra.mxu1 %v414_v61 }
 0x195   :  { %474 = vmatmul.f32.gmra.mxu0 %v415_v62 }
 0x19c   :  { %539 = vmatmul.f32.gmra.mxu1 %v416_v7 }
 0x19d   :  { %477 = vmatmul.f32.gmra.mxu0 %v417_v8 }
 0x1a4   :  { %542 = vmatmul.f32.gmra.mxu1 %v418_v21 }
 0x1a5   :  { %480 = vmatmul.f32.gmra.mxu0 %v419_v26 }
 0x1ac   :  { %545 = vmatmul.f32.gmra.mxu1 %v420_v35 }
 0x1ad   :  { %483 = vmatmul.f32.gmra.mxu0 %v421_v36 }
 0x1b4   :  { %548 = vmatmul.f32.gmra.mxu1 %v422_v37 }
 0x1b5   :  { %486 = vmatmul.f32.gmra.mxu0 %v423_v38 }
 0x1ba   :  { %v442_v40 = vpop.f32.mrf.mxu0 }
 0x1bc   :  { %551 = vmatmul.f32.gmra.mxu1 %v424_v39 }
 0x1c1   :  { %v507_v41 = vpop.f32.mrf.mxu1 }
 0x1c2   :  { %v508_v42 = vadd.f32 %v507_v41, %v442_v40  ;;  %v445_v43 = vpop.f32.mrf.mxu0 }
 0x1c4   :  { %v571_v44 = vmul.f32 0.2, %v508_v42  ;;  %vm555_vm0 = vcmp.ge.f32.partialorder %v508_v42, 0.0 }
 0x1c6   :  { %v587_v45 = vsel %vm555_vm0, %v508_v42, %v571_v44 }
 0x1c7   :  { %5973 = vmatmul.msk.f32.vlgmr.msrb.gmra.mxu2 %vm611_vm1, %v587_v45  ;;  %5997 = vmatmul.msk.f32.vlgmr.msrb.gmra.mxu3 %vm611_vm1, %v587_v45 }
 0x1c8   :  { %6021 = vmatmul.msk.f32.vlgmr.msra.gmra.mxu0 %vm611_vm1, %v587_v45  ;;  %6045 = vmatmul.msk.f32.vlgmr.msra.gmra.mxu1 %vm611_vm1, %v587_v45 }
 0x1c9   :  { %v510_v46 = vpop.f32.mrf.mxu1 }
 0x1ca   :  { %v511_v47 = vadd.f32 %v510_v46, %v445_v43  ;;  %v448_v48 = vpop.f32.mrf.mxu0 }
 0x1cc   :  { %v572_v49 = vmul.f32 0.2, %v511_v47  ;;  %vm556_vm2 = vcmp.ge.f32.partialorder %v511_v47, 0.0 }
 0x1ce   :  { %v588_v50 = vsel %vm556_vm2, %v511_v47, %v572_v49  ;;  %vm1292_vm2 = vcmask 261120  }
 0x1cf   :  { %5974 = vmatmul.msk.f32.gmra.mxu2 %vm611_vm1, %v588_v50  ;;  %5998 = vmatmul.msk.f32.gmra.mxu3 %vm611_vm1, %v588_v50 }
 0x1d0   :  { %6022 = vmatmul.msk.f32.gmra.mxu0 %vm611_vm1, %v588_v50  ;;  %6046 = vmatmul.msk.f32.gmra.mxu1 %vm611_vm1, %v588_v50 }
 0x1d1   :  { %v513_v51 = vpop.f32.mrf.mxu1 }
 0x1d2   :  { %v514_v52 = vadd.f32 %v513_v51, %v448_v48  ;;  %v451_v53 = vpop.f32.mrf.mxu0 }
 0x1d4   :  { %v573_v54 = vmul.f32 0.2, %v514_v52  ;;  %vm557_vm3 = vcmp.ge.f32.partialorder %v514_v52, 0.0 }
 0x1d6   :  { %v589_v55 = vsel %vm557_vm3, %v514_v52, %v573_v54 }
 0x1d7   :  { %5975 = vmatmul.msk.f32.gmra.mxu2 %vm611_vm1, %v589_v55  ;;  %5999 = vmatmul.msk.f32.gmra.mxu3 %vm611_vm1, %v589_v55 }
 0x1d8   :  { %6023 = vmatmul.msk.f32.gmra.mxu0 %vm611_vm1, %v589_v55  ;;  %6047 = vmatmul.msk.f32.gmra.mxu1 %vm611_vm1, %v589_v55 }
 0x1d9   :  { %v516_v56 = vpop.f32.mrf.mxu1 }
 0x1da   :  { %v517_v57 = vadd.f32 %v516_v56, %v451_v53  ;;  %v454_v58 = vpop.f32.mrf.mxu0 }
 0x1dc   :  { %v574_v59 = vmul.f32 0.2, %v517_v57  ;;  %vm558_vm4 = vcmp.ge.f32.partialorder %v517_v57, 0.0 }
 0x1de   :  { %v590_v60 = vsel %vm558_vm4, %v517_v57, %v574_v59 }
 0x1df   :  { %5976 = vmatmul.msk.f32.gmra.mxu2 %vm611_vm1, %v590_v60  ;;  %6000 = vmatmul.msk.f32.gmra.mxu3 %vm611_vm1, %v590_v60 }
 0x1e0   :  { %6024 = vmatmul.msk.f32.gmra.mxu0 %vm611_vm1, %v590_v60  ;;  %6048 = vmatmul.msk.f32.gmra.mxu1 %vm611_vm1, %v590_v60 }
 0x1e1   :  { %v519_v61 = vpop.f32.mrf.mxu1 }
 0x1e2   :  { %v520_v62 = vadd.f32 %v519_v61, %v454_v58  ;;  %v457_v63 = vpop.f32.mrf.mxu0 }
 0x1e4   :  { %v575_v0 = vmul.f32 0.2, %v520_v62  ;;  %vm559_vm5 = vcmp.ge.f32.partialorder %v520_v62, 0.0 }
 0x1e6   :  { %v591_v1 = vsel %vm559_vm5, %v520_v62, %v575_v0 }
 0x1e7   :  { %5977 = vmatmul.msk.f32.gmra.mxu2 %vm611_vm1, %v591_v1  ;;  %6001 = vmatmul.msk.f32.gmra.mxu3 %vm611_vm1, %v591_v1 }
 0x1e8   :  { %6025 = vmatmul.msk.f32.gmra.mxu0 %vm611_vm1, %v591_v1  ;;  %6049 = vmatmul.msk.f32.gmra.mxu1 %vm611_vm1, %v591_v1 }
 0x1e9   :  { %v522_v2 = vpop.f32.mrf.mxu1 }
 0x1ea   :  { %v523_v3 = vadd.f32 %v522_v2, %v457_v63  ;;  %v460_v4 = vpop.f32.mrf.mxu0 }
 0x1ec   :  { %v576_v5 = vmul.f32 0.2, %v523_v3  ;;  %vm560_vm6 = vcmp.ge.f32.partialorder %v523_v3, 0.0 }
 0x1ee   :  { %v592_v6 = vsel %vm560_vm6, %v523_v3, %v576_v5  ;;  %vm1371_vm6 = vcmask 64512  }
 0x1ef   :  { %5978 = vmatmul.msk.f32.gmra.mxu2 %vm611_vm1, %v592_v6  ;;  %6002 = vmatmul.msk.f32.gmra.mxu3 %vm611_vm1, %v592_v6 }
 0x1f0   :  { %6026 = vmatmul.msk.f32.gmra.mxu0 %vm611_vm1, %v592_v6  ;;  %6050 = vmatmul.msk.f32.gmra.mxu1 %vm611_vm1, %v592_v6 }
 0x1f1   :  { %v525_v7 = vpop.f32.mrf.mxu1 }
 0x1f2   :  { %v526_v8 = vadd.f32 %v525_v7, %v460_v4  ;;  %v463_v9 = vpop.f32.mrf.mxu0 }
 0x1f4   :  { %v577_v10 = vmul.f32 0.2, %v526_v8  ;;  %vm561_vm7 = vcmp.ge.f32.partialorder %v526_v8, 0.0 }
 0x1f6   :  { %v593_v11 = vsel %vm561_vm7, %v526_v8, %v577_v10 }
 0x1f7   :  { %5979 = vmatmul.msk.f32.gmra.mxu2 %vm611_vm1, %v593_v11  ;;  %6003 = vmatmul.msk.f32.gmra.mxu3 %vm611_vm1, %v593_v11 }
 0x1f8   :  { %6027 = vmatmul.msk.f32.gmra.mxu0 %vm611_vm1, %v593_v11  ;;  %6051 = vmatmul.msk.f32.gmra.mxu1 %vm611_vm1, %v593_v11 }
 0x1f9   :  { %v528_v12 = vpop.f32.mrf.mxu1 }
 0x1fa   :  { %v529_v13 = vadd.f32 %v528_v12, %v463_v9  ;;  %v466_v14 = vpop.f32.mrf.mxu0 }
 0x1fc   :  { %v578_v15 = vmul.f32 0.2, %v529_v13  ;;  %vm562_vm8 = vcmp.ge.f32.partialorder %v529_v13, 0.0 }
 0x1fe   :  { %v594_v16 = vsel %vm562_vm8, %v529_v13, %v578_v15 }
 0x1ff   :  { %5980 = vmatmul.msk.f32.gmra.mxu2 %vm611_vm1, %v594_v16  ;;  %6004 = vmatmul.msk.f32.gmra.mxu3 %vm611_vm1, %v594_v16 }
 0x200   :  { %6028 = vmatmul.msk.f32.gmra.mxu0 %vm611_vm1, %v594_v16  ;;  %6052 = vmatmul.msk.f32.gmra.mxu1 %vm611_vm1, %v594_v16 }
 0x201   :  { %v531_v17 = vpop.f32.mrf.mxu1 }
 0x202   :  { %v532_v18 = vadd.f32 %v531_v17, %v466_v14  ;;  %v469_v19 = vpop.f32.mrf.mxu0 }
 0x204   :  { %v579_v20 = vmul.f32 0.2, %v532_v18  ;;  %vm563_vm9 = vcmp.ge.f32.partialorder %v532_v18, 0.0 }
 0x206   :  { %v595_v21 = vsel %vm563_vm9, %v532_v18, %v579_v20 }
 0x207   :  { %5981 = vmatmul.msk.f32.gmra.mxu2 %vm611_vm1, %v595_v21  ;;  %6005 = vmatmul.msk.f32.gmra.mxu3 %vm611_vm1, %v595_v21 }
 0x208   :  { %6029 = vmatmul.msk.f32.gmra.mxu0 %vm611_vm1, %v595_v21  ;;  %6053 = vmatmul.msk.f32.gmra.mxu1 %vm611_vm1, %v595_v21 }
 0x209   :  { %v534_v22 = vpop.f32.mrf.mxu1 }
 0x20a   :  { %v535_v23 = vadd.f32 %v534_v22, %v469_v19  ;;  %v472_v24 = vpop.f32.mrf.mxu0 }
 0x20c   :  { %v580_v25 = vmul.f32 0.2, %v535_v23  ;;  %vm564_vm10 = vcmp.ge.f32.partialorder %v535_v23, 0.0 }
 0x20e   :  { %v596_v26 = vsel %vm564_vm10, %v535_v23, %v580_v25 }
 0x20f   :  { %5982 = vmatmul.msk.f32.gmra.mxu2 %vm611_vm1, %v596_v26  ;;  %6006 = vmatmul.msk.f32.gmra.mxu3 %vm611_vm1, %v596_v26 }
 0x210   :  { %6030 = vmatmul.msk.f32.gmra.mxu0 %vm611_vm1, %v596_v26  ;;  %6054 = vmatmul.msk.f32.gmra.mxu1 %vm611_vm1, %v596_v26 }
 0x211   :  { %v537_v27 = vpop.f32.mrf.mxu1 }
 0x212   :  { %v538_v28 = vadd.f32 %v537_v27, %v472_v24  ;;  %v475_v29 = vpop.f32.mrf.mxu0 }
 0x214   :  { %v581_v30 = vmul.f32 0.2, %v538_v28  ;;  %vm565_vm11 = vcmp.ge.f32.partialorder %v538_v28, 0.0 }
 0x216   :  { %v597_v31 = vsel %vm565_vm11, %v538_v28, %v581_v30 }
 0x217   :  { %5983 = vmatmul.msk.f32.gmra.mxu2 %vm611_vm1, %v597_v31  ;;  %6007 = vmatmul.msk.f32.gmra.mxu3 %vm611_vm1, %v597_v31 }
 0x218   :  { %6031 = vmatmul.msk.f32.gmra.mxu0 %vm611_vm1, %v597_v31  ;;  %6055 = vmatmul.msk.f32.gmra.mxu1 %vm611_vm1, %v597_v31 }
 0x219   :  { %v540_v32 = vpop.f32.mrf.mxu1 }
 0x21a   :  { %v541_v33 = vadd.f32 %v540_v32, %v475_v29  ;;  %v478_v34 = vpop.f32.mrf.mxu0 }
 0x21c   :  { %v582_v35 = vmul.f32 0.2, %v541_v33  ;;  %vm566_vm12 = vcmp.ge.f32.partialorder %v541_v33, 0.0 }
 0x21e   :  { %v598_v36 = vsel %vm566_vm12, %v541_v33, %v582_v35 }
 0x21f   :  { %5984 = vmatmul.msk.f32.gmra.mxu2 %vm611_vm1, %v598_v36  ;;  %6008 = vmatmul.msk.f32.gmra.mxu3 %vm611_vm1, %v598_v36 }
 0x220   :  { %6032 = vmatmul.msk.f32.gmra.mxu0 %vm611_vm1, %v598_v36  ;;  %6056 = vmatmul.msk.f32.gmra.mxu1 %vm611_vm1, %v598_v36 }
 0x221   :  { %v543_v37 = vpop.f32.mrf.mxu1 }
 0x222   :  { %v544_v38 = vadd.f32 %v543_v37, %v478_v34  ;;  %v481_v39 = vpop.f32.mrf.mxu0 }
 0x224   :  { %v583_v40 = vmul.f32 0.2, %v544_v38  ;;  %vm567_vm13 = vcmp.ge.f32.partialorder %v544_v38, 0.0 }
 0x226   :  { %v599_v41 = vsel %vm567_vm13, %v544_v38, %v583_v40 }
 0x227   :  { %5985 = vmatmul.msk.f32.gmra.mxu2 %vm611_vm1, %v599_v41  ;;  %6009 = vmatmul.msk.f32.gmra.mxu3 %vm611_vm1, %v599_v41 }
 0x228   :  { %6033 = vmatmul.msk.f32.gmra.mxu0 %vm611_vm1, %v599_v41  ;;  %6057 = vmatmul.msk.f32.gmra.mxu1 %vm611_vm1, %v599_v41 }
 0x229   :  { %v546_v42 = vpop.f32.mrf.mxu1 }
 0x22a   :  { %v547_v43 = vadd.f32 %v546_v42, %v481_v39  ;;  %v484_v45 = vpop.f32.mrf.mxu0 }
 0x22c   :  { %v584_v44 = vmul.f32 0.2, %v547_v43  ;;  %vm568_vm14 = vcmp.ge.f32.partialorder %v547_v43, 0.0 }
 0x22e   :  { %v600_v46 = vsel %vm568_vm14, %v547_v43, %v584_v44 }
 0x22f   :  { %5986 = vmatmul.msk.f32.gmra.mxu2 %vm611_vm1, %v600_v46  ;;  %6010 = vmatmul.msk.f32.gmra.mxu3 %vm611_vm1, %v600_v46 }
 0x230   :  { %6034 = vmatmul.msk.f32.gmra.mxu0 %vm611_vm1, %v600_v46  ;;  %6058 = vmatmul.msk.f32.gmra.mxu1 %vm611_vm1, %v600_v46 }
 0x231   :  { %v549_v47 = vpop.f32.mrf.mxu1 }
 0x232   :  { %v550_v48 = vadd.f32 %v549_v47, %v484_v45  ;;  %v487_v51 = vpop.f32.mrf.mxu0 }
 0x234   :  { %v585_v49 = vmul.f32 0.2, %v550_v48  ;;  %vm569_vm15 = vcmp.ge.f32.partialorder %v550_v48, 0.0 }
 0x236   :  { %v601_v50 = vsel %vm569_vm15, %v550_v48, %v585_v49 }
 0x237   :  { %5987 = vmatmul.msk.f32.gmra.mxu2 %vm611_vm1, %v601_v50  ;;  %6011 = vmatmul.msk.f32.gmra.mxu3 %vm611_vm1, %v601_v50 }
 0x238   :  { %6035 = vmatmul.msk.f32.gmra.mxu0 %vm611_vm1, %v601_v50  ;;  %6059 = vmatmul.msk.f32.gmra.mxu1 %vm611_vm1, %v601_v50 }
 0x239   :  { %v552_v52 = vpop.f32.mrf.mxu1 }
 0x23a   :  { %v553_v53 = vadd.f32 %v552_v52, %v487_v51 }
 0x23c   :  { %v586_v54 = vmul.f32 0.2, %v553_v53  ;;  %vm570_vm0 = vcmp.ge.f32.partialorder %v553_v53, 0.0 }
 0x23e   :  { %v602_v55 = vsel %vm570_vm0, %v553_v53, %v586_v54 }
 0x23f   :  { %5988 = vmatmul.msk.f32.gmra.mxu2 %vm611_vm1, %v602_v55  ;;  %6012 = vmatmul.msk.f32.gmra.mxu3 %vm611_vm1, %v602_v55 }
 0x240   :  { %6036 = vmatmul.msk.f32.gmra.mxu0 %vm611_vm1, %v602_v55  ;;  %6060 = vmatmul.msk.f32.gmra.mxu1 %vm611_vm1, %v602_v55 }
 0x245   :  { %v6956_v56 = vpop.f32.mrf.mxu0  ;;  %v6958_v57 = vpop.f32.mrf.mxu1 }
 0x24a   :  { %v6960_v58 = vpop.f32.mrf.mxu2  ;;  %v6962_v59 = vpop.f32.mrf.mxu3 }
 0x24d   :  { %v6964_v60 = vpop.f32.mrf.mxu0  ;;  %v6966_v61 = vpop.f32.mrf.mxu1 }
 0x252   :  { %v6968_v62 = vpop.f32.mrf.mxu2  ;;  %v6970_v63 = vpop.f32.mrf.mxu3 }
 0x255   :  { %v6972_v0 = vpop.f32.mrf.mxu0  ;;  %v6974_v1 = vpop.f32.mrf.mxu1 }
 0x25a   :  { %v6976_v2 = vpop.f32.mrf.mxu2  ;;  %v6978_v3 = vpop.f32.mrf.mxu3 }
 0x25d   :  { %v6980_v4 = vpop.f32.mrf.mxu0  ;;  %v6982_v5 = vpop.f32.mrf.mxu1 }
 0x262   :  { %v6984_v6 = vpop.f32.mrf.mxu2  ;;  %v6986_v7 = vpop.f32.mrf.mxu3 }
 0x265   :  { %v6988_v8 = vpop.f32.mrf.mxu0  ;;  %v6990_v9 = vpop.f32.mrf.mxu1 }
 0x26a   :  { %v6992_v10 = vpop.f32.mrf.mxu2  ;;  %v6994_v11 = vpop.f32.mrf.mxu3 }
 0x26d   :  { %v6996_v12 = vpop.f32.mrf.mxu0  ;;  %v6998_v13 = vpop.f32.mrf.mxu1 }
 0x272   :  { %v7000_v14 = vpop.f32.mrf.mxu2  ;;  %v7002_v15 = vpop.f32.mrf.mxu3 }
 0x275   :  { %v7004_v16 = vpop.f32.mrf.mxu0  ;;  %v7006_v17 = vpop.f32.mrf.mxu1 }
 0x27a   :  { %v7008_v18 = vpop.f32.mrf.mxu2  ;;  %v7010_v19 = vpop.f32.mrf.mxu3 }
 0x27d   :  { %v7012_v20 = vpop.f32.mrf.mxu0  ;;  %v7014_v21 = vpop.f32.mrf.mxu1 }
 0x282   :  { %v7016_v22 = vpop.f32.mrf.mxu2  ;;  %v7018_v23 = vpop.f32.mrf.mxu3 }
 0x285   :  { %v849_v24 = vpop.f32.mrf.mxu0  ;;  %v923_v25 = vpop.f32.mrf.mxu1 }
 0x28a   :  { %v7020_v26 = vpop.f32.mrf.mxu2  ;;  %v7022_v27 = vpop.f32.mrf.mxu3 }
 0x28d   :  { %v852_v28 = vpop.f32.mrf.mxu0  ;;  %v926_v29 = vpop.f32.mrf.mxu1 }
 0x292   :  { %v704_v30 = vpop.f32.mrf.mxu2  ;;  %v778_v31 = vpop.f32.mrf.mxu3 }
 0x295   :  { %v855_v32 = vpop.f32.mrf.mxu0  ;;  %v929_v33 = vpop.f32.mrf.mxu1 }
 0x29a   :  { %v707_v34 = vpop.f32.mrf.mxu2  ;;  %v781_v35 = vpop.f32.mrf.mxu3 }
 0x29d   :  { %v858_v36 = vpop.f32.mrf.mxu0  ;;  %v932_v37 = vpop.f32.mrf.mxu1 }
 0x2a2   :  { %v710_v38 = vpop.f32.mrf.mxu2  ;;  %v784_v39 = vpop.f32.mrf.mxu3 }
 0x2a5   :  { %v861_v40 = vpop.f32.mrf.mxu0  ;;  %v935_v41 = vpop.f32.mrf.mxu1 }
 0x2aa   :  { %v713_v42 = vpop.f32.mrf.mxu2  ;;  %v787_v43 = vpop.f32.mrf.mxu3 }
 0x2ad   :  { %v864_v44 = vpop.f32.mrf.mxu0  ;;  %v938_v45 = vpop.f32.mrf.mxu1 }
 0x2b2   :  { %v716_v46 = vpop.f32.mrf.mxu2  ;;  %v790_v47 = vpop.f32.mrf.mxu3 }
 0x2b5   :  { %v867_v48 = vpop.f32.mrf.mxu0  ;;  %v941_v49 = vpop.f32.mrf.mxu1 }
 0x2ba   :  { %v719_v50 = vpop.f32.mrf.mxu2  ;;  %v793_v51 = vpop.f32.mrf.mxu3 }
 0x2bd   :  { %v870_v52 = vpop.f32.mrf.mxu0  ;;  %v944_v53 = vpop.f32.mrf.mxu1 }
 0x2be   :  { %1141 = vmatpush.msrb.mxu0 %v870_v52  ;;  %1206 = vmatpush.msrb.mxu1 %v944_v53  ;;  %v1009_v52 = vld [vmem:[%s6618_s17 + $0x1f0] sm:$0xff]  ;;  %v1010_v53 = vld [vmem:[%s6618_s17 + $0x1f8] sm:$0xff] }
 0x2c0   :  { %1142 = vmatpush.msrb.mxu0 %v867_v48  ;;  %1207 = vmatpush.msrb.mxu1 %v941_v49  ;;  %v1005_v48 = vld [vmem:[%s6618_s17 + $0x1d0] sm:$0xff]  ;;  %v1006_v49 = vld [vmem:[%s6618_s17 + $0x1d8] sm:$0xff] }
 0x2c2   :  { %1143 = vmatpush.msrb.mxu0 %v864_v44  ;;  %1208 = vmatpush.msrb.mxu1 %v938_v45  ;;  %v722_v54 = vpop.f32.mrf.mxu2  ;;  %v796_v55 = vpop.f32.mrf.mxu3  ;;  %v1001_v44 = vld [vmem:[%s6618_s17 + $0x1b0] sm:$0xff]  ;;  %v1002_v45 = vld [vmem:[%s6618_s17 + $0x1b8] sm:$0xff] }
 0x2c3   :  { %1011 = vmatpush.msra.mxu2 %v722_v54  ;;  %1076 = vmatpush.msra.mxu3 %v796_v55  ;;  %v1007_v54 = vld [vmem:[%s6618_s17 + $0x1e0] sm:$0xff]  ;;  %v1008_v55 = vld [vmem:[%s6618_s17 + $0x1e8] sm:$0xff] }
 0x2c4   :  { %1144 = vmatpush.msrb.mxu0 %v861_v40  ;;  %1209 = vmatpush.msrb.mxu1 %v935_v41  ;;  %v997_v40 = vld [vmem:[%s6618_s17 + $0x190] sm:$0xff]  ;;  %v998_v41 = vld [vmem:[%s6618_s17 + $0x198] sm:$0xff] }
 0x2c5   :  { %1012 = vmatpush.msra.mxu2 %v719_v50  ;;  %1077 = vmatpush.msra.mxu3 %v793_v51  ;;  %v1003_v50 = vld [vmem:[%s6618_s17 + $0x1c0] sm:$0xff]  ;;  %v1004_v51 = vld [vmem:[%s6618_s17 + $0x1c8] sm:$0xff] }
 0x2c6   :  { %1145 = vmatpush.msrb.mxu0 %v858_v36  ;;  %1210 = vmatpush.msrb.mxu1 %v932_v37  ;;  %v993_v36 = vld [vmem:[%s6618_s17 + $0x170] sm:$0xff]  ;;  %v994_v37 = vld [vmem:[%s6618_s17 + $0x178] sm:$0xff] }
 0x2c7   :  { %1013 = vmatpush.msra.mxu2 %v716_v46  ;;  %1078 = vmatpush.msra.mxu3 %v790_v47  ;;  %v999_v46 = vld [vmem:[%s6618_s17 + $0x1a0] sm:$0xff]  ;;  %v1000_v47 = vld [vmem:[%s6618_s17 + $0x1a8] sm:$0xff] }
 0x2c8   :  { %1146 = vmatpush.msrb.mxu0 %v855_v32  ;;  %1211 = vmatpush.msrb.mxu1 %v929_v33  ;;  %v989_v32 = vld [vmem:[%s6618_s17 + $0x150] sm:$0xff]  ;;  %v990_v33 = vld [vmem:[%s6618_s17 + $0x158] sm:$0xff] }
 0x2c9   :  { %1014 = vmatpush.msra.mxu2 %v713_v42  ;;  %1079 = vmatpush.msra.mxu3 %v787_v43  ;;  %v995_v42 = vld [vmem:[%s6618_s17 + $0x180] sm:$0xff]  ;;  %v996_v43 = vld [vmem:[%s6618_s17 + $0x188] sm:$0xff] }
 0x2ca   :  { %1147 = vmatpush.msrb.mxu0 %v852_v28  ;;  %1212 = vmatpush.msrb.mxu1 %v926_v29  ;;  %v985_v28 = vld [vmem:[%s6618_s17 + $0x130] sm:$0xff]  ;;  %v986_v29 = vld [vmem:[%s6618_s17 + $0x138] sm:$0xff] }
 0x2cb   :  { %1015 = vmatpush.msra.mxu2 %v710_v38  ;;  %1080 = vmatpush.msra.mxu3 %v784_v39  ;;  %v991_v38 = vld [vmem:[%s6618_s17 + $0x160] sm:$0xff]  ;;  %v992_v39 = vld [vmem:[%s6618_s17 + $0x168] sm:$0xff] }
 0x2cc   :  { %1148 = vmatpush.msrb.mxu0 %v849_v24  ;;  %1213 = vmatpush.msrb.mxu1 %v923_v25  ;;  %v981_v24 = vld [vmem:[%s6618_s17 + $0x110] sm:$0xff]  ;;  %v982_v25 = vld [vmem:[%s6618_s17 + $0x118] sm:$0xff] }
 0x2cd   :  { %1016 = vmatpush.msra.mxu2 %v707_v34  ;;  %1081 = vmatpush.msra.mxu3 %v781_v35  ;;  %v987_v34 = vld [vmem:[%s6618_s17 + $0x140] sm:$0xff]  ;;  %v988_v35 = vld [vmem:[%s6618_s17 + $0x148] sm:$0xff] }
 0x2ce   :  { %1149 = vmatpush.msrb.mxu0 %v7012_v20  ;;  %1214 = vmatpush.msrb.mxu1 %v7014_v21  ;;  %v977_v20 = vld [vmem:[%s6618_s17 + $0xf0] sm:$0xff]  ;;  %v978_v21 = vld [vmem:[%s6618_s17 + $0xf8] sm:$0xff] }
 0x2cf   :  { %1017 = vmatpush.msra.mxu2 %v704_v30  ;;  %1082 = vmatpush.msra.mxu3 %v778_v31  ;;  %v983_v30 = vld [vmem:[%s6618_s17 + $0x120] sm:$0xff]  ;;  %v984_v31 = vld [vmem:[%s6618_s17 + $0x128] sm:$0xff] }
 0x2d0   :  { %1150 = vmatpush.msrb.mxu0 %v7004_v16  ;;  %1215 = vmatpush.msrb.mxu1 %v7006_v17  ;;  %v973_v16 = vld [vmem:[%s6618_s17 + $0xd0] sm:$0xff]  ;;  %v974_v17 = vld [vmem:[%s6618_s17 + $0xd8] sm:$0xff] }
 0x2d1   :  { %1018 = vmatpush.msra.mxu2 %v7020_v26  ;;  %1083 = vmatpush.msra.mxu3 %v7022_v27  ;;  %v979_v26 = vld [vmem:[%s6618_s17 + $0x100] sm:$0xff]  ;;  %v980_v27 = vld [vmem:[%s6618_s17 + $0x108] sm:$0xff] }
 0x2d2   :  { %1151 = vmatpush.msrb.mxu0 %v6996_v12  ;;  %1216 = vmatpush.msrb.mxu1 %v6998_v13  ;;  %v969_v12 = vld [vmem:[%s6618_s17 + $0xb0] sm:$0xff]  ;;  %v970_v13 = vld [vmem:[%s6618_s17 + $0xb8] sm:$0xff] }
 0x2d3   :  { %1019 = vmatpush.msra.mxu2 %v7016_v22  ;;  %1084 = vmatpush.msra.mxu3 %v7018_v23  ;;  %v975_v22 = vld [vmem:[%s6618_s17 + $0xe0] sm:$0xff]  ;;  %v976_v23 = vld [vmem:[%s6618_s17 + $0xe8] sm:$0xff] }
 0x2d4   :  { %1152 = vmatpush.msrb.mxu0 %v6988_v8  ;;  %1217 = vmatpush.msrb.mxu1 %v6990_v9  ;;  %v965_v8 = vld [vmem:[%s6618_s17 + $0x90] sm:$0xff]  ;;  %v966_v9 = vld [vmem:[%s6618_s17 + $0x98] sm:$0xff] }
 0x2d5   :  { %1020 = vmatpush.msra.mxu2 %v7008_v18  ;;  %1085 = vmatpush.msra.mxu3 %v7010_v19  ;;  %v971_v18 = vld [vmem:[%s6618_s17 + $0xc0] sm:$0xff]  ;;  %v972_v19 = vld [vmem:[%s6618_s17 + $0xc8] sm:$0xff] }
 0x2d6   :  { %1153 = vmatpush.msrb.mxu0 %v6980_v4  ;;  %1218 = vmatpush.msrb.mxu1 %v6982_v5  ;;  %v949_v4 = vld [vmem:[%s6618_s17 + $0x10] sm:$0xff]  ;;  %v950_v5 = vld [vmem:[%s6618_s17 + $0x18] sm:$0xff] }
 0x2d7   :  { %1021 = vmatpush.msra.mxu2 %v7000_v14  ;;  %1086 = vmatpush.msra.mxu3 %v7002_v15  ;;  %v967_v14 = vld [vmem:[%s6618_s17 + $0xa0] sm:$0xff]  ;;  %v968_v15 = vld [vmem:[%s6618_s17 + $0xa8] sm:$0xff] }
 0x2d8   :  { %1154 = vmatpush.msrb.mxu0 %v6972_v0  ;;  %1219 = vmatpush.msrb.mxu1 %v6974_v1  ;;  %v957_v0 = vld [vmem:[%s6618_s17 + $0x50] sm:$0xff]  ;;  %v956_v1 = vld [vmem:[%s6618_s17 + $0x48] sm:$0xff] }
 0x2d9   :  { %1022 = vmatpush.msra.mxu2 %v6992_v10  ;;  %1087 = vmatpush.msra.mxu3 %v6994_v11  ;;  %v963_v10 = vld [vmem:[%s6618_s17 + $0x80] sm:$0xff]  ;;  %v964_v11 = vld [vmem:[%s6618_s17 + $0x88] sm:$0xff] }
 0x2da   :  { %1155 = vmatpush.msrb.mxu0 %v6964_v60  ;;  %1220 = vmatpush.msrb.mxu1 %v6966_v61  ;;  %v947_v60 = vld [vmem:[%s6618_s17] sm:$0xff]  ;;  %v948_v61 = vld [vmem:[%s6618_s17 + $0x8] sm:$0xff] }
 0x2db   :  { %1023 = vmatpush.msra.mxu2 %v6984_v6  ;;  %1088 = vmatpush.msra.mxu3 %v6986_v7  ;;  %v959_v6 = vld [vmem:[%s6618_s17 + $0x60] sm:$0xff]  ;;  %v960_v7 = vld [vmem:[%s6618_s17 + $0x68] sm:$0xff] }
 0x2dc   :  { %1156 = vmatpush.msrb.mxu0 %v6956_v56  ;;  %1221 = vmatpush.msrb.mxu1 %v6958_v57  ;;  %v953_v56 = vld [vmem:[%s6618_s17 + $0x30] sm:$0xff]  ;;  %v954_v57 = vld [vmem:[%s6618_s17 + $0x38] sm:$0xff] }
 0x2dd   :  { %1024 = vmatpush.msra.mxu2 %v6976_v2  ;;  %1089 = vmatpush.msra.mxu3 %v6978_v3  ;;  %v961_v2 = vld [vmem:[%s6618_s17 + $0x70] sm:$0xff]  ;;  %v962_v3 = vld [vmem:[%s6618_s17 + $0x78] sm:$0xff] }
 0x2de   :  { %1157 = vmatmul.f32.vlgmr.msrb.gmra.mxu0 %v949_v4  ;;  %1222 = vmatmul.f32.vlgmr.msrb.gmra.mxu1 %v950_v5 }
 0x2df   :  { %1025 = vmatpush.msra.mxu2 %v6968_v62  ;;  %1090 = vmatpush.msra.mxu3 %v6970_v63  ;;  %v951_v62 = vld [vmem:[%s6618_s17 + $0x20] sm:$0xff]  ;;  %v952_v63 = vld [vmem:[%s6618_s17 + $0x28] sm:$0xff] }
 0x2e1   :  { %1026 = vmatpush.msra.mxu2 %v6960_v58  ;;  %1091 = vmatpush.msra.mxu3 %v6962_v59  ;;  %v958_v58 = vld [vmem:[%s6618_s17 + $0x58] sm:$0xff]  ;;  %v955_v59 = vld [vmem:[%s6618_s17 + $0x40] sm:$0xff]  ;;  %s9019_s17 = sld [smem:[#allocation11_spill]] }
 0x2e2   :  { %1027 = vmatmul.f32.vlgmr.msra.gmra.mxu2 %v947_v60  ;;  %1092 = vmatmul.f32.vlgmr.msra.gmra.mxu3 %v948_v61 }
 0x2e6   :  { %1160 = vmatmul.f32.gmra.mxu0 %v953_v56  ;;  %1225 = vmatmul.f32.gmra.mxu1 %v954_v57 }
 0x2ea   :  { %1030 = vmatmul.f32.gmra.mxu2 %v951_v62  ;;  %1095 = vmatmul.f32.gmra.mxu3 %v952_v63 }
 0x2ee   :  { %1163 = vmatmul.f32.gmra.mxu0 %v957_v0  ;;  %1228 = vmatmul.f32.gmra.mxu1 %v958_v58 }
 0x2f2   :  { %1033 = vmatmul.f32.gmra.mxu2 %v955_v59  ;;  %1098 = vmatmul.f32.gmra.mxu3 %v956_v1 }
 0x2f6   :  { %1166 = vmatmul.f32.gmra.mxu0 %v961_v2  ;;  %1231 = vmatmul.f32.gmra.mxu1 %v962_v3 }
 0x2fa   :  { %1036 = vmatmul.f32.gmra.mxu2 %v959_v6  ;;  %1101 = vmatmul.f32.gmra.mxu3 %v960_v7 }
 0x2fe   :  { %1169 = vmatmul.f32.gmra.mxu0 %v965_v8  ;;  %1234 = vmatmul.f32.gmra.mxu1 %v966_v9 }
 0x302   :  { %1039 = vmatmul.f32.gmra.mxu2 %v963_v10  ;;  %1104 = vmatmul.f32.gmra.mxu3 %v964_v11 }
 0x306   :  { %1172 = vmatmul.f32.gmra.mxu0 %v969_v12  ;;  %1237 = vmatmul.f32.gmra.mxu1 %v970_v13 }
 0x30a   :  { %1042 = vmatmul.f32.gmra.mxu2 %v967_v14  ;;  %1107 = vmatmul.f32.gmra.mxu3 %v968_v15 }
 0x30e   :  { %1175 = vmatmul.f32.gmra.mxu0 %v973_v16  ;;  %1240 = vmatmul.f32.gmra.mxu1 %v974_v17 }
 0x312   :  { %1045 = vmatmul.f32.gmra.mxu2 %v971_v18  ;;  %1110 = vmatmul.f32.gmra.mxu3 %v972_v19 }
 0x316   :  { %1178 = vmatmul.f32.gmra.mxu0 %v977_v20  ;;  %1243 = vmatmul.f32.gmra.mxu1 %v978_v21 }
 0x31a   :  { %1048 = vmatmul.f32.gmra.mxu2 %v975_v22  ;;  %1113 = vmatmul.f32.gmra.mxu3 %v976_v23 }
 0x31e   :  { %1181 = vmatmul.f32.gmra.mxu0 %v981_v24  ;;  %1246 = vmatmul.f32.gmra.mxu1 %v982_v25 }
 0x322   :  { %1051 = vmatmul.f32.gmra.mxu2 %v979_v26  ;;  %1116 = vmatmul.f32.gmra.mxu3 %v980_v27 }
 0x326   :  { %1184 = vmatmul.f32.gmra.mxu0 %v985_v28  ;;  %1249 = vmatmul.f32.gmra.mxu1 %v986_v29 }
 0x32a   :  { %1054 = vmatmul.f32.gmra.mxu2 %v983_v30  ;;  %1119 = vmatmul.f32.gmra.mxu3 %v984_v31 }
 0x32e   :  { %1187 = vmatmul.f32.gmra.mxu0 %v989_v32  ;;  %1252 = vmatmul.f32.gmra.mxu1 %v990_v33 }
 0x332   :  { %1057 = vmatmul.f32.gmra.mxu2 %v987_v34  ;;  %1122 = vmatmul.f32.gmra.mxu3 %v988_v35 }
 0x336   :  { %1190 = vmatmul.f32.gmra.mxu0 %v993_v36  ;;  %1255 = vmatmul.f32.gmra.mxu1 %v994_v37 }
 0x33a   :  { %1060 = vmatmul.f32.gmra.mxu2 %v991_v38  ;;  %1125 = vmatmul.f32.gmra.mxu3 %v992_v39 }
 0x33e   :  { %1193 = vmatmul.f32.gmra.mxu0 %v997_v40  ;;  %1258 = vmatmul.f32.gmra.mxu1 %v998_v41 }
 0x342   :  { %1063 = vmatmul.f32.gmra.mxu2 %v995_v42  ;;  %1128 = vmatmul.f32.gmra.mxu3 %v996_v43 }
 0x346   :  { %1196 = vmatmul.f32.gmra.mxu0 %v1001_v44  ;;  %1261 = vmatmul.f32.gmra.mxu1 %v1002_v45 }
 0x34a   :  { %1066 = vmatmul.f32.gmra.mxu2 %v999_v46  ;;  %1131 = vmatmul.f32.gmra.mxu3 %v1000_v47 }
 0x34e   :  { %1199 = vmatmul.f32.gmra.mxu0 %v1005_v48  ;;  %1264 = vmatmul.f32.gmra.mxu1 %v1006_v49 }
 0x352   :  { %1069 = vmatmul.f32.gmra.mxu2 %v1003_v50  ;;  %1134 = vmatmul.f32.gmra.mxu3 %v1004_v51 }
 0x356   :  { %1202 = vmatmul.f32.gmra.mxu0 %v1009_v52  ;;  %1267 = vmatmul.f32.gmra.mxu1 %v1010_v53 }
 0x35a   :  { %1072 = vmatmul.f32.gmra.mxu2 %v1007_v54  ;;  %1137 = vmatmul.f32.gmra.mxu3 %v1008_v55 }
 0x35b   :  { %v7122_v4 = vpop.f32.mrf.mxu0  ;;  %v7124_v5 = vpop.f32.mrf.mxu1 }
 0x35c   :  { %8958 = vst [vmem:[#allocation20_spill] sm:$0xff] %v7122_v4 }
 0x35d   :  { %8959 = vst [vmem:[#allocation21_spill] sm:$0xff] %v7124_v5 }
 0x363   :  { %v7126_v60 = vpop.f32.mrf.mxu0  ;;  %v7128_v61 = vpop.f32.mrf.mxu1 }
 0x364   :  { %8960 = vst [vmem:[#allocation22_spill] sm:$0xff] %v7126_v60 }
 0x365   :  { %8961 = vst [vmem:[#allocation23_spill] sm:$0xff] %v7128_v61  ;;  %v7130_v56 = vpop.f32.mrf.mxu2  ;;  %v7132_v57 = vpop.f32.mrf.mxu3 }
 0x366   :  { %8962 = vst [vmem:[#allocation24_spill] sm:$0xff] %v7130_v56 }
 0x367   :  { %8963 = vst [vmem:[#allocation25_spill] sm:$0xff] %v7132_v57 }
 0x36b   :  { %v7134_v62 = vpop.f32.mrf.mxu0  ;;  %v7136_v63 = vpop.f32.mrf.mxu1 }
 0x36c   :  { %8964 = vst [vmem:[#allocation26_spill] sm:$0xff] %v7134_v62 }
 0x36d   :  { %8965 = vst [vmem:[#allocation27_spill] sm:$0xff] %v7136_v63  ;;  %v7138_v0 = vpop.f32.mrf.mxu2  ;;  %v7140_v58 = vpop.f32.mrf.mxu3 }
 0x36e   :  { %8966 = vst [vmem:[#allocation28_spill] sm:$0xff] %v7138_v0 }
 0x36f   :  { %8967 = vst [vmem:[#allocation29_spill] sm:$0xff] %v7140_v58 }
 0x373   :  { %v7142_v59 = vpop.f32.mrf.mxu0  ;;  %v7144_v1 = vpop.f32.mrf.mxu1 }
 0x374   :  { %8968 = vst [vmem:[#allocation30_spill] sm:$0xff] %v7142_v59 }
 0x375   :  { %8969 = vst [vmem:[#allocation31_spill] sm:$0xff] %v7144_v1  ;;  %v7146_v2 = vpop.f32.mrf.mxu2  ;;  %v7148_v3 = vpop.f32.mrf.mxu3 }
 0x37b   :  { %v7150_v6 = vpop.f32.mrf.mxu0  ;;  %v7152_v7 = vpop.f32.mrf.mxu1 }
 0x37c   :  { %8970 = vst [vmem:[#allocation32_spill] sm:$0xff] %v7152_v7 }
 0x37d   :  { %v7154_v8 = vpop.f32.mrf.mxu2  ;;  %v7156_v9 = vpop.f32.mrf.mxu3 }
 0x383   :  { %v7158_v10 = vpop.f32.mrf.mxu0  ;;  %v7160_v11 = vpop.f32.mrf.mxu1 }
 0x384   :  { %8971 = vst [vmem:[#allocation33_spill] sm:$0xff] %v7160_v11 }
 0x385   :  { %v7162_v12 = vpop.f32.mrf.mxu2  ;;  %v7164_v13 = vpop.f32.mrf.mxu3 }
 0x38b   :  { %v7166_v14 = vpop.f32.mrf.mxu0  ;;  %v7168_v15 = vpop.f32.mrf.mxu1 }
 0x38d   :  { %v7170_v16 = vpop.f32.mrf.mxu2  ;;  %v7172_v17 = vpop.f32.mrf.mxu3 }
 0x393   :  { %v7174_v18 = vpop.f32.mrf.mxu0  ;;  %v7176_v19 = vpop.f32.mrf.mxu1 }
 0x395   :  { %v7178_v20 = vpop.f32.mrf.mxu2  ;;  %v7180_v21 = vpop.f32.mrf.mxu3 }
 0x39b   :  { %v7182_v22 = vpop.f32.mrf.mxu0  ;;  %v7184_v23 = vpop.f32.mrf.mxu1 }
 0x39d   :  { %v1049_v24 = vpop.f32.mrf.mxu2  ;;  %v1114_v25 = vpop.f32.mrf.mxu3 }
 0x3a3   :  { %v1185_v26 = vpop.f32.mrf.mxu0  ;;  %v7186_v27 = vpop.f32.mrf.mxu1 }
 0x3a5   :  { %v1052_v28 = vpop.f32.mrf.mxu2  ;;  %v1117_v29 = vpop.f32.mrf.mxu3 }
 0x3ab   :  { %v1188_v30 = vpop.f32.mrf.mxu0  ;;  %v1253_v31 = vpop.f32.mrf.mxu1 }
 0x3ad   :  { %v1055_v32 = vpop.f32.mrf.mxu2  ;;  %v1120_v33 = vpop.f32.mrf.mxu3 }
 0x3ae   :  { %v1121_v58 = vadd.f32 %v1120_v33, %v1055_v32  ;;  %v8979_v33 = vld [vmem:[#allocation32_spill] sm:$0xff] }
 0x3b3   :  { %v1191_v34 = vpop.f32.mrf.mxu0  ;;  %v1256_v37 = vpop.f32.mrf.mxu1 }
 0x3b5   :  { %v1058_v35 = vpop.f32.mrf.mxu2  ;;  %v1123_v36 = vpop.f32.mrf.mxu3 }
 0x3b6   :  { %v1124_v57 = vadd.f32 %v1123_v36, %v1058_v35  ;;  %v8980_v36 = vld [vmem:[#allocation22_spill] sm:$0xff] }
 0x3bb   :  { %v1194_v40 = vpop.f32.mrf.mxu0  ;;  %v1259_v41 = vpop.f32.mrf.mxu1 }
 0x3bd   :  { %v1061_v38 = vpop.f32.mrf.mxu2  ;;  %v1126_v39 = vpop.f32.mrf.mxu3 }
 0x3be   :  { %v1127_v60 = vadd.f32 %v1126_v39, %v1061_v38  ;;  %v8981_v39 = vld [vmem:[#allocation31_spill] sm:$0xff] }
 0x3c0   :  { %v1192_v0 = vadd.f32 %v1191_v34, %v1127_v60 }
 0x3c2   :  { %v7202_v60 = vadd.f32 %v1256_v37, %v1192_v0 }
 0x3c3   :  { %v1197_v44 = vpop.f32.mrf.mxu0  ;;  %v1262_v45 = vpop.f32.mrf.mxu1 }
 0x3c5   :  { %v1064_v42 = vpop.f32.mrf.mxu2  ;;  %v1129_v43 = vpop.f32.mrf.mxu3 }
 0x3c6   :  { %v1130_v61 = vadd.f32 %v1129_v43, %v1064_v42  ;;  %v1189_v42 = vadd.f32 %v1188_v30, %v1124_v57  ;;  %v8982_v43 = vld [vmem:[#allocation20_spill] sm:$0xff] }
 0x3c8   :  { %v1195_v56 = vadd.f32 %v1194_v40, %v1130_v61  ;;  %v1115_v61 = vadd.f32 %v1114_v25, %v1049_v24 }
 0x3ca   :  { %v7197_v38 = vadd.f32 %v1259_v41, %v1195_v56  ;;  %v1112_v56 = vadd.f32 %v7180_v21, %v7178_v20  ;;  %v1307_v20 = vmul.f32 %v7202_v60, %v7202_v60  ;;  %v1106_v21 = vadd.f32 %v7164_v13, %v7162_v12 }
 0x3cb   :  { %v1200_v48 = vpop.f32.mrf.mxu0  ;;  %v1265_v49 = vpop.f32.mrf.mxu1  ;;  %v1100_v13 = vadd.f32 %v7148_v3, %v7146_v2  ;;  %v8976_v3 = vld [vmem:[#allocation24_spill] sm:$0xff] }
 0x3cc   :  { %v1308_v0 = vmul.f32 %v7197_v38, %v7197_v38 }
 0x3cd   :  { %v1067_v46 = vpop.f32.mrf.mxu2  ;;  %v1132_v47 = vpop.f32.mrf.mxu3 }
 0x3ce   :  { %v1133_v53 = vadd.f32 %v1132_v47, %v1067_v46 }
 0x3d0   :  { %v1198_v7 = vadd.f32 %v1197_v44, %v1133_v53  ;;  %v8985_v53 = vld [vmem:[#allocation21_spill] sm:$0xff] }
 0x3d3   :  { %v1203_v54 = vpop.f32.mrf.mxu0  ;;  %v1268_v1 = vpop.f32.mrf.mxu1 }
 0x3d5   :  { %v1070_v50 = vpop.f32.mrf.mxu2  ;;  %v1135_v51 = vpop.f32.mrf.mxu3 }
 0x3d6   :  { %v1136_v52 = vadd.f32 %v1135_v51, %v1070_v50  ;;  %v7192_v50 = vadd.f32 %v1262_v45, %v1198_v7  ;;  %v1180_v7 = vadd.f32 %v7174_v18, %v1115_v61  ;;  %v8983_v45 = vld [vmem:[#allocation27_spill] sm:$0xff] }
 0x3d8   :  { %v1201_v63 = vadd.f32 %v1200_v48, %v1136_v52 }
 0x3da   :  { %v7188_v11 = vadd.f32 %v1265_v49, %v1201_v63  ;;  %v1309_v63 = vmul.f32 %v7192_v50, %v7192_v50  ;;  %v8984_v49 = vld [vmem:[#allocation23_spill] sm:$0xff] }
 0x3dd   :  { %v1073_v55 = vpop.f32.mrf.mxu2  ;;  %v1138_v5 = vpop.f32.mrf.mxu3 }
 0x3de   :  { %v1139_v4 = vadd.f32 %v1138_v5, %v1073_v55  ;;  %v1118_v5 = vadd.f32 %v1117_v29, %v1052_v28  ;;  %v8975_v29 = vld [vmem:[#allocation33_spill] sm:$0xff] }
 0x3e0   :  { %v1204_v62 = vadd.f32 %v1203_v54, %v1139_v4  ;;  %v1310_v4 = vmul.f32 %v7188_v11, %v7188_v11  ;;  %v1183_v57 = vadd.f32 %v7182_v22, %v1118_v5  ;;  %v1177_v22 = vadd.f32 %v7166_v14, %v1112_v56  ;;  %v1271_v5 = vld [vmem:[%s6638_s3] sm:$0xff]  ;;  %s9053_s3 = sld [smem:[#allocation15_spill]] }
 0x3e1   :  { %v1171_v14 = vadd.f32 %v7150_v6, %v1106_v21  ;;  %v8977_v6 = vld [vmem:[#allocation25_spill] sm:$0xff] }
 0x3e2   :  { %v7190_v59 = vadd.f32 %v1268_v1, %v1204_v62  ;;  %v1186_v62 = vadd.f32 %v1185_v26, %v1121_v58  ;;  %v7210_v1 = vadd.f32 %v1253_v31, %v1189_v42  ;;  %v1109_v58 = vadd.f32 %v7172_v17, %v7170_v16  ;;  %v8978_v31 = vld [vmem:[#allocation26_spill] sm:$0xff] }
 0x3e3   :  { %v7228_v25 = vadd.f32 %v7184_v23, %v1183_v57  ;;  %v1103_v17 = vadd.f32 %v7156_v9, %v7154_v8  ;;  %v7237_v26 = vadd.f32 %v7176_v19, %v1180_v7  ;;  %v7246_v23 = vadd.f32 %v7168_v15, %v1177_v22  ;;  %v8972_v9 = vld [vmem:[#allocation28_spill] sm:$0xff] }
 0x3e4   :  { %v1311_v46 = vmul.f32 %v7190_v59, %v7190_v59  ;;  %1272 = vmatpush.msra.mxu0 %v7190_v59  ;;  %v7219_v24 = vadd.f32 %v7186_v27, %v1186_v62  ;;  %v1306_v16 = vmul.f32 %v7210_v1, %v7210_v1  ;;  %v1174_v18 = vadd.f32 %v7158_v10, %v1109_v58  ;;  %v8973_v10 = vld [vmem:[#allocation29_spill] sm:$0xff]  ;;  %v8974_v27 = vld [vmem:[#allocation30_spill] sm:$0xff] }
 0x3e5   :  { %v1304_v8 = vmul.f32 %v7228_v25, %v7228_v25  ;;  %v1097_v19 = vadd.f32 %v8973_v10, %v8972_v9  ;;  %v1168_v28 = vadd.f32 %v8974_v27, %v1103_v17  ;;  %v1303_v2 = vmul.f32 %v7237_v26, %v7237_v26  ;;  %v1355_v10 = vld [vmem:[%s6643_s8] sm:$0xff] }
 0x3e6   :  { %1273 = vmatpush.msra.mxu0 %v7188_v11  ;;  %1312 = vmatpush.msra.mxu1 %v1311_v46  ;;  %v1305_v12 = vmul.f32 %v7219_v24, %v7219_v24  ;;  %v7255_v30 = vadd.f32 %v8975_v29, %v1174_v18  ;;  %v1094_v15 = vadd.f32 %v8977_v6, %v8976_v3  ;;  %v1356_v29 = vld [vmem:[%s6643_s8 + $0x8] sm:$0xff]  ;;  %v1358_v3 = vld [vmem:[%s6643_s8 + $0x18] sm:$0xff]  ;;  %v1359_v6 = vld [vmem:[%s6643_s8 + $0x20] sm:$0xff] }
 0x3e7   :  { %v1165_v32 = vadd.f32 %v8978_v31, %v1100_v13  ;;  %v7264_v34 = vadd.f32 %v8979_v33, %v1171_v14  ;;  %v1302_v35 = vmul.f32 %v7246_v23, %v7246_v23  ;;  %v1162_v37 = vadd.f32 %v8980_v36, %v1097_v19  ;;  %v1350_v14 = vld [vmem:[%s6628_s25] sm:$0xff]  ;;  %v1361_v31 = vld [vmem:[%s6643_s8 + $0x30] sm:$0xff]  ;;  %s9051_s25 = sld [smem:[#allocation12_spill]] }
 0x3e8   :  { %1274 = vmatpush.msra.mxu0 %v7192_v50  ;;  %1313 = vmatpush.msra.mxu1 %v1310_v4  ;;  %v7271_v40 = vadd.f32 %v8981_v39, %v1168_v28  ;;  %v1301_v41 = vmul.f32 %v7255_v30, %v7255_v30  ;;  %v1159_v44 = vadd.f32 %v8982_v43, %v1094_v15  ;;  %v1352_v19 = vld [vmem:[%s6633_s29] sm:$0xff]  ;;  %v1360_v15 = vld [vmem:[%s6643_s8 + $0x28] sm:$0xff]  ;;  %v1365_v36 = vld [vmem:[%s6643_s8 + $0x50] sm:$0xff]  ;;  %s9052_s29 = sld [smem:[#allocation13_spill]] }
 0x3e9   :  { %v7278_v47 = vadd.f32 %v8983_v45, %v1165_v32  ;;  %v1300_v48 = vmul.f32 %v7264_v34, %v7264_v34  ;;  %v7284_v51 = vadd.f32 %v8984_v49, %v1162_v37  ;;  %v1362_v32 = vld [vmem:[%s6643_s8 + $0x38] sm:$0xff]  ;;  %v1363_v33 = vld [vmem:[%s6643_s8 + $0x40] sm:$0xff]  ;;  %v1368_v43 = vld [vmem:[%s6643_s8 + $0x68] sm:$0xff] }
 0x3ea   :  { %1275 = vmatpush.msra.mxu0 %v7197_v38  ;;  %1314 = vmatpush.msra.mxu1 %v1309_v63  ;;  %v1299_v52 = vmul.f32 %v7271_v40, %v7271_v40  ;;  %v7290_v54 = vadd.f32 %v8985_v53, %v1159_v44  ;;  %v1366_v37 = vld [vmem:[%s6643_s8 + $0x58] sm:$0xff]  ;;  %v1367_v39 = vld [vmem:[%s6643_s8 + $0x60] sm:$0xff]  ;;  %v1369_v44 = vld [vmem:[%s6643_s8 + $0x70] sm:$0xff] }
 0x3eb   :  { %v1298_v55 = vmul.f32 %v7278_v47, %v7278_v47  ;;  %v1297_v46 = vmul.f32 %v7284_v51, %v7284_v51  ;;  %v1370_v45 = vld [vmem:[%s6643_s8 + $0x78] sm:$0xff] }
 0x3ec   :  { %1276 = vmatpush.msra.mxu0 %v7202_v60  ;;  %1315 = vmatpush.msra.mxu1 %v1308_v0  ;;  %v1296_v42 = vmul.f32 %v7290_v54, %v7290_v54 }
 0x3ee   :  { %1277 = vmatpush.msra.mxu0 %v7210_v1  ;;  %1316 = vmatpush.msra.mxu1 %v1307_v20 }
 0x3f0   :  { %1278 = vmatpush.msra.mxu0 %v7219_v24  ;;  %1317 = vmatpush.msra.mxu1 %v1306_v16 }
 0x3f2   :  { %1279 = vmatpush.msra.mxu0 %v7228_v25  ;;  %1318 = vmatpush.msra.mxu1 %v1305_v12 }
 0x3f4   :  { %1280 = vmatpush.msra.mxu0 %v7237_v26  ;;  %1319 = vmatpush.msra.mxu1 %v1304_v8 }
 0x3f6   :  { %1281 = vmatpush.msra.mxu0 %v7246_v23  ;;  %1320 = vmatpush.msra.mxu1 %v1303_v2  ;;  %v1357_v2 = vld [vmem:[%s6643_s8 + $0x10] sm:$0xff] }
 0x3f8   :  { %1282 = vmatpush.msra.mxu0 %v7255_v30  ;;  %1321 = vmatpush.msra.mxu1 %v1302_v35  ;;  %v1364_v35 = vld [vmem:[%s6643_s8 + $0x48] sm:$0xff]  ;;  %s9054_s8 = sld [smem:[#allocation16_spill]] }
 0x3fa   :  { %1283 = vmatpush.msra.mxu0 %v7264_v34  ;;  %1322 = vmatpush.msra.mxu1 %v1301_v41  ;;  %v6594_v41 = vmov 0  }
 0x3fb   :  { %6472 = vset.pattern.permute.xlu1 %v6594_v41  ;;  %6473 = vset.pattern.permute.xlu2 %v6594_v41 }
 0x3fc   :  { %1284 = vmatpush.msra.mxu0 %v7271_v40  ;;  %1323 = vmatpush.msra.mxu1 %v1300_v48 }
 0x3fd   :  { %6474 = vset.pattern.permute.xlu0 %v6594_v41 }
 0x3fe   :  { %1285 = vmatpush.msra.mxu0 %v7278_v47  ;;  %1324 = vmatpush.msra.mxu1 %v1299_v52 }
 0x400   :  { %1286 = vmatpush.msra.mxu0 %v7284_v51  ;;  %1325 = vmatpush.msra.mxu1 %v1298_v55 }
 0x402   :  { %1287 = vmatpush.msra.mxu0 %v7290_v54  ;;  %1326 = vmatpush.msra.mxu1 %v1297_v46 }
 0x403   :  { %1288 = vmatmul.f32.vlgmr.msra.gmra.mxu0 %v1271_v5 }
 0x404   :  { %1327 = vmatpush.msra.mxu1 %v1296_v42 }
 0x405   :  { %1328 = vmatmul.f32.vlgmr.msra.gmra.mxu1 %v1271_v5 }
 0x480   :  { %v1289_v4 = vpop.f32.mrf.mxu0 }
 0x481   :  { %v1293_v61 = vsel %vm1292_vm2, %v1289_v4, 0.0 }
 0x482   :  { %1294 = vadd.xlane.f32.xlu0 %v1293_v61  ;;  %v1329_v62 = vpop.f32.mrf.mxu1 }
 0x483   :  { %v1332_v63 = vsel %vm1292_vm2, %v1329_v62, 0.0 }
 0x48a   :  { %1333 = vadd.xlane.f32.xlu0 %v1332_v63 }
 0x4f5   :  { %v1295_v56 = vpop.xlane.xlu0 %1294 }
 0x4f6   :  { %v1335_v57 = vmul.f32 0.001953125, %v1295_v56 }
 0x4f8   :  { %v1337_v58 = vmul.f32 %v1335_v57, %v1335_v57 }
 0x4fd   :  { %v1334_v0 = vpop.xlane.xlu0 %1333 }
 0x4fe   :  { %v1336_v7 = vmul.f32 0.001953125, %v1334_v0 }
 0x500   :  { %v1338_v20 = vsub.f32 %v1336_v7, %v1337_v58 }
 0x502   :  { %v1339_v21 = vadd.f32 1e-05, %v1338_v20 }
 0x504   :  { %6475 = vrsqrt.f32 %v1339_v21  ;;  %vm1346_vm4 = vweird.f32 %v1339_v21 }
 0x50a   :  { %v6476_v22 = vpop.eup %6475 }
 0x50b   :  { %v1341_v16 = vmul.f32 %v6476_v22, %v1339_v21  ;;  %vm1347_vm3 = vweird.f32 %v6476_v22 }
 0x50c   :  { %vm1348_vm5 = vmor %vm1346_vm4, %vm1347_vm3 }
 0x50d   :  { %v1342_v17 = vmul.f32 %v6476_v22, %v1341_v16 }
 0x50f   :  { %v1343_v18 = vmul.f32 0.5, %v1342_v17 }
 0x511   :  { %v1344_v12 = vsub.f32 1.5, %v1343_v18 }
 0x513   :  { %v1345_v13 = vmul.f32 %v6476_v22, %v1344_v12  ;;  %v1793_v12 = vld [vmem:[%s6653_s19 + $0x18] sm:$0xff] }
 0x514   :  { %1854 = vmatpush.msrb.mxu0 %v1793_v12 }
 0x515   :  { %v1349_v8 = vsel %vm1348_vm5, %v6476_v22, %v1345_v13  ;;  %v6112_v13 = vld [vmem:[%s6653_s19 + $0x38] sm:$0xff] }
 0x516   :  { %v1351_v9 = vmul.f32 %v1350_v14, %v1349_v8  ;;  %v6132_v14 = vld [vmem:[%s6653_s19 + $0x58] sm:$0xff]  ;;  %1924 = vmatpush.msrb.mxu1 %v6112_v13 }
 0x517   :  { %v6152_v8 = vld [vmem:[%s6653_s19 + $0x78] sm:$0xff] }
 0x518   :  { %1435 = vmatpush.msrb.mxu2 %v1351_v9  ;;  %v1353_v27 = vmul.f32 %v1351_v9, %v1335_v57 }
 0x519   :  { %6061 = vmatmul.msk.f32.vlgmr.msrb.gmra.mxu2 %vm1371_vm6, %v1355_v10 }
 0x51a   :  { %v1354_v28 = vsub.f32 %v1352_v19, %v1353_v27  ;;  %1994 = vmatpush.msra.mxu2 %v6132_v14  ;;  %v6111_v19 = vld [vmem:[%s6653_s19 + $0x30] sm:$0xff] }
 0x51b   :  { %v6131_v27 = vld [vmem:[%s6653_s19 + $0x50] sm:$0xff]  ;;  %1925 = vmatpush.msrb.mxu1 %v6111_v19 }
 0x51c   :  { %1500 = vmatpush.msrb.mxu3 %v1354_v28  ;;  %v6151_v28 = vld [vmem:[%s6653_s19 + $0x70] sm:$0xff]  ;;  %1995 = vmatpush.msra.mxu2 %v6131_v27 }
 0x51d   :  { %6077 = vmatmul.msk.f32.vlgmr.msrb.gmra.mxu3 %vm1371_vm6, %v1355_v10  ;;  %v1792_v10 = vld [vmem:[%s6653_s19 + $0x10] sm:$0xff] }
 0x51e   :  { %2064 = vmatpush.msra.mxu3 %v6152_v8  ;;  %1855 = vmatpush.msrb.mxu0 %v1792_v10 }
 0x520   :  { %2065 = vmatpush.msra.mxu3 %v6151_v28 }
 0x521   :  { %6062 = vmatmul.msk.f32.gmra.mxu2 %vm1371_vm6, %v1356_v29 }
 0x525   :  { %6078 = vmatmul.msk.f32.gmra.mxu3 %vm1371_vm6, %v1356_v29  ;;  %v1791_v29 = vld [vmem:[%s6653_s19 + $0x8] sm:$0xff] }
 0x526   :  { %1856 = vmatpush.msrb.mxu0 %v1791_v29 }
 0x529   :  { %6063 = vmatmul.msk.f32.gmra.mxu2 %vm1371_vm6, %v1357_v2 }
 0x52d   :  { %6079 = vmatmul.msk.f32.gmra.mxu3 %vm1371_vm6, %v1357_v2  ;;  %v6110_v2 = vld [vmem:[%s6653_s19 + $0x28] sm:$0xff] }
 0x52e   :  { %1926 = vmatpush.msrb.mxu1 %v6110_v2 }
 0x531   :  { %6064 = vmatmul.msk.f32.gmra.mxu2 %vm1371_vm6, %v1358_v3 }
 0x535   :  { %6080 = vmatmul.msk.f32.gmra.mxu3 %vm1371_vm6, %v1358_v3  ;;  %v6130_v3 = vld [vmem:[%s6653_s19 + $0x48] sm:$0xff] }
 0x536   :  { %1996 = vmatpush.msra.mxu2 %v6130_v3 }
 0x539   :  { %6065 = vmatmul.msk.f32.gmra.mxu2 %vm1371_vm6, %v1359_v6 }
 0x53d   :  { %6081 = vmatmul.msk.f32.gmra.mxu3 %vm1371_vm6, %v1359_v6  ;;  %v6150_v6 = vld [vmem:[%s6653_s19 + $0x68] sm:$0xff] }
 0x53e   :  { %2066 = vmatpush.msra.mxu3 %v6150_v6 }
 0x541   :  { %6066 = vmatmul.msk.f32.gmra.mxu2 %vm1371_vm6, %v1360_v15 }
 0x545   :  { %6082 = vmatmul.msk.f32.gmra.mxu3 %vm1371_vm6, %v1360_v15 }
 0x549   :  { %6067 = vmatmul.msk.f32.gmra.mxu2 %vm1371_vm6, %v1361_v31 }
 0x54d   :  { %6083 = vmatmul.msk.f32.gmra.mxu3 %vm1371_vm6, %v1361_v31  ;;  %v1790_v31 = vld [vmem:[%s6653_s19] sm:$0xff] }
 0x54e   :  { %1857 = vmatpush.msrb.mxu0 %v1790_v31 }
 0x551   :  { %6068 = vmatmul.msk.f32.gmra.mxu2 %vm1371_vm6, %v1362_v32 }
 0x555   :  { %6084 = vmatmul.msk.f32.gmra.mxu3 %vm1371_vm6, %v1362_v32  ;;  %v6109_v32 = vld [vmem:[%s6653_s19 + $0x20] sm:$0xff] }
 0x556   :  { %1927 = vmatpush.msrb.mxu1 %v6109_v32 }
 0x559   :  { %6069 = vmatmul.msk.f32.gmra.mxu2 %vm1371_vm6, %v1363_v33 }
 0x55d   :  { %6085 = vmatmul.msk.f32.gmra.mxu3 %vm1371_vm6, %v1363_v33  ;;  %v6129_v33 = vld [vmem:[%s6653_s19 + $0x40] sm:$0xff] }
 0x55e   :  { %1997 = vmatpush.msra.mxu2 %v6129_v33 }
 0x561   :  { %6070 = vmatmul.msk.f32.gmra.mxu2 %vm1371_vm6, %v1364_v35 }
 0x565   :  { %6086 = vmatmul.msk.f32.gmra.mxu3 %vm1371_vm6, %v1364_v35  ;;  %v6149_v35 = vld [vmem:[%s6653_s19 + $0x60] sm:$0xff]  ;;  %s9084_s19 = sld [smem:[#allocation17_spill]] }
 0x566   :  { %2067 = vmatpush.msra.mxu3 %v6149_v35 }
 0x569   :  { %6071 = vmatmul.msk.f32.gmra.mxu2 %vm1371_vm6, %v1365_v36 }
 0x56d   :  { %6087 = vmatmul.msk.f32.gmra.mxu3 %vm1371_vm6, %v1365_v36 }
 0x571   :  { %6072 = vmatmul.msk.f32.gmra.mxu2 %vm1371_vm6, %v1366_v37 }
 0x575   :  { %6088 = vmatmul.msk.f32.gmra.mxu3 %vm1371_vm6, %v1366_v37 }
 0x579   :  { %6073 = vmatmul.msk.f32.gmra.mxu2 %vm1371_vm6, %v1367_v39 }
 0x57d   :  { %6089 = vmatmul.msk.f32.gmra.mxu3 %vm1371_vm6, %v1367_v39 }
 0x581   :  { %6074 = vmatmul.msk.f32.gmra.mxu2 %vm1371_vm6, %v1368_v43 }
 0x585   :  { %6090 = vmatmul.msk.f32.gmra.mxu3 %vm1371_vm6, %v1368_v43 }
 0x589   :  { %6075 = vmatmul.msk.f32.gmra.mxu2 %vm1371_vm6, %v1369_v44 }
 0x58d   :  { %6091 = vmatmul.msk.f32.gmra.mxu3 %vm1371_vm6, %v1369_v44 }
 0x591   :  { %6076 = vmatmul.msk.f32.gmra.mxu2 %vm1371_vm6, %v1370_v45 }
 0x595   :  { %6092 = vmatmul.msk.f32.gmra.mxu3 %vm1371_vm6, %v1370_v45 }
 0x59c   :  { %v1437_v48 = vpop.f32.mrf.mxu2 }
 0x59d   :  { %1552 = vperm.xlu1 %6472, %v1437_v48  }
 0x5a0   :  { %v1502_v49 = vpop.f32.mrf.mxu3 }
 0x5a4   :  { %v1440_v52 = vpop.f32.mrf.mxu2 }
 0x5a5   :  { %1557 = vperm.xlu2 %6473, %v1440_v52   ;;  %1648 = vperm.xlu1 %6472, %v1502_v49  }
 0x5a8   :  { %v1505_v53 = vpop.f32.mrf.mxu3 }
 0x5ac   :  { %v1443_v55 = vpop.f32.mrf.mxu2 }
 0x5ad   :  { %1562 = vperm.xlu0 %6474, %v1443_v55   ;;  %1653 = vperm.xlu2 %6473, %v1505_v53  }
 0x5b0   :  { %v1508_v46 = vpop.f32.mrf.mxu3 }
 0x5b1   :  { %1658 = vperm.xlu1 %6472, %v1508_v46  }
 0x5b4   :  { %v1446_v5 = vpop.f32.mrf.mxu2 }
 0x5b5   :  { %1567 = vperm.xlu2 %6473, %v1446_v5  }
 0x5b8   :  { %v1511_v42 = vpop.f32.mrf.mxu3 }
 0x5b9   :  { %1663 = vperm.xlu1 %6472, %v1511_v42  }
 0x5bc   :  { %v1449_v4 = vpop.f32.mrf.mxu2 }
 0x5bd   :  { %1572 = vperm.xlu2 %6473, %v1449_v4  }
 0x5c0   :  { %v1514_v61 = vpop.f32.mrf.mxu3 }
 0x5c1   :  { %1668 = vperm.xlu1 %6472, %v1514_v61  }
 0x5c4   :  { %v1452_v62 = vpop.f32.mrf.mxu2 }
 0x5c5   :  { %1577 = vperm.xlu2 %6473, %v1452_v62  }
 0x5c8   :  { %v1517_v63 = vpop.f32.mrf.mxu3 }
 0x5c9   :  { %1673 = vperm.xlu1 %6472, %v1517_v63  }
 0x5cc   :  { %v1455_v56 = vpop.f32.mrf.mxu2 }
 0x5cd   :  { %1582 = vperm.xlu2 %6473, %v1455_v56  }
 0x5d0   :  { %v1520_v57 = vpop.f32.mrf.mxu3 }
 0x5d1   :  { %1678 = vperm.xlu1 %6472, %v1520_v57  }
 0x5d4   :  { %v1458_v0 = vpop.f32.mrf.mxu2 }
 0x5d5   :  { %1587 = vperm.xlu2 %6473, %v1458_v0  }
 0x5d8   :  { %v1523_v58 = vpop.f32.mrf.mxu3 }
 0x5d9   :  { %1683 = vperm.xlu0 %6474, %v1523_v58  }
 0x5dc   :  { %v1461_v7 = vpop.f32.mrf.mxu2 }
 0x5dd   :  { %1592 = vperm.xlu1 %6472, %v1461_v7  }
 0x5e0   :  { %v1526_v20 = vpop.f32.mrf.mxu3 }
 0x5e1   :  { %1688 = vperm.xlu2 %6473, %v1526_v20  }
 0x5e4   :  { %v1464_v21 = vpop.f32.mrf.mxu2 }
 0x5e5   :  { %1597 = vperm.xlu0 %6474, %v1464_v21  }
 0x5e8   :  { %v1529_v22 = vpop.f32.mrf.mxu3 }
 0x5e9   :  { %1693 = vperm.xlu1 %6472, %v1529_v22  }
 0x5ec   :  { %v1467_v16 = vpop.f32.mrf.mxu2 }
 0x5ed   :  { %1602 = vperm.xlu2 %6473, %v1467_v16  }
 0x5f0   :  { %v1532_v17 = vpop.f32.mrf.mxu3 }
 0x5f1   :  { %1698 = vperm.xlu0 %6474, %v1532_v17  }
 0x5f4   :  { %v1470_v18 = vpop.f32.mrf.mxu2 }
 0x5f5   :  { %1607 = vperm.xlu1 %6472, %v1470_v18  }
 0x5f8   :  { %v1535_v9 = vpop.f32.mrf.mxu3 }
 0x5f9   :  { %1703 = vperm.xlu2 %6473, %v1535_v9  }
 0x5fc   :  { %v1473_v15 = vpop.f32.mrf.mxu2 }
 0x5fd   :  { %1612 = vperm.xlu0 %6474, %v1473_v15  }
 0x5ff   :  { %v1558_v41 = vpop.permute.xlu2 %1557 }
 0x600   :  { %v1538_v36 = vpop.f32.mrf.mxu3  ;;  %v1631_v5 = vmul.f32 %v1558_v41, %v7284_v51 }
 0x601   :  { %1708 = vperm.xlu1 %6472, %v1538_v36  }
 0x604   :  { %v1476_v37 = vpop.f32.mrf.mxu2 }
 0x605   :  { %1617 = vperm.xlu2 %6473, %v1476_v37  }
 0x607   :  { %v1654_v49 = vpop.permute.xlu2 %1653 }
 0x608   :  { %v1541_v39 = vpop.f32.mrf.mxu3  ;;  %v1727_v4 = vadd.f32 %v1654_v49, %v1631_v5 }
 0x609   :  { %1713 = vperm.xlu0 %6474, %v1541_v39  }
 0x60a   :  { %v1759_v63 = vmul.f32 0.2, %v1727_v4  ;;  %vm1743_vm8 = vcmp.ge.f32.partialorder %v1727_v4, 0.0 }
 0x60c   :  { %v1479_v43 = vpop.f32.mrf.mxu2  ;;  %v1775_v0 = vsel %vm1743_vm8, %v1727_v4, %v1759_v63 }
 0x60d   :  { %1622 = vperm.xlu1 %6472, %v1479_v43  }
 0x60f   :  { %v1553_v44 = vpop.permute.xlu1 %1552  ;;  %v1568_v62 = vpop.permute.xlu2 %1567 }
 0x610   :  { %v1544_v45 = vpop.f32.mrf.mxu3  ;;  %v1630_v52 = vmul.f32 %v1553_v44, %v7290_v54  ;;  %v1633_v20 = vmul.f32 %v1568_v62, %v7271_v40 }
 0x611   :  { %1718 = vperm.xlu2 %6473, %v1544_v45  }
 0x614   :  { %v1482_v48 = vpop.f32.mrf.mxu2 }
 0x615   :  { %1627 = vperm.xlu0 %6474, %v1482_v48  }
 0x617   :  { %v1649_v53 = vpop.permute.xlu1 %1648  ;;  %v1573_v7 = vpop.permute.xlu2 %1572 }
 0x618   :  { %v1726_v55 = vadd.f32 %v1649_v53, %v1630_v52  ;;  %v1547_v46 = vpop.f32.mrf.mxu3  ;;  %v1634_v17 = vmul.f32 %v1573_v7, %v7264_v34 }
 0x619   :  { %1723 = vperm.xlu1 %6472, %v1547_v46  }
 0x61a   :  { %vm1742_vm7 = vcmp.ge.f32.partialorder %v1726_v55, 0.0  ;;  %v1758_v42 = vmul.f32 0.2, %v1726_v55 }
 0x61c   :  { %v1774_v61 = vsel %vm1742_vm7, %v1726_v55, %v1758_v42 }
 0x61d   :  { %6093 = vmatmul.msk.f32.vlgmr.msrb.gmra.mxu0 %vm1292_vm2, %v1774_v61  ;;  %6113 = vmatmul.msk.f32.vlgmr.msrb.gmra.mxu1 %vm1292_vm2, %v1774_v61 }
 0x61e   :  { %6133 = vmatmul.msk.f32.vlgmr.msra.gmra.mxu2 %vm1292_vm2, %v1774_v61  ;;  %6153 = vmatmul.msk.f32.vlgmr.msra.gmra.mxu3 %vm1292_vm2, %v1774_v61 }
 0x61f   :  { %v1563_v54 = vpop.permute.xlu0 %1562  ;;  %v1578_v18 = vpop.permute.xlu2 %1577 }
 0x620   :  { %v1632_v56 = vmul.f32 %v1563_v54, %v7278_v47  ;;  %v1635_v8 = vmul.f32 %v1578_v18, %v7255_v30 }
 0x623   :  { %v1659_v57 = vpop.permute.xlu1 %1658 }
 0x624   :  { %v1728_v51 = vadd.f32 %v1659_v57, %v1632_v56 }
 0x625   :  { %6094 = vmatmul.msk.f32.gmra.mxu0 %vm1292_vm2, %v1775_v0  ;;  %6114 = vmatmul.msk.f32.gmra.mxu1 %vm1292_vm2, %v1775_v0 }
 0x626   :  { %6134 = vmatmul.msk.f32.gmra.mxu2 %vm1292_vm2, %v1775_v0  ;;  %6154 = vmatmul.msk.f32.gmra.mxu3 %vm1292_vm2, %v1775_v0  ;;  %v1760_v58 = vmul.f32 0.2, %v1728_v51  ;;  %vm1744_vm9 = vcmp.ge.f32.partialorder %v1728_v51, 0.0 }
 0x627   :  { %v1583_v34 = vpop.permute.xlu2 %1582 }
 0x628   :  { %v1776_v16 = vsel %vm1744_vm9, %v1728_v51, %v1760_v58  ;;  %v1636_v28 = vmul.f32 %v1583_v34, %v7246_v23 }
 0x62b   :  { %v1664_v21 = vpop.permute.xlu1 %1663 }
 0x62c   :  { %v1729_v22 = vadd.f32 %v1664_v21, %v1633_v20 }
 0x62d   :  { %6095 = vmatmul.msk.f32.gmra.mxu0 %vm1292_vm2, %v1776_v16  ;;  %6115 = vmatmul.msk.f32.gmra.mxu1 %vm1292_vm2, %v1776_v16 }
 0x62e   :  { %6135 = vmatmul.msk.f32.gmra.mxu2 %vm1292_vm2, %v1776_v16  ;;  %6155 = vmatmul.msk.f32.gmra.mxu3 %vm1292_vm2, %v1776_v16  ;;  %v1761_v47 = vmul.f32 0.2, %v1729_v22  ;;  %vm1745_vm10 = vcmp.ge.f32.partialorder %v1729_v22, 0.0 }
 0x62f   :  { %v1588_v30 = vpop.permute.xlu2 %1587 }
 0x630   :  { %v1777_v14 = vsel %vm1745_vm10, %v1729_v22, %v1761_v47  ;;  %v1637_v15 = vmul.f32 %v1588_v30, %v7237_v26  ;;  %vm2466_vm10 = vcmask 130048  }
 0x633   :  { %v1669_v12 = vpop.permute.xlu1 %1668 }
 0x634   :  { %v1730_v13 = vadd.f32 %v1669_v12, %v1634_v17 }
 0x635   :  { %6096 = vmatmul.msk.f32.gmra.mxu0 %vm1292_vm2, %v1777_v14  ;;  %6116 = vmatmul.msk.f32.gmra.mxu1 %vm1292_vm2, %v1777_v14 }
 0x636   :  { %6136 = vmatmul.msk.f32.gmra.mxu2 %vm1292_vm2, %v1777_v14  ;;  %6156 = vmatmul.msk.f32.gmra.mxu3 %vm1292_vm2, %v1777_v14  ;;  %v1762_v40 = vmul.f32 0.2, %v1730_v13  ;;  %vm1746_vm11 = vcmp.ge.f32.partialorder %v1730_v13, 0.0 }
 0x638   :  { %v1778_v19 = vsel %vm1746_vm11, %v1730_v13, %v1762_v40 }
 0x63b   :  { %v1674_v9 = vpop.permute.xlu1 %1673  ;;  %v1689_v37 = vpop.permute.xlu2 %1688 }
 0x63c   :  { %v1731_v10 = vadd.f32 %v1674_v9, %v1635_v8 }
 0x63d   :  { %6097 = vmatmul.msk.f32.gmra.mxu0 %vm1292_vm2, %v1778_v19  ;;  %6117 = vmatmul.msk.f32.gmra.mxu1 %vm1292_vm2, %v1778_v19 }
 0x63e   :  { %6137 = vmatmul.msk.f32.gmra.mxu2 %vm1292_vm2, %v1778_v19  ;;  %6157 = vmatmul.msk.f32.gmra.mxu3 %vm1292_vm2, %v1778_v19  ;;  %v1763_v27 = vmul.f32 0.2, %v1731_v10  ;;  %vm1747_vm12 = vcmp.ge.f32.partialorder %v1731_v10, 0.0 }
 0x640   :  { %v1779_v3 = vsel %vm1747_vm12, %v1731_v10, %v1763_v27 }
 0x643   :  { %v1679_v29 = vpop.permute.xlu1 %1678 }
 0x644   :  { %v1732_v2 = vadd.f32 %v1679_v29, %v1636_v28 }
 0x645   :  { %6098 = vmatmul.msk.f32.gmra.mxu0 %vm1292_vm2, %v1779_v3  ;;  %6118 = vmatmul.msk.f32.gmra.mxu1 %vm1292_vm2, %v1779_v3 }
 0x646   :  { %6138 = vmatmul.msk.f32.gmra.mxu2 %vm1292_vm2, %v1779_v3  ;;  %6158 = vmatmul.msk.f32.gmra.mxu3 %vm1292_vm2, %v1779_v3  ;;  %v1764_v6 = vmul.f32 0.2, %v1732_v2  ;;  %vm1748_vm13 = vcmp.ge.f32.partialorder %v1732_v2, 0.0 }
 0x647   :  { %v1603_v49 = vpop.permute.xlu2 %1602 }
 0x648   :  { %v1780_v33 = vsel %vm1748_vm13, %v1732_v2, %v1764_v6  ;;  %v1640_v53 = vmul.f32 %v1603_v49, %v7210_v1 }
 0x64b   :  { %v1684_v31 = vpop.permute.xlu0 %1683 }
 0x64c   :  { %v1733_v32 = vadd.f32 %v1684_v31, %v1637_v15 }
 0x64d   :  { %6099 = vmatmul.msk.f32.gmra.mxu0 %vm1292_vm2, %v1780_v33  ;;  %6119 = vmatmul.msk.f32.gmra.mxu1 %vm1292_vm2, %v1780_v33 }
 0x64e   :  { %6139 = vmatmul.msk.f32.gmra.mxu2 %vm1292_vm2, %v1780_v33  ;;  %6159 = vmatmul.msk.f32.gmra.mxu3 %vm1292_vm2, %v1780_v33  ;;  %v1765_v35 = vmul.f32 0.2, %v1733_v32  ;;  %vm1749_vm14 = vcmp.ge.f32.partialorder %v1733_v32, 0.0 }
 0x64f   :  { %v1593_v23 = vpop.permute.xlu1 %1592 }
 0x650   :  { %v1638_v36 = vmul.f32 %v1593_v23, %v7228_v25  ;;  %v1781_v41 = vsel %vm1749_vm14, %v1733_v32, %v1765_v35 }
 0x652   :  { %v1734_v39 = vadd.f32 %v1689_v37, %v1638_v36 }
 0x653   :  { %v1704_v61 = vpop.permute.xlu2 %1703 }
 0x654   :  { %v1766_v43 = vmul.f32 0.2, %v1734_v39  ;;  %vm1750_vm15 = vcmp.ge.f32.partialorder %v1734_v39, 0.0 }
 0x655   :  { %6100 = vmatmul.msk.f32.gmra.mxu0 %vm1292_vm2, %v1781_v41  ;;  %6120 = vmatmul.msk.f32.gmra.mxu1 %vm1292_vm2, %v1781_v41 }
 0x656   :  { %6140 = vmatmul.msk.f32.gmra.mxu2 %vm1292_vm2, %v1781_v41  ;;  %6160 = vmatmul.msk.f32.gmra.mxu3 %vm1292_vm2, %v1781_v41  ;;  %v1782_v25 = vsel %vm1750_vm15, %v1734_v39, %v1766_v43 }
 0x657   :  { %v1598_v26 = vpop.permute.xlu0 %1597 }
 0x658   :  { %v1639_v44 = vmul.f32 %v1598_v26, %v7219_v24 }
 0x65b   :  { %v1694_v45 = vpop.permute.xlu1 %1693 }
 0x65c   :  { %v1735_v48 = vadd.f32 %v1694_v45, %v1639_v44 }
 0x65d   :  { %6101 = vmatmul.msk.f32.gmra.mxu0 %vm1292_vm2, %v1782_v25  ;;  %6121 = vmatmul.msk.f32.gmra.mxu1 %vm1292_vm2, %v1782_v25 }
 0x65e   :  { %6141 = vmatmul.msk.f32.gmra.mxu2 %vm1292_vm2, %v1782_v25  ;;  %6161 = vmatmul.msk.f32.gmra.mxu3 %vm1292_vm2, %v1782_v25  ;;  %v1767_v52 = vmul.f32 0.2, %v1735_v48  ;;  %vm1751_vm0 = vcmp.ge.f32.partialorder %v1735_v48, 0.0 }
 0x65f   :  { %v1618_v0 = vpop.permute.xlu2 %1617 }
 0x660   :  { %v1783_v5 = vsel %vm1751_vm0, %v1735_v48, %v1767_v52  ;;  %v1643_v7 = vmul.f32 %v1618_v0, %v7192_v50 }
 0x663   :  { %v1699_v55 = vpop.permute.xlu0 %1698 }
 0x664   :  { %v1736_v46 = vadd.f32 %v1699_v55, %v1640_v53 }
 0x665   :  { %6102 = vmatmul.msk.f32.gmra.mxu0 %vm1292_vm2, %v1783_v5  ;;  %6122 = vmatmul.msk.f32.gmra.mxu1 %vm1292_vm2, %v1783_v5 }
 0x666   :  { %6142 = vmatmul.msk.f32.gmra.mxu2 %vm1292_vm2, %v1783_v5  ;;  %6162 = vmatmul.msk.f32.gmra.mxu3 %vm1292_vm2, %v1783_v5  ;;  %v1768_v42 = vmul.f32 0.2, %v1736_v46  ;;  %vm1752_vm3 = vcmp.ge.f32.partialorder %v1736_v46, 0.0 }
 0x667   :  { %v1608_v24 = vpop.permute.xlu1 %1607 }
 0x668   :  { %v1641_v4 = vmul.f32 %v1608_v24, %v7202_v60  ;;  %v1784_v54 = vsel %vm1752_vm3, %v1736_v46, %v1768_v42 }
 0x66a   :  { %v1737_v62 = vadd.f32 %v1704_v61, %v1641_v4 }
 0x66b   :  { %v1719_v17 = vpop.permute.xlu2 %1718 }
 0x66c   :  { %v1769_v63 = vmul.f32 0.2, %v1737_v62  ;;  %vm1753_vm4 = vcmp.ge.f32.partialorder %v1737_v62, 0.0 }
 0x66d   :  { %6103 = vmatmul.msk.f32.gmra.mxu0 %vm1292_vm2, %v1784_v54  ;;  %6123 = vmatmul.msk.f32.gmra.mxu1 %vm1292_vm2, %v1784_v54 }
 0x66e   :  { %6143 = vmatmul.msk.f32.gmra.mxu2 %vm1292_vm2, %v1784_v54  ;;  %6163 = vmatmul.msk.f32.gmra.mxu3 %vm1292_vm2, %v1784_v54  ;;  %v1785_v60 = vsel %vm1753_vm4, %v1737_v62, %v1769_v63 }
 0x66f   :  { %v1613_v1 = vpop.permute.xlu0 %1612 }
 0x670   :  { %v1642_v56 = vmul.f32 %v1613_v1, %v7197_v38 }
 0x673   :  { %v1709_v57 = vpop.permute.xlu1 %1708 }
 0x674   :  { %v1738_v51 = vadd.f32 %v1709_v57, %v1642_v56 }
 0x675   :  { %6104 = vmatmul.msk.f32.gmra.mxu0 %vm1292_vm2, %v1785_v60  ;;  %6124 = vmatmul.msk.f32.gmra.mxu1 %vm1292_vm2, %v1785_v60 }
 0x676   :  { %6144 = vmatmul.msk.f32.gmra.mxu2 %vm1292_vm2, %v1785_v60  ;;  %6164 = vmatmul.msk.f32.gmra.mxu3 %vm1292_vm2, %v1785_v60  ;;  %v1770_v58 = vmul.f32 0.2, %v1738_v51  ;;  %vm1754_vm5 = vcmp.ge.f32.partialorder %v1738_v51, 0.0 }
 0x678   :  { %v1786_v22 = vsel %vm1754_vm5, %v1738_v51, %v1770_v58 }
 0x67b   :  { %v1714_v20 = vpop.permute.xlu0 %1713 }
 0x67c   :  { %v1739_v21 = vadd.f32 %v1714_v20, %v1643_v7 }
 0x67d   :  { %6105 = vmatmul.msk.f32.gmra.mxu0 %vm1292_vm2, %v1786_v22  ;;  %6125 = vmatmul.msk.f32.gmra.mxu1 %vm1292_vm2, %v1786_v22 }
 0x67e   :  { %6145 = vmatmul.msk.f32.gmra.mxu2 %vm1292_vm2, %v1786_v22  ;;  %6165 = vmatmul.msk.f32.gmra.mxu3 %vm1292_vm2, %v1786_v22  ;;  %v1771_v16 = vmul.f32 0.2, %v1739_v21  ;;  %vm1755_vm7 = vcmp.ge.f32.partialorder %v1739_v21, 0.0 }
 0x67f   :  { %v1623_v38 = vpop.permute.xlu1 %1622 }
 0x680   :  { %v1644_v47 = vmul.f32 %v1623_v38, %v7188_v11  ;;  %v1787_v12 = vsel %vm1755_vm7, %v1739_v21, %v1771_v16 }
 0x682   :  { %v1740_v18 = vadd.f32 %v1719_v17, %v1644_v47 }
 0x684   :  { %v1772_v13 = vmul.f32 0.2, %v1740_v18  ;;  %vm1756_vm8 = vcmp.ge.f32.partialorder %v1740_v18, 0.0 }
 0x685   :  { %6106 = vmatmul.msk.f32.gmra.mxu0 %vm1292_vm2, %v1787_v12  ;;  %6126 = vmatmul.msk.f32.gmra.mxu1 %vm1292_vm2, %v1787_v12 }
 0x686   :  { %6146 = vmatmul.msk.f32.gmra.mxu2 %vm1292_vm2, %v1787_v12  ;;  %6166 = vmatmul.msk.f32.gmra.mxu3 %vm1292_vm2, %v1787_v12  ;;  %v1788_v11 = vsel %vm1756_vm8, %v1740_v18, %v1772_v13 }
 0x687   :  { %v1628_v50 = vpop.permute.xlu0 %1627 }
 0x688   :  { %v1645_v14 = vmul.f32 %v1628_v50, %v7190_v59 }
 0x68b   :  { %v1724_v40 = vpop.permute.xlu1 %1723 }
 0x68c   :  { %v1741_v8 = vadd.f32 %v1724_v40, %v1645_v14 }
 0x68d   :  { %6107 = vmatmul.msk.f32.gmra.mxu0 %vm1292_vm2, %v1788_v11  ;;  %6127 = vmatmul.msk.f32.gmra.mxu1 %vm1292_vm2, %v1788_v11 }
 0x68e   :  { %6147 = vmatmul.msk.f32.gmra.mxu2 %vm1292_vm2, %v1788_v11  ;;  %6167 = vmatmul.msk.f32.gmra.mxu3 %vm1292_vm2, %v1788_v11  ;;  %v1773_v9 = vmul.f32 0.2, %v1741_v8  ;;  %vm1757_vm9 = vcmp.ge.f32.partialorder %v1741_v8, 0.0 }
 0x690   :  { %v1789_v10 = vsel %vm1757_vm9, %v1741_v8, %v1773_v9 }
 0x695   :  { %6108 = vmatmul.msk.f32.gmra.mxu0 %vm1292_vm2, %v1789_v10  ;;  %6128 = vmatmul.msk.f32.gmra.mxu1 %vm1292_vm2, %v1789_v10 }
 0x696   :  { %6148 = vmatmul.msk.f32.gmra.mxu2 %vm1292_vm2, %v1789_v10  ;;  %6168 = vmatmul.msk.f32.gmra.mxu3 %vm1292_vm2, %v1789_v10 }
 0x69a   :  { %v7450_v59 = vpop.f32.mrf.mxu0  ;;  %v7452_v19 = vpop.f32.mrf.mxu1 }
 0x6a1   :  { %v7454_v34 = vpop.f32.mrf.mxu2  ;;  %v7456_v27 = vpop.f32.mrf.mxu3 }
 0x6a2   :  { %v7458_v28 = vpop.f32.mrf.mxu0  ;;  %v7460_v29 = vpop.f32.mrf.mxu1 }
 0x6a9   :  { %v7462_v2 = vpop.f32.mrf.mxu2  ;;  %v7464_v3 = vpop.f32.mrf.mxu3 }
 0x6aa   :  { %v7466_v30 = vpop.f32.mrf.mxu0  ;;  %v7468_v6 = vpop.f32.mrf.mxu1 }
 0x6b1   :  { %v7470_v15 = vpop.f32.mrf.mxu2  ;;  %v7472_v31 = vpop.f32.mrf.mxu3 }
 0x6b2   :  { %v7474_v32 = vpop.f32.mrf.mxu0  ;;  %v7476_v33 = vpop.f32.mrf.mxu1 }
 0x6b9   :  { %v7478_v23 = vpop.f32.mrf.mxu2  ;;  %v7480_v35 = vpop.f32.mrf.mxu3 }
 0x6ba   :  { %v7482_v36 = vpop.f32.mrf.mxu0  ;;  %v7484_v37 = vpop.f32.mrf.mxu1 }
 0x6c1   :  { %v7486_v39 = vpop.f32.mrf.mxu2  ;;  %v7488_v41 = vpop.f32.mrf.mxu3 }
 0x6c2   :  { %v7490_v26 = vpop.f32.mrf.mxu0  ;;  %v7492_v43 = vpop.f32.mrf.mxu1 }
 0x6c9   :  { %v7494_v44 = vpop.f32.mrf.mxu2  ;;  %v7496_v45 = vpop.f32.mrf.mxu3 }
 0x6ca   :  { %v7498_v48 = vpop.f32.mrf.mxu0  ;;  %v7500_v25 = vpop.f32.mrf.mxu1 }
 0x6d1   :  { %v7502_v49 = vpop.f32.mrf.mxu2  ;;  %v7504_v52 = vpop.f32.mrf.mxu3 }
 0x6d2   :  { %v1880_v53 = vpop.f32.mrf.mxu0  ;;  %v1950_v55 = vpop.f32.mrf.mxu1 }
 0x6d9   :  { %v7506_v46 = vpop.f32.mrf.mxu2  ;;  %v7508_v5 = vpop.f32.mrf.mxu3 }
 0x6da   :  { %v1883_v24 = vpop.f32.mrf.mxu0  ;;  %v1953_v42 = vpop.f32.mrf.mxu1 }
 0x6e1   :  { %v7510_v4 = vpop.f32.mrf.mxu2  ;;  %v7512_v61 = vpop.f32.mrf.mxu3 }
 0x6e2   :  { %v1886_v62 = vpop.f32.mrf.mxu0  ;;  %v1956_v54 = vpop.f32.mrf.mxu1 }
 0x6e9   :  { %v2026_v1 = vpop.f32.mrf.mxu2  ;;  %v2096_v63 = vpop.f32.mrf.mxu3 }
 0x6ea   :  { %v1889_v56 = vpop.f32.mrf.mxu0  ;;  %v1959_v57 = vpop.f32.mrf.mxu1 }
 0x6f1   :  { %v2029_v51 = vpop.f32.mrf.mxu2  ;;  %v2099_v60 = vpop.f32.mrf.mxu3 }
 0x6f2   :  { %v1892_v0 = vpop.f32.mrf.mxu0  ;;  %v1962_v58 = vpop.f32.mrf.mxu1 }
 0x6f9   :  { %v2032_v7 = vpop.f32.mrf.mxu2  ;;  %v2102_v20 = vpop.f32.mrf.mxu3 }
 0x6fa   :  { %v1895_v21 = vpop.f32.mrf.mxu0  ;;  %v1965_v22 = vpop.f32.mrf.mxu1 }
 0x701   :  { %v2035_v38 = vpop.f32.mrf.mxu2  ;;  %v2105_v16 = vpop.f32.mrf.mxu3 }
 0x702   :  { %v1898_v47 = vpop.f32.mrf.mxu0  ;;  %v1968_v17 = vpop.f32.mrf.mxu1 }
 0x709   :  { %v2038_v18 = vpop.f32.mrf.mxu2  ;;  %v2108_v12 = vpop.f32.mrf.mxu3 }
 0x70a   :  { %v1901_v50 = vpop.f32.mrf.mxu0  ;;  %v1971_v13 = vpop.f32.mrf.mxu1 }
 0x711   :  { %v2041_v14 = vpop.f32.mrf.mxu2  ;;  %v2111_v40 = vpop.f32.mrf.mxu3 }
 0x712   :  { %v1904_v8 = vpop.f32.mrf.mxu0  ;;  %v1974_v11 = vpop.f32.mrf.mxu1 }
 0x713   :  { %2181 = vmatpush.msra.mxu0 %v1904_v8  ;;  %2246 = vmatpush.msra.mxu1 %v1974_v11  ;;  %v2177_v8 = vld [vmem:[%s6648_s14 + $0x1e0] sm:$0xff]  ;;  %v2178_v11 = vld [vmem:[%s6648_s14 + $0x1e8] sm:$0xff] }
 0x715   :  { %2182 = vmatpush.msra.mxu0 %v1901_v50  ;;  %2247 = vmatpush.msra.mxu1 %v1971_v13  ;;  %v2173_v50 = vld [vmem:[%s6648_s14 + $0x1c0] sm:$0xff]  ;;  %v2174_v13 = vld [vmem:[%s6648_s14 + $0x1c8] sm:$0xff] }
 0x717   :  { %2183 = vmatpush.msra.mxu0 %v1898_v47  ;;  %2248 = vmatpush.msra.mxu1 %v1968_v17  ;;  %v2169_v47 = vld [vmem:[%s6648_s14 + $0x1a0] sm:$0xff]  ;;  %v2170_v17 = vld [vmem:[%s6648_s14 + $0x1a8] sm:$0xff] }
 0x719   :  { %v2044_v9 = vpop.f32.mrf.mxu2  ;;  %v2114_v10 = vpop.f32.mrf.mxu3  ;;  %2184 = vmatpush.msra.mxu0 %v1895_v21  ;;  %2249 = vmatpush.msra.mxu1 %v1965_v22  ;;  %v2165_v21 = vld [vmem:[%s6648_s14 + $0x180] sm:$0xff]  ;;  %v2166_v22 = vld [vmem:[%s6648_s14 + $0x188] sm:$0xff] }
 0x71a   :  { %2311 = vmatpush.msrb.mxu2 %v2044_v9  ;;  %2376 = vmatpush.msrb.mxu3 %v2114_v10  ;;  %v2179_v9 = vld [vmem:[%s6648_s14 + $0x1f0] sm:$0xff]  ;;  %v2180_v10 = vld [vmem:[%s6648_s14 + $0x1f8] sm:$0xff] }
 0x71b   :  { %2185 = vmatpush.msra.mxu0 %v1892_v0  ;;  %2250 = vmatpush.msra.mxu1 %v1962_v58  ;;  %v2161_v0 = vld [vmem:[%s6648_s14 + $0x160] sm:$0xff]  ;;  %v2162_v58 = vld [vmem:[%s6648_s14 + $0x168] sm:$0xff] }
 0x71c   :  { %2312 = vmatpush.msrb.mxu2 %v2041_v14  ;;  %2377 = vmatpush.msrb.mxu3 %v2111_v40  ;;  %v2175_v14 = vld [vmem:[%s6648_s14 + $0x1d0] sm:$0xff]  ;;  %v2176_v40 = vld [vmem:[%s6648_s14 + $0x1d8] sm:$0xff] }
 0x71d   :  { %2186 = vmatpush.msra.mxu0 %v1889_v56  ;;  %2251 = vmatpush.msra.mxu1 %v1959_v57  ;;  %v2157_v56 = vld [vmem:[%s6648_s14 + $0x140] sm:$0xff]  ;;  %v2158_v57 = vld [vmem:[%s6648_s14 + $0x148] sm:$0xff] }
 0x71e   :  { %2313 = vmatpush.msrb.mxu2 %v2038_v18  ;;  %2378 = vmatpush.msrb.mxu3 %v2108_v12  ;;  %v2171_v18 = vld [vmem:[%s6648_s14 + $0x1b0] sm:$0xff]  ;;  %v2172_v12 = vld [vmem:[%s6648_s14 + $0x1b8] sm:$0xff] }
 0x71f   :  { %2187 = vmatpush.msra.mxu0 %v1886_v62  ;;  %2252 = vmatpush.msra.mxu1 %v1956_v54  ;;  %v2153_v62 = vld [vmem:[%s6648_s14 + $0x120] sm:$0xff]  ;;  %v2154_v54 = vld [vmem:[%s6648_s14 + $0x128] sm:$0xff] }
 0x720   :  { %2314 = vmatpush.msrb.mxu2 %v2035_v38  ;;  %2379 = vmatpush.msrb.mxu3 %v2105_v16  ;;  %v2167_v38 = vld [vmem:[%s6648_s14 + $0x190] sm:$0xff]  ;;  %v2168_v16 = vld [vmem:[%s6648_s14 + $0x198] sm:$0xff] }
 0x721   :  { %2188 = vmatpush.msra.mxu0 %v1883_v24  ;;  %2253 = vmatpush.msra.mxu1 %v1953_v42  ;;  %v2149_v24 = vld [vmem:[%s6648_s14 + $0x100] sm:$0xff]  ;;  %v2150_v42 = vld [vmem:[%s6648_s14 + $0x108] sm:$0xff] }
 0x722   :  { %2315 = vmatpush.msrb.mxu2 %v2032_v7  ;;  %2380 = vmatpush.msrb.mxu3 %v2102_v20  ;;  %v2163_v7 = vld [vmem:[%s6648_s14 + $0x170] sm:$0xff]  ;;  %v2164_v20 = vld [vmem:[%s6648_s14 + $0x178] sm:$0xff] }
 0x723   :  { %2189 = vmatpush.msra.mxu0 %v1880_v53  ;;  %2254 = vmatpush.msra.mxu1 %v1950_v55  ;;  %v2145_v53 = vld [vmem:[%s6648_s14 + $0xe0] sm:$0xff]  ;;  %v2146_v55 = vld [vmem:[%s6648_s14 + $0xe8] sm:$0xff] }
 0x724   :  { %2316 = vmatpush.msrb.mxu2 %v2029_v51  ;;  %2381 = vmatpush.msrb.mxu3 %v2099_v60  ;;  %v2159_v51 = vld [vmem:[%s6648_s14 + $0x150] sm:$0xff]  ;;  %v2160_v60 = vld [vmem:[%s6648_s14 + $0x158] sm:$0xff] }
 0x725   :  { %2190 = vmatpush.msra.mxu0 %v7498_v48  ;;  %2255 = vmatpush.msra.mxu1 %v7500_v25  ;;  %v2141_v48 = vld [vmem:[%s6648_s14 + $0xc0] sm:$0xff]  ;;  %v2142_v25 = vld [vmem:[%s6648_s14 + $0xc8] sm:$0xff] }
 0x726   :  { %2317 = vmatpush.msrb.mxu2 %v2026_v1  ;;  %2382 = vmatpush.msrb.mxu3 %v2096_v63  ;;  %v2155_v1 = vld [vmem:[%s6648_s14 + $0x130] sm:$0xff]  ;;  %v2156_v63 = vld [vmem:[%s6648_s14 + $0x138] sm:$0xff] }
 0x727   :  { %2191 = vmatpush.msra.mxu0 %v7490_v26  ;;  %2256 = vmatpush.msra.mxu1 %v7492_v43  ;;  %v2137_v26 = vld [vmem:[%s6648_s14 + $0xa0] sm:$0xff]  ;;  %v2138_v43 = vld [vmem:[%s6648_s14 + $0xa8] sm:$0xff] }
 0x728   :  { %2318 = vmatpush.msrb.mxu2 %v7510_v4  ;;  %2383 = vmatpush.msrb.mxu3 %v7512_v61  ;;  %v2151_v4 = vld [vmem:[%s6648_s14 + $0x110] sm:$0xff]  ;;  %v2152_v61 = vld [vmem:[%s6648_s14 + $0x118] sm:$0xff] }
 0x729   :  { %2192 = vmatpush.msra.mxu0 %v7482_v36  ;;  %2257 = vmatpush.msra.mxu1 %v7484_v37  ;;  %v2133_v36 = vld [vmem:[%s6648_s14 + $0x80] sm:$0xff]  ;;  %v2134_v37 = vld [vmem:[%s6648_s14 + $0x88] sm:$0xff] }
 0x72a   :  { %2319 = vmatpush.msrb.mxu2 %v7506_v46  ;;  %2384 = vmatpush.msrb.mxu3 %v7508_v5  ;;  %v2147_v46 = vld [vmem:[%s6648_s14 + $0xf0] sm:$0xff]  ;;  %v2148_v5 = vld [vmem:[%s6648_s14 + $0xf8] sm:$0xff] }
 0x72b   :  { %2193 = vmatpush.msra.mxu0 %v7474_v32  ;;  %2258 = vmatpush.msra.mxu1 %v7476_v33  ;;  %v2117_v32 = vld [vmem:[%s6648_s14] sm:$0xff]  ;;  %v2118_v33 = vld [vmem:[%s6648_s14 + $0x8] sm:$0xff] }
 0x72c   :  { %2320 = vmatpush.msrb.mxu2 %v7502_v49  ;;  %2385 = vmatpush.msrb.mxu3 %v7504_v52  ;;  %v2143_v49 = vld [vmem:[%s6648_s14 + $0xd0] sm:$0xff]  ;;  %v2144_v52 = vld [vmem:[%s6648_s14 + $0xd8] sm:$0xff] }
 0x72d   :  { %2194 = vmatpush.msra.mxu0 %v7466_v30  ;;  %2259 = vmatpush.msra.mxu1 %v7468_v6  ;;  %v2123_v30 = vld [vmem:[%s6648_s14 + $0x30] sm:$0xff]  ;;  %v2126_v6 = vld [vmem:[%s6648_s14 + $0x48] sm:$0xff] }
 0x72e   :  { %2321 = vmatpush.msrb.mxu2 %v7494_v44  ;;  %2386 = vmatpush.msrb.mxu3 %v7496_v45  ;;  %v2139_v44 = vld [vmem:[%s6648_s14 + $0xb0] sm:$0xff]  ;;  %v2140_v45 = vld [vmem:[%s6648_s14 + $0xb8] sm:$0xff] }
 0x72f   :  { %2195 = vmatpush.msra.mxu0 %v7458_v28  ;;  %2260 = vmatpush.msra.mxu1 %v7460_v29  ;;  %v2121_v28 = vld [vmem:[%s6648_s14 + $0x20] sm:$0xff]  ;;  %v2122_v29 = vld [vmem:[%s6648_s14 + $0x28] sm:$0xff] }
 0x730   :  { %2322 = vmatpush.msrb.mxu2 %v7486_v39  ;;  %2387 = vmatpush.msrb.mxu3 %v7488_v41  ;;  %v2135_v39 = vld [vmem:[%s6648_s14 + $0x90] sm:$0xff]  ;;  %v2136_v41 = vld [vmem:[%s6648_s14 + $0x98] sm:$0xff] }
 0x731   :  { %2196 = vmatpush.msra.mxu0 %v7450_v59  ;;  %2261 = vmatpush.msra.mxu1 %v7452_v19  ;;  %v2119_v59 = vld [vmem:[%s6648_s14 + $0x10] sm:$0xff]  ;;  %v2120_v19 = vld [vmem:[%s6648_s14 + $0x18] sm:$0xff] }
 0x732   :  { %2323 = vmatpush.msrb.mxu2 %v7478_v23  ;;  %2388 = vmatpush.msrb.mxu3 %v7480_v35  ;;  %v2131_v23 = vld [vmem:[%s6648_s14 + $0x70] sm:$0xff]  ;;  %v2132_v35 = vld [vmem:[%s6648_s14 + $0x78] sm:$0xff] }
 0x733   :  { %2197 = vmatmul.f32.vlgmr.msra.gmra.mxu0 %v2117_v32  ;;  %2262 = vmatmul.f32.vlgmr.msra.gmra.mxu1 %v2118_v33 }
 0x734   :  { %2324 = vmatpush.msrb.mxu2 %v7470_v15  ;;  %2389 = vmatpush.msrb.mxu3 %v7472_v31  ;;  %v2129_v15 = vld [vmem:[%s6648_s14 + $0x60] sm:$0xff]  ;;  %v2130_v31 = vld [vmem:[%s6648_s14 + $0x68] sm:$0xff] }
 0x736   :  { %2325 = vmatpush.msrb.mxu2 %v7462_v2  ;;  %2390 = vmatpush.msrb.mxu3 %v7464_v3  ;;  %v2124_v2 = vld [vmem:[%s6648_s14 + $0x38] sm:$0xff]  ;;  %v2125_v3 = vld [vmem:[%s6648_s14 + $0x40] sm:$0xff] }
 0x738   :  { %2326 = vmatpush.msrb.mxu2 %v7454_v34  ;;  %2391 = vmatpush.msrb.mxu3 %v7456_v27  ;;  %v2127_v34 = vld [vmem:[%s6648_s14 + $0x50] sm:$0xff]  ;;  %v2128_v27 = vld [vmem:[%s6648_s14 + $0x58] sm:$0xff]  ;;  %s9081_s14 = sld [smem:[#allocation19_spill]] }
 0x739   :  { %2327 = vmatmul.f32.vlgmr.msrb.gmra.mxu2 %v2119_v59  ;;  %2392 = vmatmul.f32.vlgmr.msrb.gmra.mxu3 %v2120_v19 }
 0x73b   :  { %2200 = vmatmul.f32.gmra.mxu0 %v2121_v28  ;;  %2265 = vmatmul.f32.gmra.mxu1 %v2122_v29 }
 0x741   :  { %2330 = vmatmul.f32.gmra.mxu2 %v2123_v30  ;;  %2395 = vmatmul.f32.gmra.mxu3 %v2124_v2 }
 0x743   :  { %2203 = vmatmul.f32.gmra.mxu0 %v2125_v3  ;;  %2268 = vmatmul.f32.gmra.mxu1 %v2126_v6 }
 0x749   :  { %2333 = vmatmul.f32.gmra.mxu2 %v2127_v34  ;;  %2398 = vmatmul.f32.gmra.mxu3 %v2128_v27 }
 0x74b   :  { %2206 = vmatmul.f32.gmra.mxu0 %v2129_v15  ;;  %2271 = vmatmul.f32.gmra.mxu1 %v2130_v31 }
 0x751   :  { %2336 = vmatmul.f32.gmra.mxu2 %v2131_v23  ;;  %2401 = vmatmul.f32.gmra.mxu3 %v2132_v35 }
 0x753   :  { %2209 = vmatmul.f32.gmra.mxu0 %v2133_v36  ;;  %2274 = vmatmul.f32.gmra.mxu1 %v2134_v37 }
 0x759   :  { %2339 = vmatmul.f32.gmra.mxu2 %v2135_v39  ;;  %2404 = vmatmul.f32.gmra.mxu3 %v2136_v41 }
 0x75b   :  { %2212 = vmatmul.f32.gmra.mxu0 %v2137_v26  ;;  %2277 = vmatmul.f32.gmra.mxu1 %v2138_v43 }
 0x761   :  { %2342 = vmatmul.f32.gmra.mxu2 %v2139_v44  ;;  %2407 = vmatmul.f32.gmra.mxu3 %v2140_v45 }
 0x763   :  { %2215 = vmatmul.f32.gmra.mxu0 %v2141_v48  ;;  %2280 = vmatmul.f32.gmra.mxu1 %v2142_v25 }
 0x769   :  { %2345 = vmatmul.f32.gmra.mxu2 %v2143_v49  ;;  %2410 = vmatmul.f32.gmra.mxu3 %v2144_v52 }
 0x76b   :  { %2218 = vmatmul.f32.gmra.mxu0 %v2145_v53  ;;  %2283 = vmatmul.f32.gmra.mxu1 %v2146_v55 }
 0x771   :  { %2348 = vmatmul.f32.gmra.mxu2 %v2147_v46  ;;  %2413 = vmatmul.f32.gmra.mxu3 %v2148_v5 }
 0x773   :  { %2221 = vmatmul.f32.gmra.mxu0 %v2149_v24  ;;  %2286 = vmatmul.f32.gmra.mxu1 %v2150_v42 }
 0x779   :  { %2351 = vmatmul.f32.gmra.mxu2 %v2151_v4  ;;  %2416 = vmatmul.f32.gmra.mxu3 %v2152_v61 }
 0x77b   :  { %2224 = vmatmul.f32.gmra.mxu0 %v2153_v62  ;;  %2289 = vmatmul.f32.gmra.mxu1 %v2154_v54 }
 0x781   :  { %2354 = vmatmul.f32.gmra.mxu2 %v2155_v1  ;;  %2419 = vmatmul.f32.gmra.mxu3 %v2156_v63 }
 0x783   :  { %2227 = vmatmul.f32.gmra.mxu0 %v2157_v56  ;;  %2292 = vmatmul.f32.gmra.mxu1 %v2158_v57 }
 0x789   :  { %2357 = vmatmul.f32.gmra.mxu2 %v2159_v51  ;;  %2422 = vmatmul.f32.gmra.mxu3 %v2160_v60 }
 0x78b   :  { %2230 = vmatmul.f32.gmra.mxu0 %v2161_v0  ;;  %2295 = vmatmul.f32.gmra.mxu1 %v2162_v58 }
 0x791   :  { %2360 = vmatmul.f32.gmra.mxu2 %v2163_v7  ;;  %2425 = vmatmul.f32.gmra.mxu3 %v2164_v20 }
 0x793   :  { %2233 = vmatmul.f32.gmra.mxu0 %v2165_v21  ;;  %2298 = vmatmul.f32.gmra.mxu1 %v2166_v22 }
 0x799   :  { %2363 = vmatmul.f32.gmra.mxu2 %v2167_v38  ;;  %2428 = vmatmul.f32.gmra.mxu3 %v2168_v16 }
 0x79b   :  { %2236 = vmatmul.f32.gmra.mxu0 %v2169_v47  ;;  %2301 = vmatmul.f32.gmra.mxu1 %v2170_v17 }
 0x7a1   :  { %2366 = vmatmul.f32.gmra.mxu2 %v2171_v18  ;;  %2431 = vmatmul.f32.gmra.mxu3 %v2172_v12 }
 0x7a3   :  { %2239 = vmatmul.f32.gmra.mxu0 %v2173_v50  ;;  %2304 = vmatmul.f32.gmra.mxu1 %v2174_v13 }
 0x7a9   :  { %2369 = vmatmul.f32.gmra.mxu2 %v2175_v14  ;;  %2434 = vmatmul.f32.gmra.mxu3 %v2176_v40 }
 0x7ab   :  { %2242 = vmatmul.f32.gmra.mxu0 %v2177_v8  ;;  %2307 = vmatmul.f32.gmra.mxu1 %v2178_v11 }
 0x7b0   :  { %v7610_v32 = vpop.f32.mrf.mxu0  ;;  %v7612_v33 = vpop.f32.mrf.mxu1 }
 0x7b1   :  { %8986 = vst [vmem:[#allocation28_spill] sm:$0xff] %v7610_v32  ;;  %2372 = vmatmul.f32.gmra.mxu2 %v2179_v9  ;;  %2437 = vmatmul.f32.gmra.mxu3 %v2180_v10 }
 0x7b2   :  { %8987 = vst [vmem:[#allocation29_spill] sm:$0xff] %v7612_v33 }
 0x7b8   :  { %v7614_v59 = vpop.f32.mrf.mxu0  ;;  %v7616_v19 = vpop.f32.mrf.mxu1 }
 0x7b9   :  { %8988 = vst [vmem:[#allocation30_spill] sm:$0xff] %v7614_v59 }
 0x7ba   :  { %8989 = vst [vmem:[#allocation33_spill] sm:$0xff] %v7616_v19 }
 0x7bc   :  { %v7618_v28 = vpop.f32.mrf.mxu2  ;;  %v7620_v29 = vpop.f32.mrf.mxu3 }
 0x7bd   :  { %8990 = vst [vmem:[#allocation24_spill] sm:$0xff] %v7618_v28 }
 0x7be   :  { %8991 = vst [vmem:[#allocation25_spill] sm:$0xff] %v7620_v29 }
 0x7c0   :  { %v7622_v30 = vpop.f32.mrf.mxu0  ;;  %v7624_v2 = vpop.f32.mrf.mxu1 }
 0x7c4   :  { %v7626_v3 = vpop.f32.mrf.mxu2  ;;  %v7628_v6 = vpop.f32.mrf.mxu3 }
 0x7c5   :  { %8992 = vst [vmem:[#allocation26_spill] sm:$0xff] %v7626_v3 }
 0x7c6   :  { %8993 = vst [vmem:[#allocation32_spill] sm:$0xff] %v7628_v6 }
 0x7c8   :  { %v7630_v34 = vpop.f32.mrf.mxu0  ;;  %v7632_v27 = vpop.f32.mrf.mxu1 }
 0x7cc   :  { %v7634_v15 = vpop.f32.mrf.mxu2  ;;  %v7636_v31 = vpop.f32.mrf.mxu3 }
 0x7cd   :  { %8994 = vst [vmem:[#allocation22_spill] sm:$0xff] %v7634_v15 }
 0x7ce   :  { %8995 = vst [vmem:[#allocation31_spill] sm:$0xff] %v7636_v31 }
 0x7d0   :  { %v7638_v23 = vpop.f32.mrf.mxu0  ;;  %v7640_v35 = vpop.f32.mrf.mxu1 }
 0x7d4   :  { %v7642_v36 = vpop.f32.mrf.mxu2  ;;  %v7644_v37 = vpop.f32.mrf.mxu3 }
 0x7d5   :  { %8996 = vst [vmem:[#allocation20_spill] sm:$0xff] %v7642_v36 }
 0x7d6   :  { %8997 = vst [vmem:[#allocation27_spill] sm:$0xff] %v7644_v37 }
 0x7d8   :  { %v7646_v39 = vpop.f32.mrf.mxu0  ;;  %v7648_v41 = vpop.f32.mrf.mxu1 }
 0x7dc   :  { %v7650_v26 = vpop.f32.mrf.mxu2  ;;  %v7652_v43 = vpop.f32.mrf.mxu3 }
 0x7dd   :  { %8998 = vst [vmem:[#allocation23_spill] sm:$0xff] %v7652_v43 }
 0x7e0   :  { %v7654_v44 = vpop.f32.mrf.mxu0  ;;  %v7656_v45 = vpop.f32.mrf.mxu1 }
 0x7e4   :  { %v7658_v48 = vpop.f32.mrf.mxu2  ;;  %v7660_v25 = vpop.f32.mrf.mxu3 }
 0x7e5   :  { %8999 = vst [vmem:[#allocation21_spill] sm:$0xff] %v7660_v25 }
 0x7e8   :  { %v2219_v49 = vpop.f32.mrf.mxu0  ;;  %v2284_v52 = vpop.f32.mrf.mxu1 }
 0x7ec   :  { %v7662_v53 = vpop.f32.mrf.mxu2  ;;  %v7664_v55 = vpop.f32.mrf.mxu3 }
 0x7ed   :  { %9000 = vst [vmem:[#allocation34_spill] sm:$0xff] %v7664_v55 }
 0x7f0   :  { %v2222_v46 = vpop.f32.mrf.mxu0  ;;  %v2287_v5 = vpop.f32.mrf.mxu1 }
 0x7f4   :  { %v7666_v24 = vpop.f32.mrf.mxu2  ;;  %v7668_v42 = vpop.f32.mrf.mxu3 }
 0x7f8   :  { %v2225_v4 = vpop.f32.mrf.mxu0  ;;  %v2290_v61 = vpop.f32.mrf.mxu1 }
 0x7f9   :  { %v2291_v19 = vadd.f32 %v2290_v61, %v2225_v4  ;;  %v9004_v61 = vld [vmem:[#allocation20_spill] sm:$0xff] }
 0x7fc   :  { %v2352_v62 = vpop.f32.mrf.mxu2  ;;  %v7670_v54 = vpop.f32.mrf.mxu3 }
 0x800   :  { %v2228_v1 = vpop.f32.mrf.mxu0  ;;  %v2293_v63 = vpop.f32.mrf.mxu1 }
 0x801   :  { %v2294_v33 = vadd.f32 %v2293_v63, %v2228_v1 }
 0x804   :  { %v2355_v56 = vpop.f32.mrf.mxu2  ;;  %v2420_v57 = vpop.f32.mrf.mxu3 }
 0x808   :  { %v2231_v51 = vpop.f32.mrf.mxu0  ;;  %v2296_v60 = vpop.f32.mrf.mxu1 }
 0x809   :  { %v2297_v3 = vadd.f32 %v2296_v60, %v2231_v51  ;;  %v9009_v60 = vld [vmem:[#allocation23_spill] sm:$0xff] }
 0x80c   :  { %v2358_v0 = vpop.f32.mrf.mxu2  ;;  %v2423_v58 = vpop.f32.mrf.mxu3 }
 0x810   :  { %v2234_v7 = vpop.f32.mrf.mxu0  ;;  %v2299_v20 = vpop.f32.mrf.mxu1 }
 0x811   :  { %v2300_v6 = vadd.f32 %v2299_v20, %v2234_v7  ;;  %v2288_v7 = vadd.f32 %v2287_v5, %v2222_v46  ;;  %v2359_v20 = vadd.f32 %v2358_v0, %v2294_v33 }
 0x813   :  { %v2353_v33 = vadd.f32 %v2352_v62, %v2288_v7 }
 0x814   :  { %v2361_v21 = vpop.f32.mrf.mxu2  ;;  %v2426_v22 = vpop.f32.mrf.mxu3 }
 0x815   :  { %v2362_v59 = vadd.f32 %v2361_v21, %v2297_v3  ;;  %v9010_v21 = vld [vmem:[#allocation26_spill] sm:$0xff] }
 0x817   :  { %v7686_v3 = vadd.f32 %v2426_v22, %v2362_v59  ;;  %v2279_v59 = vadd.f32 %v7648_v41, %v7646_v39  ;;  %v2273_v41 = vadd.f32 %v7632_v27, %v7630_v34  ;;  %v9002_v27 = vld [vmem:[#allocation30_spill] sm:$0xff] }
 0x818   :  { %v2237_v38 = vpop.f32.mrf.mxu0  ;;  %v2302_v16 = vpop.f32.mrf.mxu1 }
 0x819   :  { %v2303_v10 = vadd.f32 %v2302_v16, %v2237_v38  ;;  %v2344_v46 = vadd.f32 %v7658_v48, %v2279_v59  ;;  %v9003_v48 = vld [vmem:[#allocation33_spill] sm:$0xff]  ;;  %v2338_v62 = vadd.f32 %v9004_v61, %v2273_v41  ;;  %v9011_v16 = vld [vmem:[#allocation27_spill] sm:$0xff] }
 0x81c   :  { %v2364_v47 = vpop.f32.mrf.mxu2  ;;  %v2429_v17 = vpop.f32.mrf.mxu3 }
 0x81d   :  { %v2365_v32 = vadd.f32 %v2364_v47, %v2300_v6  ;;  %v2356_v6 = vadd.f32 %v2355_v56, %v2291_v19  ;;  %v9008_v56 = vld [vmem:[#allocation22_spill] sm:$0xff]  ;;  %v7753_v47 = vadd.f32 %v9011_v16, %v2338_v62 }
 0x81f   :  { %v7681_v51 = vadd.f32 %v2429_v17, %v2365_v32  ;;  %v2282_v32 = vadd.f32 %v7656_v45, %v7654_v44  ;;  %v2484_v44 = vmul.f32 %v7686_v3, %v7686_v3  ;;  %v2276_v45 = vadd.f32 %v7640_v35, %v7638_v23 }
 0x820   :  { %v2240_v18 = vpop.f32.mrf.mxu0  ;;  %v2305_v12 = vpop.f32.mrf.mxu1  ;;  %v2270_v35 = vadd.f32 %v7624_v2, %v7622_v30  ;;  %v9006_v2 = vld [vmem:[#allocation28_spill] sm:$0xff] }
 0x821   :  { %v2306_v9 = vadd.f32 %v2305_v12, %v2240_v18  ;;  %v2485_v19 = vmul.f32 %v7681_v51, %v7681_v51  ;;  %v9012_v18 = vld [vmem:[#allocation24_spill] sm:$0xff] }
 0x824   :  { %v2367_v50 = vpop.f32.mrf.mxu2  ;;  %v2432_v13 = vpop.f32.mrf.mxu3 }
 0x825   :  { %v2368_v43 = vadd.f32 %v2367_v50, %v2303_v10  ;;  %v9013_v50 = vld [vmem:[#allocation31_spill] sm:$0xff] }
 0x827   :  { %v7676_v55 = vadd.f32 %v2432_v13, %v2368_v43  ;;  %v7701_v43 = vadd.f32 %v2420_v57, %v2356_v6  ;;  %v2335_v57 = vadd.f32 %v9008_v56, %v2270_v35 }
 0x828   :  { %v2243_v8 = vpop.f32.mrf.mxu0  ;;  %v2308_v11 = vpop.f32.mrf.mxu1 }
 0x829   :  { %v2309_v29 = vadd.f32 %v2308_v11, %v2243_v8  ;;  %v2482_v23 = vmul.f32 %v7701_v43, %v7701_v43  ;;  %v7760_v13 = vadd.f32 %v9013_v50, %v2335_v57  ;;  %v2476_v11 = vmul.f32 %v7753_v47, %v7753_v47 }
 0x82c   :  { %v2370_v14 = vpop.f32.mrf.mxu2  ;;  %v2435_v40 = vpop.f32.mrf.mxu3 }
 0x82d   :  { %v2371_v31 = vadd.f32 %v2370_v14, %v2306_v9  ;;  %v9015_v9 = vld [vmem:[#allocation25_spill] sm:$0xff] }
 0x82f   :  { %v7672_v25 = vadd.f32 %v2435_v40, %v2371_v31  ;;  %v7693_v31 = vadd.f32 %v2423_v58, %v2359_v20  ;;  %v9014_v40 = vld [vmem:[#allocation32_spill] sm:$0xff] }
 0x830   :  { %v2441_v20 = vld [vmem:[%s6668_s6] sm:$0xff] }
 0x831   :  { %v2483_v39 = vmul.f32 %v7693_v31, %v7693_v31 }
 0x834   :  { %v2373_v28 = vpop.f32.mrf.mxu2  ;;  %v2438_v37 = vpop.f32.mrf.mxu3 }
 0x835   :  { %v2374_v15 = vadd.f32 %v2373_v28, %v2309_v29  ;;  %v2487_v28 = vmul.f32 %v7672_v25, %v7672_v25  ;;  %v2285_v29 = vadd.f32 %v2284_v52, %v2219_v49  ;;  %v2347_v49 = vadd.f32 %v7662_v53, %v2282_v32 }
 0x836   :  { %v7710_v52 = vadd.f32 %v7670_v54, %v2353_v33  ;;  %v2341_v53 = vadd.f32 %v7650_v26, %v2276_v45  ;;  %v9005_v54 = vld [vmem:[#allocation21_spill] sm:$0xff] }
 0x837   :  { %v7674_v36 = vadd.f32 %v2438_v37, %v2374_v15  ;;  %v2486_v15 = vmul.f32 %v7676_v55, %v7676_v55  ;;  %v2350_v37 = vadd.f32 %v7666_v24, %v2285_v29  ;;  %v9001_v24 = vld [vmem:[#allocation34_spill] sm:$0xff]  ;;  %v7737_v1 = vadd.f32 %v9005_v54, %v2344_v46  ;;  %v9007_v26 = vld [vmem:[#allocation29_spill] sm:$0xff] }
 0x838   :  { %v7728_v4 = vadd.f32 %v9001_v24, %v2347_v49  ;;  %v2481_v34 = vmul.f32 %v7710_v52, %v7710_v52  ;;  %v2264_v63 = vadd.f32 %v9007_v26, %v9006_v2  ;;  %v7746_v0 = vadd.f32 %v9009_v60, %v2341_v53  ;;  %v2442_v29 = vld [vmem:[%s6668_s6 + $0x8] sm:$0xff]  ;;  %s9089_s6 = sld [smem:[#allocation18_spill]] }
 0x839   :  { %v2488_v38 = vmul.f32 %v7674_v36, %v7674_v36  ;;  %2443 = vmatpush.msrb.mxu0 %v7674_v36  ;;  %v7719_v5 = vadd.f32 %v7668_v42, %v2350_v37  ;;  %v2267_v42 = vadd.f32 %v9003_v48, %v9002_v27  ;;  %v2478_v17 = vmul.f32 %v7737_v1, %v7737_v1 }
 0x83a   :  { %v2479_v58 = vmul.f32 %v7728_v4, %v7728_v4  ;;  %v2329_v12 = vadd.f32 %v9012_v18, %v2264_v63  ;;  %v2477_v14 = vmul.f32 %v7746_v0, %v7746_v0  ;;  %v2553_v18 = vld [vmem:[%s9017_s9 + $0x8] sm:$0xff] }
 0x83b   :  { %2444 = vmatpush.msrb.mxu0 %v7672_v25  ;;  %2489 = vmatpush.msrb.mxu1 %v2488_v38  ;;  %v2480_v30 = vmul.f32 %v7719_v5, %v7719_v5  ;;  %v2332_v22 = vadd.f32 %v9010_v21, %v2267_v42  ;;  %v2475_v38 = vmul.f32 %v7760_v13, %v7760_v13 }
 0x83c   :  { %v7772_v10 = vadd.f32 %v9015_v9, %v2329_v12 }
 0x83d   :  { %2445 = vmatpush.msrb.mxu0 %v7676_v55  ;;  %2490 = vmatpush.msrb.mxu1 %v2487_v28  ;;  %v7766_v8 = vadd.f32 %v9014_v40, %v2332_v22 }
 0x83e   :  { %v2473_v28 = vmul.f32 %v7772_v10, %v7772_v10 }
 0x83f   :  { %2446 = vmatpush.msrb.mxu0 %v7681_v51  ;;  %2491 = vmatpush.msrb.mxu1 %v2486_v15  ;;  %v2474_v7 = vmul.f32 %v7766_v8, %v7766_v8 }
 0x841   :  { %2447 = vmatpush.msrb.mxu0 %v7686_v3  ;;  %2492 = vmatpush.msrb.mxu1 %v2485_v19 }
 0x843   :  { %2448 = vmatpush.msrb.mxu0 %v7693_v31  ;;  %2493 = vmatpush.msrb.mxu1 %v2484_v44 }
 0x845   :  { %2449 = vmatpush.msrb.mxu0 %v7701_v43  ;;  %2494 = vmatpush.msrb.mxu1 %v2483_v39 }
 0x847   :  { %2450 = vmatpush.msrb.mxu0 %v7710_v52  ;;  %2495 = vmatpush.msrb.mxu1 %v2482_v23 }
 0x849   :  { %2451 = vmatpush.msrb.mxu0 %v7719_v5  ;;  %2496 = vmatpush.msrb.mxu1 %v2481_v34 }
 0x84b   :  { %2452 = vmatpush.msrb.mxu0 %v7728_v4  ;;  %2497 = vmatpush.msrb.mxu1 %v2480_v30 }
 0x84d   :  { %2453 = vmatpush.msrb.mxu0 %v7737_v1  ;;  %2498 = vmatpush.msrb.mxu1 %v2479_v58  ;;  %v2549_v58 = vld [vmem:[%s9016_s5 + $0x8] sm:$0xff] }
 0x84f   :  { %2454 = vmatpush.msrb.mxu0 %v7746_v0  ;;  %2499 = vmatpush.msrb.mxu1 %v2478_v17 }
 0x851   :  { %2455 = vmatpush.msrb.mxu0 %v7753_v47  ;;  %2500 = vmatpush.msrb.mxu1 %v2477_v14  ;;  %v2548_v14 = vld [vmem:[%s9016_s5] sm:$0xff] }
 0x853   :  { %2456 = vmatpush.msrb.mxu0 %v7760_v13  ;;  %2501 = vmatpush.msrb.mxu1 %v2476_v11 }
 0x855   :  { %2457 = vmatpush.msrb.mxu0 %v7766_v8  ;;  %2502 = vmatpush.msrb.mxu1 %v2475_v38  ;;  %v2558_v38 = vld [vmem:[%s9018_s13] sm:$0xff] }
 0x857   :  { %2458 = vmatpush.msrb.mxu0 %v7772_v10  ;;  %2503 = vmatpush.msrb.mxu1 %v2474_v7  ;;  %v2552_v7 = vld [vmem:[%s9017_s9] sm:$0xff] }
 0x858   :  { %2459 = vmatmul.f32.vlgmr.msrb.gmra.mxu0 %v2441_v20 }
 0x859   :  { %2504 = vmatpush.msrb.mxu1 %v2473_v28 }
 0x85a   :  { %2505 = vmatmul.f32.vlgmr.msrb.gmra.mxu1 %v2441_v20 }
 0x860   :  { %2462 = vmatmul.f32.gmra.mxu0 %v2442_v29 }
 0x862   :  { %2508 = vmatmul.f32.gmra.mxu1 %v2442_v29  ;;  %v2559_v29 = vld [vmem:[%s9018_s13 + $0x8] sm:$0xff] }
 0x8d5   :  { %v2460_v6 = vpop.f32.mrf.mxu0 }
 0x8d6   :  { %v2467_v15 = vsel %vm2466_vm10, %v2460_v6, 0.0  ;;  %v2560_v6 = vld [vmem:[%s9018_s13 + $0x10] sm:$0xff] }
 0x8d7   :  { %v2506_v32 = vpop.f32.mrf.mxu1  ;;  %2468 = vadd.xlane.f32.xlu0 %v2467_v15  ;;  %v2561_v15 = vld [vmem:[%s9018_s13 + $0x18] sm:$0xff] }
 0x8d8   :  { %v2512_v44 = vsel %vm2466_vm10, %v2506_v32, 0.0  ;;  %v2562_v32 = vld [vmem:[%s9018_s13 + $0x20] sm:$0xff] }
 0x8dd   :  { %v2463_v33 = vpop.f32.mrf.mxu0 }
 0x8de   :  { %v2470_v19 = vsel %vm2466_vm10, %v2463_v33, 0.0  ;;  %v2563_v33 = vld [vmem:[%s9018_s13 + $0x28] sm:$0xff] }
 0x8df   :  { %v2509_v59 = vpop.f32.mrf.mxu1  ;;  %2471 = vadd.xlane.f32.xlu2 %v2470_v19  ;;  %v2564_v19 = vld [vmem:[%s9018_s13 + $0x30] sm:$0xff] }
 0x8e0   :  { %v2515_v37 = vsel %vm2466_vm10, %v2509_v59, 0.0  ;;  %v2565_v59 = vld [vmem:[%s9018_s13 + $0x38] sm:$0xff] }
 0x8e1   :  { %2516 = vadd.xlane.f32.xlu1 %v2515_v37  ;;  %v2566_v37 = vld [vmem:[%s9018_s13 + $0x40] sm:$0xff] }
 0x8e7   :  { %2513 = vadd.xlane.f32.xlu2 %v2512_v44  ;;  %v2567_v44 = vld [vmem:[%s9018_s13 + $0x48] sm:$0xff] }
 0x94a   :  { %v2469_v39 = vpop.xlane.xlu0 %2468 }
 0x94b   :  { %v2518_v35 = vmul.f32 0.0078125, %v2469_v39  ;;  %v2570_v39 = vld [vmem:[%s9018_s13 + $0x60] sm:$0xff] }
 0x94d   :  { %v2522_v27 = vmul.f32 %v2518_v35, %v2518_v35 }
 0x952   :  { %v2472_v45 = vpop.xlane.xlu2 %2471 }
 0x953   :  { %v2519_v49 = vmul.f32 0.0078125, %v2472_v45  ;;  %v2568_v45 = vld [vmem:[%s9018_s13 + $0x50] sm:$0xff] }
 0x954   :  { %v2517_v41 = vpop.xlane.xlu1 %2516 }
 0x955   :  { %v2523_v46 = vmul.f32 %v2519_v49, %v2519_v49  ;;  %v2521_v23 = vmul.f32 0.0078125, %v2517_v41  ;;  %v2571_v41 = vld [vmem:[%s9018_s13 + $0x68] sm:$0xff] }
 0x957   :  { %v2525_v53 = vsub.f32 %v2521_v23, %v2523_v46  ;;  %v2572_v46 = vld [vmem:[%s9018_s13 + $0x70] sm:$0xff]  ;;  %v2573_v23 = vld [vmem:[%s9018_s13 + $0x78] sm:$0xff] }
 0x959   :  { %v2527_v24 = vadd.f32 1e-05, %v2525_v53 }
 0x95a   :  { %v2514_v34 = vpop.xlane.xlu2 %2513 }
 0x95b   :  { %6477 = vrsqrt.f32 %v2527_v24  ;;  %v2520_v48 = vmul.f32 0.0078125, %v2514_v34  ;;  %vm2544_vm12 = vweird.f32 %v2527_v24 }
 0x95d   :  { %v2524_v42 = vsub.f32 %v2520_v48, %v2522_v27 }
 0x95f   :  { %v2526_v61 = vadd.f32 1e-05, %v2524_v42 }
 0x961   :  { %v6478_v62 = vpop.eup %6477  ;;  %6479 = vrsqrt.f32 %v2526_v61  ;;  %vm2534_vm15 = vweird.f32 %v2526_v61 }
 0x962   :  { %v2539_v54 = vmul.f32 %v6478_v62, %v2527_v24  ;;  %vm2545_vm11 = vweird.f32 %v6478_v62 }
 0x963   :  { %vm2546_vm13 = vmor %vm2544_vm12, %vm2545_vm11 }
 0x964   :  { %v2540_v30 = vmul.f32 %v6478_v62, %v2539_v54 }
 0x966   :  { %v2541_v2 = vmul.f32 0.5, %v2540_v30 }
 0x967   :  { %v6480_v26 = vpop.eup %6479 }
 0x968   :  { %v2542_v63 = vsub.f32 1.5, %v2541_v2  ;;  %v2529_v56 = vmul.f32 %v6480_v26, %v2526_v61  ;;  %vm2535_vm14 = vweird.f32 %v6480_v26 }
 0x969   :  { %vm2536_vm0 = vmor %vm2534_vm15, %vm2535_vm14 }
 0x96a   :  { %v2543_v57 = vmul.f32 %v6478_v62, %v2542_v63  ;;  %v2530_v60 = vmul.f32 %v6480_v26, %v2529_v56 }
 0x96c   :  { %v2531_v21 = vmul.f32 0.5, %v2530_v60  ;;  %v2547_v22 = vsel %vm2546_vm13, %v6478_v62, %v2543_v57 }
 0x96d   :  { %v2551_v16 = vmul.f32 %v2549_v58, %v2547_v22 }
 0x96e   :  { %v2532_v17 = vsub.f32 1.5, %v2531_v21 }
 0x96f   :  { %2636 = vmatpush.msra.mxu2 %v2551_v16  ;;  %v2555_v12 = vmul.f32 %v2551_v16, %v2519_v49  ;;  %v2569_v49 = vld [vmem:[%s9018_s13 + $0x58] sm:$0xff] }
 0x970   :  { %v2533_v50 = vmul.f32 %v6480_v26, %v2532_v17 }
 0x971   :  { %v2557_v40 = vsub.f32 %v2553_v18, %v2555_v12  ;;  %v2993_v12 = vld [vmem:[%s9019_s17 + $0x8] sm:$0xff] }
 0x972   :  { %v2537_v11 = vsel %vm2536_vm0, %v6480_v26, %v2533_v50  ;;  %v6218_v50 = vld [vmem:[%s9019_s17 + $0x18] sm:$0xff]  ;;  %3056 = vmatpush.msra.mxu0 %v2993_v12 }
 0x973   :  { %2701 = vmatpush.msra.mxu3 %v2557_v40  ;;  %v2550_v9 = vmul.f32 %v2548_v14, %v2537_v11  ;;  %v6236_v14 = vld [vmem:[%s9019_s17 + $0x28] sm:$0xff]  ;;  %3124 = vmatpush.msra.mxu1 %v6218_v50  ;;  %v6254_v40 = vld [vmem:[%s9019_s17 + $0x38] sm:$0xff]  ;;  %v2992_v11 = vld [vmem:[%s9019_s17] sm:$0xff] }
 0x974   :  { %3057 = vmatpush.msra.mxu0 %v2992_v11 }
 0x975   :  { %2637 = vmatpush.msra.mxu2 %v2550_v9  ;;  %v2554_v20 = vmul.f32 %v2550_v9, %v2518_v35  ;;  %v6217_v9 = vld [vmem:[%s9019_s17 + $0x10] sm:$0xff] }
 0x976   :  { %6169 = vmatmul.msk.f32.vlgmr.msra.gmra.mxu2 %vm2466_vm10, %v2558_v38  ;;  %3125 = vmatpush.msra.mxu1 %v6217_v9 }
 0x977   :  { %v2556_v28 = vsub.f32 %v2552_v7, %v2554_v20  ;;  %3192 = vmatpush.msrb.mxu2 %v6236_v14  ;;  %v6253_v20 = vld [vmem:[%s9019_s17 + $0x30] sm:$0xff] }
 0x979   :  { %2702 = vmatpush.msra.mxu3 %v2556_v28 }
 0x97a   :  { %6185 = vmatmul.msk.f32.vlgmr.msra.gmra.mxu3 %vm2466_vm10, %v2558_v38  ;;  %v6235_v38 = vld [vmem:[%s9019_s17 + $0x20] sm:$0xff] }
 0x97b   :  { %3260 = vmatpush.msrb.mxu3 %v6254_v40  ;;  %3193 = vmatpush.msrb.mxu2 %v6235_v38 }
 0x97d   :  { %3261 = vmatpush.msrb.mxu3 %v6253_v20 }
 0x97e   :  { %6170 = vmatmul.msk.f32.gmra.mxu2 %vm2466_vm10, %v2559_v29 }
 0x982   :  { %6186 = vmatmul.msk.f32.gmra.mxu3 %vm2466_vm10, %v2559_v29 }
 0x986   :  { %6171 = vmatmul.msk.f32.gmra.mxu2 %vm2466_vm10, %v2560_v6 }
 0x98a   :  { %6187 = vmatmul.msk.f32.gmra.mxu3 %vm2466_vm10, %v2560_v6 }
 0x98e   :  { %6172 = vmatmul.msk.f32.gmra.mxu2 %vm2466_vm10, %v2561_v15 }
 0x992   :  { %6188 = vmatmul.msk.f32.gmra.mxu3 %vm2466_vm10, %v2561_v15 }
 0x996   :  { %6173 = vmatmul.msk.f32.gmra.mxu2 %vm2466_vm10, %v2562_v32 }
 0x99a   :  { %6189 = vmatmul.msk.f32.gmra.mxu3 %vm2466_vm10, %v2562_v32 }
 0x99e   :  { %6174 = vmatmul.msk.f32.gmra.mxu2 %vm2466_vm10, %v2563_v33 }
 0x9a2   :  { %6190 = vmatmul.msk.f32.gmra.mxu3 %vm2466_vm10, %v2563_v33 }
 0x9a6   :  { %6175 = vmatmul.msk.f32.gmra.mxu2 %vm2466_vm10, %v2564_v19 }
 0x9aa   :  { %6191 = vmatmul.msk.f32.gmra.mxu3 %vm2466_vm10, %v2564_v19 }
 0x9ae   :  { %6176 = vmatmul.msk.f32.gmra.mxu2 %vm2466_vm10, %v2565_v59 }
 0x9b2   :  { %6192 = vmatmul.msk.f32.gmra.mxu3 %vm2466_vm10, %v2565_v59 }
 0x9b6   :  { %6177 = vmatmul.msk.f32.gmra.mxu2 %vm2466_vm10, %v2566_v37 }
 0x9ba   :  { %6193 = vmatmul.msk.f32.gmra.mxu3 %vm2466_vm10, %v2566_v37 }
 0x9be   :  { %6178 = vmatmul.msk.f32.gmra.mxu2 %vm2466_vm10, %v2567_v44 }
 0x9c2   :  { %6194 = vmatmul.msk.f32.gmra.mxu3 %vm2466_vm10, %v2567_v44 }
 0x9c6   :  { %6179 = vmatmul.msk.f32.gmra.mxu2 %vm2466_vm10, %v2568_v45 }
 0x9ca   :  { %6195 = vmatmul.msk.f32.gmra.mxu3 %vm2466_vm10, %v2568_v45 }
 0x9ce   :  { %6180 = vmatmul.msk.f32.gmra.mxu2 %vm2466_vm10, %v2569_v49 }
 0x9d2   :  { %6196 = vmatmul.msk.f32.gmra.mxu3 %vm2466_vm10, %v2569_v49 }
 0x9d6   :  { %6181 = vmatmul.msk.f32.gmra.mxu2 %vm2466_vm10, %v2570_v39 }
 0x9da   :  { %6197 = vmatmul.msk.f32.gmra.mxu3 %vm2466_vm10, %v2570_v39 }
 0x9de   :  { %6182 = vmatmul.msk.f32.gmra.mxu2 %vm2466_vm10, %v2571_v41 }
 0x9e2   :  { %6198 = vmatmul.msk.f32.gmra.mxu3 %vm2466_vm10, %v2571_v41 }
 0x9e6   :  { %6183 = vmatmul.msk.f32.gmra.mxu2 %vm2466_vm10, %v2572_v46 }
 0x9ea   :  { %6199 = vmatmul.msk.f32.gmra.mxu3 %vm2466_vm10, %v2572_v46 }
 0x9ee   :  { %6184 = vmatmul.msk.f32.gmra.mxu2 %vm2466_vm10, %v2573_v23 }
 0x9f2   :  { %6200 = vmatmul.msk.f32.gmra.mxu3 %vm2466_vm10, %v2573_v23 }
 0x9f9   :  { %v2639_v35 = vpop.f32.mrf.mxu2 }
 0x9fa   :  { %2754 = vperm.xlu2 %6473, %v2639_v35  }
 0x9fd   :  { %v2704_v53 = vpop.f32.mrf.mxu3 }
 0x9fe   :  { %2850 = vperm.xlu0 %6474, %v2704_v53  }
 0xa01   :  { %v2642_v24 = vpop.f32.mrf.mxu2 }
 0xa02   :  { %2759 = vperm.xlu1 %6472, %v2642_v24  }
 0xa05   :  { %v2707_v34 = vpop.f32.mrf.mxu3 }
 0xa06   :  { %2855 = vperm.xlu0 %6474, %v2707_v34  }
 0xa09   :  { %v2645_v27 = vpop.f32.mrf.mxu2 }
 0xa0a   :  { %2764 = vperm.xlu2 %6473, %v2645_v27  }
 0xa0d   :  { %v2710_v48 = vpop.f32.mrf.mxu3 }
 0xa0e   :  { %2860 = vperm.xlu1 %6472, %v2710_v48  }
 0xa11   :  { %v2648_v42 = vpop.f32.mrf.mxu2 }
 0xa12   :  { %2769 = vperm.xlu0 %6474, %v2648_v42  }
 0xa15   :  { %v2713_v61 = vpop.f32.mrf.mxu3 }
 0xa16   :  { %2865 = vperm.xlu2 %6473, %v2713_v61  }
 0xa19   :  { %v2651_v62 = vpop.f32.mrf.mxu2 }
 0xa1a   :  { %2774 = vperm.xlu1 %6472, %v2651_v62  }
 0xa1d   :  { %v2716_v54 = vpop.f32.mrf.mxu3 }
 0xa1e   :  { %2870 = vperm.xlu0 %6474, %v2716_v54  }
 0xa21   :  { %v2654_v30 = vpop.f32.mrf.mxu2 }
 0xa22   :  { %2779 = vperm.xlu2 %6473, %v2654_v30  }
 0xa25   :  { %v2719_v2 = vpop.f32.mrf.mxu3 }
 0xa26   :  { %2875 = vperm.xlu1 %6472, %v2719_v2  }
 0xa29   :  { %v2657_v26 = vpop.f32.mrf.mxu2 }
 0xa2a   :  { %2784 = vperm.xlu0 %6474, %v2657_v26  }
 0xa2d   :  { %v2722_v63 = vpop.f32.mrf.mxu3 }
 0xa2e   :  { %2880 = vperm.xlu2 %6473, %v2722_v63  }
 0xa31   :  { %v2660_v56 = vpop.f32.mrf.mxu2 }
 0xa32   :  { %2789 = vperm.xlu1 %6472, %v2660_v56  }
 0xa35   :  { %v2725_v57 = vpop.f32.mrf.mxu3 }
 0xa36   :  { %2885 = vperm.xlu0 %6474, %v2725_v57  }
 0xa39   :  { %v2663_v60 = vpop.f32.mrf.mxu2 }
 0xa3a   :  { %2794 = vperm.xlu2 %6473, %v2663_v60  }
 0xa3d   :  { %v2728_v58 = vpop.f32.mrf.mxu3 }
 0xa3e   :  { %2890 = vperm.xlu1 %6472, %v2728_v58  }
 0xa41   :  { %v2666_v21 = vpop.f32.mrf.mxu2 }
 0xa42   :  { %2799 = vperm.xlu0 %6474, %v2666_v21  }
 0xa45   :  { %v2731_v22 = vpop.f32.mrf.mxu3 }
 0xa46   :  { %2895 = vperm.xlu2 %6473, %v2731_v22  }
 0xa49   :  { %v2669_v16 = vpop.f32.mrf.mxu2 }
 0xa4a   :  { %2804 = vperm.xlu1 %6472, %v2669_v16  }
 0xa4d   :  { %v2734_v17 = vpop.f32.mrf.mxu3 }
 0xa4e   :  { %2900 = vperm.xlu0 %6474, %v2734_v17  }
 0xa51   :  { %v2672_v18 = vpop.f32.mrf.mxu2 }
 0xa52   :  { %2809 = vperm.xlu2 %6473, %v2672_v18  }
 0xa54   :  { %v2755_v33 = vpop.permute.xlu2 %2754 }
 0xa55   :  { %v2737_v7 = vpop.f32.mrf.mxu3  ;;  %v2832_v59 = vmul.f32 %v2755_v33, %v7772_v10 }
 0xa56   :  { %2905 = vperm.xlu1 %6472, %v2737_v7  }
 0xa59   :  { %v2675_v28 = vpop.f32.mrf.mxu2 }
 0xa5a   :  { %2814 = vperm.xlu0 %6474, %v2675_v28  }
 0xa5d   :  { %v2740_v29 = vpop.f32.mrf.mxu3 }
 0xa5e   :  { %2910 = vperm.xlu2 %6473, %v2740_v29  }
 0xa61   :  { %v2678_v6 = vpop.f32.mrf.mxu2 }
 0xa62   :  { %2819 = vperm.xlu1 %6472, %v2678_v6  }
 0xa64   :  { %v2765_v24 = vpop.permute.xlu2 %2764 }
 0xa65   :  { %v2743_v15 = vpop.f32.mrf.mxu3  ;;  %v2834_v27 = vmul.f32 %v2765_v24, %v7760_v13 }
 0xa66   :  { %2915 = vperm.xlu0 %6474, %v2743_v15  }
 0xa69   :  { %v2681_v32 = vpop.f32.mrf.mxu2 }
 0xa6a   :  { %2824 = vperm.xlu2 %6473, %v2681_v32  }
 0xa6d   :  { %v2746_v19 = vpop.f32.mrf.mxu3 }
 0xa6e   :  { %2920 = vperm.xlu1 %6472, %v2746_v19  }
 0xa70   :  { %v2851_v37 = vpop.permute.xlu0 %2850  ;;  %v2866_v30 = vpop.permute.xlu2 %2865 }
 0xa71   :  { %v2928_v44 = vadd.f32 %v2851_v37, %v2832_v59  ;;  %v2684_v45 = vpop.f32.mrf.mxu2 }
 0xa72   :  { %2829 = vperm.xlu0 %6474, %v2684_v45  }
 0xa73   :  { %vm2944_vm3 = vcmp.ge.f32.partialorder %v2928_v44, 0.0  ;;  %v2960_v49 = vmul.f32 0.2, %v2928_v44 }
 0xa74   :  { %v2760_v39 = vpop.permute.xlu1 %2759 }
 0xa75   :  { %v2976_v41 = vsel %vm2944_vm3, %v2928_v44, %v2960_v49  ;;  %v2749_v46 = vpop.f32.mrf.mxu3  ;;  %v2833_v23 = vmul.f32 %v2760_v39, %v7766_v8 }
 0xa76   :  { %6201 = vmatmul.msk.f32.vlgmr.msra.gmra.mxu0 %vm2466_vm10, %v2976_v41  ;;  %6219 = vmatmul.msk.f32.vlgmr.msra.gmra.mxu1 %vm2466_vm10, %v2976_v41 }
 0xa77   :  { %6237 = vmatmul.msk.f32.vlgmr.msrb.gmra.mxu2 %vm2466_vm10, %v2976_v41  ;;  %6255 = vmatmul.msk.f32.vlgmr.msrb.gmra.mxu3 %vm2466_vm10, %v2976_v41 }
 0xa78   :  { %2925 = vperm.xlu2 %6473, %v2749_v46   ;;  %v2856_v10 = vpop.permute.xlu0 %2855 }
 0xa79   :  { %v2929_v35 = vadd.f32 %v2856_v10, %v2833_v23 }
 0xa7b   :  { %vm2945_vm4 = vcmp.ge.f32.partialorder %v2929_v35, 0.0  ;;  %v2961_v53 = vmul.f32 0.2, %v2929_v35 }
 0xa7c   :  { %v2780_v58 = vpop.permute.xlu2 %2779 }
 0xa7d   :  { %v2977_v34 = vsel %vm2945_vm4, %v2929_v35, %v2961_v53  ;;  %v2837_v22 = vmul.f32 %v2780_v58, %v7737_v1 }
 0xa7e   :  { %6202 = vmatmul.msk.f32.gmra.mxu0 %vm2466_vm10, %v2977_v34  ;;  %6220 = vmatmul.msk.f32.gmra.mxu1 %vm2466_vm10, %v2977_v34 }
 0xa7f   :  { %6238 = vmatmul.msk.f32.gmra.mxu2 %vm2466_vm10, %v2977_v34  ;;  %6256 = vmatmul.msk.f32.gmra.mxu3 %vm2466_vm10, %v2977_v34 }
 0xa80   :  { %v2861_v8 = vpop.permute.xlu1 %2860 }
 0xa81   :  { %v2930_v48 = vadd.f32 %v2861_v8, %v2834_v27 }
 0xa83   :  { %vm2946_vm5 = vcmp.ge.f32.partialorder %v2930_v48, 0.0  ;;  %v2962_v42 = vmul.f32 0.2, %v2930_v48 }
 0xa84   :  { %v2770_v61 = vpop.permute.xlu0 %2769 }
 0xa85   :  { %v2835_v62 = vmul.f32 %v2770_v61, %v7753_v47  ;;  %v2978_v54 = vsel %vm2946_vm5, %v2930_v48, %v2962_v42 }
 0xa86   :  { %6203 = vmatmul.msk.f32.gmra.mxu0 %vm2466_vm10, %v2978_v54  ;;  %6221 = vmatmul.msk.f32.gmra.mxu1 %vm2466_vm10, %v2978_v54 }
 0xa87   :  { %v2931_v2 = vadd.f32 %v2866_v30, %v2835_v62  ;;  %6239 = vmatmul.msk.f32.gmra.mxu2 %vm2466_vm10, %v2978_v54  ;;  %6257 = vmatmul.msk.f32.gmra.mxu3 %vm2466_vm10, %v2978_v54 }
 0xa88   :  { %v2881_v14 = vpop.permute.xlu2 %2880 }
 0xa89   :  { %v2963_v13 = vmul.f32 0.2, %v2931_v2  ;;  %vm2947_vm7 = vcmp.ge.f32.partialorder %v2931_v2, 0.0 }
 0xa8b   :  { %v2979_v63 = vsel %vm2947_vm7, %v2931_v2, %v2963_v13 }
 0xa8c   :  { %v2775_v26 = vpop.permute.xlu1 %2774 }
 0xa8d   :  { %v2836_v47 = vmul.f32 %v2775_v26, %v7746_v0 }
 0xa8e   :  { %6204 = vmatmul.msk.f32.gmra.mxu0 %vm2466_vm10, %v2979_v63  ;;  %6222 = vmatmul.msk.f32.gmra.mxu1 %vm2466_vm10, %v2979_v63 }
 0xa8f   :  { %6240 = vmatmul.msk.f32.gmra.mxu2 %vm2466_vm10, %v2979_v63  ;;  %6258 = vmatmul.msk.f32.gmra.mxu3 %vm2466_vm10, %v2979_v63 }
 0xa90   :  { %v2871_v56 = vpop.permute.xlu0 %2870 }
 0xa91   :  { %v2932_v57 = vadd.f32 %v2871_v56, %v2836_v47 }
 0xa93   :  { %vm2948_vm8 = vcmp.ge.f32.partialorder %v2932_v57, 0.0  ;;  %v2964_v60 = vmul.f32 0.2, %v2932_v57 }
 0xa94   :  { %v2795_v28 = vpop.permute.xlu2 %2794 }
 0xa95   :  { %v2980_v21 = vsel %vm2948_vm8, %v2932_v57, %v2964_v60  ;;  %v2840_v6 = vmul.f32 %v2795_v28, %v7710_v52 }
 0xa96   :  { %6205 = vmatmul.msk.f32.gmra.mxu0 %vm2466_vm10, %v2980_v21  ;;  %6223 = vmatmul.msk.f32.gmra.mxu1 %vm2466_vm10, %v2980_v21 }
 0xa97   :  { %6241 = vmatmul.msk.f32.gmra.mxu2 %vm2466_vm10, %v2980_v21  ;;  %6259 = vmatmul.msk.f32.gmra.mxu3 %vm2466_vm10, %v2980_v21 }
 0xa98   :  { %v2876_v0 = vpop.permute.xlu1 %2875 }
 0xa99   :  { %v2933_v16 = vadd.f32 %v2876_v0, %v2837_v22 }
 0xa9b   :  { %vm2949_vm9 = vcmp.ge.f32.partialorder %v2933_v16, 0.0  ;;  %v2965_v17 = vmul.f32 0.2, %v2933_v16 }
 0xa9c   :  { %v2785_v18 = vpop.permute.xlu0 %2784 }
 0xa9d   :  { %v2838_v12 = vmul.f32 %v2785_v18, %v7728_v4  ;;  %v2981_v50 = vsel %vm2949_vm9, %v2933_v16, %v2965_v17 }
 0xa9e   :  { %6206 = vmatmul.msk.f32.gmra.mxu0 %vm2466_vm10, %v2981_v50  ;;  %6224 = vmatmul.msk.f32.gmra.mxu1 %vm2466_vm10, %v2981_v50 }
 0xa9f   :  { %v2934_v40 = vadd.f32 %v2881_v14, %v2838_v12  ;;  %6242 = vmatmul.msk.f32.gmra.mxu2 %vm2466_vm10, %v2981_v50  ;;  %6260 = vmatmul.msk.f32.gmra.mxu3 %vm2466_vm10, %v2981_v50 }
 0xaa0   :  { %v2896_v37 = vpop.permute.xlu2 %2895 }
 0xaa1   :  { %v2966_v1 = vmul.f32 0.2, %v2934_v40  ;;  %vm2950_vm11 = vcmp.ge.f32.partialorder %v2934_v40, 0.0 }
 0xaa3   :  { %v2982_v9 = vsel %vm2950_vm11, %v2934_v40, %v2966_v1 }
 0xaa4   :  { %v2790_v11 = vpop.permute.xlu1 %2789 }
 0xaa5   :  { %v2839_v4 = vmul.f32 %v2790_v11, %v7719_v5 }
 0xaa6   :  { %6207 = vmatmul.msk.f32.gmra.mxu0 %vm2466_vm10, %v2982_v9  ;;  %6225 = vmatmul.msk.f32.gmra.mxu1 %vm2466_vm10, %v2982_v9 }
 0xaa7   :  { %6243 = vmatmul.msk.f32.gmra.mxu2 %vm2466_vm10, %v2982_v9  ;;  %6261 = vmatmul.msk.f32.gmra.mxu3 %vm2466_vm10, %v2982_v9 }
 0xaa8   :  { %v2886_v38 = vpop.permute.xlu0 %2885 }
 0xaa9   :  { %v2935_v7 = vadd.f32 %v2886_v38, %v2839_v4 }
 0xaab   :  { %vm2951_vm12 = vcmp.ge.f32.partialorder %v2935_v7, 0.0  ;;  %v2967_v20 = vmul.f32 0.2, %v2935_v7 }
 0xaac   :  { %v2810_v23 = vpop.permute.xlu2 %2809 }
 0xaad   :  { %v2983_v29 = vsel %vm2951_vm12, %v2935_v7, %v2967_v20  ;;  %v2843_v35 = vmul.f32 %v2810_v23, %v7686_v3 }
 0xaae   :  { %6208 = vmatmul.msk.f32.gmra.mxu0 %vm2466_vm10, %v2983_v29  ;;  %6226 = vmatmul.msk.f32.gmra.mxu1 %vm2466_vm10, %v2983_v29 }
 0xaaf   :  { %6244 = vmatmul.msk.f32.gmra.mxu2 %vm2466_vm10, %v2983_v29  ;;  %6262 = vmatmul.msk.f32.gmra.mxu3 %vm2466_vm10, %v2983_v29 }
 0xab0   :  { %v2891_v5 = vpop.permute.xlu1 %2890 }
 0xab1   :  { %v2936_v15 = vadd.f32 %v2891_v5, %v2840_v6 }
 0xab3   :  { %vm2952_vm13 = vcmp.ge.f32.partialorder %v2936_v15, 0.0  ;;  %v2968_v32 = vmul.f32 0.2, %v2936_v15 }
 0xab4   :  { %v2800_v33 = vpop.permute.xlu0 %2799 }
 0xab5   :  { %v2841_v19 = vmul.f32 %v2800_v33, %v7701_v43  ;;  %v2984_v59 = vsel %vm2952_vm13, %v2936_v15, %v2968_v32 }
 0xab6   :  { %6209 = vmatmul.msk.f32.gmra.mxu0 %vm2466_vm10, %v2984_v59  ;;  %6227 = vmatmul.msk.f32.gmra.mxu1 %vm2466_vm10, %v2984_v59 }
 0xab7   :  { %v2937_v44 = vadd.f32 %v2896_v37, %v2841_v19  ;;  %6245 = vmatmul.msk.f32.gmra.mxu2 %vm2466_vm10, %v2984_v59  ;;  %6263 = vmatmul.msk.f32.gmra.mxu3 %vm2466_vm10, %v2984_v59 }
 0xab8   :  { %v2911_v48 = vpop.permute.xlu2 %2910 }
 0xab9   :  { %v2969_v52 = vmul.f32 0.2, %v2937_v44  ;;  %vm2953_vm14 = vcmp.ge.f32.partialorder %v2937_v44, 0.0 }
 0xabb   :  { %v2985_v49 = vsel %vm2953_vm14, %v2937_v44, %v2969_v52 }
 0xabc   :  { %v2805_v45 = vpop.permute.xlu1 %2804 }
 0xabd   :  { %v2842_v43 = vmul.f32 %v2805_v45, %v7693_v31 }
 0xabe   :  { %6210 = vmatmul.msk.f32.gmra.mxu0 %vm2466_vm10, %v2985_v49  ;;  %6228 = vmatmul.msk.f32.gmra.mxu1 %vm2466_vm10, %v2985_v49 }
 0xabf   :  { %6246 = vmatmul.msk.f32.gmra.mxu2 %vm2466_vm10, %v2985_v49  ;;  %6264 = vmatmul.msk.f32.gmra.mxu3 %vm2466_vm10, %v2985_v49 }
 0xac0   :  { %v2901_v39 = vpop.permute.xlu0 %2900 }
 0xac1   :  { %v2938_v41 = vadd.f32 %v2901_v39, %v2842_v43 }
 0xac3   :  { %vm2954_vm15 = vcmp.ge.f32.partialorder %v2938_v41, 0.0  ;;  %v2970_v46 = vmul.f32 0.2, %v2938_v41 }
 0xac4   :  { %v2825_v13 = vpop.permute.xlu2 %2824 }
 0xac5   :  { %v2986_v10 = vsel %vm2954_vm15, %v2938_v41, %v2970_v46  ;;  %v2846_v63 = vmul.f32 %v2825_v13, %v7672_v25 }
 0xac6   :  { %6211 = vmatmul.msk.f32.gmra.mxu0 %vm2466_vm10, %v2986_v10  ;;  %6229 = vmatmul.msk.f32.gmra.mxu1 %vm2466_vm10, %v2986_v10 }
 0xac7   :  { %6247 = vmatmul.msk.f32.gmra.mxu2 %vm2466_vm10, %v2986_v10  ;;  %6265 = vmatmul.msk.f32.gmra.mxu3 %vm2466_vm10, %v2986_v10 }
 0xac8   :  { %v2906_v31 = vpop.permute.xlu1 %2905 }
 0xac9   :  { %v2939_v53 = vadd.f32 %v2906_v31, %v2843_v35 }
 0xacb   :  { %vm2955_vm0 = vcmp.ge.f32.partialorder %v2939_v53, 0.0  ;;  %v2971_v24 = vmul.f32 0.2, %v2939_v53 }
 0xacc   :  { %v2815_v34 = vpop.permute.xlu0 %2814 }
 0xacd   :  { %v2844_v27 = vmul.f32 %v2815_v34, %v7681_v51  ;;  %v2987_v8 = vsel %vm2955_vm0, %v2939_v53, %v2971_v24 }
 0xace   :  { %6212 = vmatmul.msk.f32.gmra.mxu0 %vm2466_vm10, %v2987_v8  ;;  %6230 = vmatmul.msk.f32.gmra.mxu1 %vm2466_vm10, %v2987_v8 }
 0xacf   :  { %v2940_v42 = vadd.f32 %v2911_v48, %v2844_v27  ;;  %6248 = vmatmul.msk.f32.gmra.mxu2 %vm2466_vm10, %v2987_v8  ;;  %6266 = vmatmul.msk.f32.gmra.mxu3 %vm2466_vm10, %v2987_v8 }
 0xad1   :  { %v2972_v3 = vmul.f32 0.2, %v2940_v42  ;;  %vm2956_vm3 = vcmp.ge.f32.partialorder %v2940_v42, 0.0 }
 0xad2   :  { %v2926_v21 = vpop.permute.xlu2 %2925 }
 0xad3   :  { %v2988_v62 = vsel %vm2956_vm3, %v2940_v42, %v2972_v3 }
 0xad4   :  { %v2820_v61 = vpop.permute.xlu1 %2819 }
 0xad5   :  { %v2845_v51 = vmul.f32 %v2820_v61, %v7676_v55 }
 0xad6   :  { %6213 = vmatmul.msk.f32.gmra.mxu0 %vm2466_vm10, %v2988_v62  ;;  %6231 = vmatmul.msk.f32.gmra.mxu1 %vm2466_vm10, %v2988_v62 }
 0xad7   :  { %6249 = vmatmul.msk.f32.gmra.mxu2 %vm2466_vm10, %v2988_v62  ;;  %6267 = vmatmul.msk.f32.gmra.mxu3 %vm2466_vm10, %v2988_v62 }
 0xad8   :  { %v2916_v54 = vpop.permute.xlu0 %2915 }
 0xad9   :  { %v2941_v30 = vadd.f32 %v2916_v54, %v2845_v51 }
 0xadb   :  { %vm2957_vm4 = vcmp.ge.f32.partialorder %v2941_v30, 0.0  ;;  %v2973_v2 = vmul.f32 0.2, %v2941_v30 }
 0xadd   :  { %v2989_v26 = vsel %vm2957_vm4, %v2941_v30, %v2973_v2 }
 0xade   :  { %6214 = vmatmul.msk.f32.gmra.mxu0 %vm2466_vm10, %v2989_v26  ;;  %6232 = vmatmul.msk.f32.gmra.mxu1 %vm2466_vm10, %v2989_v26 }
 0xadf   :  { %6250 = vmatmul.msk.f32.gmra.mxu2 %vm2466_vm10, %v2989_v26  ;;  %6268 = vmatmul.msk.f32.gmra.mxu3 %vm2466_vm10, %v2989_v26 }
 0xae0   :  { %v2921_v55 = vpop.permute.xlu1 %2920 }
 0xae1   :  { %v2942_v47 = vadd.f32 %v2921_v55, %v2846_v63 }
 0xae3   :  { %vm2958_vm5 = vcmp.ge.f32.partialorder %v2942_v47, 0.0  ;;  %v2974_v56 = vmul.f32 0.2, %v2942_v47 }
 0xae4   :  { %v2830_v57 = vpop.permute.xlu0 %2829 }
 0xae5   :  { %v2847_v60 = vmul.f32 %v2830_v57, %v7674_v36  ;;  %v2990_v58 = vsel %vm2958_vm5, %v2942_v47, %v2974_v56 }
 0xae6   :  { %6215 = vmatmul.msk.f32.gmra.mxu0 %vm2466_vm10, %v2990_v58  ;;  %6233 = vmatmul.msk.f32.gmra.mxu1 %vm2466_vm10, %v2990_v58 }
 0xae7   :  { %v2943_v22 = vadd.f32 %v2926_v21, %v2847_v60  ;;  %6251 = vmatmul.msk.f32.gmra.mxu2 %vm2466_vm10, %v2990_v58  ;;  %6269 = vmatmul.msk.f32.gmra.mxu3 %vm2466_vm10, %v2990_v58 }
 0xae9   :  { %v2975_v25 = vmul.f32 0.2, %v2943_v22  ;;  %vm2959_vm7 = vcmp.ge.f32.partialorder %v2943_v22, 0.0 }
 0xaeb   :  { %v2991_v0 = vsel %vm2959_vm7, %v2943_v22, %v2975_v25 }
 0xaee   :  { %6216 = vmatmul.msk.f32.gmra.mxu0 %vm2466_vm10, %v2991_v0  ;;  %6234 = vmatmul.msk.f32.gmra.mxu1 %vm2466_vm10, %v2991_v0 }
 0xaef   :  { %6252 = vmatmul.msk.f32.gmra.mxu2 %vm2466_vm10, %v2991_v0  ;;  %6270 = vmatmul.msk.f32.gmra.mxu3 %vm2466_vm10, %v2991_v0 }
 0xaf3   :  { %v7929_v36 = vpop.f32.mrf.mxu0  ;;  %v7931_v16 = vpop.f32.mrf.mxu1 }
 0xafa   :  { %v7933_v17 = vpop.f32.mrf.mxu2  ;;  %v7935_v18 = vpop.f32.mrf.mxu3 }
 0xafb   :  { %v7937_v12 = vpop.f32.mrf.mxu0  ;;  %v7939_v50 = vpop.f32.mrf.mxu1 }
 0xb02   :  { %v7941_v14 = vpop.f32.mrf.mxu2  ;;  %v7943_v40 = vpop.f32.mrf.mxu3 }
 0xb03   :  { %v7945_v1 = vpop.f32.mrf.mxu0  ;;  %v7947_v11 = vpop.f32.mrf.mxu1 }
 0xb0a   :  { %v7949_v9 = vpop.f32.mrf.mxu2  ;;  %v7951_v4 = vpop.f32.mrf.mxu3 }
 0xb0b   :  { %v7953_v38 = vpop.f32.mrf.mxu0  ;;  %v7955_v7 = vpop.f32.mrf.mxu1 }
 0xb12   :  { %v7957_v20 = vpop.f32.mrf.mxu2  ;;  %v7959_v28 = vpop.f32.mrf.mxu3 }
 0xb13   :  { %v7961_v29 = vpop.f32.mrf.mxu0  ;;  %v7963_v6 = vpop.f32.mrf.mxu1 }
 0xb1a   :  { %v7965_v5 = vpop.f32.mrf.mxu2  ;;  %v7967_v15 = vpop.f32.mrf.mxu3 }
 0xb1b   :  { %v7969_v32 = vpop.f32.mrf.mxu0  ;;  %v7971_v33 = vpop.f32.mrf.mxu1 }
 0xb22   :  { %v7973_v19 = vpop.f32.mrf.mxu2  ;;  %v7975_v59 = vpop.f32.mrf.mxu3 }
 0xb23   :  { %v7977_v37 = vpop.f32.mrf.mxu0  ;;  %v7979_v44 = vpop.f32.mrf.mxu1 }
 0xb2a   :  { %v7981_v52 = vpop.f32.mrf.mxu2  ;;  %v7983_v45 = vpop.f32.mrf.mxu3 }
 0xb2b   :  { %v3080_v49 = vpop.f32.mrf.mxu0  ;;  %v3148_v43 = vpop.f32.mrf.mxu1 }
 0xb32   :  { %v7985_v39 = vpop.f32.mrf.mxu2  ;;  %v7987_v41 = vpop.f32.mrf.mxu3 }
 0xb33   :  { %v3083_v46 = vpop.f32.mrf.mxu0  ;;  %v3151_v23 = vpop.f32.mrf.mxu1 }
 0xb3a   :  { %v7989_v10 = vpop.f32.mrf.mxu2  ;;  %v7991_v35 = vpop.f32.mrf.mxu3 }
 0xb3b   :  { %v3086_v31 = vpop.f32.mrf.mxu0  ;;  %v3154_v53 = vpop.f32.mrf.mxu1 }
 0xb42   :  { %v3222_v24 = vpop.f32.mrf.mxu2  ;;  %v3290_v34 = vpop.f32.mrf.mxu3 }
 0xb43   :  { %v3089_v27 = vpop.f32.mrf.mxu0  ;;  %v3157_v8 = vpop.f32.mrf.mxu1 }
 0xb4a   :  { %v3225_v48 = vpop.f32.mrf.mxu2  ;;  %v3293_v42 = vpop.f32.mrf.mxu3 }
 0xb4b   :  { %v3092_v3 = vpop.f32.mrf.mxu0  ;;  %v3160_v61 = vpop.f32.mrf.mxu1 }
 0xb52   :  { %v3228_v62 = vpop.f32.mrf.mxu2  ;;  %v3296_v51 = vpop.f32.mrf.mxu3 }
 0xb53   :  { %v3095_v54 = vpop.f32.mrf.mxu0  ;;  %v3163_v30 = vpop.f32.mrf.mxu1 }
 0xb5a   :  { %v3231_v2 = vpop.f32.mrf.mxu2  ;;  %v3299_v13 = vpop.f32.mrf.mxu3 }
 0xb5b   :  { %v3098_v26 = vpop.f32.mrf.mxu0  ;;  %v3166_v63 = vpop.f32.mrf.mxu1 }
 0xb62   :  { %v3234_v55 = vpop.f32.mrf.mxu2  ;;  %v3302_v47 = vpop.f32.mrf.mxu3 }
 0xb63   :  { %v3101_v56 = vpop.f32.mrf.mxu0  ;;  %v3169_v57 = vpop.f32.mrf.mxu1 }
 0xb6a   :  { %v3237_v60 = vpop.f32.mrf.mxu2  ;;  %v3305_v58 = vpop.f32.mrf.mxu3 }
 0xb6b   :  { %v3104_v21 = vpop.f32.mrf.mxu0  ;;  %v3172_v22 = vpop.f32.mrf.mxu1 }
 0xb6c   :  { %3375 = vmatpush.msrb.mxu0 %v3104_v21  ;;  %3440 = vmatpush.msrb.mxu1 %v3172_v22  ;;  %v3371_v21 = vld [vmem:[#allocation2 + $0x1e0] sm:$0xff]  ;;  %v3372_v22 = vld [vmem:[#allocation2 + $0x1e8] sm:$0xff] }
 0xb6e   :  { %3376 = vmatpush.msrb.mxu0 %v3101_v56  ;;  %3441 = vmatpush.msrb.mxu1 %v3169_v57  ;;  %v3367_v56 = vld [vmem:[#allocation2 + $0x1c0] sm:$0xff]  ;;  %v3368_v57 = vld [vmem:[#allocation2 + $0x1c8] sm:$0xff] }
 0xb70   :  { %3377 = vmatpush.msrb.mxu0 %v3098_v26  ;;  %3442 = vmatpush.msrb.mxu1 %v3166_v63  ;;  %v3363_v26 = vld [vmem:[#allocation2 + $0x1a0] sm:$0xff]  ;;  %v3364_v63 = vld [vmem:[#allocation2 + $0x1a8] sm:$0xff] }
 0xb72   :  { %v3240_v25 = vpop.f32.mrf.mxu2  ;;  %v3308_v0 = vpop.f32.mrf.mxu3  ;;  %3378 = vmatpush.msrb.mxu0 %v3095_v54  ;;  %3443 = vmatpush.msrb.mxu1 %v3163_v30  ;;  %v3359_v54 = vld [vmem:[#allocation2 + $0x180] sm:$0xff]  ;;  %v3360_v30 = vld [vmem:[#allocation2 + $0x188] sm:$0xff] }
 0xb73   :  { %3505 = vmatpush.msra.mxu2 %v3240_v25  ;;  %3570 = vmatpush.msra.mxu3 %v3308_v0  ;;  %v3373_v25 = vld [vmem:[#allocation2 + $0x1f0] sm:$0xff]  ;;  %v3374_v0 = vld [vmem:[#allocation2 + $0x1f8] sm:$0xff] }
 0xb74   :  { %3379 = vmatpush.msrb.mxu0 %v3092_v3  ;;  %3444 = vmatpush.msrb.mxu1 %v3160_v61  ;;  %v3355_v3 = vld [vmem:[#allocation2 + $0x160] sm:$0xff]  ;;  %v3356_v61 = vld [vmem:[#allocation2 + $0x168] sm:$0xff] }
 0xb75   :  { %3506 = vmatpush.msra.mxu2 %v3237_v60  ;;  %3571 = vmatpush.msra.mxu3 %v3305_v58  ;;  %v3369_v60 = vld [vmem:[#allocation2 + $0x1d0] sm:$0xff]  ;;  %v3370_v58 = vld [vmem:[#allocation2 + $0x1d8] sm:$0xff] }
 0xb76   :  { %3380 = vmatpush.msrb.mxu0 %v3089_v27  ;;  %3445 = vmatpush.msrb.mxu1 %v3157_v8  ;;  %v3351_v27 = vld [vmem:[#allocation2 + $0x140] sm:$0xff]  ;;  %v3352_v8 = vld [vmem:[#allocation2 + $0x148] sm:$0xff] }
 0xb77   :  { %3507 = vmatpush.msra.mxu2 %v3234_v55  ;;  %3572 = vmatpush.msra.mxu3 %v3302_v47  ;;  %v3365_v55 = vld [vmem:[#allocation2 + $0x1b0] sm:$0xff]  ;;  %v3366_v47 = vld [vmem:[#allocation2 + $0x1b8] sm:$0xff] }
 0xb78   :  { %3381 = vmatpush.msrb.mxu0 %v3086_v31  ;;  %3446 = vmatpush.msrb.mxu1 %v3154_v53  ;;  %v3347_v31 = vld [vmem:[#allocation2 + $0x120] sm:$0xff]  ;;  %v3348_v53 = vld [vmem:[#allocation2 + $0x128] sm:$0xff] }
 0xb79   :  { %3508 = vmatpush.msra.mxu2 %v3231_v2  ;;  %3573 = vmatpush.msra.mxu3 %v3299_v13  ;;  %v3361_v2 = vld [vmem:[#allocation2 + $0x190] sm:$0xff]  ;;  %v3362_v13 = vld [vmem:[#allocation2 + $0x198] sm:$0xff] }
 0xb7a   :  { %3382 = vmatpush.msrb.mxu0 %v3083_v46  ;;  %3447 = vmatpush.msrb.mxu1 %v3151_v23  ;;  %v3343_v46 = vld [vmem:[#allocation2 + $0x100] sm:$0xff]  ;;  %v3344_v23 = vld [vmem:[#allocation2 + $0x108] sm:$0xff] }
 0xb7b   :  { %3509 = vmatpush.msra.mxu2 %v3228_v62  ;;  %3574 = vmatpush.msra.mxu3 %v3296_v51  ;;  %v3357_v62 = vld [vmem:[#allocation2 + $0x170] sm:$0xff]  ;;  %v3358_v51 = vld [vmem:[#allocation2 + $0x178] sm:$0xff] }
 0xb7c   :  { %3383 = vmatpush.msrb.mxu0 %v3080_v49  ;;  %3448 = vmatpush.msrb.mxu1 %v3148_v43  ;;  %v3339_v49 = vld [vmem:[#allocation2 + $0xe0] sm:$0xff]  ;;  %v3340_v43 = vld [vmem:[#allocation2 + $0xe8] sm:$0xff] }
 0xb7d   :  { %3510 = vmatpush.msra.mxu2 %v3225_v48  ;;  %3575 = vmatpush.msra.mxu3 %v3293_v42  ;;  %v3353_v48 = vld [vmem:[#allocation2 + $0x150] sm:$0xff]  ;;  %v3354_v42 = vld [vmem:[#allocation2 + $0x158] sm:$0xff] }
 0xb7e   :  { %3384 = vmatpush.msrb.mxu0 %v7977_v37  ;;  %3449 = vmatpush.msrb.mxu1 %v7979_v44  ;;  %v3335_v37 = vld [vmem:[#allocation2 + $0xc0] sm:$0xff]  ;;  %v3336_v44 = vld [vmem:[#allocation2 + $0xc8] sm:$0xff] }
 0xb7f   :  { %3511 = vmatpush.msra.mxu2 %v3222_v24  ;;  %3576 = vmatpush.msra.mxu3 %v3290_v34  ;;  %v3349_v24 = vld [vmem:[#allocation2 + $0x130] sm:$0xff]  ;;  %v3350_v34 = vld [vmem:[#allocation2 + $0x138] sm:$0xff] }
 0xb80   :  { %3385 = vmatpush.msrb.mxu0 %v7969_v32  ;;  %3450 = vmatpush.msrb.mxu1 %v7971_v33  ;;  %v3331_v32 = vld [vmem:[#allocation2 + $0xa0] sm:$0xff]  ;;  %v3332_v33 = vld [vmem:[#allocation2 + $0xa8] sm:$0xff] }
 0xb81   :  { %3512 = vmatpush.msra.mxu2 %v7989_v10  ;;  %3577 = vmatpush.msra.mxu3 %v7991_v35  ;;  %v3345_v10 = vld [vmem:[#allocation2 + $0x110] sm:$0xff]  ;;  %v3346_v35 = vld [vmem:[#allocation2 + $0x118] sm:$0xff] }
 0xb82   :  { %3386 = vmatpush.msrb.mxu0 %v7961_v29  ;;  %3451 = vmatpush.msrb.mxu1 %v7963_v6  ;;  %v3327_v29 = vld [vmem:[#allocation2 + $0x80] sm:$0xff]  ;;  %v3328_v6 = vld [vmem:[#allocation2 + $0x88] sm:$0xff] }
 0xb83   :  { %3513 = vmatpush.msra.mxu2 %v7985_v39  ;;  %3578 = vmatpush.msra.mxu3 %v7987_v41  ;;  %v3341_v39 = vld [vmem:[#allocation2 + $0xf0] sm:$0xff]  ;;  %v3342_v41 = vld [vmem:[#allocation2 + $0xf8] sm:$0xff] }
 0xb84   :  { %3387 = vmatpush.msrb.mxu0 %v7953_v38  ;;  %3452 = vmatpush.msrb.mxu1 %v7955_v7  ;;  %v3311_v38 = vld [vmem:[#allocation2] sm:$0xff]  ;;  %v3312_v7 = vld [vmem:[#allocation2 + $0x8] sm:$0xff] }
 0xb85   :  { %3514 = vmatpush.msra.mxu2 %v7981_v52  ;;  %3579 = vmatpush.msra.mxu3 %v7983_v45  ;;  %v3337_v52 = vld [vmem:[#allocation2 + $0xd0] sm:$0xff]  ;;  %v3338_v45 = vld [vmem:[#allocation2 + $0xd8] sm:$0xff] }
 0xb86   :  { %3388 = vmatpush.msrb.mxu0 %v7945_v1  ;;  %3453 = vmatpush.msrb.mxu1 %v7947_v11  ;;  %v3317_v1 = vld [vmem:[#allocation2 + $0x30] sm:$0xff]  ;;  %v3318_v11 = vld [vmem:[#allocation2 + $0x38] sm:$0xff] }
 0xb87   :  { %3515 = vmatpush.msra.mxu2 %v7973_v19  ;;  %3580 = vmatpush.msra.mxu3 %v7975_v59  ;;  %v3333_v19 = vld [vmem:[#allocation2 + $0xb0] sm:$0xff]  ;;  %v3334_v59 = vld [vmem:[#allocation2 + $0xb8] sm:$0xff] }
 0xb88   :  { %3389 = vmatpush.msrb.mxu0 %v7937_v12  ;;  %3454 = vmatpush.msrb.mxu1 %v7939_v50  ;;  %v3313_v12 = vld [vmem:[#allocation2 + $0x10] sm:$0xff]  ;;  %v3314_v50 = vld [vmem:[#allocation2 + $0x18] sm:$0xff] }
 0xb89   :  { %3516 = vmatpush.msra.mxu2 %v7965_v5  ;;  %3581 = vmatpush.msra.mxu3 %v7967_v15  ;;  %v3329_v5 = vld [vmem:[#allocation2 + $0x90] sm:$0xff]  ;;  %v3330_v15 = vld [vmem:[#allocation2 + $0x98] sm:$0xff] }
 0xb8a   :  { %3390 = vmatpush.msrb.mxu0 %v7929_v36  ;;  %3455 = vmatpush.msrb.mxu1 %v7931_v16  ;;  %v3315_v36 = vld [vmem:[#allocation2 + $0x20] sm:$0xff]  ;;  %v3316_v16 = vld [vmem:[#allocation2 + $0x28] sm:$0xff] }
 0xb8b   :  { %3517 = vmatpush.msra.mxu2 %v7957_v20  ;;  %3582 = vmatpush.msra.mxu3 %v7959_v28  ;;  %v3323_v20 = vld [vmem:[#allocation2 + $0x60] sm:$0xff]  ;;  %v3326_v28 = vld [vmem:[#allocation2 + $0x78] sm:$0xff] }
 0xb8c   :  { %3391 = vmatmul.f32.vlgmr.msrb.gmra.mxu0 %v3311_v38  ;;  %3456 = vmatmul.f32.vlgmr.msrb.gmra.mxu1 %v3312_v7 }
 0xb8d   :  { %3518 = vmatpush.msra.mxu2 %v7949_v9  ;;  %3583 = vmatpush.msra.mxu3 %v7951_v4  ;;  %v3319_v9 = vld [vmem:[#allocation2 + $0x40] sm:$0xff]  ;;  %v3320_v4 = vld [vmem:[#allocation2 + $0x48] sm:$0xff] }
 0xb8f   :  { %3519 = vmatpush.msra.mxu2 %v7941_v14  ;;  %3584 = vmatpush.msra.mxu3 %v7943_v40  ;;  %v3321_v14 = vld [vmem:[#allocation2 + $0x50] sm:$0xff]  ;;  %v3322_v40 = vld [vmem:[#allocation2 + $0x58] sm:$0xff] }
 0xb91   :  { %3520 = vmatpush.msra.mxu2 %v7933_v17  ;;  %3585 = vmatpush.msra.mxu3 %v7935_v18  ;;  %v3324_v17 = vld [vmem:[#allocation2 + $0x68] sm:$0xff]  ;;  %v3325_v18 = vld [vmem:[#allocation2 + $0x70] sm:$0xff] }
 0xb92   :  { %3521 = vmatmul.f32.vlgmr.msra.gmra.mxu2 %v3313_v12  ;;  %3586 = vmatmul.f32.vlgmr.msra.gmra.mxu3 %v3314_v50 }
 0xb94   :  { %3394 = vmatmul.f32.gmra.mxu0 %v3315_v36  ;;  %3459 = vmatmul.f32.gmra.mxu1 %v3316_v16 }
 0xb9a   :  { %3524 = vmatmul.f32.gmra.mxu2 %v3317_v1  ;;  %3589 = vmatmul.f32.gmra.mxu3 %v3318_v11 }
 0xb9c   :  { %3397 = vmatmul.f32.gmra.mxu0 %v3319_v9  ;;  %3462 = vmatmul.f32.gmra.mxu1 %v3320_v4 }
 0xba2   :  { %3527 = vmatmul.f32.gmra.mxu2 %v3321_v14  ;;  %3592 = vmatmul.f32.gmra.mxu3 %v3322_v40 }
 0xba4   :  { %3400 = vmatmul.f32.gmra.mxu0 %v3323_v20  ;;  %3465 = vmatmul.f32.gmra.mxu1 %v3324_v17 }
 0xbaa   :  { %3530 = vmatmul.f32.gmra.mxu2 %v3325_v18  ;;  %3595 = vmatmul.f32.gmra.mxu3 %v3326_v28 }
 0xbac   :  { %3403 = vmatmul.f32.gmra.mxu0 %v3327_v29  ;;  %3468 = vmatmul.f32.gmra.mxu1 %v3328_v6 }
 0xbb2   :  { %3533 = vmatmul.f32.gmra.mxu2 %v3329_v5  ;;  %3598 = vmatmul.f32.gmra.mxu3 %v3330_v15 }
 0xbb4   :  { %3406 = vmatmul.f32.gmra.mxu0 %v3331_v32  ;;  %3471 = vmatmul.f32.gmra.mxu1 %v3332_v33 }
 0xbba   :  { %3536 = vmatmul.f32.gmra.mxu2 %v3333_v19  ;;  %3601 = vmatmul.f32.gmra.mxu3 %v3334_v59 }
 0xbbc   :  { %3409 = vmatmul.f32.gmra.mxu0 %v3335_v37  ;;  %3474 = vmatmul.f32.gmra.mxu1 %v3336_v44 }
 0xbc2   :  { %3539 = vmatmul.f32.gmra.mxu2 %v3337_v52  ;;  %3604 = vmatmul.f32.gmra.mxu3 %v3338_v45 }
 0xbc4   :  { %3412 = vmatmul.f32.gmra.mxu0 %v3339_v49  ;;  %3477 = vmatmul.f32.gmra.mxu1 %v3340_v43 }
 0xbca   :  { %3542 = vmatmul.f32.gmra.mxu2 %v3341_v39  ;;  %3607 = vmatmul.f32.gmra.mxu3 %v3342_v41 }
 0xbcc   :  { %3415 = vmatmul.f32.gmra.mxu0 %v3343_v46  ;;  %3480 = vmatmul.f32.gmra.mxu1 %v3344_v23 }
 0xbd2   :  { %3545 = vmatmul.f32.gmra.mxu2 %v3345_v10  ;;  %3610 = vmatmul.f32.gmra.mxu3 %v3346_v35 }
 0xbd4   :  { %3418 = vmatmul.f32.gmra.mxu0 %v3347_v31  ;;  %3483 = vmatmul.f32.gmra.mxu1 %v3348_v53 }
 0xbda   :  { %3548 = vmatmul.f32.gmra.mxu2 %v3349_v24  ;;  %3613 = vmatmul.f32.gmra.mxu3 %v3350_v34 }
 0xbdc   :  { %3421 = vmatmul.f32.gmra.mxu0 %v3351_v27  ;;  %3486 = vmatmul.f32.gmra.mxu1 %v3352_v8 }
 0xbe2   :  { %3551 = vmatmul.f32.gmra.mxu2 %v3353_v48  ;;  %3616 = vmatmul.f32.gmra.mxu3 %v3354_v42 }
 0xbe4   :  { %3424 = vmatmul.f32.gmra.mxu0 %v3355_v3  ;;  %3489 = vmatmul.f32.gmra.mxu1 %v3356_v61 }
 0xbea   :  { %3554 = vmatmul.f32.gmra.mxu2 %v3357_v62  ;;  %3619 = vmatmul.f32.gmra.mxu3 %v3358_v51 }
 0xbec   :  { %3427 = vmatmul.f32.gmra.mxu0 %v3359_v54  ;;  %3492 = vmatmul.f32.gmra.mxu1 %v3360_v30 }
 0xbf2   :  { %3557 = vmatmul.f32.gmra.mxu2 %v3361_v2  ;;  %3622 = vmatmul.f32.gmra.mxu3 %v3362_v13 }
 0xbf4   :  { %3430 = vmatmul.f32.gmra.mxu0 %v3363_v26  ;;  %3495 = vmatmul.f32.gmra.mxu1 %v3364_v63 }
 0xbfa   :  { %3560 = vmatmul.f32.gmra.mxu2 %v3365_v55  ;;  %3625 = vmatmul.f32.gmra.mxu3 %v3366_v47 }
 0xbfc   :  { %3433 = vmatmul.f32.gmra.mxu0 %v3367_v56  ;;  %3498 = vmatmul.f32.gmra.mxu1 %v3368_v57 }
 0xc02   :  { %3563 = vmatmul.f32.gmra.mxu2 %v3369_v60  ;;  %3628 = vmatmul.f32.gmra.mxu3 %v3370_v58 }
 0xc04   :  { %3436 = vmatmul.f32.gmra.mxu0 %v3371_v21  ;;  %3501 = vmatmul.f32.gmra.mxu1 %v3372_v22 }
 0xc09   :  { %v8025_v38 = vpop.f32.mrf.mxu0  ;;  %v8027_v7 = vpop.f32.mrf.mxu1 }
 0xc0a   :  { %9020 = vst [vmem:[#allocation34_spill] sm:$0xff] %v8025_v38  ;;  %3566 = vmatmul.f32.gmra.mxu2 %v3373_v25  ;;  %3631 = vmatmul.f32.gmra.mxu3 %v3374_v0 }
 0xc0b   :  { %9021 = vst [vmem:[#allocation30_spill] sm:$0xff] %v8027_v7 }
 0xc11   :  { %v8029_v12 = vpop.f32.mrf.mxu0  ;;  %v8031_v50 = vpop.f32.mrf.mxu1 }
 0xc12   :  { %9022 = vst [vmem:[#allocation33_spill] sm:$0xff] %v8029_v12 }
 0xc13   :  { %9023 = vst [vmem:[#allocation20_spill] sm:$0xff] %v8031_v50 }
 0xc15   :  { %v8033_v36 = vpop.f32.mrf.mxu2  ;;  %v8035_v16 = vpop.f32.mrf.mxu3 }
 0xc16   :  { %9024 = vst [vmem:[#allocation21_spill] sm:$0xff] %v8033_v36 }
 0xc17   :  { %9025 = vst [vmem:[#allocation28_spill] sm:$0xff] %v8035_v16 }
 0xc19   :  { %v8037_v1 = vpop.f32.mrf.mxu0  ;;  %v8039_v11 = vpop.f32.mrf.mxu1 }
 0xc1d   :  { %v8041_v9 = vpop.f32.mrf.mxu2  ;;  %v8043_v4 = vpop.f32.mrf.mxu3 }
 0xc1e   :  { %9026 = vst [vmem:[#allocation29_spill] sm:$0xff] %v8041_v9 }
 0xc1f   :  { %9027 = vst [vmem:[#allocation22_spill] sm:$0xff] %v8043_v4 }
 0xc21   :  { %v8045_v14 = vpop.f32.mrf.mxu0  ;;  %v8047_v40 = vpop.f32.mrf.mxu1 }
 0xc25   :  { %v8049_v20 = vpop.f32.mrf.mxu2  ;;  %v8051_v17 = vpop.f32.mrf.mxu3 }
 0xc26   :  { %9028 = vst [vmem:[#allocation23_spill] sm:$0xff] %v8049_v20 }
 0xc27   :  { %9029 = vst [vmem:[#allocation26_spill] sm:$0xff] %v8051_v17 }
 0xc29   :  { %v8053_v18 = vpop.f32.mrf.mxu0  ;;  %v8055_v28 = vpop.f32.mrf.mxu1 }
 0xc2d   :  { %v8057_v29 = vpop.f32.mrf.mxu2  ;;  %v8059_v6 = vpop.f32.mrf.mxu3 }
 0xc2e   :  { %9030 = vst [vmem:[#allocation27_spill] sm:$0xff] %v8057_v29 }
 0xc2f   :  { %9031 = vst [vmem:[#allocation24_spill] sm:$0xff] %v8059_v6 }
 0xc31   :  { %v8061_v5 = vpop.f32.mrf.mxu0  ;;  %v8063_v15 = vpop.f32.mrf.mxu1 }
 0xc35   :  { %v8065_v32 = vpop.f32.mrf.mxu2  ;;  %v8067_v33 = vpop.f32.mrf.mxu3 }
 0xc36   :  { %9032 = vst [vmem:[#allocation31_spill] sm:$0xff] %v8067_v33 }
 0xc39   :  { %v8069_v19 = vpop.f32.mrf.mxu0  ;;  %v8071_v59 = vpop.f32.mrf.mxu1 }
 0xc3d   :  { %v8073_v37 = vpop.f32.mrf.mxu2  ;;  %v8075_v44 = vpop.f32.mrf.mxu3 }
 0xc3e   :  { %9033 = vst [vmem:[#allocation32_spill] sm:$0xff] %v8075_v44 }
 0xc41   :  { %v3413_v52 = vpop.f32.mrf.mxu0  ;;  %v3478_v45 = vpop.f32.mrf.mxu1 }
 0xc45   :  { %v8077_v49 = vpop.f32.mrf.mxu2  ;;  %v8079_v43 = vpop.f32.mrf.mxu3 }
 0xc46   :  { %9034 = vst [vmem:[#allocation25_spill] sm:$0xff] %v8079_v43 }
 0xc49   :  { %v3416_v39 = vpop.f32.mrf.mxu0  ;;  %v3481_v41 = vpop.f32.mrf.mxu1 }
 0xc4d   :  { %v8081_v46 = vpop.f32.mrf.mxu2  ;;  %v8083_v23 = vpop.f32.mrf.mxu3 }
 0xc51   :  { %v3419_v10 = vpop.f32.mrf.mxu0  ;;  %v3484_v35 = vpop.f32.mrf.mxu1 }
 0xc52   :  { %v3485_v50 = vadd.f32 %v3484_v35, %v3419_v10  ;;  %v9038_v35 = vld [vmem:[#allocation27_spill] sm:$0xff] }
 0xc55   :  { %v3546_v31 = vpop.f32.mrf.mxu2  ;;  %v8085_v53 = vpop.f32.mrf.mxu3 }
 0xc59   :  { %v3422_v24 = vpop.f32.mrf.mxu0  ;;  %v3487_v34 = vpop.f32.mrf.mxu1 }
 0xc5a   :  { %v3488_v7 = vadd.f32 %v3487_v34, %v3422_v24 }
 0xc5d   :  { %v3549_v27 = vpop.f32.mrf.mxu2  ;;  %v3614_v8 = vpop.f32.mrf.mxu3 }
 0xc61   :  { %v3425_v48 = vpop.f32.mrf.mxu0  ;;  %v3490_v42 = vpop.f32.mrf.mxu1 }
 0xc62   :  { %v3491_v9 = vadd.f32 %v3490_v42, %v3425_v48  ;;  %v9043_v42 = vld [vmem:[#allocation31_spill] sm:$0xff] }
 0xc65   :  { %v3552_v3 = vpop.f32.mrf.mxu2  ;;  %v3617_v61 = vpop.f32.mrf.mxu3 }
 0xc69   :  { %v3428_v62 = vpop.f32.mrf.mxu0  ;;  %v3493_v51 = vpop.f32.mrf.mxu1 }
 0xc6a   :  { %v3494_v4 = vadd.f32 %v3493_v51, %v3428_v62  ;;  %v3482_v62 = vadd.f32 %v3481_v41, %v3416_v39  ;;  %v3553_v51 = vadd.f32 %v3552_v3, %v3488_v7 }
 0xc6c   :  { %v3547_v7 = vadd.f32 %v3546_v31, %v3482_v62 }
 0xc6d   :  { %v3555_v54 = vpop.f32.mrf.mxu2  ;;  %v3620_v30 = vpop.f32.mrf.mxu3 }
 0xc6e   :  { %v3556_v12 = vadd.f32 %v3555_v54, %v3491_v9  ;;  %v9044_v54 = vld [vmem:[#allocation29_spill] sm:$0xff] }
 0xc70   :  { %v8101_v9 = vadd.f32 %v3620_v30, %v3556_v12  ;;  %v3473_v12 = vadd.f32 %v8063_v15, %v8061_v5  ;;  %v3467_v15 = vadd.f32 %v8047_v40, %v8045_v14  ;;  %v9036_v40 = vld [vmem:[#allocation33_spill] sm:$0xff] }
 0xc71   :  { %v3431_v2 = vpop.f32.mrf.mxu0  ;;  %v3496_v13 = vpop.f32.mrf.mxu1 }
 0xc72   :  { %v3497_v0 = vadd.f32 %v3496_v13, %v3431_v2  ;;  %v3538_v39 = vadd.f32 %v8073_v37, %v3473_v12  ;;  %v9037_v37 = vld [vmem:[#allocation20_spill] sm:$0xff]  ;;  %v3532_v31 = vadd.f32 %v9038_v35, %v3467_v15 }
 0xc73   :  { %v9045_v13 = vld [vmem:[#allocation24_spill] sm:$0xff] }
 0xc75   :  { %v3558_v26 = vpop.f32.mrf.mxu2  ;;  %v3623_v63 = vpop.f32.mrf.mxu3 }
 0xc76   :  { %v3559_v38 = vadd.f32 %v3558_v26, %v3494_v4  ;;  %v3550_v4 = vadd.f32 %v3549_v27, %v3485_v50  ;;  %v9042_v27 = vld [vmem:[#allocation23_spill] sm:$0xff]  ;;  %v8168_v26 = vadd.f32 %v9045_v13, %v3532_v31 }
 0xc78   :  { %v8096_v48 = vadd.f32 %v3623_v63, %v3559_v38  ;;  %v3476_v38 = vadd.f32 %v8071_v59, %v8069_v19  ;;  %v3691_v19 = vmul.f32 %v8101_v9, %v8101_v9  ;;  %v3470_v59 = vadd.f32 %v8055_v28, %v8053_v18 }
 0xc79   :  { %v3434_v55 = vpop.f32.mrf.mxu0  ;;  %v3499_v47 = vpop.f32.mrf.mxu1  ;;  %v3464_v28 = vadd.f32 %v8039_v11, %v8037_v1  ;;  %v9040_v11 = vld [vmem:[#allocation34_spill] sm:$0xff] }
 0xc7a   :  { %v3500_v25 = vadd.f32 %v3499_v47, %v3434_v55  ;;  %v3692_v50 = vmul.f32 %v8096_v48, %v8096_v48  ;;  %v9046_v55 = vld [vmem:[#allocation21_spill] sm:$0xff] }
 0xc7d   :  { %v3561_v56 = vpop.f32.mrf.mxu2  ;;  %v3626_v57 = vpop.f32.mrf.mxu3 }
 0xc7e   :  { %v3562_v33 = vadd.f32 %v3561_v56, %v3497_v0  ;;  %v9047_v56 = vld [vmem:[#allocation26_spill] sm:$0xff] }
 0xc80   :  { %v8091_v43 = vadd.f32 %v3626_v57, %v3562_v33  ;;  %v8116_v33 = vadd.f32 %v3614_v8, %v3550_v4  ;;  %v3529_v8 = vadd.f32 %v9042_v27, %v3464_v28  ;;  %v3637_v4 = vld [vmem:[%s9048_s21 + $0x10] sm:$0xff] }
 0xc81   :  { %v3437_v21 = vpop.f32.mrf.mxu0  ;;  %v3502_v22 = vpop.f32.mrf.mxu1 }
 0xc82   :  { %v3503_v16 = vadd.f32 %v3502_v22, %v3437_v21  ;;  %v3689_v18 = vmul.f32 %v8116_v33, %v8116_v33  ;;  %v8175_v57 = vadd.f32 %v9047_v56, %v3529_v8  ;;  %v3683_v22 = vmul.f32 %v8168_v26, %v8168_v26 }
 0xc85   :  { %v3564_v60 = vpop.f32.mrf.mxu2  ;;  %v3629_v58 = vpop.f32.mrf.mxu3 }
 0xc86   :  { %v3565_v17 = vadd.f32 %v3564_v60, %v3500_v25  ;;  %v9050_v25 = vld [vmem:[#allocation28_spill] sm:$0xff] }
 0xc88   :  { %v8087_v44 = vadd.f32 %v3629_v58, %v3565_v17  ;;  %v8108_v17 = vadd.f32 %v3617_v61, %v3553_v51  ;;  %v9049_v58 = vld [vmem:[#allocation22_spill] sm:$0xff]  ;;  %v3635_v51 = vld [vmem:[%s9048_s21] sm:$0xff] }
 0xc8a   :  { %v3690_v5 = vmul.f32 %v8108_v17, %v8108_v17 }
 0xc8d   :  { %v3567_v36 = vpop.f32.mrf.mxu2  ;;  %v3632_v6 = vpop.f32.mrf.mxu3 }
 0xc8e   :  { %v3568_v20 = vadd.f32 %v3567_v36, %v3503_v16  ;;  %v3694_v36 = vmul.f32 %v8087_v44, %v8087_v44  ;;  %v3479_v16 = vadd.f32 %v3478_v45, %v3413_v52  ;;  %v3541_v52 = vadd.f32 %v8077_v49, %v3476_v38 }
 0xc8f   :  { %v8125_v45 = vadd.f32 %v8085_v53, %v3547_v7  ;;  %v3535_v49 = vadd.f32 %v8065_v32, %v3470_v59  ;;  %v9039_v53 = vld [vmem:[#allocation32_spill] sm:$0xff]  ;;  %v9041_v32 = vld [vmem:[#allocation30_spill] sm:$0xff] }
 0xc90   :  { %v8089_v29 = vadd.f32 %v3632_v6, %v3568_v20  ;;  %v3693_v20 = vmul.f32 %v8091_v43, %v8091_v43  ;;  %v3544_v6 = vadd.f32 %v8081_v46, %v3479_v16  ;;  %v9035_v46 = vld [vmem:[#allocation25_spill] sm:$0xff]  ;;  %v8152_v24 = vadd.f32 %v9039_v53, %v3538_v39 }
 0xc91   :  { %v8143_v10 = vadd.f32 %v9035_v46, %v3541_v52  ;;  %v3688_v14 = vmul.f32 %v8125_v45, %v8125_v45  ;;  %v3458_v34 = vadd.f32 %v9041_v32, %v9040_v11  ;;  %v8161_v3 = vadd.f32 %v9043_v42, %v3535_v49  ;;  %v3636_v16 = vld [vmem:[%s9048_s21 + $0x8] sm:$0xff] }
 0xc92   :  { %v3695_v2 = vmul.f32 %v8089_v29, %v8089_v29  ;;  %3639 = vmatpush.msra.mxu0 %v8089_v29  ;;  %v8134_v41 = vadd.f32 %v8083_v23, %v3544_v6  ;;  %v3461_v23 = vadd.f32 %v9037_v37, %v9036_v40  ;;  %v3685_v63 = vmul.f32 %v8152_v24, %v8152_v24 }
 0xc93   :  { %v3686_v61 = vmul.f32 %v8143_v10, %v8143_v10  ;;  %v3523_v47 = vadd.f32 %v9046_v55, %v3458_v34  ;;  %v3684_v60 = vmul.f32 %v8161_v3, %v8161_v3 }
 0xc94   :  { %3640 = vmatpush.msra.mxu0 %v8087_v44  ;;  %3696 = vmatpush.msra.mxu1 %v3695_v2  ;;  %v3687_v1 = vmul.f32 %v8134_v41, %v8134_v41  ;;  %v3526_v30 = vadd.f32 %v9044_v54, %v3461_v23  ;;  %v3682_v2 = vmul.f32 %v8175_v57, %v8175_v57 }
 0xc95   :  { %v8187_v0 = vadd.f32 %v9050_v25, %v3523_v47 }
 0xc96   :  { %3641 = vmatpush.msra.mxu0 %v8091_v43  ;;  %3697 = vmatpush.msra.mxu1 %v3694_v36  ;;  %v8181_v21 = vadd.f32 %v9049_v58, %v3526_v30 }
 0xc97   :  { %v3680_v36 = vmul.f32 %v8187_v0, %v8187_v0 }
 0xc98   :  { %3642 = vmatpush.msra.mxu0 %v8096_v48  ;;  %3698 = vmatpush.msra.mxu1 %v3693_v20  ;;  %v3681_v62 = vmul.f32 %v8181_v21, %v8181_v21  ;;  %v3638_v20 = vld [vmem:[%s9048_s21 + $0x18] sm:$0xff] }
 0xc9a   :  { %3643 = vmatpush.msra.mxu0 %v8101_v9  ;;  %3699 = vmatpush.msra.mxu1 %v3692_v50 }
 0xc9c   :  { %3644 = vmatpush.msra.mxu0 %v8108_v17  ;;  %3700 = vmatpush.msra.mxu1 %v3691_v19 }
 0xc9e   :  { %3645 = vmatpush.msra.mxu0 %v8116_v33  ;;  %3701 = vmatpush.msra.mxu1 %v3690_v5 }
 0xca0   :  { %3646 = vmatpush.msra.mxu0 %v8125_v45  ;;  %3702 = vmatpush.msra.mxu1 %v3689_v18 }
 0xca2   :  { %3647 = vmatpush.msra.mxu0 %v8134_v41  ;;  %3703 = vmatpush.msra.mxu1 %v3688_v14 }
 0xca4   :  { %3648 = vmatpush.msra.mxu0 %v8143_v10  ;;  %3704 = vmatpush.msra.mxu1 %v3687_v1 }
 0xca6   :  { %3649 = vmatpush.msra.mxu0 %v8152_v24  ;;  %3705 = vmatpush.msra.mxu1 %v3686_v61 }
 0xca8   :  { %3650 = vmatpush.msra.mxu0 %v8161_v3  ;;  %3706 = vmatpush.msra.mxu1 %v3685_v63 }
 0xcaa   :  { %3651 = vmatpush.msra.mxu0 %v8168_v26  ;;  %3707 = vmatpush.msra.mxu1 %v3684_v60 }
 0xcac   :  { %3652 = vmatpush.msra.mxu0 %v8175_v57  ;;  %3708 = vmatpush.msra.mxu1 %v3683_v22 }
 0xcae   :  { %3653 = vmatpush.msra.mxu0 %v8181_v21  ;;  %3709 = vmatpush.msra.mxu1 %v3682_v2 }
 0xcb0   :  { %3654 = vmatpush.msra.mxu0 %v8187_v0  ;;  %3710 = vmatpush.msra.mxu1 %v3681_v62 }
 0xcb1   :  { %3655 = vmatmul.f32.vlgmr.msra.gmra.mxu0 %v3635_v51 }
 0xcb2   :  { %3711 = vmatpush.msra.mxu1 %v3680_v36 }
 0xcb3   :  { %3712 = vmatmul.f32.vlgmr.msra.gmra.mxu1 %v3635_v51 }
 0xcb9   :  { %3658 = vmatmul.f32.gmra.mxu0 %v3636_v16 }
 0xcbb   :  { %3715 = vmatmul.f32.gmra.mxu1 %v3636_v16 }
 0xcc1   :  { %3661 = vmatmul.f32.gmra.mxu0 %v3637_v4 }
 0xcc3   :  { %3718 = vmatmul.f32.gmra.mxu1 %v3637_v4 }
 0xcc9   :  { %3664 = vmatmul.f32.gmra.mxu0 %v3638_v20 }
 0xccb   :  { %3721 = vmatmul.f32.gmra.mxu1 %v3638_v20 }
 0xd2e   :  { %v3656_v38 = vpop.f32.mrf.mxu0 }
 0xd2f   :  { %v3668_v14 = vsel %vm1371_vm6, %v3656_v38, 0.0 }
 0xd30   :  { %v3713_v7 = vpop.f32.mrf.mxu1 }
 0xd31   :  { %v3725_v49 = vsel %vm1371_vm6, %v3713_v7, 0.0 }
 0xd36   :  { %v3659_v50 = vpop.f32.mrf.mxu0 }
 0xd37   :  { %v3671_v12 = vsel %vm1371_vm6, %v3659_v50, 0.0 }
 0xd38   :  { %v3716_v6 = vpop.f32.mrf.mxu1  ;;  %3672 = vadd.xlane.f32.xlu1 %v3671_v12 }
 0xd39   :  { %v3728_v46 = vsel %vm1371_vm6, %v3716_v6, 0.0 }
 0xd3e   :  { %v3662_v19 = vpop.f32.mrf.mxu0 }
 0xd3f   :  { %v3674_v59 = vsel %vm1371_vm6, %v3662_v19, 0.0 }
 0xd40   :  { %v3719_v52 = vpop.f32.mrf.mxu1  ;;  %3675 = vadd.xlane.f32.xlu0 %v3674_v59 }
 0xd41   :  { %v3731_v15 = vsel %vm1371_vm6, %v3719_v52, 0.0 }
 0xd46   :  { %v3665_v5 = vpop.f32.mrf.mxu0 }
 0xd47   :  { %v3677_v39 = vsel %vm1371_vm6, %v3665_v5, 0.0 }
 0xd48   :  { %v3722_v18 = vpop.f32.mrf.mxu1  ;;  %3732 = vadd.xlane.f32.xlu0 %v3731_v15  ;;  %3678 = vadd.xlane.f32.xlu1 %v3677_v39  ;;  %v3799_v15 = vld [vmem:[%s9051_s25 + $0x10] sm:$0xff] }
 0xd49   :  { %v3734_v28 = vsel %vm1371_vm6, %v3722_v18, 0.0 }
 0xd4a   :  { %3735 = vadd.xlane.f32.xlu2 %v3734_v28  ;;  %v3800_v28 = vld [vmem:[%s9051_s25 + $0x18] sm:$0xff] }
 0xd50   :  { %3726 = vadd.xlane.f32.xlu0 %v3725_v49  ;;  %3729 = vadd.xlane.f32.xlu1 %v3728_v46 }
 0xd52   :  { %3669 = vadd.xlane.f32.xlu2 %v3668_v14 }
 0xdab   :  { %v3673_v40 = vpop.xlane.xlu1 %3672 }
 0xdac   :  { %v8214_v42 = vmul.f32 0.03125, %v3673_v40 }
 0xdae   :  { %v3746_v63 = vmul.f32 %v8214_v42, %v8214_v42 }
 0xdb3   :  { %v3676_v37 = vpop.xlane.xlu0 %3675 }
 0xdb4   :  { %v8210_v23 = vmul.f32 0.03125, %v3676_v37 }
 0xdb6   :  { %v3747_v53 = vmul.f32 %v8210_v23, %v8210_v23 }
 0xdbb   :  { %v3733_v35 = vpop.xlane.xlu0 %3732  ;;  %v3679_v31 = vpop.xlane.xlu1 %3678 }
 0xdbc   :  { %v3743_v1 = vmul.f32 0.03125, %v3733_v35  ;;  %v3740_v11 = vmul.f32 0.03125, %v3679_v31 }
 0xdbd   :  { %v3736_v32 = vpop.xlane.xlu2 %3735 }
 0xdbe   :  { %v3751_v34 = vsub.f32 %v3743_v1, %v3747_v53  ;;  %v3748_v27 = vmul.f32 %v3740_v11, %v3740_v11  ;;  %v3744_v8 = vmul.f32 0.03125, %v3736_v32  ;;  %v3808_v32 = vld [vmem:[%s9052_s29 + $0x18] sm:$0xff] }
 0xdc0   :  { %v3755_v61 = vadd.f32 1e-05, %v3751_v34  ;;  %v3752_v54 = vsub.f32 %v3744_v8, %v3748_v27 }
 0xdc2   :  { %6481 = vrsqrt.f32 %v3755_v61  ;;  %v3756_v30 = vadd.f32 1e-05, %v3752_v54  ;;  %vm3783_vm8 = vweird.f32 %v3755_v61  ;;  %v3798_v54 = vld [vmem:[%s9051_s25 + $0x8] sm:$0xff] }
 0xdc3   :  { %v3730_v13 = vpop.xlane.xlu1 %3729  ;;  %v3727_v47 = vpop.xlane.xlu0 %3726 }
 0xdc4   :  { %6483 = vrsqrt.f32 %v3756_v30  ;;  %v3742_v55 = vmul.f32 0.03125, %v3730_v13  ;;  %v3741_v25 = vmul.f32 0.03125, %v3727_v47  ;;  %vm3793_vm12 = vweird.f32 %v3756_v30 }
 0xdc5   :  { %v3670_v56 = vpop.xlane.xlu2 %3669 }
 0xdc6   :  { %v3750_v60 = vsub.f32 %v3742_v55, %v3746_v63  ;;  %v8218_v58 = vmul.f32 0.03125, %v3670_v56  ;;  %v3797_v56 = vld [vmem:[%s9051_s25] sm:$0xff] }
 0xdc8   :  { %v6482_v22 = vpop.eup %6481  ;;  %v3754_v2 = vadd.f32 1e-05, %v3750_v60  ;;  %v3745_v62 = vmul.f32 %v8218_v58, %v8218_v58 }
 0xdc9   :  { %v3778_v51 = vmul.f32 %v6482_v22, %v3755_v61  ;;  %vm3784_vm10 = vweird.f32 %v6482_v22 }
 0xdca   :  { %v6484_v36 = vpop.eup %6483  ;;  %6485 = vrsqrt.f32 %v3754_v2  ;;  %v3749_v16 = vsub.f32 %v3741_v25, %v3745_v62  ;;  %vm3785_vm11 = vmor %vm3783_vm8, %vm3784_vm10  ;;  %vm3773_vm15 = vweird.f32 %v3754_v2 }
 0xdcb   :  { %v3779_v4 = vmul.f32 %v6482_v22, %v3778_v51  ;;  %v3788_v20 = vmul.f32 %v6484_v36, %v3756_v30  ;;  %vm3794_vm9 = vweird.f32 %v6484_v36  ;;  %v3807_v30 = vld [vmem:[%s9052_s29 + $0x10] sm:$0xff]  ;;  %v3817_v51 = vld [vmem:[%s9053_s3] sm:$0xff] }
 0xdcc   :  { %v3753_v38 = vadd.f32 1e-05, %v3749_v16  ;;  %vm3795_vm13 = vmor %vm3793_vm12, %vm3794_vm9 }
 0xdcd   :  { %v3780_v7 = vmul.f32 0.5, %v3779_v4  ;;  %v3789_v50 = vmul.f32 %v6484_v36, %v3788_v20  ;;  %v3819_v20 = vld [vmem:[%s9053_s3 + $0x10] sm:$0xff] }
 0xdce   :  { %6487 = vrsqrt.f32 %v3753_v38  ;;  %vm3763_vm4 = vweird.f32 %v3753_v38 }
 0xdcf   :  { %v3781_v12 = vsub.f32 1.5, %v3780_v7  ;;  %v3790_v6 = vmul.f32 0.5, %v3789_v50  ;;  %v3822_v7 = vld [vmem:[%s9053_s3 + $0x28] sm:$0xff]  ;;  %v3823_v50 = vld [vmem:[%s9053_s3 + $0x30] sm:$0xff] }
 0xdd0   :  { %v6486_v19 = vpop.eup %6485 }
 0xdd1   :  { %v3791_v59 = vsub.f32 1.5, %v3790_v6  ;;  %v3768_v52 = vmul.f32 %v6486_v19, %v3754_v2  ;;  %v3782_v5 = vmul.f32 %v6482_v22, %v3781_v12  ;;  %vm3774_vm14 = vweird.f32 %v6486_v19  ;;  %v3824_v12 = vld [vmem:[%s9053_s3 + $0x38] sm:$0xff]  ;;  %v3825_v6 = vld [vmem:[%s9053_s3 + $0x40] sm:$0xff] }
 0xdd2   :  { %vm3775_vm0 = vmor %vm3773_vm15, %vm3774_vm14 }
 0xdd3   :  { %v3792_v39 = vmul.f32 %v6484_v36, %v3791_v59  ;;  %v3769_v18 = vmul.f32 %v6486_v19, %v3768_v52  ;;  %v3786_v49 = vsel %vm3785_vm11, %v6482_v22, %v3782_v5  ;;  %v3827_v59 = vld [vmem:[%s9053_s3 + $0x50] sm:$0xff]  ;;  %v3828_v52 = vld [vmem:[%s9053_s3 + $0x58] sm:$0xff]  ;;  %v3829_v5 = vld [vmem:[%s9053_s3 + $0x60] sm:$0xff] }
 0xdd4   :  { %v6488_v46 = vpop.eup %6487  ;;  %v3803_v14 = vmul.f32 %v3799_v15, %v3786_v49  ;;  %v3830_v15 = vld [vmem:[%s9053_s3 + $0x68] sm:$0xff] }
 0xdd5   :  { %v3770_v40 = vmul.f32 0.5, %v3769_v18  ;;  %v3758_v37 = vmul.f32 %v6488_v46, %v3753_v38  ;;  %v3796_v35 = vsel %vm3795_vm13, %v6484_v36, %v3792_v39  ;;  %vm3764_vm3 = vweird.f32 %v6488_v46  ;;  %v3805_v36 = vld [vmem:[%s9052_s29] sm:$0xff]  ;;  %v3831_v39 = vld [vmem:[%s9053_s3 + $0x70] sm:$0xff]  ;;  %v3832_v18 = vld [vmem:[%s9053_s3 + $0x78] sm:$0xff] }
 0xdd6   :  { %v3804_v31 = vmul.f32 %v3800_v28, %v3796_v35  ;;  %v3811_v27 = vmul.f32 %v3803_v14, %v8210_v23  ;;  %v3806_v23 = vld [vmem:[%s9052_s29 + $0x8] sm:$0xff]  ;;  %vm3765_vm5 = vmor %vm3763_vm4, %vm3764_vm3  ;;  %v3821_v38 = vld [vmem:[%s9053_s3 + $0x20] sm:$0xff] }
 0xdd7   :  { %v3771_v53 = vsub.f32 1.5, %v3770_v40  ;;  %v3759_v1 = vmul.f32 %v6488_v46, %v3758_v37 }
 0xdd8   :  { %3893 = vmatpush.msrb.mxu0 %v3804_v31  ;;  %v3812_v34 = vmul.f32 %v3804_v31, %v3740_v11  ;;  %v3815_v11 = vsub.f32 %v3807_v30, %v3811_v27 }
 0xdd9   :  { %v3760_v8 = vmul.f32 0.5, %v3759_v1  ;;  %v3772_v61 = vmul.f32 %v6486_v19, %v3771_v53 }
 0xdda   :  { %3894 = vmatpush.msrb.mxu0 %v3803_v14  ;;  %v3816_v13 = vsub.f32 %v3808_v32, %v3812_v34 }
 0xddb   :  { %v3761_v63 = vsub.f32 1.5, %v3760_v8  ;;  %v3776_v55 = vsel %vm3775_vm0, %v6486_v19, %v3772_v61  ;;  %v3826_v19 = vld [vmem:[%s9053_s3 + $0x48] sm:$0xff] }
 0xddc   :  { %3958 = vmatpush.msrb.mxu1 %v3816_v13  ;;  %v3802_v47 = vmul.f32 %v3798_v54, %v3776_v55 }
 0xddd   :  { %v3762_v60 = vmul.f32 %v6488_v46, %v3761_v63 }
 0xdde   :  { %3895 = vmatpush.msrb.mxu0 %v3802_v47  ;;  %3959 = vmatpush.msrb.mxu1 %v3815_v11  ;;  %v3810_v22 = vmul.f32 %v3802_v47, %v8214_v42  ;;  %v3818_v42 = vld [vmem:[%s9053_s3 + $0x8] sm:$0xff] }
 0xddf   :  { %v3766_v25 = vsel %vm3765_vm5, %v6488_v46, %v3762_v60 }
 0xde0   :  { %v3801_v2 = vmul.f32 %v3797_v56, %v3766_v25  ;;  %v3814_v62 = vsub.f32 %v3806_v23, %v3810_v22  ;;  %v4251_v23 = vld [vmem:[%s9054_s8] sm:$0xff]  ;;  %v6319_v22 = vld [vmem:[%s9054_s8 + $0x8] sm:$0xff]  ;;  %v6336_v25 = vld [vmem:[%s9054_s8 + $0x10] sm:$0xff] }
 0xde1   :  { %4315 = vmatpush.msrb.mxu2 %v4251_v23  ;;  %4382 = vmatpush.msrb.mxu3 %v6319_v22 }
 0xde2   :  { %v3809_v16 = vmul.f32 %v3801_v2, %v8218_v58  ;;  %3896 = vmatpush.msrb.mxu0 %v3801_v2  ;;  %3960 = vmatpush.msrb.mxu1 %v3814_v62  ;;  %v3820_v58 = vld [vmem:[%s9053_s3 + $0x18] sm:$0xff] }
 0xde3   :  { %6271 = vmatmul.msk.f32.vlgmr.msrb.gmra.mxu0 %vm1292_vm2, %v3817_v51  ;;  %v6353_v2 = vld [vmem:[%s9054_s8 + $0x18] sm:$0xff] }
 0xde4   :  { %v3813_v4 = vsub.f32 %v3805_v36, %v3809_v16  ;;  %4449 = vmatpush.msra.mxu0 %v6336_v25 }
 0xde6   :  { %3961 = vmatpush.msrb.mxu1 %v3813_v4 }
 0xde7   :  { %6287 = vmatmul.msk.f32.vlgmr.msrb.gmra.mxu1 %vm1292_vm2, %v3817_v51 }
 0xde8   :  { %4516 = vmatpush.msra.mxu1 %v6353_v2 }
 0xdeb   :  { %6272 = vmatmul.msk.f32.gmra.mxu0 %vm1292_vm2, %v3818_v42 }
 0xdef   :  { %6288 = vmatmul.msk.f32.gmra.mxu1 %vm1292_vm2, %v3818_v42 }
 0xdf3   :  { %6273 = vmatmul.msk.f32.gmra.mxu0 %vm1292_vm2, %v3819_v20 }
 0xdf7   :  { %6289 = vmatmul.msk.f32.gmra.mxu1 %vm1292_vm2, %v3819_v20 }
 0xdfb   :  { %6274 = vmatmul.msk.f32.gmra.mxu0 %vm1292_vm2, %v3820_v58 }
 0xdff   :  { %6290 = vmatmul.msk.f32.gmra.mxu1 %vm1292_vm2, %v3820_v58 }
 0xe03   :  { %6275 = vmatmul.msk.f32.gmra.mxu0 %vm1292_vm2, %v3821_v38 }
 0xe07   :  { %6291 = vmatmul.msk.f32.gmra.mxu1 %vm1292_vm2, %v3821_v38 }
 0xe0b   :  { %6276 = vmatmul.msk.f32.gmra.mxu0 %vm1292_vm2, %v3822_v7 }
 0xe0f   :  { %6292 = vmatmul.msk.f32.gmra.mxu1 %vm1292_vm2, %v3822_v7 }
 0xe13   :  { %6277 = vmatmul.msk.f32.gmra.mxu0 %vm1292_vm2, %v3823_v50 }
 0xe17   :  { %6293 = vmatmul.msk.f32.gmra.mxu1 %vm1292_vm2, %v3823_v50 }
 0xe1b   :  { %6278 = vmatmul.msk.f32.gmra.mxu0 %vm1292_vm2, %v3824_v12 }
 0xe1f   :  { %6294 = vmatmul.msk.f32.gmra.mxu1 %vm1292_vm2, %v3824_v12 }
 0xe23   :  { %6279 = vmatmul.msk.f32.gmra.mxu0 %vm1292_vm2, %v3825_v6 }
 0xe27   :  { %6295 = vmatmul.msk.f32.gmra.mxu1 %vm1292_vm2, %v3825_v6 }
 0xe2b   :  { %6280 = vmatmul.msk.f32.gmra.mxu0 %vm1292_vm2, %v3826_v19 }
 0xe2f   :  { %6296 = vmatmul.msk.f32.gmra.mxu1 %vm1292_vm2, %v3826_v19 }
 0xe33   :  { %6281 = vmatmul.msk.f32.gmra.mxu0 %vm1292_vm2, %v3827_v59 }
 0xe37   :  { %6297 = vmatmul.msk.f32.gmra.mxu1 %vm1292_vm2, %v3827_v59 }
 0xe3b   :  { %6282 = vmatmul.msk.f32.gmra.mxu0 %vm1292_vm2, %v3828_v52 }
 0xe3f   :  { %6298 = vmatmul.msk.f32.gmra.mxu1 %vm1292_vm2, %v3828_v52 }
 0xe43   :  { %6283 = vmatmul.msk.f32.gmra.mxu0 %vm1292_vm2, %v3829_v5 }
 0xe47   :  { %6299 = vmatmul.msk.f32.gmra.mxu1 %vm1292_vm2, %v3829_v5 }
 0xe4b   :  { %6284 = vmatmul.msk.f32.gmra.mxu0 %vm1292_vm2, %v3830_v15 }
 0xe4f   :  { %6300 = vmatmul.msk.f32.gmra.mxu1 %vm1292_vm2, %v3830_v15 }
 0xe53   :  { %6285 = vmatmul.msk.f32.gmra.mxu0 %vm1292_vm2, %v3831_v39 }
 0xe57   :  { %6301 = vmatmul.msk.f32.gmra.mxu1 %vm1292_vm2, %v3831_v39 }
 0xe5b   :  { %6286 = vmatmul.msk.f32.gmra.mxu0 %vm1292_vm2, %v3832_v18 }
 0xe5f   :  { %6302 = vmatmul.msk.f32.gmra.mxu1 %vm1292_vm2, %v3832_v18 }
 0xe60   :  { %v3898_v28 = vpop.f32.mrf.mxu0 }
 0xe61   :  { %4013 = vperm.xlu2 %6473, %v3898_v28  }
 0xe64   :  { %v3963_v49 = vpop.f32.mrf.mxu1 }
 0xe65   :  { %4109 = vperm.xlu1 %6472, %v3963_v49  }
 0xe68   :  { %v3901_v46 = vpop.f32.mrf.mxu0 }
 0xe69   :  { %4018 = vperm.xlu0 %6474, %v3901_v46  }
 0xe6c   :  { %v3966_v14 = vpop.f32.mrf.mxu1 }
 0xe6d   :  { %4114 = vperm.xlu2 %6473, %v3966_v14  }
 0xe70   :  { %v3904_v40 = vpop.f32.mrf.mxu0 }
 0xe71   :  { %4023 = vperm.xlu0 %6474, %v3904_v40  }
 0xe74   :  { %v3969_v37 = vpop.f32.mrf.mxu1 }
 0xe75   :  { %4119 = vperm.xlu1 %6472, %v3969_v37  }
 0xe78   :  { %v3907_v35 = vpop.f32.mrf.mxu0 }
 0xe79   :  { %4028 = vperm.xlu2 %6473, %v3907_v35  }
 0xe7c   :  { %v3972_v31 = vpop.f32.mrf.mxu1 }
 0xe7d   :  { %4124 = vperm.xlu0 %6474, %v3972_v31  }
 0xe80   :  { %v3910_v53 = vpop.f32.mrf.mxu0 }
 0xe81   :  { %4033 = vperm.xlu1 %6472, %v3910_v53  }
 0xe84   :  { %v3975_v1 = vpop.f32.mrf.mxu1 }
 0xe85   :  { %4129 = vperm.xlu2 %6473, %v3975_v1  }
 0xe88   :  { %v3913_v32 = vpop.f32.mrf.mxu0 }
 0xe89   :  { %4038 = vperm.xlu0 %6474, %v3913_v32  }
 0xe8c   :  { %v3978_v34 = vpop.f32.mrf.mxu1 }
 0xe8d   :  { %4134 = vperm.xlu1 %6472, %v3978_v34  }
 0xe90   :  { %v3916_v27 = vpop.f32.mrf.mxu0 }
 0xe91   :  { %4043 = vperm.xlu2 %6473, %v3916_v27  }
 0xe94   :  { %v3981_v8 = vpop.f32.mrf.mxu1 }
 0xe95   :  { %4139 = vperm.xlu0 %6474, %v3981_v8  }
 0xe98   :  { %v3919_v61 = vpop.f32.mrf.mxu0 }
 0xe99   :  { %4048 = vperm.xlu1 %6472, %v3919_v61  }
 0xe9c   :  { %v3984_v54 = vpop.f32.mrf.mxu1 }
 0xe9d   :  { %4144 = vperm.xlu2 %6473, %v3984_v54  }
 0xea0   :  { %v3922_v30 = vpop.f32.mrf.mxu0 }
 0xea1   :  { %4053 = vperm.xlu0 %6474, %v3922_v30  }
 0xea4   :  { %v3987_v13 = vpop.f32.mrf.mxu1 }
 0xea5   :  { %4149 = vperm.xlu1 %6472, %v3987_v13  }
 0xea8   :  { %v3925_v63 = vpop.f32.mrf.mxu0 }
 0xea9   :  { %4058 = vperm.xlu2 %6473, %v3925_v63  }
 0xeac   :  { %v3990_v55 = vpop.f32.mrf.mxu1 }
 0xead   :  { %4154 = vperm.xlu0 %6474, %v3990_v55  }
 0xeb0   :  { %v3928_v47 = vpop.f32.mrf.mxu0 }
 0xeb1   :  { %4063 = vperm.xlu1 %6472, %v3928_v47  }
 0xeb4   :  { %v3993_v11 = vpop.f32.mrf.mxu1 }
 0xeb5   :  { %4159 = vperm.xlu2 %6473, %v3993_v11  }
 0xeb8   :  { %v3931_v56 = vpop.f32.mrf.mxu0 }
 0xeb9   :  { %4068 = vperm.xlu0 %6474, %v3931_v56  }
 0xebb   :  { %v4014_v42 = vpop.permute.xlu2 %4013 }
 0xebc   :  { %v3996_v60 = vpop.f32.mrf.mxu1  ;;  %v4091_v58 = vmul.f32 %v4014_v42, %v8187_v0 }
 0xebd   :  { %4164 = vperm.xlu1 %6472, %v3996_v60  }
 0xec0   :  { %v3934_v62 = vpop.f32.mrf.mxu0 }
 0xec1   :  { %4073 = vperm.xlu2 %6473, %v3934_v62  }
 0xec4   :  { %v3999_v51 = vpop.f32.mrf.mxu1 }
 0xec5   :  { %4169 = vperm.xlu0 %6474, %v3999_v51  }
 0xec7   :  { %v4115_v5 = vpop.permute.xlu2 %4114 }
 0xec8   :  { %v3937_v36 = vpop.f32.mrf.mxu0 }
 0xec9   :  { %4078 = vperm.xlu1 %6472, %v3937_v36  }
 0xecc   :  { %v4002_v16 = vpop.f32.mrf.mxu1 }
 0xecd   :  { %4174 = vperm.xlu2 %6473, %v4002_v16  }
 0xed0   :  { %v3940_v4 = vpop.f32.mrf.mxu0 }
 0xed1   :  { %4083 = vperm.xlu0 %6474, %v3940_v4  }
 0xed3   :  { %v4029_v14 = vpop.permute.xlu2 %4028 }
 0xed4   :  { %v4005_v20 = vpop.f32.mrf.mxu1  ;;  %v4094_v37 = vmul.f32 %v4029_v14, %v8168_v26 }
 0xed5   :  { %4179 = vperm.xlu1 %6472, %v4005_v20  }
 0xed7   :  { %v4110_v38 = vpop.permute.xlu1 %4109 }
 0xed8   :  { %v4187_v7 = vadd.f32 %v4110_v38, %v4091_v58  ;;  %v3943_v50 = vpop.f32.mrf.mxu0 }
 0xed9   :  { %4088 = vperm.xlu2 %6473, %v3943_v50  }
 0xeda   :  { %vm4203_vm2 = vcmp.ge.f32.partialorder %v4187_v7, 0.0  ;;  %v4219_v12 = vmul.f32 0.2, %v4187_v7 }
 0xedb   :  { %v4019_v6 = vpop.permute.xlu0 %4018 }
 0xedc   :  { %v4235_v19 = vsel %vm4203_vm2, %v4187_v7, %v4219_v12  ;;  %v4092_v59 = vmul.f32 %v4019_v6, %v8181_v21  ;;  %v4008_v52 = vpop.f32.mrf.mxu1 }
 0xedd   :  { %6303 = vmatmul.msk.f32.vlgmr.msrb.gmra.mxu2 %vm1371_vm6, %v4235_v19  ;;  %6320 = vmatmul.msk.f32.vlgmr.msrb.gmra.mxu3 %vm1371_vm6, %v4235_v19 }
 0xede   :  { %v4188_v15 = vadd.f32 %v4115_v5, %v4092_v59  ;;  %6337 = vmatmul.msk.f32.vlgmr.msra.gmra.mxu0 %vm1371_vm6, %v4235_v19  ;;  %6354 = vmatmul.msk.f32.vlgmr.msra.gmra.mxu1 %vm1371_vm6, %v4235_v19 }
 0xedf   :  { %4184 = vperm.xlu0 %6474, %v4008_v52   ;;  %v4130_v34 = vpop.permute.xlu2 %4129 }
 0xee0   :  { %v4220_v0 = vmul.f32 0.2, %v4188_v15  ;;  %vm4204_vm7 = vcmp.ge.f32.partialorder %v4188_v15, 0.0 }
 0xee2   :  { %v4236_v18 = vsel %vm4204_vm7, %v4188_v15, %v4220_v0 }
 0xee3   :  { %v4024_v39 = vpop.permute.xlu0 %4023 }
 0xee4   :  { %v4093_v21 = vmul.f32 %v4024_v39, %v8175_v57 }
 0xee5   :  { %6304 = vmatmul.msk.f32.gmra.mxu2 %vm1371_vm6, %v4236_v18  ;;  %6321 = vmatmul.msk.f32.gmra.mxu3 %vm1371_vm6, %v4236_v18 }
 0xee6   :  { %6338 = vmatmul.msk.f32.gmra.mxu0 %vm1371_vm6, %v4236_v18  ;;  %6355 = vmatmul.msk.f32.gmra.mxu1 %vm1371_vm6, %v4236_v18 }
 0xee7   :  { %v4120_v28 = vpop.permute.xlu1 %4119 }
 0xee8   :  { %v4189_v49 = vadd.f32 %v4120_v28, %v4093_v21 }
 0xeea   :  { %vm4205_vm10 = vcmp.ge.f32.partialorder %v4189_v49, 0.0  ;;  %v4221_v46 = vmul.f32 0.2, %v4189_v49 }
 0xeeb   :  { %v4044_v63 = vpop.permute.xlu2 %4043 }
 0xeec   :  { %v4237_v40 = vsel %vm4205_vm10, %v4189_v49, %v4221_v46  ;;  %v4097_v47 = vmul.f32 %v4044_v63, %v8143_v10 }
 0xeed   :  { %6305 = vmatmul.msk.f32.gmra.mxu2 %vm1371_vm6, %v4237_v40  ;;  %6322 = vmatmul.msk.f32.gmra.mxu3 %vm1371_vm6, %v4237_v40 }
 0xeee   :  { %6339 = vmatmul.msk.f32.gmra.mxu0 %vm1371_vm6, %v4237_v40  ;;  %6356 = vmatmul.msk.f32.gmra.mxu1 %vm1371_vm6, %v4237_v40 }
 0xeef   :  { %v4125_v57 = vpop.permute.xlu0 %4124 }
 0xef0   :  { %v4190_v35 = vadd.f32 %v4125_v57, %v4094_v37 }
 0xef2   :  { %vm4206_vm8 = vcmp.ge.f32.partialorder %v4190_v35, 0.0  ;;  %v4222_v31 = vmul.f32 0.2, %v4190_v35 }
 0xef3   :  { %v4034_v53 = vpop.permute.xlu1 %4033 }
 0xef4   :  { %v4095_v1 = vmul.f32 %v4034_v53, %v8161_v3  ;;  %v4238_v32 = vsel %vm4206_vm8, %v4190_v35, %v4222_v31 }
 0xef5   :  { %6306 = vmatmul.msk.f32.gmra.mxu2 %vm1371_vm6, %v4238_v32  ;;  %6323 = vmatmul.msk.f32.gmra.mxu3 %vm1371_vm6, %v4238_v32 }
 0xef6   :  { %v4191_v27 = vadd.f32 %v4130_v34, %v4095_v1  ;;  %6340 = vmatmul.msk.f32.gmra.mxu0 %vm1371_vm6, %v4238_v32  ;;  %6357 = vmatmul.msk.f32.gmra.mxu1 %vm1371_vm6, %v4238_v32 }
 0xef7   :  { %v4145_v25 = vpop.permute.xlu2 %4144 }
 0xef8   :  { %v4223_v26 = vmul.f32 0.2, %v4191_v27  ;;  %vm4207_vm9 = vcmp.ge.f32.partialorder %v4191_v27, 0.0 }
 0xefa   :  { %v4239_v61 = vsel %vm4207_vm9, %v4191_v27, %v4223_v26 }
 0xefb   :  { %v4039_v8 = vpop.permute.xlu0 %4038 }
 0xefc   :  { %v4096_v3 = vmul.f32 %v4039_v8, %v8152_v24 }
 0xefd   :  { %6307 = vmatmul.msk.f32.gmra.mxu2 %vm1371_vm6, %v4239_v61  ;;  %6324 = vmatmul.msk.f32.gmra.mxu3 %vm1371_vm6, %v4239_v61 }
 0xefe   :  { %6341 = vmatmul.msk.f32.gmra.mxu0 %vm1371_vm6, %v4239_v61  ;;  %6358 = vmatmul.msk.f32.gmra.mxu1 %vm1371_vm6, %v4239_v61 }
 0xeff   :  { %v4135_v54 = vpop.permute.xlu1 %4134 }
 0xf00   :  { %v4192_v30 = vadd.f32 %v4135_v54, %v4096_v3 }
 0xf02   :  { %vm4208_vm11 = vcmp.ge.f32.partialorder %v4192_v30, 0.0  ;;  %v4224_v13 = vmul.f32 0.2, %v4192_v30 }
 0xf03   :  { %v4059_v42 = vpop.permute.xlu2 %4058 }
 0xf04   :  { %v4240_v55 = vsel %vm4208_vm11, %v4192_v30, %v4224_v13  ;;  %v4100_v58 = vmul.f32 %v4059_v42, %v8116_v33 }
 0xf05   :  { %6308 = vmatmul.msk.f32.gmra.mxu2 %vm1371_vm6, %v4240_v55  ;;  %6325 = vmatmul.msk.f32.gmra.mxu3 %vm1371_vm6, %v4240_v55 }
 0xf06   :  { %6342 = vmatmul.msk.f32.gmra.mxu0 %vm1371_vm6, %v4240_v55  ;;  %6359 = vmatmul.msk.f32.gmra.mxu1 %vm1371_vm6, %v4240_v55 }
 0xf07   :  { %v4140_v24 = vpop.permute.xlu0 %4139 }
 0xf08   :  { %v4193_v11 = vadd.f32 %v4140_v24, %v4097_v47 }
 0xf0a   :  { %vm4209_vm12 = vcmp.ge.f32.partialorder %v4193_v11, 0.0  ;;  %v4225_v56 = vmul.f32 0.2, %v4193_v11 }
 0xf0b   :  { %v4049_v60 = vpop.permute.xlu1 %4048 }
 0xf0c   :  { %v4098_v23 = vmul.f32 %v4049_v60, %v8134_v41  ;;  %v4241_v22 = vsel %vm4209_vm12, %v4193_v11, %v4225_v56 }
 0xf0d   :  { %6309 = vmatmul.msk.f32.gmra.mxu2 %vm1371_vm6, %v4241_v22  ;;  %6326 = vmatmul.msk.f32.gmra.mxu3 %vm1371_vm6, %v4241_v22 }
 0xf0e   :  { %v4194_v2 = vadd.f32 %v4145_v25, %v4098_v23  ;;  %6343 = vmatmul.msk.f32.gmra.mxu0 %vm1371_vm6, %v4241_v22  ;;  %6360 = vmatmul.msk.f32.gmra.mxu1 %vm1371_vm6, %v4241_v22 }
 0xf0f   :  { %v4160_v19 = vpop.permute.xlu2 %4159 }
 0xf10   :  { %v4226_v10 = vmul.f32 0.2, %v4194_v2  ;;  %vm4210_vm13 = vcmp.ge.f32.partialorder %v4194_v2, 0.0 }
 0xf12   :  { %v4242_v51 = vsel %vm4210_vm13, %v4194_v2, %v4226_v10 }
 0xf13   :  { %v4054_v62 = vpop.permute.xlu0 %4053 }
 0xf14   :  { %v4099_v41 = vmul.f32 %v4054_v62, %v8125_v45 }
 0xf15   :  { %6310 = vmatmul.msk.f32.gmra.mxu2 %vm1371_vm6, %v4242_v51  ;;  %6327 = vmatmul.msk.f32.gmra.mxu3 %vm1371_vm6, %v4242_v51 }
 0xf16   :  { %6344 = vmatmul.msk.f32.gmra.mxu0 %vm1371_vm6, %v4242_v51  ;;  %6361 = vmatmul.msk.f32.gmra.mxu1 %vm1371_vm6, %v4242_v51 }
 0xf17   :  { %v4150_v36 = vpop.permute.xlu1 %4149 }
 0xf18   :  { %v4195_v16 = vadd.f32 %v4150_v36, %v4099_v41 }
 0xf1a   :  { %vm4211_vm14 = vcmp.ge.f32.partialorder %v4195_v16, 0.0  ;;  %v4227_v4 = vmul.f32 0.2, %v4195_v16 }
 0xf1b   :  { %v4074_v18 = vpop.permute.xlu2 %4073 }
 0xf1c   :  { %v4243_v20 = vsel %vm4211_vm14, %v4195_v16, %v4227_v4  ;;  %v4103_v28 = vmul.f32 %v4074_v18, %v8096_v48 }
 0xf1d   :  { %6311 = vmatmul.msk.f32.gmra.mxu2 %vm1371_vm6, %v4243_v20  ;;  %6328 = vmatmul.msk.f32.gmra.mxu3 %vm1371_vm6, %v4243_v20 }
 0xf1e   :  { %6345 = vmatmul.msk.f32.gmra.mxu0 %vm1371_vm6, %v4243_v20  ;;  %6362 = vmatmul.msk.f32.gmra.mxu1 %vm1371_vm6, %v4243_v20 }
 0xf1f   :  { %v4155_v45 = vpop.permute.xlu0 %4154 }
 0xf20   :  { %v4196_v38 = vadd.f32 %v4155_v45, %v4100_v58 }
 0xf22   :  { %vm4212_vm15 = vcmp.ge.f32.partialorder %v4196_v38, 0.0  ;;  %v4228_v7 = vmul.f32 0.2, %v4196_v38 }
 0xf23   :  { %v4064_v50 = vpop.permute.xlu1 %4063 }
 0xf24   :  { %v4101_v12 = vmul.f32 %v4064_v50, %v8108_v17  ;;  %v4244_v6 = vsel %vm4212_vm15, %v4196_v38, %v4228_v7 }
 0xf25   :  { %6312 = vmatmul.msk.f32.gmra.mxu2 %vm1371_vm6, %v4244_v6  ;;  %6329 = vmatmul.msk.f32.gmra.mxu3 %vm1371_vm6, %v4244_v6 }
 0xf26   :  { %v4197_v59 = vadd.f32 %v4160_v19, %v4101_v12  ;;  %6346 = vmatmul.msk.f32.gmra.mxu0 %vm1371_vm6, %v4244_v6  ;;  %6363 = vmatmul.msk.f32.gmra.mxu1 %vm1371_vm6, %v4244_v6 }
 0xf27   :  { %v4175_v57 = vpop.permute.xlu2 %4174 }
 0xf28   :  { %v4229_v33 = vmul.f32 0.2, %v4197_v59  ;;  %vm4213_vm0 = vcmp.ge.f32.partialorder %v4197_v59, 0.0 }
 0xf2a   :  { %v4245_v5 = vsel %vm4213_vm0, %v4197_v59, %v4229_v33 }
 0xf2b   :  { %v4069_v52 = vpop.permute.xlu0 %4068 }
 0xf2c   :  { %v4102_v17 = vmul.f32 %v4069_v52, %v8101_v9 }
 0xf2d   :  { %6313 = vmatmul.msk.f32.gmra.mxu2 %vm1371_vm6, %v4245_v5  ;;  %6330 = vmatmul.msk.f32.gmra.mxu3 %vm1371_vm6, %v4245_v5 }
 0xf2e   :  { %6347 = vmatmul.msk.f32.gmra.mxu0 %vm1371_vm6, %v4245_v5  ;;  %6364 = vmatmul.msk.f32.gmra.mxu1 %vm1371_vm6, %v4245_v5 }
 0xf2f   :  { %v4165_v15 = vpop.permute.xlu1 %4164 }
 0xf30   :  { %v4198_v0 = vadd.f32 %v4165_v15, %v4102_v17 }
 0xf32   :  { %vm4214_vm3 = vcmp.ge.f32.partialorder %v4198_v0, 0.0  ;;  %v4230_v39 = vmul.f32 0.2, %v4198_v0 }
 0xf33   :  { %v4089_v26 = vpop.permute.xlu2 %4088 }
 0xf34   :  { %v4246_v21 = vsel %vm4214_vm3, %v4198_v0, %v4230_v39 }
 0xf35   :  { %6314 = vmatmul.msk.f32.gmra.mxu2 %vm1371_vm6, %v4246_v21  ;;  %6331 = vmatmul.msk.f32.gmra.mxu3 %vm1371_vm6, %v4246_v21 }
 0xf36   :  { %6348 = vmatmul.msk.f32.gmra.mxu0 %vm1371_vm6, %v4246_v21  ;;  %6365 = vmatmul.msk.f32.gmra.mxu1 %vm1371_vm6, %v4246_v21 }
 0xf37   :  { %v4170_v9 = vpop.permute.xlu0 %4169 }
 0xf38   :  { %v4199_v49 = vadd.f32 %v4170_v9, %v4103_v28 }
 0xf3a   :  { %vm4215_vm4 = vcmp.ge.f32.partialorder %v4199_v49, 0.0  ;;  %v4231_v46 = vmul.f32 0.2, %v4199_v49 }
 0xf3b   :  { %v4079_v14 = vpop.permute.xlu1 %4078 }
 0xf3c   :  { %v4104_v40 = vmul.f32 %v4079_v14, %v8091_v43  ;;  %v4247_v37 = vsel %vm4215_vm4, %v4199_v49, %v4231_v46 }
 0xf3d   :  { %6315 = vmatmul.msk.f32.gmra.mxu2 %vm1371_vm6, %v4247_v37  ;;  %6332 = vmatmul.msk.f32.gmra.mxu3 %vm1371_vm6, %v4247_v37 }
 0xf3e   :  { %v4200_v35 = vadd.f32 %v4175_v57, %v4104_v40  ;;  %6349 = vmatmul.msk.f32.gmra.mxu0 %vm1371_vm6, %v4247_v37  ;;  %6366 = vmatmul.msk.f32.gmra.mxu1 %vm1371_vm6, %v4247_v37 }
 0xf40   :  { %v4232_v48 = vmul.f32 0.2, %v4200_v35  ;;  %vm4216_vm5 = vcmp.ge.f32.partialorder %v4200_v35, 0.0 }
 0xf42   :  { %v4248_v53 = vsel %vm4216_vm5, %v4200_v35, %v4232_v48 }
 0xf43   :  { %v4084_v31 = vpop.permute.xlu0 %4083 }
 0xf44   :  { %v4105_v43 = vmul.f32 %v4084_v31, %v8087_v44  ;;  %v4106_v44 = vmul.f32 %v4089_v26, %v8089_v29 }
 0xf45   :  { %6316 = vmatmul.msk.f32.gmra.mxu2 %vm1371_vm6, %v4248_v53  ;;  %6333 = vmatmul.msk.f32.gmra.mxu3 %vm1371_vm6, %v4248_v53 }
 0xf46   :  { %6350 = vmatmul.msk.f32.gmra.mxu0 %vm1371_vm6, %v4248_v53  ;;  %6367 = vmatmul.msk.f32.gmra.mxu1 %vm1371_vm6, %v4248_v53 }
 0xf47   :  { %v4180_v1 = vpop.permute.xlu1 %4179 }
 0xf48   :  { %v4201_v32 = vadd.f32 %v4180_v1, %v4105_v43 }
 0xf4a   :  { %vm4217_vm2 = vcmp.ge.f32.partialorder %v4201_v32, 0.0  ;;  %v4233_v34 = vmul.f32 0.2, %v4201_v32 }
 0xf4c   :  { %v4249_v27 = vsel %vm4217_vm2, %v4201_v32, %v4233_v34 }
 0xf4d   :  { %6317 = vmatmul.msk.f32.gmra.mxu2 %vm1371_vm6, %v4249_v27  ;;  %6334 = vmatmul.msk.f32.gmra.mxu3 %vm1371_vm6, %v4249_v27 }
 0xf4e   :  { %6351 = vmatmul.msk.f32.gmra.mxu0 %vm1371_vm6, %v4249_v27  ;;  %6368 = vmatmul.msk.f32.gmra.mxu1 %vm1371_vm6, %v4249_v27 }
 0xf51   :  { %v4185_v8 = vpop.permute.xlu0 %4184 }
 0xf52   :  { %v4202_v61 = vadd.f32 %v4185_v8, %v4106_v44 }
 0xf54   :  { %vm4218_vm7 = vcmp.ge.f32.partialorder %v4202_v61, 0.0  ;;  %v4234_v3 = vmul.f32 0.2, %v4202_v61 }
 0xf56   :  { %v4250_v54 = vsel %vm4218_vm7, %v4202_v61, %v4234_v3 }
 0xf57   :  { %6318 = vmatmul.msk.f32.gmra.mxu2 %vm1371_vm6, %v4250_v54  ;;  %6335 = vmatmul.msk.f32.gmra.mxu3 %vm1371_vm6, %v4250_v54 }
 0xf58   :  { %6352 = vmatmul.msk.f32.gmra.mxu0 %vm1371_vm6, %v4250_v54  ;;  %6369 = vmatmul.msk.f32.gmra.mxu1 %vm1371_vm6, %v4250_v54  ;;  %vm4939_vm6 = vcmask 31744  }
 0xf5b   :  { %v8365_v30 = vpop.f32.mrf.mxu0  ;;  %v8367_v13 = vpop.f32.mrf.mxu1 }
 0xf60   :  { %v8369_v63 = vpop.f32.mrf.mxu2  ;;  %v8371_v29 = vpop.f32.mrf.mxu3 }
 0xf63   :  { %v8373_v55 = vpop.f32.mrf.mxu0  ;;  %v8375_v47 = vpop.f32.mrf.mxu1 }
 0xf68   :  { %v8377_v24 = vpop.f32.mrf.mxu2  ;;  %v8379_v11 = vpop.f32.mrf.mxu3 }
 0xf6b   :  { %v8381_v56 = vpop.f32.mrf.mxu0  ;;  %v8383_v60 = vpop.f32.mrf.mxu1 }
 0xf70   :  { %v8385_v23 = vpop.f32.mrf.mxu2  ;;  %v8387_v22 = vpop.f32.mrf.mxu3 }
 0xf73   :  { %v8389_v25 = vpop.f32.mrf.mxu0  ;;  %v8391_v2 = vpop.f32.mrf.mxu1 }
 0xf78   :  { %v8393_v10 = vpop.f32.mrf.mxu2  ;;  %v8395_v62 = vpop.f32.mrf.mxu3 }
 0xf7b   :  { %v8397_v51 = vpop.f32.mrf.mxu0  ;;  %v8399_v41 = vpop.f32.mrf.mxu1 }
 0xf80   :  { %v8401_v36 = vpop.f32.mrf.mxu2  ;;  %v8403_v16 = vpop.f32.mrf.mxu3 }
 0xf83   :  { %v8405_v4 = vpop.f32.mrf.mxu0  ;;  %v8407_v42 = vpop.f32.mrf.mxu1 }
 0xf88   :  { %v8409_v20 = vpop.f32.mrf.mxu2  ;;  %v8411_v58 = vpop.f32.mrf.mxu3 }
 0xf8b   :  { %v8413_v45 = vpop.f32.mrf.mxu0  ;;  %v8415_v38 = vpop.f32.mrf.mxu1 }
 0xf90   :  { %v8417_v7 = vpop.f32.mrf.mxu2  ;;  %v8419_v50 = vpop.f32.mrf.mxu3 }
 0xf93   :  { %v8421_v12 = vpop.f32.mrf.mxu0  ;;  %v8423_v6 = vpop.f32.mrf.mxu1 }
 0xf98   :  { %v8425_v19 = vpop.f32.mrf.mxu2  ;;  %v8427_v59 = vpop.f32.mrf.mxu3 }
 0xf9b   :  { %v4475_v33 = vpop.f32.mrf.mxu0  ;;  %v4542_v52 = vpop.f32.mrf.mxu1 }
 0xfa0   :  { %v8429_v5 = vpop.f32.mrf.mxu2  ;;  %v8431_v17 = vpop.f32.mrf.mxu3 }
 0xfa3   :  { %v4478_v15 = vpop.f32.mrf.mxu0  ;;  %v4545_v0 = vpop.f32.mrf.mxu1 }
 0xfa8   :  { %v4344_v39 = vpop.f32.mrf.mxu2  ;;  %v4411_v18 = vpop.f32.mrf.mxu3 }
 0xfab   :  { %v4481_v21 = vpop.f32.mrf.mxu0  ;;  %v4548_v28 = vpop.f32.mrf.mxu1 }
 0xfb0   :  { %v4347_v9 = vpop.f32.mrf.mxu2  ;;  %v4414_v49 = vpop.f32.mrf.mxu3 }
 0xfb3   :  { %v4484_v46 = vpop.f32.mrf.mxu0  ;;  %v4551_v14 = vpop.f32.mrf.mxu1 }
 0xfb8   :  { %v4350_v40 = vpop.f32.mrf.mxu2  ;;  %v4417_v37 = vpop.f32.mrf.mxu3 }
 0xfbb   :  { %v4487_v57 = vpop.f32.mrf.mxu0  ;;  %v4554_v35 = vpop.f32.mrf.mxu1 }
 0xfc0   :  { %v4353_v48 = vpop.f32.mrf.mxu2  ;;  %v4420_v31 = vpop.f32.mrf.mxu3 }
 0xfc3   :  { %v4490_v53 = vpop.f32.mrf.mxu0  ;;  %v4557_v43 = vpop.f32.mrf.mxu1 }
 0xfc8   :  { %v4356_v1 = vpop.f32.mrf.mxu2  ;;  %v4423_v32 = vpop.f32.mrf.mxu3 }
 0xfcb   :  { %v4493_v34 = vpop.f32.mrf.mxu0  ;;  %v4560_v27 = vpop.f32.mrf.mxu1 }
 0xfd0   :  { %v4359_v26 = vpop.f32.mrf.mxu2  ;;  %v4426_v44 = vpop.f32.mrf.mxu3 }
 0xfd5   :  { %v4496_v8 = vpop.f32.mrf.mxu0  ;;  %v4563_v61 = vpop.f32.mrf.mxu1 }
 0xfd6   :  { %4760 = vmatpush.msrb.mxu0 %v4496_v8  ;;  %4825 = vmatpush.msrb.mxu1 %v4563_v61  ;;  %v4628_v8 = vld [vmem:[#allocation4 + $0x1f0] sm:$0xff]  ;;  %v4629_v61 = vld [vmem:[#allocation4 + $0x1f8] sm:$0xff] }
 0xfd8   :  { %4761 = vmatpush.msrb.mxu0 %v4493_v34  ;;  %4826 = vmatpush.msrb.mxu1 %v4560_v27  ;;  %v4624_v34 = vld [vmem:[#allocation4 + $0x1d0] sm:$0xff]  ;;  %v4625_v27 = vld [vmem:[#allocation4 + $0x1d8] sm:$0xff] }
 0xfda   :  { %4762 = vmatpush.msrb.mxu0 %v4490_v53  ;;  %4827 = vmatpush.msrb.mxu1 %v4557_v43  ;;  %v4362_v3 = vpop.f32.mrf.mxu2  ;;  %v4429_v54 = vpop.f32.mrf.mxu3  ;;  %v4620_v53 = vld [vmem:[#allocation4 + $0x1b0] sm:$0xff]  ;;  %v4621_v43 = vld [vmem:[#allocation4 + $0x1b8] sm:$0xff] }
 0xfdb   :  { %4630 = vmatpush.msra.mxu2 %v4362_v3  ;;  %4695 = vmatpush.msra.mxu3 %v4429_v54  ;;  %v4626_v3 = vld [vmem:[#allocation4 + $0x1e0] sm:$0xff]  ;;  %v4627_v54 = vld [vmem:[#allocation4 + $0x1e8] sm:$0xff] }
 0xfdc   :  { %4763 = vmatpush.msrb.mxu0 %v4487_v57  ;;  %4828 = vmatpush.msrb.mxu1 %v4554_v35  ;;  %v4616_v57 = vld [vmem:[#allocation4 + $0x190] sm:$0xff]  ;;  %v4617_v35 = vld [vmem:[#allocation4 + $0x198] sm:$0xff] }
 0xfdd   :  { %4631 = vmatpush.msra.mxu2 %v4359_v26  ;;  %4696 = vmatpush.msra.mxu3 %v4426_v44  ;;  %v4622_v26 = vld [vmem:[#allocation4 + $0x1c0] sm:$0xff]  ;;  %v4623_v44 = vld [vmem:[#allocation4 + $0x1c8] sm:$0xff] }
 0xfde   :  { %4764 = vmatpush.msrb.mxu0 %v4484_v46  ;;  %4829 = vmatpush.msrb.mxu1 %v4551_v14  ;;  %v4612_v46 = vld [vmem:[#allocation4 + $0x170] sm:$0xff]  ;;  %v4613_v14 = vld [vmem:[#allocation4 + $0x178] sm:$0xff] }
 0xfdf   :  { %4632 = vmatpush.msra.mxu2 %v4356_v1  ;;  %4697 = vmatpush.msra.mxu3 %v4423_v32  ;;  %v4618_v1 = vld [vmem:[#allocation4 + $0x1a0] sm:$0xff]  ;;  %v4619_v32 = vld [vmem:[#allocation4 + $0x1a8] sm:$0xff] }
 0xfe0   :  { %4765 = vmatpush.msrb.mxu0 %v4481_v21  ;;  %4830 = vmatpush.msrb.mxu1 %v4548_v28  ;;  %v4608_v21 = vld [vmem:[#allocation4 + $0x150] sm:$0xff]  ;;  %v4609_v28 = vld [vmem:[#allocation4 + $0x158] sm:$0xff] }
 0xfe1   :  { %4633 = vmatpush.msra.mxu2 %v4353_v48  ;;  %4698 = vmatpush.msra.mxu3 %v4420_v31  ;;  %v4614_v48 = vld [vmem:[#allocation4 + $0x180] sm:$0xff]  ;;  %v4615_v31 = vld [vmem:[#allocation4 + $0x188] sm:$0xff] }
 0xfe2   :  { %4766 = vmatpush.msrb.mxu0 %v4478_v15  ;;  %4831 = vmatpush.msrb.mxu1 %v4545_v0  ;;  %v4604_v15 = vld [vmem:[#allocation4 + $0x130] sm:$0xff]  ;;  %v4605_v0 = vld [vmem:[#allocation4 + $0x138] sm:$0xff] }
 0xfe3   :  { %4634 = vmatpush.msra.mxu2 %v4350_v40  ;;  %4699 = vmatpush.msra.mxu3 %v4417_v37  ;;  %v4610_v40 = vld [vmem:[#allocation4 + $0x160] sm:$0xff]  ;;  %v4611_v37 = vld [vmem:[#allocation4 + $0x168] sm:$0xff] }
 0xfe4   :  { %4767 = vmatpush.msrb.mxu0 %v4475_v33  ;;  %4832 = vmatpush.msrb.mxu1 %v4542_v52  ;;  %v4600_v33 = vld [vmem:[#allocation4 + $0x110] sm:$0xff]  ;;  %v4601_v52 = vld [vmem:[#allocation4 + $0x118] sm:$0xff] }
 0xfe5   :  { %4635 = vmatpush.msra.mxu2 %v4347_v9  ;;  %4700 = vmatpush.msra.mxu3 %v4414_v49  ;;  %v4606_v9 = vld [vmem:[#allocation4 + $0x140] sm:$0xff]  ;;  %v4607_v49 = vld [vmem:[#allocation4 + $0x148] sm:$0xff] }
 0xfe6   :  { %4768 = vmatpush.msrb.mxu0 %v8421_v12  ;;  %4833 = vmatpush.msrb.mxu1 %v8423_v6  ;;  %v4596_v12 = vld [vmem:[#allocation4 + $0xf0] sm:$0xff]  ;;  %v4597_v6 = vld [vmem:[#allocation4 + $0xf8] sm:$0xff] }
 0xfe7   :  { %4636 = vmatpush.msra.mxu2 %v4344_v39  ;;  %4701 = vmatpush.msra.mxu3 %v4411_v18  ;;  %v4602_v39 = vld [vmem:[#allocation4 + $0x120] sm:$0xff]  ;;  %v4603_v18 = vld [vmem:[#allocation4 + $0x128] sm:$0xff] }
 0xfe8   :  { %4769 = vmatpush.msrb.mxu0 %v8413_v45  ;;  %4834 = vmatpush.msrb.mxu1 %v8415_v38  ;;  %v4592_v45 = vld [vmem:[#allocation4 + $0xd0] sm:$0xff]  ;;  %v4593_v38 = vld [vmem:[#allocation4 + $0xd8] sm:$0xff] }
 0xfe9   :  { %4637 = vmatpush.msra.mxu2 %v8429_v5  ;;  %4702 = vmatpush.msra.mxu3 %v8431_v17  ;;  %v4598_v5 = vld [vmem:[#allocation4 + $0x100] sm:$0xff]  ;;  %v4599_v17 = vld [vmem:[#allocation4 + $0x108] sm:$0xff] }
 0xfea   :  { %4770 = vmatpush.msrb.mxu0 %v8405_v4  ;;  %4835 = vmatpush.msrb.mxu1 %v8407_v42  ;;  %v4588_v4 = vld [vmem:[#allocation4 + $0xb0] sm:$0xff]  ;;  %v4589_v42 = vld [vmem:[#allocation4 + $0xb8] sm:$0xff] }
 0xfeb   :  { %4638 = vmatpush.msra.mxu2 %v8425_v19  ;;  %4703 = vmatpush.msra.mxu3 %v8427_v59  ;;  %v4594_v19 = vld [vmem:[#allocation4 + $0xe0] sm:$0xff]  ;;  %v4595_v59 = vld [vmem:[#allocation4 + $0xe8] sm:$0xff] }
 0xfec   :  { %4771 = vmatpush.msrb.mxu0 %v8397_v51  ;;  %4836 = vmatpush.msrb.mxu1 %v8399_v41  ;;  %v4584_v51 = vld [vmem:[#allocation4 + $0x90] sm:$0xff]  ;;  %v4585_v41 = vld [vmem:[#allocation4 + $0x98] sm:$0xff] }
 0xfed   :  { %4639 = vmatpush.msra.mxu2 %v8417_v7  ;;  %4704 = vmatpush.msra.mxu3 %v8419_v50  ;;  %v4590_v7 = vld [vmem:[#allocation4 + $0xc0] sm:$0xff]  ;;  %v4591_v50 = vld [vmem:[#allocation4 + $0xc8] sm:$0xff] }
 0xfee   :  { %4772 = vmatpush.msrb.mxu0 %v8389_v25  ;;  %4837 = vmatpush.msrb.mxu1 %v8391_v2  ;;  %v4568_v25 = vld [vmem:[#allocation4 + $0x10] sm:$0xff]  ;;  %v4569_v2 = vld [vmem:[#allocation4 + $0x18] sm:$0xff] }
 0xfef   :  { %4640 = vmatpush.msra.mxu2 %v8409_v20  ;;  %4705 = vmatpush.msra.mxu3 %v8411_v58  ;;  %v4586_v20 = vld [vmem:[#allocation4 + $0xa0] sm:$0xff]  ;;  %v4587_v58 = vld [vmem:[#allocation4 + $0xa8] sm:$0xff] }
 0xff0   :  { %4773 = vmatpush.msrb.mxu0 %v8381_v56  ;;  %4838 = vmatpush.msrb.mxu1 %v8383_v60  ;;  %v4570_v56 = vld [vmem:[#allocation4 + $0x20] sm:$0xff]  ;;  %v4571_v60 = vld [vmem:[#allocation4 + $0x28] sm:$0xff] }
 0xff1   :  { %4641 = vmatpush.msra.mxu2 %v8401_v36  ;;  %4706 = vmatpush.msra.mxu3 %v8403_v16  ;;  %v4582_v36 = vld [vmem:[#allocation4 + $0x80] sm:$0xff]  ;;  %v4583_v16 = vld [vmem:[#allocation4 + $0x88] sm:$0xff] }
 0xff2   :  { %4774 = vmatpush.msrb.mxu0 %v8373_v55  ;;  %4839 = vmatpush.msrb.mxu1 %v8375_v47  ;;  %v4566_v55 = vld [vmem:[#allocation4] sm:$0xff]  ;;  %v4567_v47 = vld [vmem:[#allocation4 + $0x8] sm:$0xff] }
 0xff3   :  { %4642 = vmatpush.msra.mxu2 %v8393_v10  ;;  %4707 = vmatpush.msra.mxu3 %v8395_v62  ;;  %v4578_v10 = vld [vmem:[#allocation4 + $0x60] sm:$0xff]  ;;  %v4579_v62 = vld [vmem:[#allocation4 + $0x68] sm:$0xff] }
 0xff4   :  { %4775 = vmatpush.msrb.mxu0 %v8365_v30  ;;  %4840 = vmatpush.msrb.mxu1 %v8367_v13  ;;  %v4572_v30 = vld [vmem:[#allocation4 + $0x30] sm:$0xff]  ;;  %v4573_v13 = vld [vmem:[#allocation4 + $0x38] sm:$0xff] }
 0xff5   :  { %4643 = vmatpush.msra.mxu2 %v8385_v23  ;;  %4708 = vmatpush.msra.mxu3 %v8387_v22  ;;  %v4576_v23 = vld [vmem:[#allocation4 + $0x50] sm:$0xff]  ;;  %v4575_v22 = vld [vmem:[#allocation4 + $0x48] sm:$0xff] }
 0xff6   :  { %4776 = vmatmul.f32.vlgmr.msrb.gmra.mxu0 %v4568_v25  ;;  %4841 = vmatmul.f32.vlgmr.msrb.gmra.mxu1 %v4569_v2 }
 0xff7   :  { %4644 = vmatpush.msra.mxu2 %v8377_v24  ;;  %4709 = vmatpush.msra.mxu3 %v8379_v11  ;;  %v4577_v24 = vld [vmem:[#allocation4 + $0x58] sm:$0xff]  ;;  %v4574_v11 = vld [vmem:[#allocation4 + $0x40] sm:$0xff] }
 0xff9   :  { %4645 = vmatpush.msra.mxu2 %v8369_v63  ;;  %4710 = vmatpush.msra.mxu3 %v8371_v29  ;;  %v4580_v63 = vld [vmem:[#allocation4 + $0x70] sm:$0xff]  ;;  %v4581_v29 = vld [vmem:[#allocation4 + $0x78] sm:$0xff] }
 0xffa   :  { %4646 = vmatmul.f32.vlgmr.msra.gmra.mxu2 %v4566_v55  ;;  %4711 = vmatmul.f32.vlgmr.msra.gmra.mxu3 %v4567_v47 }
 0xffe   :  { %4779 = vmatmul.f32.gmra.mxu0 %v4572_v30  ;;  %4844 = vmatmul.f32.gmra.mxu1 %v4573_v13 }
0x1002   :  { %4649 = vmatmul.f32.gmra.mxu2 %v4570_v56  ;;  %4714 = vmatmul.f32.gmra.mxu3 %v4571_v60 }
0x1006   :  { %4782 = vmatmul.f32.gmra.mxu0 %v4576_v23  ;;  %4847 = vmatmul.f32.gmra.mxu1 %v4577_v24 }
0x100a   :  { %4652 = vmatmul.f32.gmra.mxu2 %v4574_v11  ;;  %4717 = vmatmul.f32.gmra.mxu3 %v4575_v22 }
0x100e   :  { %4785 = vmatmul.f32.gmra.mxu0 %v4580_v63  ;;  %4850 = vmatmul.f32.gmra.mxu1 %v4581_v29 }
0x1012   :  { %4655 = vmatmul.f32.gmra.mxu2 %v4578_v10  ;;  %4720 = vmatmul.f32.gmra.mxu3 %v4579_v62 }
0x1016   :  { %4788 = vmatmul.f32.gmra.mxu0 %v4584_v51  ;;  %4853 = vmatmul.f32.gmra.mxu1 %v4585_v41 }
0x101a   :  { %4658 = vmatmul.f32.gmra.mxu2 %v4582_v36  ;;  %4723 = vmatmul.f32.gmra.mxu3 %v4583_v16 }
0x101e   :  { %4791 = vmatmul.f32.gmra.mxu0 %v4588_v4  ;;  %4856 = vmatmul.f32.gmra.mxu1 %v4589_v42 }
0x1022   :  { %4661 = vmatmul.f32.gmra.mxu2 %v4586_v20  ;;  %4726 = vmatmul.f32.gmra.mxu3 %v4587_v58 }
0x1026   :  { %4794 = vmatmul.f32.gmra.mxu0 %v4592_v45  ;;  %4859 = vmatmul.f32.gmra.mxu1 %v4593_v38 }
0x102a   :  { %4664 = vmatmul.f32.gmra.mxu2 %v4590_v7  ;;  %4729 = vmatmul.f32.gmra.mxu3 %v4591_v50 }
0x102e   :  { %4797 = vmatmul.f32.gmra.mxu0 %v4596_v12  ;;  %4862 = vmatmul.f32.gmra.mxu1 %v4597_v6 }
0x1032   :  { %4667 = vmatmul.f32.gmra.mxu2 %v4594_v19  ;;  %4732 = vmatmul.f32.gmra.mxu3 %v4595_v59 }
0x1036   :  { %4800 = vmatmul.f32.gmra.mxu0 %v4600_v33  ;;  %4865 = vmatmul.f32.gmra.mxu1 %v4601_v52 }
0x103a   :  { %4670 = vmatmul.f32.gmra.mxu2 %v4598_v5  ;;  %4735 = vmatmul.f32.gmra.mxu3 %v4599_v17 }
0x103e   :  { %4803 = vmatmul.f32.gmra.mxu0 %v4604_v15  ;;  %4868 = vmatmul.f32.gmra.mxu1 %v4605_v0 }
0x1042   :  { %4673 = vmatmul.f32.gmra.mxu2 %v4602_v39  ;;  %4738 = vmatmul.f32.gmra.mxu3 %v4603_v18 }
0x1046   :  { %4806 = vmatmul.f32.gmra.mxu0 %v4608_v21  ;;  %4871 = vmatmul.f32.gmra.mxu1 %v4609_v28 }
0x104a   :  { %4676 = vmatmul.f32.gmra.mxu2 %v4606_v9  ;;  %4741 = vmatmul.f32.gmra.mxu3 %v4607_v49 }
0x104e   :  { %4809 = vmatmul.f32.gmra.mxu0 %v4612_v46  ;;  %4874 = vmatmul.f32.gmra.mxu1 %v4613_v14 }
0x1052   :  { %4679 = vmatmul.f32.gmra.mxu2 %v4610_v40  ;;  %4744 = vmatmul.f32.gmra.mxu3 %v4611_v37 }
0x1056   :  { %4812 = vmatmul.f32.gmra.mxu0 %v4616_v57  ;;  %4877 = vmatmul.f32.gmra.mxu1 %v4617_v35 }
0x105a   :  { %4682 = vmatmul.f32.gmra.mxu2 %v4614_v48  ;;  %4747 = vmatmul.f32.gmra.mxu3 %v4615_v31 }
0x105e   :  { %4815 = vmatmul.f32.gmra.mxu0 %v4620_v53  ;;  %4880 = vmatmul.f32.gmra.mxu1 %v4621_v43 }
0x1062   :  { %4685 = vmatmul.f32.gmra.mxu2 %v4618_v1  ;;  %4750 = vmatmul.f32.gmra.mxu3 %v4619_v32 }
0x1066   :  { %4818 = vmatmul.f32.gmra.mxu0 %v4624_v34  ;;  %4883 = vmatmul.f32.gmra.mxu1 %v4625_v27 }
0x106a   :  { %4688 = vmatmul.f32.gmra.mxu2 %v4622_v26  ;;  %4753 = vmatmul.f32.gmra.mxu3 %v4623_v44 }
0x106e   :  { %4821 = vmatmul.f32.gmra.mxu0 %v4628_v8  ;;  %4886 = vmatmul.f32.gmra.mxu1 %v4629_v61 }
0x1072   :  { %4691 = vmatmul.f32.gmra.mxu2 %v4626_v3  ;;  %4756 = vmatmul.f32.gmra.mxu3 %v4627_v54 }
0x1073   :  { %v8467_v25 = vpop.f32.mrf.mxu0  ;;  %v8469_v2 = vpop.f32.mrf.mxu1 }
0x1074   :  { %9055 = vst [vmem:[#allocation25_spill] sm:$0xff] %v8467_v25 }
0x1075   :  { %9056 = vst [vmem:[#allocation33_spill] sm:$0xff] %v8469_v2 }
0x107b   :  { %v8471_v55 = vpop.f32.mrf.mxu0  ;;  %v8473_v47 = vpop.f32.mrf.mxu1 }
0x107c   :  { %9057 = vst [vmem:[#allocation20_spill] sm:$0xff] %v8471_v55 }
0x107d   :  { %9058 = vst [vmem:[#allocation27_spill] sm:$0xff] %v8473_v47  ;;  %v8475_v30 = vpop.f32.mrf.mxu2  ;;  %v8477_v13 = vpop.f32.mrf.mxu3 }
0x107e   :  { %9059 = vst [vmem:[#allocation32_spill] sm:$0xff] %v8475_v30 }
0x107f   :  { %9060 = vst [vmem:[#allocation34_spill] sm:$0xff] %v8477_v13 }
0x1083   :  { %v8479_v56 = vpop.f32.mrf.mxu0  ;;  %v8481_v60 = vpop.f32.mrf.mxu1 }
0x1084   :  { %9061 = vst [vmem:[#allocation30_spill] sm:$0xff] %v8479_v56 }
0x1085   :  { %9062 = vst [vmem:[#allocation23_spill] sm:$0xff] %v8481_v60  ;;  %v8483_v23 = vpop.f32.mrf.mxu2  ;;  %v8485_v24 = vpop.f32.mrf.mxu3 }
0x1086   :  { %9063 = vst [vmem:[#allocation31_spill] sm:$0xff] %v8483_v23 }
0x1087   :  { %9064 = vst [vmem:[#allocation29_spill] sm:$0xff] %v8485_v24 }
0x108b   :  { %v8487_v11 = vpop.f32.mrf.mxu0  ;;  %v8489_v22 = vpop.f32.mrf.mxu1 }
0x108c   :  { %9065 = vst [vmem:[#allocation24_spill] sm:$0xff] %v8487_v11 }
0x108d   :  { %9066 = vst [vmem:[#allocation21_spill] sm:$0xff] %v8489_v22  ;;  %v8491_v63 = vpop.f32.mrf.mxu2  ;;  %v8493_v29 = vpop.f32.mrf.mxu3 }
0x1093   :  { %v8495_v10 = vpop.f32.mrf.mxu0  ;;  %v8497_v62 = vpop.f32.mrf.mxu1 }
0x1094   :  { %9067 = vst [vmem:[#allocation26_spill] sm:$0xff] %v8497_v62 }
0x1095   :  { %v8499_v51 = vpop.f32.mrf.mxu2  ;;  %v8501_v41 = vpop.f32.mrf.mxu3 }
0x109b   :  { %v8503_v36 = vpop.f32.mrf.mxu0  ;;  %v8505_v16 = vpop.f32.mrf.mxu1 }
0x109c   :  { %9068 = vst [vmem:[#allocation22_spill] sm:$0xff] %v8505_v16 }
0x109d   :  { %v8507_v4 = vpop.f32.mrf.mxu2  ;;  %v8509_v42 = vpop.f32.mrf.mxu3 }
0x10a3   :  { %v8511_v20 = vpop.f32.mrf.mxu0  ;;  %v8513_v58 = vpop.f32.mrf.mxu1 }
0x10a5   :  { %v8515_v45 = vpop.f32.mrf.mxu2  ;;  %v8517_v38 = vpop.f32.mrf.mxu3 }
0x10ab   :  { %v8519_v7 = vpop.f32.mrf.mxu0  ;;  %v8521_v50 = vpop.f32.mrf.mxu1 }
0x10ad   :  { %v8523_v12 = vpop.f32.mrf.mxu2  ;;  %v8525_v6 = vpop.f32.mrf.mxu3 }
0x10b3   :  { %v8527_v19 = vpop.f32.mrf.mxu0  ;;  %v8529_v59 = vpop.f32.mrf.mxu1 }
0x10b5   :  { %v4668_v33 = vpop.f32.mrf.mxu2  ;;  %v4733_v52 = vpop.f32.mrf.mxu3 }
0x10bb   :  { %v4804_v5 = vpop.f32.mrf.mxu0  ;;  %v8531_v17 = vpop.f32.mrf.mxu1 }
0x10bd   :  { %v4671_v15 = vpop.f32.mrf.mxu2  ;;  %v4736_v0 = vpop.f32.mrf.mxu3 }
0x10c3   :  { %v4807_v39 = vpop.f32.mrf.mxu0  ;;  %v4872_v18 = vpop.f32.mrf.mxu1 }
0x10c5   :  { %v4674_v21 = vpop.f32.mrf.mxu2  ;;  %v4739_v28 = vpop.f32.mrf.mxu3 }
0x10c6   :  { %v4740_v24 = vadd.f32 %v4739_v28, %v4674_v21  ;;  %v9076_v28 = vld [vmem:[#allocation26_spill] sm:$0xff] }
0x10cb   :  { %v4810_v9 = vpop.f32.mrf.mxu0  ;;  %v4875_v14 = vpop.f32.mrf.mxu1 }
0x10cd   :  { %v4677_v49 = vpop.f32.mrf.mxu2  ;;  %v4742_v46 = vpop.f32.mrf.mxu3 }
0x10ce   :  { %v4743_v13 = vadd.f32 %v4742_v46, %v4677_v49  ;;  %v9077_v46 = vld [vmem:[#allocation20_spill] sm:$0xff] }
0x10d3   :  { %v4813_v57 = vpop.f32.mrf.mxu0  ;;  %v4878_v35 = vpop.f32.mrf.mxu1 }
0x10d5   :  { %v4680_v40 = vpop.f32.mrf.mxu2  ;;  %v4745_v37 = vpop.f32.mrf.mxu3 }
0x10d6   :  { %v4746_v55 = vadd.f32 %v4745_v37, %v4680_v40  ;;  %v9078_v37 = vld [vmem:[#allocation21_spill] sm:$0xff] }
0x10d8   :  { %v4811_v23 = vadd.f32 %v4810_v9, %v4746_v55 }
0x10da   :  { %v8547_v55 = vadd.f32 %v4875_v14, %v4811_v23 }
0x10db   :  { %v4816_v53 = vpop.f32.mrf.mxu0  ;;  %v4881_v43 = vpop.f32.mrf.mxu1 }
0x10dd   :  { %v4683_v48 = vpop.f32.mrf.mxu2  ;;  %v4748_v31 = vpop.f32.mrf.mxu3 }
0x10de   :  { %v4749_v47 = vadd.f32 %v4748_v31, %v4683_v48  ;;  %v4808_v48 = vadd.f32 %v4807_v39, %v4743_v13  ;;  %v9079_v31 = vld [vmem:[#allocation25_spill] sm:$0xff] }
0x10e0   :  { %v4814_v30 = vadd.f32 %v4813_v57, %v4749_v47  ;;  %v4734_v47 = vadd.f32 %v4733_v52, %v4668_v33 }
0x10e2   :  { %v8542_v40 = vadd.f32 %v4878_v35, %v4814_v30  ;;  %v4731_v30 = vadd.f32 %v8525_v6, %v8523_v12  ;;  %v4975_v12 = vmul.f32 %v8547_v55, %v8547_v55  ;;  %v4725_v6 = vadd.f32 %v8509_v42, %v8507_v4 }
0x10e3   :  { %v4819_v34 = vpop.f32.mrf.mxu0  ;;  %v4884_v27 = vpop.f32.mrf.mxu1  ;;  %v4719_v42 = vadd.f32 %v8493_v29, %v8491_v63  ;;  %v9073_v29 = vld [vmem:[#allocation32_spill] sm:$0xff] }
0x10e4   :  { %v4976_v23 = vmul.f32 %v8542_v40, %v8542_v40 }
0x10e5   :  { %v4686_v1 = vpop.f32.mrf.mxu2  ;;  %v4751_v32 = vpop.f32.mrf.mxu3 }
0x10e6   :  { %v4752_v61 = vadd.f32 %v4751_v32, %v4686_v1 }
0x10e8   :  { %v4817_v62 = vadd.f32 %v4816_v53, %v4752_v61  ;;  %v9083_v61 = vld [vmem:[#allocation33_spill] sm:$0xff] }
0x10eb   :  { %v4822_v3 = vpop.f32.mrf.mxu0  ;;  %v4887_v22 = vpop.f32.mrf.mxu1 }
0x10ed   :  { %v4689_v26 = vpop.f32.mrf.mxu2  ;;  %v4754_v44 = vpop.f32.mrf.mxu3 }
0x10ee   :  { %v4755_v8 = vadd.f32 %v4754_v44, %v4689_v26  ;;  %v8537_v26 = vadd.f32 %v4881_v43, %v4817_v62  ;;  %v4799_v62 = vadd.f32 %v8519_v7, %v4734_v47  ;;  %v9080_v43 = vld [vmem:[#allocation23_spill] sm:$0xff]  ;;  %v4892_v47 = vld [vmem:[%s9081_s14 + $0x10] sm:$0xff] }
0x10f0   :  { %v4820_v60 = vadd.f32 %v4819_v34, %v4755_v8 }
0x10f2   :  { %v8533_v16 = vadd.f32 %v4884_v27, %v4820_v60  ;;  %v4977_v60 = vmul.f32 %v8537_v26, %v8537_v26  ;;  %v9082_v27 = vld [vmem:[#allocation27_spill] sm:$0xff] }
0x10f5   :  { %v4692_v54 = vpop.f32.mrf.mxu2  ;;  %v4757_v2 = vpop.f32.mrf.mxu3 }
0x10f6   :  { %v4758_v25 = vadd.f32 %v4757_v2, %v4692_v54  ;;  %v4737_v2 = vadd.f32 %v4736_v0, %v4671_v15  ;;  %v9072_v0 = vld [vmem:[#allocation22_spill] sm:$0xff] }
0x10f8   :  { %v4823_v56 = vadd.f32 %v4822_v3, %v4758_v25  ;;  %v4978_v25 = vmul.f32 %v8533_v16, %v8533_v16  ;;  %v4802_v13 = vadd.f32 %v8527_v19, %v4737_v2  ;;  %v4796_v19 = vadd.f32 %v8511_v20, %v4731_v30  ;;  %v4890_v2 = vld [vmem:[%s9081_s14] sm:$0xff]  ;;  %v4895_v30 = vld [vmem:[%s9081_s14 + $0x28] sm:$0xff] }
0x10f9   :  { %v4790_v20 = vadd.f32 %v8495_v10, %v4725_v6  ;;  %v9074_v10 = vld [vmem:[#allocation34_spill] sm:$0xff] }
0x10fa   :  { %v8535_v11 = vadd.f32 %v4887_v22, %v4823_v56  ;;  %v4805_v56 = vadd.f32 %v4804_v5, %v4740_v24  ;;  %v8555_v22 = vadd.f32 %v4872_v18, %v4808_v48  ;;  %v4728_v24 = vadd.f32 %v8517_v38, %v8515_v45  ;;  %v9075_v18 = vld [vmem:[#allocation30_spill] sm:$0xff] }
0x10fb   :  { %v8573_v52 = vadd.f32 %v8529_v59, %v4802_v13  ;;  %v4722_v38 = vadd.f32 %v8501_v41, %v8499_v51  ;;  %v8582_v5 = vadd.f32 %v8521_v50, %v4799_v62  ;;  %v8591_v59 = vadd.f32 %v8513_v58, %v4796_v19  ;;  %v9069_v41 = vld [vmem:[#allocation31_spill] sm:$0xff]  ;;  %v4896_v13 = vld [vmem:[%s9081_s14 + $0x30] sm:$0xff] }
0x10fc   :  { %v4979_v1 = vmul.f32 %v8535_v11, %v8535_v11  ;;  %4898 = vmatpush.msrb.mxu2 %v8535_v11  ;;  %v8564_v33 = vadd.f32 %v8531_v17, %v4805_v56  ;;  %v4974_v45 = vmul.f32 %v8555_v22, %v8555_v22  ;;  %v4793_v7 = vadd.f32 %v8503_v36, %v4728_v24  ;;  %v9070_v36 = vld [vmem:[#allocation29_spill] sm:$0xff]  ;;  %v9071_v17 = vld [vmem:[#allocation24_spill] sm:$0xff]  ;;  %v4893_v56 = vld [vmem:[%s9081_s14 + $0x18] sm:$0xff] }
0x10fd   :  { %v4972_v51 = vmul.f32 %v8573_v52, %v8573_v52  ;;  %v4716_v50 = vadd.f32 %v9070_v36, %v9069_v41  ;;  %v4787_v15 = vadd.f32 %v9071_v17, %v4722_v38  ;;  %v4971_v63 = vmul.f32 %v8582_v5, %v8582_v5 }
0x10fe   :  { %4899 = vmatpush.msrb.mxu2 %v8533_v16  ;;  %4980 = vmatpush.msrb.mxu3 %v4979_v1  ;;  %v4973_v4 = vmul.f32 %v8564_v33, %v8564_v33  ;;  %v8600_v39 = vadd.f32 %v9072_v0, %v4793_v7  ;;  %v4713_v58 = vadd.f32 %v9074_v10, %v9073_v29 }
0x10ff   :  { %v4784_v21 = vadd.f32 %v9075_v18, %v4719_v42  ;;  %v8609_v9 = vadd.f32 %v9076_v28, %v4790_v20  ;;  %v4970_v49 = vmul.f32 %v8591_v59, %v8591_v59  ;;  %v4781_v14 = vadd.f32 %v9077_v46, %v4716_v50 }
0x1100   :  { %4900 = vmatpush.msrb.mxu2 %v8537_v26  ;;  %4981 = vmatpush.msrb.mxu3 %v4978_v25  ;;  %v8616_v57 = vadd.f32 %v9078_v37, %v4787_v15  ;;  %v4969_v35 = vmul.f32 %v8600_v39, %v8600_v39  ;;  %v4778_v53 = vadd.f32 %v9079_v31, %v4713_v58  ;;  %v4891_v25 = vld [vmem:[%s9081_s14 + $0x8] sm:$0xff] }
0x1101   :  { %v8623_v32 = vadd.f32 %v9080_v43, %v4784_v21  ;;  %v4968_v34 = vmul.f32 %v8609_v9, %v8609_v9  ;;  %v8629_v44 = vadd.f32 %v9082_v27, %v4781_v14 }
0x1102   :  { %4901 = vmatpush.msrb.mxu2 %v8542_v40  ;;  %4982 = vmatpush.msrb.mxu3 %v4977_v60  ;;  %v4967_v8 = vmul.f32 %v8616_v57, %v8616_v57  ;;  %v8635_v3 = vadd.f32 %v9083_v61, %v4778_v53  ;;  %v4894_v60 = vld [vmem:[%s9081_s14 + $0x20] sm:$0xff] }
0x1103   :  { %v4966_v54 = vmul.f32 %v8623_v32, %v8623_v32  ;;  %v4965_v1 = vmul.f32 %v8629_v44, %v8629_v44 }
0x1104   :  { %4902 = vmatpush.msrb.mxu2 %v8547_v55  ;;  %4983 = vmatpush.msrb.mxu3 %v4976_v23  ;;  %v4964_v48 = vmul.f32 %v8635_v3, %v8635_v3  ;;  %v4897_v23 = vld [vmem:[%s9081_s14 + $0x38] sm:$0xff] }
0x1106   :  { %4903 = vmatpush.msrb.mxu2 %v8555_v22  ;;  %4984 = vmatpush.msrb.mxu3 %v4975_v12 }
0x1108   :  { %4904 = vmatpush.msrb.mxu2 %v8564_v33  ;;  %4985 = vmatpush.msrb.mxu3 %v4974_v45 }
0x110a   :  { %4905 = vmatpush.msrb.mxu2 %v8573_v52  ;;  %4986 = vmatpush.msrb.mxu3 %v4973_v4 }
0x110c   :  { %4906 = vmatpush.msrb.mxu2 %v8582_v5  ;;  %4987 = vmatpush.msrb.mxu3 %v4972_v51 }
0x110e   :  { %4907 = vmatpush.msrb.mxu2 %v8591_v59  ;;  %4988 = vmatpush.msrb.mxu3 %v4971_v63 }
0x1110   :  { %4908 = vmatpush.msrb.mxu2 %v8600_v39  ;;  %4989 = vmatpush.msrb.mxu3 %v4970_v49 }
0x1112   :  { %4909 = vmatpush.msrb.mxu2 %v8609_v9  ;;  %4990 = vmatpush.msrb.mxu3 %v4969_v35 }
0x1114   :  { %4910 = vmatpush.msrb.mxu2 %v8616_v57  ;;  %4991 = vmatpush.msrb.mxu3 %v4968_v34 }
0x1116   :  { %4911 = vmatpush.msrb.mxu2 %v8623_v32  ;;  %4992 = vmatpush.msrb.mxu3 %v4967_v8 }
0x1118   :  { %4912 = vmatpush.msrb.mxu2 %v8629_v44  ;;  %4993 = vmatpush.msrb.mxu3 %v4966_v54 }
0x111a   :  { %4913 = vmatpush.msrb.mxu2 %v8635_v3  ;;  %4994 = vmatpush.msrb.mxu3 %v4965_v1 }
0x111b   :  { %4914 = vmatmul.f32.vlgmr.msrb.gmra.mxu2 %v4890_v2 }
0x111c   :  { %4995 = vmatpush.msrb.mxu3 %v4964_v48 }
0x111d   :  { %4996 = vmatmul.f32.vlgmr.msrb.gmra.mxu3 %v4890_v2 }
0x1123   :  { %4917 = vmatmul.f32.gmra.mxu2 %v4891_v25 }
0x1125   :  { %4999 = vmatmul.f32.gmra.mxu3 %v4891_v25 }
0x112b   :  { %4920 = vmatmul.f32.gmra.mxu2 %v4892_v47 }
0x112d   :  { %5002 = vmatmul.f32.gmra.mxu3 %v4892_v47 }
0x1133   :  { %4923 = vmatmul.f32.gmra.mxu2 %v4893_v56 }
0x1135   :  { %5005 = vmatmul.f32.gmra.mxu3 %v4893_v56 }
0x113b   :  { %4926 = vmatmul.f32.gmra.mxu2 %v4894_v60 }
0x113d   :  { %5008 = vmatmul.f32.gmra.mxu3 %v4894_v60 }
0x1143   :  { %4929 = vmatmul.f32.gmra.mxu2 %v4895_v30 }
0x1145   :  { %5011 = vmatmul.f32.gmra.mxu3 %v4895_v30 }
0x114b   :  { %4932 = vmatmul.f32.gmra.mxu2 %v4896_v13 }
0x114d   :  { %5014 = vmatmul.f32.gmra.mxu3 %v4896_v13 }
0x1153   :  { %4935 = vmatmul.f32.gmra.mxu2 %v4897_v23 }
0x1155   :  { %5017 = vmatmul.f32.gmra.mxu3 %v4897_v23 }
0x119e   :  { %v4915_v24 = vpop.f32.mrf.mxu2 }
0x119f   :  { %v4940_v35 = vsel %vm4939_vm6, %v4915_v24, 0.0 }
0x11a0   :  { %v4997_v62 = vpop.f32.mrf.mxu3 }
0x11a1   :  { %v5021_v31 = vsel %vm4939_vm6, %v4997_v62, 0.0 }
0x11a6   :  { %v4918_v12 = vpop.f32.mrf.mxu2 }
0x11a7   :  { %v4943_v37 = vsel %vm4939_vm6, %v4918_v12, 0.0 }
0x11a8   :  { %v5000_v6 = vpop.f32.mrf.mxu3 }
0x11a9   :  { %v5024_v53 = vsel %vm4939_vm6, %v5000_v6, 0.0 }
0x11ae   :  { %v4921_v19 = vpop.f32.mrf.mxu2 }
0x11af   :  { %v4946_v45 = vsel %vm4939_vm6, %v4921_v19, 0.0 }
0x11b0   :  { %v5003_v38 = vpop.f32.mrf.mxu3  ;;  %4947 = vadd.xlane.f32.xlu1 %v4946_v45 }
0x11b1   :  { %v5027_v14 = vsel %vm4939_vm6, %v5003_v38, 0.0 }
0x11b6   :  { %v4924_v7 = vpop.f32.mrf.mxu2 }
0x11b7   :  { %v4949_v4 = vsel %vm4939_vm6, %v4924_v7, 0.0 }
0x11b8   :  { %v5006_v42 = vpop.f32.mrf.mxu3  ;;  %4950 = vadd.xlane.f32.xlu2 %v4949_v4 }
0x11b9   :  { %v5030_v46 = vsel %vm4939_vm6, %v5006_v42, 0.0 }
0x11be   :  { %v4927_v20 = vpop.f32.mrf.mxu2 }
0x11bf   :  { %v4952_v51 = vsel %vm4939_vm6, %v4927_v20, 0.0 }
0x11c0   :  { %v5009_v41 = vpop.f32.mrf.mxu3  ;;  %4953 = vadd.xlane.f32.xlu0 %v4952_v51 }
0x11c1   :  { %v5033_v50 = vsel %vm4939_vm6, %v5009_v41, 0.0 }
0x11c6   :  { %v4930_v36 = vpop.f32.mrf.mxu2 }
0x11c7   :  { %v4955_v17 = vsel %vm4939_vm6, %v4930_v36, 0.0 }
0x11c8   :  { %v5012_v15 = vpop.f32.mrf.mxu3  ;;  %5034 = vadd.xlane.f32.xlu0 %v5033_v50  ;;  %4956 = vadd.xlane.f32.xlu1 %v4955_v17 }
0x11c9   :  { %v5036_v63 = vsel %vm4939_vm6, %v5012_v15, 0.0 }
0x11ce   :  { %v4933_v0 = vpop.f32.mrf.mxu2 }
0x11cf   :  { %v4958_v29 = vsel %vm4939_vm6, %v4933_v0, 0.0 }
0x11d0   :  { %v5015_v10 = vpop.f32.mrf.mxu3  ;;  %5037 = vadd.xlane.f32.xlu1 %v5036_v63  ;;  %4959 = vadd.xlane.f32.xlu2 %v4958_v29 }
0x11d1   :  { %v5039_v18 = vsel %vm4939_vm6, %v5015_v10, 0.0 }
0x11d6   :  { %v4936_v58 = vpop.f32.mrf.mxu2 }
0x11d7   :  { %v4961_v21 = vsel %vm4939_vm6, %v4936_v58, 0.0 }
0x11d8   :  { %v5018_v28 = vpop.f32.mrf.mxu3  ;;  %5040 = vadd.xlane.f32.xlu2 %v5039_v18  ;;  %4962 = vadd.xlane.f32.xlu1 %v4961_v21 }
0x11d9   :  { %v5042_v49 = vsel %vm4939_vm6, %v5018_v28, 0.0 }
0x11da   :  { %5043 = vadd.xlane.f32.xlu0 %v5042_v49 }
0x11e0   :  { %5031 = vadd.xlane.f32.xlu2 %v5030_v46  ;;  %5028 = vadd.xlane.f32.xlu1 %v5027_v14 }
0x11e2   :  { %4944 = vadd.xlane.f32.xlu0 %v4943_v37 }
0x11e8   :  { %4941 = vadd.xlane.f32.xlu2 %v4940_v35  ;;  %5022 = vadd.xlane.f32.xlu1 %v5021_v31 }
0x11ea   :  { %5025 = vadd.xlane.f32.xlu0 %v5024_v53 }
0x1223   :  { %v4948_v43 = vpop.xlane.xlu1 %4947 }
0x1224   :  { %v8694_v41 = vmul.f32 0.125, %v4948_v43 }
0x1226   :  { %v5063_v10 = vmul.f32 %v8694_v41, %v8694_v41 }
0x122b   :  { %v4951_v8 = vpop.xlane.xlu2 %4950 }
0x122c   :  { %v8696_v36 = vmul.f32 0.125, %v4951_v8 }
0x122e   :  { %v5064_v58 = vmul.f32 %v8696_v36, %v8696_v36 }
0x1233   :  { %v4954_v34 = vpop.xlane.xlu0 %4953 }
0x1234   :  { %v8670_v27 = vmul.f32 0.125, %v4954_v34 }
0x1236   :  { %v5065_v2 = vmul.f32 %v8670_v27, %v8670_v27 }
0x123b   :  { %v5035_v61 = vpop.xlane.xlu0 %5034  ;;  %v4957_v54 = vpop.xlane.xlu1 %4956 }
0x123c   :  { %v5057_v1 = vmul.f32 0.125, %v5035_v61  ;;  %v8674_v25 = vmul.f32 0.125, %v4957_v54 }
0x123e   :  { %v5073_v48 = vsub.f32 %v5057_v1, %v5065_v2  ;;  %v5066_v30 = vmul.f32 %v8674_v25, %v8674_v25 }
0x1240   :  { %v8676_v47 = vadd.f32 1e-05, %v5073_v48 }
0x1242   :  { %6489 = vrsqrt.f32 %v8676_v47  ;;  %vm5131_vm10 = vweird.f32 %v8676_v47 }
0x1243   :  { %v5038_v56 = vpop.xlane.xlu1 %5037  ;;  %v4960_v60 = vpop.xlane.xlu2 %4959 }
0x1244   :  { %v5058_v13 = vmul.f32 0.125, %v5038_v56  ;;  %v8683_v62 = vmul.f32 0.125, %v4960_v60 }
0x1246   :  { %v5074_v23 = vsub.f32 %v5058_v13, %v5066_v30  ;;  %v5067_v19 = vmul.f32 %v8683_v62, %v8683_v62 }
0x1248   :  { %v8681_v24 = vadd.f32 1e-05, %v5074_v23  ;;  %v8690_v7 = vpop.eup %6489 }
0x1249   :  { %v5126_v17 = vmul.f32 %v8690_v7, %v8676_v47  ;;  %vm5132_vm8 = vweird.f32 %v8690_v7 }
0x124a   :  { %6491 = vrsqrt.f32 %v8681_v24  ;;  %vm5141_vm9 = vweird.f32 %v8681_v24  ;;  %vm5133_vm4 = vmor %vm5131_vm10, %vm5132_vm8 }
0x124b   :  { %v5041_v12 = vpop.xlane.xlu2 %5040  ;;  %v4963_v6 = vpop.xlane.xlu1 %4962  ;;  %v5127_v49 = vmul.f32 %v8690_v7, %v5126_v17 }
0x124c   :  { %v5059_v45 = vmul.f32 0.125, %v5041_v12  ;;  %v8688_v38 = vmul.f32 0.125, %v4963_v6 }
0x124d   :  { %v5044_v4 = vpop.xlane.xlu0 %5043  ;;  %v5128_v34 = vmul.f32 0.5, %v5127_v49 }
0x124e   :  { %v5075_v42 = vsub.f32 %v5059_v45, %v5067_v19  ;;  %v5068_v20 = vmul.f32 %v8688_v38, %v8688_v38  ;;  %v5060_v51 = vmul.f32 0.125, %v5044_v4 }
0x124f   :  { %v5129_v23 = vsub.f32 1.5, %v5128_v34 }
0x1250   :  { %v8698_v50 = vpop.eup %6491  ;;  %v8702_v15 = vadd.f32 1e-05, %v5075_v42  ;;  %v5076_v0 = vsub.f32 %v5060_v51, %v5068_v20 }
0x1251   :  { %v5136_v63 = vmul.f32 %v8698_v50, %v8681_v24  ;;  %vm5142_vm11 = vweird.f32 %v8698_v50  ;;  %v5171_v24 = vld [vmem:[%s9084_s19 + $0x30] sm:$0xff] }
0x1252   :  { %6493 = vrsqrt.f32 %v8702_v15  ;;  %v8707_v29 = vadd.f32 1e-05, %v5076_v0  ;;  %vm5151_vm13 = vweird.f32 %v8702_v15  ;;  %vm8755_vm15 = vmor %vm5141_vm9, %vm5142_vm11 }
0x1253   :  { %v5137_v18 = vmul.f32 %v8698_v50, %v5136_v63  ;;  %v5032_v21 = vpop.xlane.xlu2 %5031  ;;  %v5029_v28 = vpop.xlane.xlu1 %5028 }
0x1254   :  { %6495 = vrsqrt.f32 %v8707_v29  ;;  %v5056_v46 = vmul.f32 0.125, %v5032_v21  ;;  %v5055_v14 = vmul.f32 0.125, %v5029_v28  ;;  %v5130_v21 = vmul.f32 %v8690_v7, %v5129_v23 }
0x1255   :  { %v4945_v37 = vpop.xlane.xlu0 %4944  ;;  %v5138_v53 = vmul.f32 0.5, %v5137_v18  ;;  %vm5161_vm0 = vweird.f32 %v8707_v29 }
0x1256   :  { %v5072_v35 = vsub.f32 %v5056_v46, %v5064_v58  ;;  %v5071_v31 = vsub.f32 %v5055_v14, %v5063_v10  ;;  %v8725_v2 = vmul.f32 0.125, %v4945_v37 }
0x1257   :  { %v5139_v48 = vsub.f32 1.5, %v5138_v53 }
0x1258   :  { %v8716_v43 = vpop.eup %6493  ;;  %v8718_v8 = vadd.f32 1e-05, %v5072_v35  ;;  %v8720_v61 = vadd.f32 1e-05, %v5071_v31  ;;  %v5062_v4 = vmul.f32 %v8725_v2, %v8725_v2 }
0x1259   :  { %v5146_v54 = vmul.f32 %v8716_v43, %v8702_v15  ;;  %vm5152_vm12 = vweird.f32 %v8716_v43  ;;  %v5140_v63 = vmul.f32 %v8698_v50, %v5139_v48  ;;  %v5172_v48 = vld [vmem:[%s9084_s19 + $0x38] sm:$0xff]  ;;  %v5186_v15 = vld [vmem:[%s9089_s6 + $0x28] sm:$0xff] }
0x125a   :  { %v6496_v1 = vpop.eup %6495  ;;  %6497 = vrsqrt.f32 %v8718_v8  ;;  %vm8768_vm3 = vmor %vm5151_vm13, %vm5152_vm12  ;;  %vm5121_vm10 = vweird.f32 %v8718_v8  ;;  %vm5111_vm8 = vweird.f32 %v8720_v61 }
0x125b   :  { %v5147_v56 = vmul.f32 %v8716_v43, %v5146_v54  ;;  %v5156_v60 = vmul.f32 %v6496_v1, %v8707_v29  ;;  %6499 = vrsqrt.f32 %v8720_v61  ;;  %v4942_v30 = vpop.xlane.xlu2 %4941  ;;  %v5023_v13 = vpop.xlane.xlu1 %5022  ;;  %vm5162_vm14 = vweird.f32 %v6496_v1 }
0x125c   :  { %v8731_v12 = vmul.f32 0.125, %v4942_v30  ;;  %v5053_v20 = vmul.f32 0.125, %v5023_v13  ;;  %vm5163_vm5 = vmor %vm5161_vm0, %vm5162_vm14  ;;  %v5134_v13 = vsel %vm5133_vm4, %v8690_v7, %v5130_v21 }
0x125d   :  { %v5148_v6 = vmul.f32 0.5, %v5147_v56  ;;  %v5157_v19 = vmul.f32 %v6496_v1, %v5156_v60  ;;  %v5026_v45 = vpop.xlane.xlu0 %5025  ;;  %v5144_v56 = vsel %vm8755_vm15, %v8698_v50, %v5140_v63  ;;  %v5170_v60 = vld [vmem:[%s9084_s19 + $0x28] sm:$0xff]  ;;  %v5168_v63 = vld [vmem:[%s9084_s19 + $0x18] sm:$0xff] }
0x125e   :  { %v5061_v42 = vmul.f32 %v8731_v12, %v8731_v12  ;;  %v5054_v51 = vmul.f32 0.125, %v5026_v45  ;;  %v5178_v47 = vmul.f32 %v5170_v60, %v5144_v56  ;;  %v5184_v60 = vld [vmem:[%s9089_s6 + $0x18] sm:$0xff] }
0x125f   :  { %v5149_v17 = vsub.f32 1.5, %v5148_v6  ;;  %v5158_v0 = vmul.f32 0.5, %v5157_v19 }
0x1260   :  { %v8742_v10 = vpop.eup %6497  ;;  %v5069_v58 = vsub.f32 %v5053_v20, %v5061_v42  ;;  %v5070_v18 = vsub.f32 %v5054_v51, %v5062_v4  ;;  %v5188_v42 = vld [vmem:[%s9089_s6 + $0x38] sm:$0xff] }
0x1261   :  { %v8746_v28 = vpop.eup %6499  ;;  %v5159_v49 = vsub.f32 1.5, %v5158_v0  ;;  %v5116_v46 = vmul.f32 %v8742_v10, %v8718_v8  ;;  %v5150_v14 = vmul.f32 %v8716_v43, %v5149_v17  ;;  %vm5122_vm2 = vweird.f32 %v8742_v10  ;;  %v5187_v0 = vld [vmem:[%s9089_s6 + $0x30] sm:$0xff] }
0x1262   :  { %v5106_v37 = vmul.f32 %v8746_v28, %v8720_v61  ;;  %v8762_v35 = vadd.f32 1e-05, %v5069_v58  ;;  %v8764_v31 = vadd.f32 1e-05, %v5070_v18  ;;  %vm5112_vm7 = vweird.f32 %v8746_v28  ;;  %vm5123_vm9 = vmor %vm5121_vm10, %vm5122_vm2 }
0x1263   :  { %v5160_v34 = vmul.f32 %v6496_v1, %v5159_v49  ;;  %v5117_v54 = vmul.f32 %v8742_v10, %v5116_v46  ;;  %v5154_v29 = vsel %vm8768_vm3, %v8716_v43, %v5150_v14  ;;  %v5169_v43 = vld [vmem:[%s9084_s19 + $0x20] sm:$0xff]  ;;  %v5194_v18 = vmul.f32 %v5178_v47, %v8674_v25  ;;  %vm5113_vm11 = vmor %vm5111_vm8, %vm5112_vm7 }
0x1264   :  { %v5107_v30 = vmul.f32 %v8746_v28, %v5106_v37  ;;  %6501 = vrsqrt.f32 %v8762_v35  ;;  %v5179_v6 = vmul.f32 %v5171_v24, %v5154_v29  ;;  %v5177_v20 = vmul.f32 %v5169_v43, %v5134_v13  ;;  %v5183_v43 = vld [vmem:[%s9089_s6 + $0x10] sm:$0xff] }
0x1265   :  { %v5118_v23 = vmul.f32 0.5, %v5117_v54  ;;  %6503 = vrsqrt.f32 %v8764_v31  ;;  %v5164_v50 = vsel %vm5163_vm5, %v6496_v1, %v5160_v34  ;;  %v5185_v54 = vld [vmem:[%s9089_s6 + $0x20] sm:$0xff]  ;;  %vm5091_vm14 = vweird.f32 %v8762_v35 }
0x1266   :  { %v5108_v19 = vmul.f32 0.5, %v5107_v30  ;;  %v5180_v45 = vmul.f32 %v5172_v48, %v5164_v50  ;;  %v5195_v51 = vmul.f32 %v5179_v6, %v8683_v62  ;;  %v5193_v61 = vmul.f32 %v5177_v20, %v8670_v27 }
0x1267   :  { %v5119_v4 = vsub.f32 1.5, %v5118_v23  ;;  %vm5101_vm15 = vweird.f32 %v8764_v31 }
0x1268   :  { %v5109_v7 = vsub.f32 1.5, %v5108_v19  ;;  %5277 = vmatpush.msra.mxu0 %v5180_v45  ;;  %v5196_v17 = vmul.f32 %v5180_v45, %v8688_v38  ;;  %v5167_v38 = vld [vmem:[%s9084_s19 + $0x10] sm:$0xff]  ;;  %v5203_v14 = vsub.f32 %v5187_v0, %v5195_v51  ;;  %v5201_v30 = vsub.f32 %v5185_v54, %v5193_v61  ;;  %v5166_v45 = vld [vmem:[%s9084_s19 + $0x8] sm:$0xff] }
0x1269   :  { %v5120_v1 = vmul.f32 %v8742_v10, %v5119_v4  ;;  %v5182_v51 = vld [vmem:[%s9089_s6 + $0x8] sm:$0xff]  ;;  %v5219_v61 = vld [vmem:[%s6733_s12 + $0x70] sm:$0xff] }
0x126a   :  { %v6502_v58 = vpop.eup %6501  ;;  %5278 = vmatpush.msra.mxu0 %v5179_v6  ;;  %v5204_v62 = vsub.f32 %v5188_v42, %v5196_v17  ;;  %v5110_v21 = vmul.f32 %v8746_v28, %v5109_v7  ;;  %v5165_v6 = vld [vmem:[%s9084_s19] sm:$0xff] }
0x126b   :  { %v6504_v49 = vpop.eup %6503  ;;  %v5086_v46 = vmul.f32 %v6502_v58, %v8762_v35  ;;  %v5124_v8 = vsel %vm5123_vm9, %v8742_v10, %v5120_v1  ;;  %v5202_v10 = vsub.f32 %v5186_v15, %v5194_v18  ;;  %vm5092_vm12 = vweird.f32 %v6502_v58  ;;  %v5205_v35 = vld [vmem:[%s6733_s12] sm:$0xff]  ;;  %v5211_v18 = vld [vmem:[%s6733_s12 + $0x30] sm:$0xff]  ;;  %v5218_v15 = vld [vmem:[%s6733_s12 + $0x68] sm:$0xff] }
0x126c   :  { %v5096_v37 = vmul.f32 %v6504_v49, %v8764_v31  ;;  %5279 = vmatpush.msra.mxu0 %v5178_v47  ;;  %5342 = vmatpush.msra.mxu1 %v5204_v62  ;;  %v5176_v25 = vmul.f32 %v5168_v63, %v5124_v8  ;;  %v5114_v53 = vsel %vm5113_vm11, %v8746_v28, %v5110_v21  ;;  %vm5102_vm13 = vweird.f32 %v6504_v49  ;;  %vm5093_vm0 = vmor %vm5091_vm14, %vm5092_vm12  ;;  %v5181_v17 = vld [vmem:[%s9089_s6] sm:$0xff]  ;;  %v5206_v63 = vld [vmem:[%s6733_s12 + $0x8] sm:$0xff] }
0x126d   :  { %v5087_v24 = vmul.f32 %v6502_v58, %v5086_v46  ;;  %v5175_v34 = vmul.f32 %v5167_v38, %v5114_v53  ;;  %vm5103_vm3 = vmor %vm5101_vm15, %vm5102_vm13  ;;  %v5210_v62 = vld [vmem:[%s6733_s12 + $0x28] sm:$0xff]  ;;  %v5212_v21 = vld [vmem:[%s6733_s12 + $0x38] sm:$0xff] }
0x126e   :  { %v5097_v48 = vmul.f32 %v6504_v49, %v5096_v37  ;;  %5280 = vmatpush.msra.mxu0 %v5177_v20  ;;  %5343 = vmatpush.msra.mxu1 %v5203_v14  ;;  %v5192_v29 = vmul.f32 %v5176_v25, %v8696_v36  ;;  %v5213_v38 = vld [vmem:[%s6733_s12 + $0x40] sm:$0xff]  ;;  %v5215_v46 = vld [vmem:[%s6733_s12 + $0x50] sm:$0xff]  ;;  %v5216_v14 = vld [vmem:[%s6733_s12 + $0x58] sm:$0xff] }
0x126f   :  { %v5088_v56 = vmul.f32 0.5, %v5087_v24  ;;  %v5191_v13 = vmul.f32 %v5175_v34, %v8694_v41  ;;  %v5217_v8 = vld [vmem:[%s6733_s12 + $0x60] sm:$0xff]  ;;  %v5220_v37 = vld [vmem:[%s6733_s12 + $0x78] sm:$0xff] }
0x1270   :  { %v5098_v27 = vmul.f32 0.5, %v5097_v48  ;;  %5281 = vmatpush.msra.mxu0 %v5176_v25  ;;  %5344 = vmatpush.msra.mxu1 %v5202_v10  ;;  %v5200_v50 = vsub.f32 %v5184_v60, %v5192_v29 }
0x1271   :  { %v5089_v28 = vsub.f32 1.5, %v5088_v56  ;;  %v5199_v41 = vsub.f32 %v5183_v43, %v5191_v13 }
0x1272   :  { %v5099_v23 = vsub.f32 1.5, %v5098_v27  ;;  %5282 = vmatpush.msra.mxu0 %v5175_v34  ;;  %5345 = vmatpush.msra.mxu1 %v5201_v30 }
0x1273   :  { %v5090_v36 = vmul.f32 %v6502_v58, %v5089_v28 }
0x1274   :  { %5346 = vmatpush.msra.mxu1 %v5200_v50  ;;  %v5100_v19 = vmul.f32 %v6504_v49, %v5099_v23 }
0x1275   :  { %v5094_v47 = vsel %vm5093_vm0, %v6502_v58, %v5090_v36  ;;  %v5209_v58 = vld [vmem:[%s6733_s12 + $0x20] sm:$0xff] }
0x1276   :  { %5347 = vmatpush.msra.mxu1 %v5199_v41  ;;  %v5104_v4 = vsel %vm5103_vm3, %v6504_v49, %v5100_v19  ;;  %v5173_v42 = vmul.f32 %v5165_v6, %v5094_v47  ;;  %v5214_v49 = vld [vmem:[%s6733_s12 + $0x48] sm:$0xff] }
0x1277   :  { %v5174_v20 = vmul.f32 %v5166_v45, %v5104_v4 }
0x1278   :  { %v5189_v31 = vmul.f32 %v5173_v42, %v8731_v12  ;;  %v5208_v12 = vld [vmem:[%s6733_s12 + $0x18] sm:$0xff] }
0x1279   :  { %5283 = vmatpush.msra.mxu0 %v5174_v20  ;;  %v5190_v7 = vmul.f32 %v5174_v20, %v8725_v2  ;;  %v5207_v2 = vld [vmem:[%s6733_s12 + $0x10] sm:$0xff]  ;;  %v6419_v20 = vld [vmem:[%s6743_s27 + $0x4] sm:$0xf] }
0x127a   :  { %v5197_v1 = vsub.f32 %v5181_v17, %v5189_v31 }
0x127b   :  { %5284 = vmatpush.msra.mxu0 %v5173_v42  ;;  %v5198_v0 = vsub.f32 %v5182_v51, %v5190_v7  ;;  %v5639_v42 = vld [vmem:[%s6743_s27] sm:$0xf] }
0x127c   :  { %6370 = vmatmul.msk.f32.vlgmr.msra.gmra.mxu0 %vm611_vm1, %v5205_v35 }
0x127d   :  { %5348 = vmatpush.msra.mxu1 %v5198_v0 }
0x127f   :  { %5349 = vmatpush.msra.mxu1 %v5197_v1 }
0x1280   :  { %6386 = vmatmul.msk.f32.vlgmr.msra.gmra.mxu1 %vm611_vm1, %v5205_v35 }
0x1284   :  { %6371 = vmatmul.msk.f32.gmra.mxu0 %vm611_vm1, %v5206_v63 }
0x1288   :  { %6387 = vmatmul.msk.f32.gmra.mxu1 %vm611_vm1, %v5206_v63 }
0x128c   :  { %6372 = vmatmul.msk.f32.gmra.mxu0 %vm611_vm1, %v5207_v2 }
0x1290   :  { %6388 = vmatmul.msk.f32.gmra.mxu1 %vm611_vm1, %v5207_v2 }
0x1294   :  { %6373 = vmatmul.msk.f32.gmra.mxu0 %vm611_vm1, %v5208_v12 }
0x1298   :  { %6389 = vmatmul.msk.f32.gmra.mxu1 %vm611_vm1, %v5208_v12 }
0x129c   :  { %6374 = vmatmul.msk.f32.gmra.mxu0 %vm611_vm1, %v5209_v58 }
0x12a0   :  { %6390 = vmatmul.msk.f32.gmra.mxu1 %vm611_vm1, %v5209_v58 }
0x12a4   :  { %6375 = vmatmul.msk.f32.gmra.mxu0 %vm611_vm1, %v5210_v62 }
0x12a8   :  { %6391 = vmatmul.msk.f32.gmra.mxu1 %vm611_vm1, %v5210_v62 }
0x12ac   :  { %6376 = vmatmul.msk.f32.gmra.mxu0 %vm611_vm1, %v5211_v18 }
0x12b0   :  { %6392 = vmatmul.msk.f32.gmra.mxu1 %vm611_vm1, %v5211_v18 }
0x12b4   :  { %6377 = vmatmul.msk.f32.gmra.mxu0 %vm611_vm1, %v5212_v21 }
0x12b8   :  { %6393 = vmatmul.msk.f32.gmra.mxu1 %vm611_vm1, %v5212_v21 }
0x12bc   :  { %6378 = vmatmul.msk.f32.gmra.mxu0 %vm611_vm1, %v5213_v38 }
0x12c0   :  { %6394 = vmatmul.msk.f32.gmra.mxu1 %vm611_vm1, %v5213_v38 }
0x12c4   :  { %6379 = vmatmul.msk.f32.gmra.mxu0 %vm611_vm1, %v5214_v49 }
0x12c8   :  { %6395 = vmatmul.msk.f32.gmra.mxu1 %vm611_vm1, %v5214_v49 }
0x12cc   :  { %6380 = vmatmul.msk.f32.gmra.mxu0 %vm611_vm1, %v5215_v46 }
0x12d0   :  { %6396 = vmatmul.msk.f32.gmra.mxu1 %vm611_vm1, %v5215_v46 }
0x12d4   :  { %6381 = vmatmul.msk.f32.gmra.mxu0 %vm611_vm1, %v5216_v14 }
0x12d8   :  { %6397 = vmatmul.msk.f32.gmra.mxu1 %vm611_vm1, %v5216_v14 }
0x12dc   :  { %6382 = vmatmul.msk.f32.gmra.mxu0 %vm611_vm1, %v5217_v8 }
0x12e0   :  { %6398 = vmatmul.msk.f32.gmra.mxu1 %vm611_vm1, %v5217_v8 }
0x12e4   :  { %6383 = vmatmul.msk.f32.gmra.mxu0 %vm611_vm1, %v5218_v15 }
0x12e8   :  { %6399 = vmatmul.msk.f32.gmra.mxu1 %vm611_vm1, %v5218_v15 }
0x12ec   :  { %6384 = vmatmul.msk.f32.gmra.mxu0 %vm611_vm1, %v5219_v61 }
0x12f0   :  { %6400 = vmatmul.msk.f32.gmra.mxu1 %vm611_vm1, %v5219_v61 }
0x12f4   :  { %6385 = vmatmul.msk.f32.gmra.mxu0 %vm611_vm1, %v5220_v37 }
0x12f8   :  { %6401 = vmatmul.msk.f32.gmra.mxu1 %vm611_vm1, %v5220_v37  ;;  %vm5688_vm1 = vcmask 1043456  }
0x12f9   :  { %v5286_v25 = vpop.f32.mrf.mxu0  ;;  %6402 = vmatpush.msk.msra.mxu2 %vm5688_vm1, %v5639_v42  ;;  %6420 = vmatpush.msk.msra.mxu3 %vm5688_vm1, %v6419_v20 }
0x12fa   :  { %5401 = vperm.xlu2 %6473, %v5286_v25  }
0x12fd   :  { %v5351_v53 = vpop.f32.mrf.mxu1 }
0x12fe   :  { %5497 = vperm.xlu0 %6474, %v5351_v53  }
0x1301   :  { %v5289_v24 = vpop.f32.mrf.mxu0 }
0x1302   :  { %5406 = vperm.xlu1 %6472, %v5289_v24  }
0x1305   :  { %v5354_v34 = vpop.f32.mrf.mxu1 }
0x1306   :  { %5502 = vperm.xlu0 %6474, %v5354_v34  }
0x1309   :  { %v5292_v54 = vpop.f32.mrf.mxu0 }
0x130a   :  { %5411 = vperm.xlu2 %6473, %v5292_v54  }
0x130d   :  { %v5357_v48 = vpop.f32.mrf.mxu1 }
0x130e   :  { %5507 = vperm.xlu1 %6472, %v5357_v48  }
0x1311   :  { %v5295_v10 = vpop.f32.mrf.mxu0 }
0x1312   :  { %5416 = vperm.xlu0 %6474, %v5295_v10  }
0x1315   :  { %v5360_v29 = vpop.f32.mrf.mxu1 }
0x1316   :  { %5512 = vperm.xlu2 %6473, %v5360_v29  }
0x1319   :  { %v5298_v56 = vpop.f32.mrf.mxu0 }
0x131a   :  { %5421 = vperm.xlu1 %6472, %v5298_v56  }
0x131d   :  { %v5363_v60 = vpop.f32.mrf.mxu1 }
0x131e   :  { %5517 = vperm.xlu0 %6474, %v5363_v60  }
0x1321   :  { %v5301_v27 = vpop.f32.mrf.mxu0 }
0x1322   :  { %5426 = vperm.xlu2 %6473, %v5301_v27  }
0x1325   :  { %v5366_v30 = vpop.f32.mrf.mxu1 }
0x1326   :  { %5522 = vperm.xlu1 %6472, %v5366_v30  }
0x1329   :  { %v5304_v13 = vpop.f32.mrf.mxu0 }
0x132a   :  { %5431 = vperm.xlu0 %6474, %v5304_v13  }
0x132d   :  { %v5369_v28 = vpop.f32.mrf.mxu1 }
0x132e   :  { %5527 = vperm.xlu2 %6473, %v5369_v28  }
0x1331   :  { %v5307_v43 = vpop.f32.mrf.mxu0 }
0x1332   :  { %5436 = vperm.xlu1 %6472, %v5307_v43  }
0x1335   :  { %v5372_v23 = vpop.f32.mrf.mxu1 }
0x1336   :  { %5532 = vperm.xlu0 %6474, %v5372_v23  }
0x1339   :  { %v5310_v50 = vpop.f32.mrf.mxu0 }
0x133a   :  { %5441 = vperm.xlu2 %6473, %v5310_v50  }
0x133d   :  { %v5375_v36 = vpop.f32.mrf.mxu1 }
0x133e   :  { %5537 = vperm.xlu1 %6472, %v5375_v36  }
0x1341   :  { %v5313_v6 = vpop.f32.mrf.mxu0 }
0x1342   :  { %5446 = vperm.xlu0 %6474, %v5313_v6  }
0x1345   :  { %v5378_v41 = vpop.f32.mrf.mxu1 }
0x1346   :  { %5542 = vperm.xlu2 %6473, %v5378_v41  }
0x1349   :  { %v5316_v19 = vpop.f32.mrf.mxu0 }
0x134a   :  { %5451 = vperm.xlu1 %6472, %v5316_v19  }
0x134d   :  { %v5381_v45 = vpop.f32.mrf.mxu1 }
0x134e   :  { %5547 = vperm.xlu0 %6474, %v5381_v45  }
0x1351   :  { %v5319_v47 = vpop.f32.mrf.mxu0 }
0x1352   :  { %5456 = vperm.xlu2 %6473, %v5319_v47  }
0x1354   :  { %v5402_v0 = vpop.permute.xlu2 %5401 }
0x1355   :  { %v5384_v4 = vpop.f32.mrf.mxu1  ;;  %v5479_v63 = vmul.f32 %v5402_v0, %v8635_v3 }
0x1356   :  { %5552 = vperm.xlu1 %6472, %v5384_v4  }
0x1359   :  { %v5322_v51 = vpop.f32.mrf.mxu0 }
0x135a   :  { %5461 = vperm.xlu0 %6474, %v5322_v51  }
0x135d   :  { %v5387_v35 = vpop.f32.mrf.mxu1 }
0x135e   :  { %5557 = vperm.xlu2 %6473, %v5387_v35  }
0x1361   :  { %v5325_v7 = vpop.f32.mrf.mxu0 }
0x1362   :  { %5466 = vperm.xlu1 %6472, %v5325_v7  }
0x1364   :  { %v5412_v8 = vpop.permute.xlu2 %5411 }
0x1365   :  { %v5390_v31 = vpop.f32.mrf.mxu1  ;;  %v5481_v61 = vmul.f32 %v5412_v8, %v8623_v32 }
0x1366   :  { %5562 = vperm.xlu0 %6474, %v5390_v31  }
0x1369   :  { %v5328_v17 = vpop.f32.mrf.mxu0 }
0x136a   :  { %5471 = vperm.xlu2 %6473, %v5328_v17  }
0x136d   :  { %v5393_v1 = vpop.f32.mrf.mxu1 }
0x136e   :  { %5567 = vperm.xlu1 %6472, %v5393_v1  }
0x1370   :  { %v5498_v2 = vpop.permute.xlu0 %5497  ;;  %v5513_v54 = vpop.permute.xlu2 %5512 }
0x1371   :  { %v5575_v12 = vadd.f32 %v5498_v2, %v5479_v63  ;;  %v5331_v58 = vpop.f32.mrf.mxu0 }
0x1372   :  { %5476 = vperm.xlu0 %6474, %v5331_v58  }
0x1373   :  { %vm5591_vm4 = vcmp.ge.f32.partialorder %v5575_v12, 0.0  ;;  %v5607_v62 = vmul.f32 0.2, %v5575_v12 }
0x1374   :  { %v5407_v18 = vpop.permute.xlu1 %5406 }
0x1375   :  { %v5623_v21 = vsel %vm5591_vm4, %v5575_v12, %v5607_v62  ;;  %v5396_v38 = vpop.f32.mrf.mxu1  ;;  %v5480_v49 = vmul.f32 %v5407_v18, %v8629_v44 }
0x1376   :  { %6403 = vmatmul.msk.f32.vlgmr.msra.gmra.mxu2 %vm4939_vm6, %v5623_v21  ;;  %6421 = vmatmul.msk.f32.vlgmr.msra.gmra.mxu3 %vm4939_vm6, %v5623_v21 }
0x1377   :  { %5572 = vperm.xlu2 %6473, %v5396_v38  }
0x1378   :  { %v5503_v46 = vpop.permute.xlu0 %5502 }
0x1379   :  { %v5576_v14 = vadd.f32 %v5503_v46, %v5480_v49 }
0x137b   :  { %vm5592_vm5 = vcmp.ge.f32.partialorder %v5576_v14, 0.0  ;;  %v5608_v3 = vmul.f32 0.2, %v5576_v14 }
0x137c   :  { %v5427_v30 = vpop.permute.xlu2 %5426 }
0x137d   :  { %v5624_v15 = vsel %vm5592_vm5, %v5576_v14, %v5608_v3  ;;  %v5484_v28 = vmul.f32 %v5427_v30, %v8600_v39 }
0x137e   :  { %6404 = vmatmul.msk.f32.gmra.mxu2 %vm4939_vm6, %v5624_v15  ;;  %6422 = vmatmul.msk.f32.gmra.mxu3 %vm4939_vm6, %v5624_v15 }
0x1380   :  { %v5508_v37 = vpop.permute.xlu1 %5507 }
0x1381   :  { %v5577_v25 = vadd.f32 %v5508_v37, %v5481_v61 }
0x1383   :  { %vm5593_vm2 = vcmp.ge.f32.partialorder %v5577_v25, 0.0  ;;  %v5609_v53 = vmul.f32 0.2, %v5577_v25 }
0x1384   :  { %v5417_v24 = vpop.permute.xlu0 %5416 }
0x1385   :  { %v5482_v44 = vmul.f32 %v5417_v24, %v8616_v57  ;;  %v5625_v34 = vsel %vm5593_vm2, %v5577_v25, %v5609_v53 }
0x1386   :  { %6405 = vmatmul.msk.f32.gmra.mxu2 %vm4939_vm6, %v5625_v34  ;;  %6423 = vmatmul.msk.f32.gmra.mxu3 %vm4939_vm6, %v5625_v34 }
0x1387   :  { %v5578_v48 = vadd.f32 %v5513_v54, %v5482_v44 }
0x1388   :  { %v5528_v41 = vpop.permute.xlu2 %5527 }
0x1389   :  { %v5610_v10 = vmul.f32 0.2, %v5578_v48  ;;  %vm5594_vm7 = vcmp.ge.f32.partialorder %v5578_v48, 0.0 }
0x138b   :  { %v5626_v56 = vsel %vm5594_vm7, %v5578_v48, %v5610_v10  ;;  %vm5888_vm7 = vcmask 15360  }
0x138c   :  { %v5422_v29 = vpop.permute.xlu1 %5421 }
0x138d   :  { %v5483_v32 = vmul.f32 %v5422_v29, %v8609_v9 }
0x138e   :  { %6406 = vmatmul.msk.f32.gmra.mxu2 %vm4939_vm6, %v5626_v56  ;;  %6424 = vmatmul.msk.f32.gmra.mxu3 %vm4939_vm6, %v5626_v56 }
0x1390   :  { %v5518_v60 = vpop.permute.xlu0 %5517 }
0x1391   :  { %v5579_v27 = vadd.f32 %v5518_v60, %v5483_v32 }
0x1393   :  { %vm5595_vm10 = vcmp.ge.f32.partialorder %v5579_v27, 0.0  ;;  %v5611_v57 = vmul.f32 0.2, %v5579_v27 }
0x1394   :  { %v5442_v51 = vpop.permute.xlu2 %5441 }
0x1395   :  { %v5627_v13 = vsel %vm5595_vm10, %v5579_v27, %v5611_v57  ;;  %v5487_v7 = vmul.f32 %v5442_v51, %v8573_v52 }
0x1396   :  { %6407 = vmatmul.msk.f32.gmra.mxu2 %vm4939_vm6, %v5627_v13  ;;  %6425 = vmatmul.msk.f32.gmra.mxu3 %vm4939_vm6, %v5627_v13 }
0x1398   :  { %v5523_v43 = vpop.permute.xlu1 %5522 }
0x1399   :  { %v5580_v23 = vadd.f32 %v5523_v43, %v5484_v28 }
0x139b   :  { %vm5596_vm8 = vcmp.ge.f32.partialorder %v5580_v23, 0.0  ;;  %v5612_v50 = vmul.f32 0.2, %v5580_v23 }
0x139c   :  { %v5432_v36 = vpop.permute.xlu0 %5431 }
0x139d   :  { %v5485_v6 = vmul.f32 %v5432_v36, %v8591_v59  ;;  %v5628_v9 = vsel %vm5596_vm8, %v5580_v23, %v5612_v50 }
0x139e   :  { %6408 = vmatmul.msk.f32.gmra.mxu2 %vm4939_vm6, %v5628_v9  ;;  %6426 = vmatmul.msk.f32.gmra.mxu3 %vm4939_vm6, %v5628_v9 }
0x139f   :  { %v5581_v19 = vadd.f32 %v5528_v41, %v5485_v6 }
0x13a0   :  { %v5543_v2 = vpop.permute.xlu2 %5542 }
0x13a1   :  { %v5613_v45 = vmul.f32 0.2, %v5581_v19  ;;  %vm5597_vm9 = vcmp.ge.f32.partialorder %v5581_v19, 0.0 }
0x13a3   :  { %v5629_v4 = vsel %vm5597_vm9, %v5581_v19, %v5613_v45 }
0x13a4   :  { %v5437_v47 = vpop.permute.xlu1 %5436 }
0x13a5   :  { %v5486_v39 = vmul.f32 %v5437_v47, %v8582_v5 }
0x13a6   :  { %6409 = vmatmul.msk.f32.gmra.mxu2 %vm4939_vm6, %v5629_v4  ;;  %6427 = vmatmul.msk.f32.gmra.mxu3 %vm4939_vm6, %v5629_v4 }
0x13a8   :  { %v5533_v42 = vpop.permute.xlu0 %5532 }
0x13a9   :  { %v5582_v20 = vadd.f32 %v5533_v42, %v5486_v39 }
0x13ab   :  { %vm5598_vm11 = vcmp.ge.f32.partialorder %v5582_v20, 0.0  ;;  %v5614_v59 = vmul.f32 0.2, %v5582_v20 }
0x13ac   :  { %v5457_v49 = vpop.permute.xlu2 %5456 }
0x13ad   :  { %v5630_v35 = vsel %vm5598_vm11, %v5582_v20, %v5614_v59  ;;  %v5490_v14 = vmul.f32 %v5457_v49, %v8547_v55  ;;  %v5828_v49 = vld [vmem:[%s6738_s30 + $0x8] sm:$0xff] }
0x13ae   :  { %6410 = vmatmul.msk.f32.gmra.mxu2 %vm4939_vm6, %v5630_v35  ;;  %6428 = vmatmul.msk.f32.gmra.mxu3 %vm4939_vm6, %v5630_v35 }
0x13b0   :  { %v5538_v31 = vpop.permute.xlu1 %5537 }
0x13b1   :  { %v5583_v17 = vadd.f32 %v5538_v31, %v5487_v7 }
0x13b3   :  { %vm5599_vm12 = vcmp.ge.f32.partialorder %v5583_v17, 0.0  ;;  %v5615_v0 = vmul.f32 0.2, %v5583_v17 }
0x13b4   :  { %v5447_v1 = vpop.permute.xlu0 %5446 }
0x13b5   :  { %v5488_v63 = vmul.f32 %v5447_v1, %v8564_v33  ;;  %v5631_v5 = vsel %vm5599_vm12, %v5583_v17, %v5615_v0 }
0x13b6   :  { %6411 = vmatmul.msk.f32.gmra.mxu2 %vm4939_vm6, %v5631_v5  ;;  %6429 = vmatmul.msk.f32.gmra.mxu3 %vm4939_vm6, %v5631_v5 }
0x13b7   :  { %v5584_v12 = vadd.f32 %v5543_v2, %v5488_v63 }
0x13b8   :  { %v5558_v25 = vpop.permute.xlu2 %5557 }
0x13b9   :  { %v5616_v58 = vmul.f32 0.2, %v5584_v12  ;;  %vm5600_vm13 = vcmp.ge.f32.partialorder %v5584_v12, 0.0 }
0x13bb   :  { %v5632_v18 = vsel %vm5600_vm13, %v5584_v12, %v5616_v58 }
0x13bc   :  { %v5452_v62 = vpop.permute.xlu1 %5451 }
0x13bd   :  { %v5489_v52 = vmul.f32 %v5452_v62, %v8555_v22 }
0x13be   :  { %6412 = vmatmul.msk.f32.gmra.mxu2 %vm4939_vm6, %v5632_v18  ;;  %6430 = vmatmul.msk.f32.gmra.mxu3 %vm4939_vm6, %v5632_v18 }
0x13c0   :  { %v5548_v21 = vpop.permute.xlu0 %5547 }
0x13c1   :  { %v5585_v38 = vadd.f32 %v5548_v21, %v5489_v52 }
0x13c3   :  { %vm5601_vm14 = vcmp.ge.f32.partialorder %v5585_v38, 0.0  ;;  %v5617_v33 = vmul.f32 0.2, %v5585_v38 }
0x13c4   :  { %v5472_v10 = vpop.permute.xlu2 %5471 }
0x13c5   :  { %v5633_v46 = vsel %vm5601_vm14, %v5585_v38, %v5617_v33  ;;  %v5493_v56 = vmul.f32 %v5472_v10, %v8533_v16  ;;  %v5827_v33 = vld [vmem:[%s6738_s30] sm:$0xff] }
0x13c6   :  { %6413 = vmatmul.msk.f32.gmra.mxu2 %vm4939_vm6, %v5633_v46  ;;  %6431 = vmatmul.msk.f32.gmra.mxu3 %vm4939_vm6, %v5633_v46 }
0x13c8   :  { %v5553_v3 = vpop.permute.xlu1 %5552 }
0x13c9   :  { %v5586_v8 = vadd.f32 %v5553_v3, %v5490_v14 }
0x13cb   :  { %vm5602_vm15 = vcmp.ge.f32.partialorder %v5586_v8, 0.0  ;;  %v5618_v15 = vmul.f32 0.2, %v5586_v8 }
0x13cc   :  { %v5462_v61 = vpop.permute.xlu0 %5461 }
0x13cd   :  { %v5491_v37 = vmul.f32 %v5462_v61, %v8542_v40  ;;  %v5634_v22 = vsel %vm5602_vm15, %v5586_v8, %v5618_v15 }
0x13ce   :  { %6414 = vmatmul.msk.f32.gmra.mxu2 %vm4939_vm6, %v5634_v22  ;;  %6432 = vmatmul.msk.f32.gmra.mxu3 %vm4939_vm6, %v5634_v22 }
0x13cf   :  { %v5587_v53 = vadd.f32 %v5558_v25, %v5491_v37 }
0x13d1   :  { %v5619_v24 = vmul.f32 0.2, %v5587_v53  ;;  %vm5603_vm0 = vcmp.ge.f32.partialorder %v5587_v53, 0.0  ;;  %v5573_v13 = vpop.permute.xlu2 %5572 }
0x13d3   :  { %v5635_v34 = vsel %vm5603_vm0, %v5587_v53, %v5619_v24 }
0x13d4   :  { %v5467_v44 = vpop.permute.xlu1 %5466 }
0x13d5   :  { %v5492_v55 = vmul.f32 %v5467_v44, %v8537_v26 }
0x13d6   :  { %6415 = vmatmul.msk.f32.gmra.mxu2 %vm4939_vm6, %v5635_v34  ;;  %6433 = vmatmul.msk.f32.gmra.mxu3 %vm4939_vm6, %v5635_v34 }
0x13d8   :  { %v5563_v54 = vpop.permute.xlu0 %5562 }
0x13d9   :  { %v5588_v48 = vadd.f32 %v5563_v54, %v5492_v55 }
0x13db   :  { %vm5604_vm3 = vcmp.ge.f32.partialorder %v5588_v48, 0.0  ;;  %v5620_v40 = vmul.f32 0.2, %v5588_v48 }
0x13dd   :  { %v5636_v29 = vsel %vm5604_vm3, %v5588_v48, %v5620_v40 }
0x13de   :  { %6416 = vmatmul.msk.f32.gmra.mxu2 %vm4939_vm6, %v5636_v29  ;;  %6434 = vmatmul.msk.f32.gmra.mxu3 %vm4939_vm6, %v5636_v29 }
0x13e0   :  { %v5568_v32 = vpop.permute.xlu1 %5567 }
0x13e1   :  { %v5589_v60 = vadd.f32 %v5568_v32, %v5493_v56 }
0x13e3   :  { %vm5605_vm1 = vcmp.ge.f32.partialorder %v5589_v60, 0.0  ;;  %v5621_v27 = vmul.f32 0.2, %v5589_v60 }
0x13e4   :  { %v5477_v57 = vpop.permute.xlu0 %5476 }
0x13e5   :  { %v5494_v30 = vmul.f32 %v5477_v57, %v8535_v11  ;;  %v5637_v26 = vsel %vm5605_vm1, %v5589_v60, %v5621_v27 }
0x13e6   :  { %6417 = vmatmul.msk.f32.gmra.mxu2 %vm4939_vm6, %v5637_v26  ;;  %6435 = vmatmul.msk.f32.gmra.mxu3 %vm4939_vm6, %v5637_v26 }
0x13e7   :  { %v5590_v28 = vadd.f32 %v5573_v13, %v5494_v30 }
0x13e9   :  { %v5622_v43 = vmul.f32 0.2, %v5590_v28  ;;  %vm5606_vm4 = vcmp.ge.f32.partialorder %v5590_v28, 0.0 }
0x13eb   :  { %v5638_v23 = vsel %vm5606_vm4, %v5590_v28, %v5622_v43 }
0x13ee   :  { %6418 = vmatmul.msk.f32.gmra.mxu2 %vm4939_vm6, %v5638_v23  ;;  %6436 = vmatmul.msk.f32.gmra.mxu3 %vm4939_vm6, %v5638_v23 }
0x13f9   :  { %v8924_v16 = vpop.f32.mrf.mxu2  ;;  %v8926_v50 = vpop.f32.mrf.mxu3 }
0x1401   :  { %v5712_v36 = vpop.f32.mrf.mxu2  ;;  %v5782_v11 = vpop.f32.mrf.mxu3 }
0x1409   :  { %v5715_v6 = vpop.f32.mrf.mxu2  ;;  %v5785_v9 = vpop.f32.mrf.mxu3 }
0x1411   :  { %v5718_v41 = vpop.f32.mrf.mxu2  ;;  %v5788_v19 = vpop.f32.mrf.mxu3 }
0x1419   :  { %v5721_v45 = vpop.f32.mrf.mxu2  ;;  %v5791_v47 = vpop.f32.mrf.mxu3 }
0x1421   :  { %v5724_v4 = vpop.f32.mrf.mxu2  ;;  %v5794_v39 = vpop.f32.mrf.mxu3 }
0x1429   :  { %v5727_v42 = vpop.f32.mrf.mxu2  ;;  %v5797_v20 = vpop.f32.mrf.mxu3 }
0x1431   :  { %v5730_v59 = vpop.f32.mrf.mxu2  ;;  %v5800_v51 = vpop.f32.mrf.mxu3 }
0x1439   :  { %v5733_v35 = vpop.f32.mrf.mxu2  ;;  %v5803_v7 = vpop.f32.mrf.mxu3 }
0x1441   :  { %v5736_v31 = vpop.f32.mrf.mxu2  ;;  %v5806_v17 = vpop.f32.mrf.mxu3 }
0x1449   :  { %v5739_v0 = vpop.f32.mrf.mxu2  ;;  %v5809_v1 = vpop.f32.mrf.mxu3 }
0x1451   :  { %v5742_v63 = vpop.f32.mrf.mxu2  ;;  %v5812_v5 = vpop.f32.mrf.mxu3 }
0x1459   :  { %v5745_v2 = vpop.f32.mrf.mxu2  ;;  %v5815_v12 = vpop.f32.mrf.mxu3 }
0x1461   :  { %v5748_v58 = vpop.f32.mrf.mxu2  ;;  %v5818_v62 = vpop.f32.mrf.mxu3 }
0x1469   :  { %v5751_v18 = vpop.f32.mrf.mxu2  ;;  %v5821_v52 = vpop.f32.mrf.mxu3 }
0x1471   :  { %v5754_v21 = vpop.f32.mrf.mxu2  ;;  %v5824_v38 = vpop.f32.mrf.mxu3 }
0x1472   :  { %5829 = vmatpush.msrb.mxu0 %v5754_v21  ;;  %5849 = vmatpush.msrb.mxu1 %v5824_v38 }
0x1474   :  { %5830 = vmatpush.msrb.mxu0 %v5751_v18  ;;  %5850 = vmatpush.msrb.mxu1 %v5821_v52 }
0x1476   :  { %5831 = vmatpush.msrb.mxu0 %v5748_v58  ;;  %5851 = vmatpush.msrb.mxu1 %v5818_v62 }
0x1478   :  { %5832 = vmatpush.msrb.mxu0 %v5745_v2  ;;  %5852 = vmatpush.msrb.mxu1 %v5815_v12 }
0x147a   :  { %5833 = vmatpush.msrb.mxu0 %v5742_v63  ;;  %5853 = vmatpush.msrb.mxu1 %v5812_v5 }
0x147c   :  { %5834 = vmatpush.msrb.mxu0 %v5739_v0  ;;  %5854 = vmatpush.msrb.mxu1 %v5809_v1 }
0x147e   :  { %5835 = vmatpush.msrb.mxu0 %v5736_v31  ;;  %5855 = vmatpush.msrb.mxu1 %v5806_v17 }
0x1480   :  { %5836 = vmatpush.msrb.mxu0 %v5733_v35  ;;  %5856 = vmatpush.msrb.mxu1 %v5803_v7 }
0x1482   :  { %5837 = vmatpush.msrb.mxu0 %v5730_v59  ;;  %5857 = vmatpush.msrb.mxu1 %v5800_v51 }
0x1484   :  { %5838 = vmatpush.msrb.mxu0 %v5727_v42  ;;  %5858 = vmatpush.msrb.mxu1 %v5797_v20 }
0x1486   :  { %5839 = vmatpush.msrb.mxu0 %v5724_v4  ;;  %5859 = vmatpush.msrb.mxu1 %v5794_v39 }
0x1488   :  { %5840 = vmatpush.msrb.mxu0 %v5721_v45  ;;  %5860 = vmatpush.msrb.mxu1 %v5791_v47 }
0x148a   :  { %5841 = vmatpush.msrb.mxu0 %v5718_v41  ;;  %5861 = vmatpush.msrb.mxu1 %v5788_v19 }
0x148c   :  { %5842 = vmatpush.msrb.mxu0 %v5715_v6  ;;  %5862 = vmatpush.msrb.mxu1 %v5785_v9 }
0x148e   :  { %5843 = vmatpush.msrb.mxu0 %v5712_v36  ;;  %5863 = vmatpush.msrb.mxu1 %v5782_v11 }
0x1490   :  { %5844 = vmatpush.msrb.mxu0 %v8924_v16  ;;  %5864 = vmatpush.msrb.mxu1 %v8926_v50 }
0x1491   :  { %5845 = vmatmul.f32.vlgmr.msrb.gmra.mxu0 %v5827_v33  ;;  %5865 = vmatmul.f32.vlgmr.msrb.gmra.mxu1 %v5828_v49 }
0x150e   :  { %v5846_v46 = vpop.f32.mrf.mxu0  ;;  %v5866_v14 = vpop.f32.mrf.mxu1 }
0x150f   :  { %v5867_v3 = vadd.f32 %v5866_v14, %v5846_v46 }
0x1511   :  { %v6437_v8 = vmul.f32 -1.442695, %v5867_v3 }
0x1513   :  { %6505 = vpow2.f32 %v6437_v8 }
0x1519   :  { %v6506_v15 = vpop.eup %6505 }
0x151a   :  { %v5872_v61 = vadd.f32 1.0, %v6506_v15 }
0x151c   :  { %6507 = vrcp.f32 %v5872_v61  ;;  %v5884_v53 = vand.u32 2147483648, %v5872_v61  ;;  %v5882_v44 = vand.u32 2147483647, %v5872_v61  ;;  %vm5878_vm5 = vweird.f32 %v5872_v61 }
0x151e   :  { %v5885_v55 = vor.u32 1.1754944e-38, %v5884_v53  ;;  %vm5883_vm10 = vcmp.eq.f32.partialorder %v5882_v44, 8.507059e+37 }
0x1522   :  { %v6508_v37 = vpop.eup %6507 }
0x1523   :  { %v5874_v22 = vmul.f32 %v6508_v37, %v5872_v61  ;;  %vm5879_vm6 = vweird.f32 %v6508_v37 }
0x1524   :  { %vm5880_vm2 = vmor %vm5878_vm5, %vm5879_vm6 }
0x1525   :  { %v5875_v25 = vsub.f32 1.0, %v5874_v22 }
0x1527   :  { %v5876_v24 = vmul.f32 %v6508_v37, %v5875_v25 }
0x1529   :  { %v5877_v34 = vadd.f32 %v6508_v37, %v5876_v24 }
0x152b   :  { %v5881_v54 = vsel %vm5880_vm2, %v6508_v37, %v5877_v34 }
0x152c   :  { %v5886_v48 = vsel %vm5883_vm10, %v5885_v55, %v5881_v54 }
0x152d   :  { %5889 = vst.msk [vmem:[%s6748_s24] sm:$0xff] %vm5888_vm7, %v5886_v48 }
0x152e   :  { %5894 = vsyncpa [#allocation3], 1 }
0x152f   :  { %5895 = vsyncpa [#allocation5], 1 }

</bundles_post_ra>
